<compile_context>
chip_gen: v5e
topology: v5e:2x2
jax: 0.10.0
libtpu: 0.0.40
codegen_flags: <defaults>
</compile_context>

<pallas_src>
import jax
import jax.numpy as jnp
from jax.experimental import pallas as pl
from jax.experimental.pallas import tpu as pltpu

# ---------------- model hyper-parameters (small, consistent with the module) --
E = 32            # embedding_size
NUM_HEADS = 4
DH = E // NUM_HEADS
NUM_ENC = 2       # num_encoder_layers
NUM_DEC = 2       # num_decoder_layers
FF = 64           # forward_expansion (dim_feedforward)
SRC_VOCAB = 50
TRG_VOCAB = 60
V_PAD = 128       # lane-dense padded vocab width for the output projection
SRC_PAD_IDX = 1
MAX_LEN = 16
S_SRC = 10
S_TRG = 8
BATCH = 2
LN_EPS = 1e-5
NEG_INF = -1e9
SCALE = 1.0 / (DH ** 0.5)


# ---------------- in-kernel helpers -------------------------------------------

def _layer_norm(x, g, b):
    """LayerNorm over last dim (biased variance, matching PyTorch)."""
    mean = jnp.mean(x, axis=-1, keepdims=True)
    var = jnp.mean((x - mean) ** 2, axis=-1, keepdims=True)
    return (x - mean) * jax.lax.rsqrt(var + LN_EPS) * g + b


def _softmax(s):
    s = s - jnp.max(s, axis=-1, keepdims=True)
    p = jnp.exp(s)
    return p / jnp.sum(p, axis=-1, keepdims=True)   # exact divide (PyTorch parity)


def _mha(x_q, x_kv, wqkv, bqkv, wo, bo, mask):
    """Multi-head attention incl. output projection, fully in-registers.

    x_q: (Sq, E), x_kv: (Sk, E).  wqkv: (E, 3E), bqkv: (1, 3E) (Q|K|V stacked
    along columns, contiguous Dh chunks per head inside each E block),
    wo: (E, E), bo: (1, E).  mask: additive, broadcastable to (Sq, Sk) or None.
    QKV projection is ONE fused matmul; the out-projection is accumulated as
    sum_h o_h @ Wo[h*Dh:(h+1)*Dh, :] (mathematically identical to concat @ Wo).
    """
    if x_q is x_kv:   # self-attention: single fused (S,E)@(E,3E) projection
        qkv = jnp.dot(x_q, wqkv, preferred_element_type=jnp.float32) + bqkv
        q, k, v = qkv[:, :E], qkv[:, E:2 * E], qkv[:, 2 * E:]
    else:             # cross-attention: Q from x_q, fused KV from x_kv
        q = jnp.dot(x_q, wqkv[:, :E], preferred_element_type=jnp.float32) + bqkv[:, :E]
        kv = jnp.dot(x_kv, wqkv[:, E:], preferred_element_type=jnp.float32) + bqkv[:, E:]
        k, v = kv[:, :E], kv[:, E:]

    out = jnp.zeros((x_q.shape[0], E), jnp.float32) + bo
    for h in range(NUM_HEADS):
        sl = slice(h * DH, (h + 1) * DH)
        s = jax.lax.dot_general(q[:, sl], k[:, sl], (((1,), (1,)), ((), ())),
                                preferred_element_type=jnp.float32) * SCALE
        if mask is not None:
            s = s + mask
        p = _softmax(s)
        o = jnp.dot(p, v[:, sl], preferred_element_type=jnp.float32)      # (Sq, DH)
        out = out + jnp.dot(o, wo[sl, :], preferred_element_type=jnp.float32)
    return out


def _ffn(x, w1, b1, w2, b2):
    h = jnp.maximum(jnp.dot(x, w1, preferred_element_type=jnp.float32) + b1, 0.0)
    return jnp.dot(h, w2, preferred_element_type=jnp.float32) + b2


# ---------------- single fused forward kernel ---------------------------------

def _fused_forward_kernel(mask_ref, src_ref, trg_ref, *refs):
    (e_wqkv, e_bqkv, e_wo, e_bo, e_ln1, e_ln2, e_w1, e_b1, e_w2, e_b2,
     d_swqkv, d_sbqkv, d_swo, d_sbo,
     d_cwqkv, d_cbqkv, d_cwo, d_cbo,
     d_ln1, d_ln2, d_ln3,
     d_w1, d_b1, d_w2, d_b2,
     enc_norm, dec_norm, fc_w, fc_b, out_ref) = refs

    pad_mask = mask_ref[0]                         # (1, S_src) additive key-pad mask
    x = src_ref[0]                                 # (S_src, E)

    # ---------------- encoder stack (unrolled, activations stay in VMEM) ------
    for l in range(NUM_ENC):
        a = _mha(x, x, e_wqkv[l], e_bqkv[l], e_wo[l], e_bo[l], pad_mask)
        ln1 = e_ln1[l]
        x = _layer_norm(x + a, ln1[0], ln1[1])
        f = _ffn(x, e_w1[l], e_b1[l], e_w2[l], e_b2[l])
        ln2 = e_ln2[l]
        x = _layer_norm(x + f, ln2[0], ln2[1])
    en = enc_norm[...]
    mem = _layer_norm(x, en[0], en[1])             # encoder final LayerNorm

    # ---------------- decoder stack --------------------------------------------
    y = trg_ref[0]                                 # (S_trg, E)
    s_trg = y.shape[0]
    row = jax.lax.broadcasted_iota(jnp.int32, (s_trg, s_trg), 0)
    col = jax.lax.broadcasted_iota(jnp.int32, (s_trg, s_trg), 1)
    causal = jnp.where(col > row, jnp.float32(NEG_INF), jnp.float32(0.0))

    for l in range(NUM_DEC):
        a = _mha(y, y, d_swqkv[l], d_sbqkv[l], d_swo[l], d_sbo[l], causal)
        ln1 = d_ln1[l]
        y = _layer_norm(y + a, ln1[0], ln1[1])
        # memory_key_padding_mask=None in nn.Transformer -> unmasked cross-attn.
        c = _mha(y, mem, d_cwqkv[l], d_cbqkv[l], d_cwo[l], d_cbo[l], None)
        ln2 = d_ln2[l]
        y = _layer_norm(y + c, ln2[0], ln2[1])
        f = _ffn(y, d_w1[l], d_b1[l], d_w2[l], d_b2[l])
        ln3 = d_ln3[l]
        y = _layer_norm(y + f, ln3[0], ln3[1])

    dn = dec_norm[...]
    y = _layer_norm(y, dn[0], dn[1])               # decoder final LayerNorm
    # Lane-dense (128-wide) output projection; wrapper slices back to TRG_VOCAB.
    out_ref[0] = jnp.dot(y, fc_w[...], preferred_element_type=jnp.float32) + fc_b[...]


# ---------------- pallas_call wrapper ------------------------------------------

def _bspec_full(shape):
    """Whole array resident every grid step (weights / shared params)."""
    rank = len(shape)
    return pl.BlockSpec(tuple(shape), lambda n: (0,) * rank)


def _bspec_batch(shape):
    """One block per batch element along the leading axis."""
    rank = len(shape)
    return pl.BlockSpec((1,) + tuple(shape[1:]),
                        lambda n: (n,) + (0,) * (rank - 1))


@jax.jit
def transformer_forward(params, src, trg):
    s_src, n = src.shape
    s_trg, _ = trg.shape

    src_b = src.T                                     # (N, S_src)
    trg_b = trg.T                                     # (N, S_trg)

    pos_src = params["src_pos_emb"][:s_src]
    pos_trg = params["trg_pos_emb"][:s_trg]

    # Embedding lookups (gathers) stay in plain JAX glue.
    embed_src = (jnp.take(params["src_word_emb"], src_b, axis=0)
                 + pos_src[None, :, :]).astype(jnp.float32)   # (N, S_src, E)
    embed_trg = (jnp.take(params["trg_word_emb"], trg_b, axis=0)
                 + pos_trg[None, :, :]).astype(jnp.float32)   # (N, S_trg, E)
    # TODO(synk): nn.Dropout is identity at inference; not applied here.

    # make_src_mask: src.T == pad_idx -> tiny (N, 1, S_src) additive mask,
    # shared across heads (no per-head duplication).
    enc_mask = jnp.where(src_b == SRC_PAD_IDX,
                         jnp.float32(NEG_INF), jnp.float32(0.0))[:, None, :]

    # Pad fc_out to a lane-dense 128-wide output (sliced back below).
    fc_w = jnp.pad(params["fc_out_w"], ((0, 0), (0, V_PAD - TRG_VOCAB)))
    fc_b = jnp.pad(params["fc_out_b"], ((0, 0), (0, V_PAD - TRG_VOCAB)))

    enc, dec = params["enc"], params["dec"]
    weight_args = (
        enc["wqkv"], enc["bqkv"], enc["wo"], enc["bo"], enc["ln1"], enc["ln2"],
        enc["w1"], enc["b1"], enc["w2"], enc["b2"],
        dec["swqkv"], dec["sbqkv"], dec["swo"], dec["sbo"],
        dec["cwqkv"], dec["cbqkv"], dec["cwo"], dec["cbo"],
        dec["ln1"], dec["ln2"], dec["ln3"],
        dec["w1"], dec["b1"], dec["w2"], dec["b2"],
        params["enc_norm"], params["dec_norm"], fc_w, fc_b)

    in_specs = ([_bspec_batch(enc_mask.shape),
                 _bspec_batch(embed_src.shape),
                 _bspec_batch(embed_trg.shape)]
                + [_bspec_full(a.shape) for a in weight_args])

    logits_pad = pl.pallas_call(
        _fused_forward_kernel,
        out_shape=jax.ShapeDtypeStruct((n, s_trg, V_PAD), jnp.float32),
        grid=(n,),
        in_specs=in_specs,
        out_specs=_bspec_batch((n, s_trg, V_PAD)),
        compiler_params=pltpu.CompilerParams(dimension_semantics=("parallel",)),
    )(enc_mask, embed_src, embed_trg, *weight_args)

    logits = logits_pad[:, :, :TRG_VOCAB]             # drop lane padding
    return jnp.transpose(logits, (1, 0, 2))           # (S_trg, N, TRG_VOCAB)


# ---------------- deterministic synthetic parameters --------------------------

def init_params(key):
    std = 0.02
    keys = iter(jax.random.split(key, 64))

    def w(shape):
        return jax.random.normal(next(keys), shape, jnp.float32) * std

    def zeros(shape):
        return jnp.zeros(shape, jnp.float32)

    def ln_stack(num_layers):
        # gamma at [:,0], beta at [:,1] -> (L, 2, 1, E)
        return jnp.concatenate(
            [jnp.ones((num_layers, 1, 1, E), jnp.float32),
             jnp.zeros((num_layers, 1, 1, E), jnp.float32)], axis=1)

    def final_ln():
        return jnp.concatenate(
            [jnp.ones((1, 1, E), jnp.float32),
             jnp.zeros((1, 1, E), jnp.float32)], axis=0)       # (2, 1, E)

    enc = dict(
        wqkv=w((NUM_ENC, E, 3 * E)), bqkv=zeros((NUM_ENC, 1, 3 * E)),
        wo=w((NUM_ENC, E, E)), bo=zeros((NUM_ENC, 1, E)),
        ln1=ln_stack(NUM_ENC), ln2=ln_stack(NUM_ENC),
        w1=w((NUM_ENC, E, FF)), b1=zeros((NUM_ENC, 1, FF)),
        w2=w((NUM_ENC, FF, E)), b2=zeros((NUM_ENC, 1, E)))

    dec = dict(
        swqkv=w((NUM_DEC, E, 3 * E)), sbqkv=zeros((NUM_DEC, 1, 3 * E)),
        swo=w((NUM_DEC, E, E)), sbo=zeros((NUM_DEC, 1, E)),
        cwqkv=w((NUM_DEC, E, 3 * E)), cbqkv=zeros((NUM_DEC, 1, 3 * E)),
        cwo=w((NUM_DEC, E, E)), cbo=zeros((NUM_DEC, 1, E)),
        ln1=ln_stack(NUM_DEC), ln2=ln_stack(NUM_DEC), ln3=ln_stack(NUM_DEC),
        w1=w((NUM_DEC, E, FF)), b1=zeros((NUM_DEC, 1, FF)),
        w2=w((NUM_DEC, FF, E)), b2=zeros((NUM_DEC, 1, E)))

    return dict(
        src_word_emb=w((SRC_VOCAB, E)),
        src_pos_emb=w((MAX_LEN, E)),
        trg_word_emb=w((TRG_VOCAB, E)),
        trg_pos_emb=w((MAX_LEN, E)),
        enc=enc, dec=dec,
        enc_norm=final_ln(), dec_norm=final_ln(),
        fc_out_w=w((E, TRG_VOCAB)), fc_out_b=zeros((1, TRG_VOCAB)),
    )


if __name__ == "__main__":
    key = jax.random.PRNGKey(0)
    pkey, skey, tkey = jax.random.split(key, 3)
    params = init_params(pkey)

    src = jax.random.randint(skey, (S_SRC, BATCH), 0, SRC_VOCAB, dtype=jnp.int32)
    src = src.at[-2:, 0].set(SRC_PAD_IDX)   # some pad tokens to exercise the mask
    trg = jax.random.randint(tkey, (S_TRG, BATCH), 0, TRG_VOCAB, dtype=jnp.int32)

    out = transformer_forward(params, src, trg)
    out = jax.block_until_ready(out)
    assert out.shape == (S_TRG, BATCH, TRG_VOCAB), out.shape
    assert bool(jnp.all(jnp.isfinite(out)))
    print("KERNEL_OK")
</pallas_src>

<mosaic_0001>
module attributes {stable_mosaic.version = 11 : i64} {
  func.func @_fused_forward_kernel(%arg0: i32, %arg1: memref<1x1x10xf32, #tpu.memory_space<vmem>>, %arg2: memref<1x10x32xf32, #tpu.memory_space<vmem>>, %arg3: memref<1x8x32xf32, #tpu.memory_space<vmem>>, %arg4: memref<2x32x96xf32, #tpu.memory_space<vmem>>, %arg5: memref<2x1x96xf32, #tpu.memory_space<vmem>>, %arg6: memref<2x32x32xf32, #tpu.memory_space<vmem>>, %arg7: memref<2x1x32xf32, #tpu.memory_space<vmem>>, %arg8: memref<2x2x1x32xf32, #tpu.memory_space<vmem>>, %arg9: memref<2x2x1x32xf32, #tpu.memory_space<vmem>>, %arg10: memref<2x32x64xf32, #tpu.memory_space<vmem>>, %arg11: memref<2x1x64xf32, #tpu.memory_space<vmem>>, %arg12: memref<2x64x32xf32, #tpu.memory_space<vmem>>, %arg13: memref<2x1x32xf32, #tpu.memory_space<vmem>>, %arg14: memref<2x32x96xf32, #tpu.memory_space<vmem>>, %arg15: memref<2x1x96xf32, #tpu.memory_space<vmem>>, %arg16: memref<2x32x32xf32, #tpu.memory_space<vmem>>, %arg17: memref<2x1x32xf32, #tpu.memory_space<vmem>>, %arg18: memref<2x32x96xf32, #tpu.memory_space<vmem>>, %arg19: memref<2x1x96xf32, #tpu.memory_space<vmem>>, %arg20: memref<2x32x32xf32, #tpu.memory_space<vmem>>, %arg21: memref<2x1x32xf32, #tpu.memory_space<vmem>>, %arg22: memref<2x2x1x32xf32, #tpu.memory_space<vmem>>, %arg23: memref<2x2x1x32xf32, #tpu.memory_space<vmem>>, %arg24: memref<2x2x1x32xf32, #tpu.memory_space<vmem>>, %arg25: memref<2x32x64xf32, #tpu.memory_space<vmem>>, %arg26: memref<2x1x64xf32, #tpu.memory_space<vmem>>, %arg27: memref<2x64x32xf32, #tpu.memory_space<vmem>>, %arg28: memref<2x1x32xf32, #tpu.memory_space<vmem>>, %arg29: memref<2x1x32xf32, #tpu.memory_space<vmem>>, %arg30: memref<2x1x32xf32, #tpu.memory_space<vmem>>, %arg31: memref<32x128xf32, #tpu.memory_space<vmem>>, %arg32: memref<1x128xf32, #tpu.memory_space<vmem>>, %arg33: memref<1x8x128xf32, #tpu.memory_space<vmem>>) attributes {dimension_semantics = [#tpu.dimension_semantics<parallel>], iteration_bounds = array<i64: 2>, scalar_prefetch = 0 : i64, scratch_operands = 0 : i64, tpu.core_type = #tpu.core_type<tc>, window_params = [{transform_indices = @transform_0, window_bounds = array<i64: 1, 1, 10>}, {transform_indices = @transform_1, window_bounds = array<i64: 1, 10, 32>}, {transform_indices = @transform_2, window_bounds = array<i64: 1, 8, 32>}, {pipeline_mode = #tpu.pipeline_mode<synchronous>, transform_indices = @transform_3, window_bounds = array<i64: 2, 32, 96>}, {pipeline_mode = #tpu.pipeline_mode<synchronous>, transform_indices = @transform_4, window_bounds = array<i64: 2, 1, 96>}, {pipeline_mode = #tpu.pipeline_mode<synchronous>, transform_indices = @transform_5, window_bounds = array<i64: 2, 32, 32>}, {pipeline_mode = #tpu.pipeline_mode<synchronous>, transform_indices = @transform_6, window_bounds = array<i64: 2, 1, 32>}, {pipeline_mode = #tpu.pipeline_mode<synchronous>, transform_indices = @transform_7, window_bounds = array<i64: 2, 2, 1, 32>}, {pipeline_mode = #tpu.pipeline_mode<synchronous>, transform_indices = @transform_8, window_bounds = array<i64: 2, 2, 1, 32>}, {pipeline_mode = #tpu.pipeline_mode<synchronous>, transform_indices = @transform_9, window_bounds = array<i64: 2, 32, 64>}, {pipeline_mode = #tpu.pipeline_mode<synchronous>, transform_indices = @transform_10, window_bounds = array<i64: 2, 1, 64>}, {pipeline_mode = #tpu.pipeline_mode<synchronous>, transform_indices = @transform_11, window_bounds = array<i64: 2, 64, 32>}, {pipeline_mode = #tpu.pipeline_mode<synchronous>, transform_indices = @transform_12, window_bounds = array<i64: 2, 1, 32>}, {pipeline_mode = #tpu.pipeline_mode<synchronous>, transform_indices = @transform_13, window_bounds = array<i64: 2, 32, 96>}, {pipeline_mode = #tpu.pipeline_mode<synchronous>, transform_indices = @transform_14, window_bounds = array<i64: 2, 1, 96>}, {pipeline_mode = #tpu.pipeline_mode<synchronous>, transform_indices = @transform_15, window_bounds = array<i64: 2, 32, 32>}, {pipeline_mode = #tpu.pipeline_mode<synchronous>, transform_indices = @transform_16, window_bounds = array<i64: 2, 1, 32>}, {pipeline_mode = #tpu.pipeline_mode<synchronous>, transform_indices = @transform_17, window_bounds = array<i64: 2, 32, 96>}, {pipeline_mode = #tpu.pipeline_mode<synchronous>, transform_indices = @transform_18, window_bounds = array<i64: 2, 1, 96>}, {pipeline_mode = #tpu.pipeline_mode<synchronous>, transform_indices = @transform_19, window_bounds = array<i64: 2, 32, 32>}, {pipeline_mode = #tpu.pipeline_mode<synchronous>, transform_indices = @transform_20, window_bounds = array<i64: 2, 1, 32>}, {pipeline_mode = #tpu.pipeline_mode<synchronous>, transform_indices = @transform_21, window_bounds = array<i64: 2, 2, 1, 32>}, {pipeline_mode = #tpu.pipeline_mode<synchronous>, transform_indices = @transform_22, window_bounds = array<i64: 2, 2, 1, 32>}, {pipeline_mode = #tpu.pipeline_mode<synchronous>, transform_indices = @transform_23, window_bounds = array<i64: 2, 2, 1, 32>}, {pipeline_mode = #tpu.pipeline_mode<synchronous>, transform_indices = @transform_24, window_bounds = array<i64: 2, 32, 64>}, {pipeline_mode = #tpu.pipeline_mode<synchronous>, transform_indices = @transform_25, window_bounds = array<i64: 2, 1, 64>}, {pipeline_mode = #tpu.pipeline_mode<synchronous>, transform_indices = @transform_26, window_bounds = array<i64: 2, 64, 32>}, {pipeline_mode = #tpu.pipeline_mode<synchronous>, transform_indices = @transform_27, window_bounds = array<i64: 2, 1, 32>}, {pipeline_mode = #tpu.pipeline_mode<synchronous>, transform_indices = @transform_28, window_bounds = array<i64: 2, 1, 32>}, {pipeline_mode = #tpu.pipeline_mode<synchronous>, transform_indices = @transform_29, window_bounds = array<i64: 2, 1, 32>}, {pipeline_mode = #tpu.pipeline_mode<synchronous>, transform_indices = @transform_30, window_bounds = array<i64: 32, 128>}, {pipeline_mode = #tpu.pipeline_mode<synchronous>, transform_indices = @transform_31, window_bounds = array<i64: 1, 128>}, {transform_indices = @transform_32, window_bounds = array<i64: 1, 8, 128>}]} {
    %c0 = arith.constant 0 : index
    %c0_0 = arith.constant 0 : index
    %c0_1 = arith.constant 0 : index
    %0 = vector.load %arg1[%c0, %c0_0, %c0_1] : memref<1x1x10xf32, #tpu.memory_space<vmem>>, vector<1x1x10xf32>
    %1 = vector.shape_cast %0 : vector<1x1x10xf32> to vector<1x10xf32>
    %c0_2 = arith.constant 0 : index
    %c0_3 = arith.constant 0 : index
    %c0_4 = arith.constant 0 : index
    %2 = vector.load %arg2[%c0_2, %c0_3, %c0_4] : memref<1x10x32xf32, #tpu.memory_space<vmem>>, vector<1x10x32xf32>
    %3 = vector.shape_cast %2 : vector<1x10x32xf32> to vector<10x32xf32>
    %c0_5 = arith.constant 0 : index
    %c0_6 = arith.constant 0 : index
    %c0_7 = arith.constant 0 : index
    %4 = vector.load %arg4[%c0_5, %c0_6, %c0_7] : memref<2x32x96xf32, #tpu.memory_space<vmem>>, vector<1x32x96xf32>
    %5 = vector.shape_cast %4 : vector<1x32x96xf32> to vector<32x96xf32>
    %c0_8 = arith.constant 0 : index
    %c0_9 = arith.constant 0 : index
    %c0_10 = arith.constant 0 : index
    %6 = vector.load %arg5[%c0_8, %c0_9, %c0_10] : memref<2x1x96xf32, #tpu.memory_space<vmem>>, vector<1x1x96xf32>
    %7 = vector.shape_cast %6 : vector<1x1x96xf32> to vector<1x96xf32>
    %c0_11 = arith.constant 0 : index
    %c0_12 = arith.constant 0 : index
    %c0_13 = arith.constant 0 : index
    %8 = vector.load %arg6[%c0_11, %c0_12, %c0_13] : memref<2x32x32xf32, #tpu.memory_space<vmem>>, vector<1x32x32xf32>
    %9 = vector.shape_cast %8 : vector<1x32x32xf32> to vector<32x32xf32>
    %c0_14 = arith.constant 0 : index
    %c0_15 = arith.constant 0 : index
    %c0_16 = arith.constant 0 : index
    %10 = vector.load %arg7[%c0_14, %c0_15, %c0_16] : memref<2x1x32xf32, #tpu.memory_space<vmem>>, vector<1x1x32xf32>
    %11 = vector.shape_cast %10 : vector<1x1x32xf32> to vector<1x32xf32>
    %cst = arith.constant dense<0.000000e+00> : vector<10x96xf32>
    %12 = tpu.matmul %3, %5, %cst {dimension_numbers = #tpu.dot_dimension_numbers<[1], [0], [0], [1], [0, 0, 1, 1], [], []>} : vector<10x32xf32>, vector<32x96xf32>, vector<10x96xf32> -> vector<10x96xf32>
    %13 = vector.broadcast %7 : vector<1x96xf32> to vector<10x96xf32>
    %14 = arith.addf %12, %13 : vector<10x96xf32>
    %15 = vector.extract_strided_slice %14 {offsets = [0, 0], sizes = [10, 32], strides = [1, 1]} : vector<10x96xf32> to vector<10x32xf32>
    %16 = vector.extract_strided_slice %14 {offsets = [0, 32], sizes = [10, 32], strides = [1, 1]} : vector<10x96xf32> to vector<10x32xf32>
    %17 = vector.extract_strided_slice %14 {offsets = [0, 64], sizes = [10, 32], strides = [1, 1]} : vector<10x96xf32> to vector<10x32xf32>
    %cst_17 = arith.constant 0.000000e+00 : f32
    %18 = vector.broadcast %cst_17 : f32 to vector<10x32xf32>
    %19 = vector.broadcast %11 : vector<1x32xf32> to vector<10x32xf32>
    %20 = arith.addf %18, %19 : vector<10x32xf32>
    %21 = vector.extract_strided_slice %15 {offsets = [0, 0], sizes = [10, 8], strides = [1, 1]} : vector<10x32xf32> to vector<10x8xf32>
    %22 = vector.extract_strided_slice %16 {offsets = [0, 0], sizes = [10, 8], strides = [1, 1]} : vector<10x32xf32> to vector<10x8xf32>
    %cst_18 = arith.constant dense<0.000000e+00> : vector<10x10xf32>
    %23 = tpu.matmul %21, %22, %cst_18 {dimension_numbers = #tpu.dot_dimension_numbers<[1], [1], [0], [0], [0, 0, 1, 0], [], []>} : vector<10x8xf32>, vector<10x8xf32>, vector<10x10xf32> -> vector<10x10xf32>
    %cst_19 = arith.constant 0.353553385 : f32
    %24 = vector.broadcast %cst_19 : f32 to vector<10x10xf32>
    %25 = arith.mulf %23, %24 : vector<10x10xf32>
    %26 = vector.broadcast %1 : vector<1x10xf32> to vector<10x10xf32>
    %27 = arith.addf %25, %26 : vector<10x10xf32>
    %cst_20 = arith.constant dense<0xFF800000> : vector<10xf32>
    %28 = vector.multi_reduction <maximumf>, %27, %cst_20 [1] : vector<10x10xf32> to vector<10xf32>
    %29 = vector.shape_cast %28 : vector<10xf32> to vector<10x1xf32>
    %30 = vector.broadcast %29 : vector<10x1xf32> to vector<10x10xf32>
    %31 = arith.subf %27, %30 : vector<10x10xf32>
    %32 = math.exp %31 : vector<10x10xf32>
    %cst_21 = arith.constant dense<0.000000e+00> : vector<10xf32>
    %33 = vector.multi_reduction <add>, %32, %cst_21 [1] : vector<10x10xf32> to vector<10xf32>
    %34 = vector.shape_cast %33 : vector<10xf32> to vector<10x1xf32>
    %35 = vector.broadcast %34 : vector<10x1xf32> to vector<10x10xf32>
    %36 = arith.divf %32, %35 : vector<10x10xf32>
    %37 = vector.extract_strided_slice %17 {offsets = [0, 0], sizes = [10, 8], strides = [1, 1]} : vector<10x32xf32> to vector<10x8xf32>
    %cst_22 = arith.constant dense<0.000000e+00> : vector<10x8xf32>
    %38 = tpu.matmul %36, %37, %cst_22 {dimension_numbers = #tpu.dot_dimension_numbers<[1], [0], [0], [1], [0, 0, 1, 1], [], []>} : vector<10x10xf32>, vector<10x8xf32>, vector<10x8xf32> -> vector<10x8xf32>
    %39 = vector.extract_strided_slice %9 {offsets = [0, 0], sizes = [8, 32], strides = [1, 1]} : vector<32x32xf32> to vector<8x32xf32>
    %cst_23 = arith.constant dense<0.000000e+00> : vector<10x32xf32>
    %40 = tpu.matmul %38, %39, %cst_23 {dimension_numbers = #tpu.dot_dimension_numbers<[1], [0], [0], [1], [0, 0, 1, 1], [], []>} : vector<10x8xf32>, vector<8x32xf32>, vector<10x32xf32> -> vector<10x32xf32>
    %41 = arith.addf %20, %40 : vector<10x32xf32>
    %42 = vector.extract_strided_slice %15 {offsets = [0, 8], sizes = [10, 8], strides = [1, 1]} : vector<10x32xf32> to vector<10x8xf32>
    %43 = vector.extract_strided_slice %16 {offsets = [0, 8], sizes = [10, 8], strides = [1, 1]} : vector<10x32xf32> to vector<10x8xf32>
    %cst_24 = arith.constant dense<0.000000e+00> : vector<10x10xf32>
    %44 = tpu.matmul %42, %43, %cst_24 {dimension_numbers = #tpu.dot_dimension_numbers<[1], [1], [0], [0], [0, 0, 1, 0], [], []>} : vector<10x8xf32>, vector<10x8xf32>, vector<10x10xf32> -> vector<10x10xf32>
    %cst_25 = arith.constant 0.353553385 : f32
    %45 = vector.broadcast %cst_25 : f32 to vector<10x10xf32>
    %46 = arith.mulf %44, %45 : vector<10x10xf32>
    %47 = vector.broadcast %1 : vector<1x10xf32> to vector<10x10xf32>
    %48 = arith.addf %46, %47 : vector<10x10xf32>
    %cst_26 = arith.constant dense<0xFF800000> : vector<10xf32>
    %49 = vector.multi_reduction <maximumf>, %48, %cst_26 [1] : vector<10x10xf32> to vector<10xf32>
    %50 = vector.shape_cast %49 : vector<10xf32> to vector<10x1xf32>
    %51 = vector.broadcast %50 : vector<10x1xf32> to vector<10x10xf32>
    %52 = arith.subf %48, %51 : vector<10x10xf32>
    %53 = math.exp %52 : vector<10x10xf32>
    %cst_27 = arith.constant dense<0.000000e+00> : vector<10xf32>
    %54 = vector.multi_reduction <add>, %53, %cst_27 [1] : vector<10x10xf32> to vector<10xf32>
    %55 = vector.shape_cast %54 : vector<10xf32> to vector<10x1xf32>
    %56 = vector.broadcast %55 : vector<10x1xf32> to vector<10x10xf32>
    %57 = arith.divf %53, %56 : vector<10x10xf32>
    %58 = vector.extract_strided_slice %17 {offsets = [0, 8], sizes = [10, 8], strides = [1, 1]} : vector<10x32xf32> to vector<10x8xf32>
    %cst_28 = arith.constant dense<0.000000e+00> : vector<10x8xf32>
    %59 = tpu.matmul %57, %58, %cst_28 {dimension_numbers = #tpu.dot_dimension_numbers<[1], [0], [0], [1], [0, 0, 1, 1], [], []>} : vector<10x10xf32>, vector<10x8xf32>, vector<10x8xf32> -> vector<10x8xf32>
    %60 = vector.extract_strided_slice %9 {offsets = [8, 0], sizes = [8, 32], strides = [1, 1]} : vector<32x32xf32> to vector<8x32xf32>
    %cst_29 = arith.constant dense<0.000000e+00> : vector<10x32xf32>
    %61 = tpu.matmul %59, %60, %cst_29 {dimension_numbers = #tpu.dot_dimension_numbers<[1], [0], [0], [1], [0, 0, 1, 1], [], []>} : vector<10x8xf32>, vector<8x32xf32>, vector<10x32xf32> -> vector<10x32xf32>
    %62 = arith.addf %41, %61 : vector<10x32xf32>
    %63 = vector.extract_strided_slice %15 {offsets = [0, 16], sizes = [10, 8], strides = [1, 1]} : vector<10x32xf32> to vector<10x8xf32>
    %64 = vector.extract_strided_slice %16 {offsets = [0, 16], sizes = [10, 8], strides = [1, 1]} : vector<10x32xf32> to vector<10x8xf32>
    %cst_30 = arith.constant dense<0.000000e+00> : vector<10x10xf32>
    %65 = tpu.matmul %63, %64, %cst_30 {dimension_numbers = #tpu.dot_dimension_numbers<[1], [1], [0], [0], [0, 0, 1, 0], [], []>} : vector<10x8xf32>, vector<10x8xf32>, vector<10x10xf32> -> vector<10x10xf32>
    %cst_31 = arith.constant 0.353553385 : f32
    %66 = vector.broadcast %cst_31 : f32 to vector<10x10xf32>
    %67 = arith.mulf %65, %66 : vector<10x10xf32>
    %68 = vector.broadcast %1 : vector<1x10xf32> to vector<10x10xf32>
    %69 = arith.addf %67, %68 : vector<10x10xf32>
    %cst_32 = arith.constant dense<0xFF800000> : vector<10xf32>
    %70 = vector.multi_reduction <maximumf>, %69, %cst_32 [1] : vector<10x10xf32> to vector<10xf32>
    %71 = vector.shape_cast %70 : vector<10xf32> to vector<10x1xf32>
    %72 = vector.broadcast %71 : vector<10x1xf32> to vector<10x10xf32>
    %73 = arith.subf %69, %72 : vector<10x10xf32>
    %74 = math.exp %73 : vector<10x10xf32>
    %cst_33 = arith.constant dense<0.000000e+00> : vector<10xf32>
    %75 = vector.multi_reduction <add>, %74, %cst_33 [1] : vector<10x10xf32> to vector<10xf32>
    %76 = vector.shape_cast %75 : vector<10xf32> to vector<10x1xf32>
    %77 = vector.broadcast %76 : vector<10x1xf32> to vector<10x10xf32>
    %78 = arith.divf %74, %77 : vector<10x10xf32>
    %79 = vector.extract_strided_slice %17 {offsets = [0, 16], sizes = [10, 8], strides = [1, 1]} : vector<10x32xf32> to vector<10x8xf32>
    %cst_34 = arith.constant dense<0.000000e+00> : vector<10x8xf32>
    %80 = tpu.matmul %78, %79, %cst_34 {dimension_numbers = #tpu.dot_dimension_numbers<[1], [0], [0], [1], [0, 0, 1, 1], [], []>} : vector<10x10xf32>, vector<10x8xf32>, vector<10x8xf32> -> vector<10x8xf32>
    %81 = vector.extract_strided_slice %9 {offsets = [16, 0], sizes = [8, 32], strides = [1, 1]} : vector<32x32xf32> to vector<8x32xf32>
    %cst_35 = arith.constant dense<0.000000e+00> : vector<10x32xf32>
    %82 = tpu.matmul %80, %81, %cst_35 {dimension_numbers = #tpu.dot_dimension_numbers<[1], [0], [0], [1], [0, 0, 1, 1], [], []>} : vector<10x8xf32>, vector<8x32xf32>, vector<10x32xf32> -> vector<10x32xf32>
    %83 = arith.addf %62, %82 : vector<10x32xf32>
    %84 = vector.extract_strided_slice %15 {offsets = [0, 24], sizes = [10, 8], strides = [1, 1]} : vector<10x32xf32> to vector<10x8xf32>
    %85 = vector.extract_strided_slice %16 {offsets = [0, 24], sizes = [10, 8], strides = [1, 1]} : vector<10x32xf32> to vector<10x8xf32>
    %cst_36 = arith.constant dense<0.000000e+00> : vector<10x10xf32>
    %86 = tpu.matmul %84, %85, %cst_36 {dimension_numbers = #tpu.dot_dimension_numbers<[1], [1], [0], [0], [0, 0, 1, 0], [], []>} : vector<10x8xf32>, vector<10x8xf32>, vector<10x10xf32> -> vector<10x10xf32>
    %cst_37 = arith.constant 0.353553385 : f32
    %87 = vector.broadcast %cst_37 : f32 to vector<10x10xf32>
    %88 = arith.mulf %86, %87 : vector<10x10xf32>
    %89 = vector.broadcast %1 : vector<1x10xf32> to vector<10x10xf32>
    %90 = arith.addf %88, %89 : vector<10x10xf32>
    %cst_38 = arith.constant dense<0xFF800000> : vector<10xf32>
    %91 = vector.multi_reduction <maximumf>, %90, %cst_38 [1] : vector<10x10xf32> to vector<10xf32>
    %92 = vector.shape_cast %91 : vector<10xf32> to vector<10x1xf32>
    %93 = vector.broadcast %92 : vector<10x1xf32> to vector<10x10xf32>
    %94 = arith.subf %90, %93 : vector<10x10xf32>
    %95 = math.exp %94 : vector<10x10xf32>
    %cst_39 = arith.constant dense<0.000000e+00> : vector<10xf32>
    %96 = vector.multi_reduction <add>, %95, %cst_39 [1] : vector<10x10xf32> to vector<10xf32>
    %97 = vector.shape_cast %96 : vector<10xf32> to vector<10x1xf32>
    %98 = vector.broadcast %97 : vector<10x1xf32> to vector<10x10xf32>
    %99 = arith.divf %95, %98 : vector<10x10xf32>
    %100 = vector.extract_strided_slice %17 {offsets = [0, 24], sizes = [10, 8], strides = [1, 1]} : vector<10x32xf32> to vector<10x8xf32>
    %cst_40 = arith.constant dense<0.000000e+00> : vector<10x8xf32>
    %101 = tpu.matmul %99, %100, %cst_40 {dimension_numbers = #tpu.dot_dimension_numbers<[1], [0], [0], [1], [0, 0, 1, 1], [], []>} : vector<10x10xf32>, vector<10x8xf32>, vector<10x8xf32> -> vector<10x8xf32>
    %102 = vector.extract_strided_slice %9 {offsets = [24, 0], sizes = [8, 32], strides = [1, 1]} : vector<32x32xf32> to vector<8x32xf32>
    %cst_41 = arith.constant dense<0.000000e+00> : vector<10x32xf32>
    %103 = tpu.matmul %101, %102, %cst_41 {dimension_numbers = #tpu.dot_dimension_numbers<[1], [0], [0], [1], [0, 0, 1, 1], [], []>} : vector<10x8xf32>, vector<8x32xf32>, vector<10x32xf32> -> vector<10x32xf32>
    %104 = arith.addf %83, %103 : vector<10x32xf32>
    %c0_42 = arith.constant 0 : index
    %c0_43 = arith.constant 0 : index
    %c0_44 = arith.constant 0 : index
    %c0_45 = arith.constant 0 : index
    %105 = vector.load %arg8[%c0_42, %c0_43, %c0_44, %c0_45] : memref<2x2x1x32xf32, #tpu.memory_space<vmem>>, vector<1x2x1x32xf32>
    %106 = vector.shape_cast %105 : vector<1x2x1x32xf32> to vector<2x1x32xf32>
    %107 = arith.addf %3, %104 : vector<10x32xf32>
    %108 = vector.extract_strided_slice %106 {offsets = [0, 0, 0], sizes = [1, 1, 32], strides = [1, 1, 1]} : vector<2x1x32xf32> to vector<1x1x32xf32>
    %109 = vector.shape_cast %108 : vector<1x1x32xf32> to vector<1x32xf32>
    %110 = vector.extract_strided_slice %106 {offsets = [1, 0, 0], sizes = [1, 1, 32], strides = [1, 1, 1]} : vector<2x1x32xf32> to vector<1x1x32xf32>
    %111 = vector.shape_cast %110 : vector<1x1x32xf32> to vector<1x32xf32>
    %cst_46 = arith.constant dense<0.000000e+00> : vector<10xf32>
    %112 = vector.multi_reduction <add>, %107, %cst_46 [1] : vector<10x32xf32> to vector<10xf32>
    %113 = vector.shape_cast %112 : vector<10xf32> to vector<10x1xf32>
    %cst_47 = arith.constant 3.200000e+01 : f32
    %114 = vector.broadcast %cst_47 : f32 to vector<10x1xf32>
    %115 = arith.divf %113, %114 : vector<10x1xf32>
    %116 = vector.broadcast %115 : vector<10x1xf32> to vector<10x32xf32>
    %117 = arith.subf %107, %116 : vector<10x32xf32>
    %118 = arith.mulf %117, %117 : vector<10x32xf32>
    %cst_48 = arith.constant dense<0.000000e+00> : vector<10xf32>
    %119 = vector.multi_reduction <add>, %118, %cst_48 [1] : vector<10x32xf32> to vector<10xf32>
    %120 = vector.shape_cast %119 : vector<10xf32> to vector<10x1xf32>
    %cst_49 = arith.constant 3.200000e+01 : f32
    %121 = vector.broadcast %cst_49 : f32 to vector<10x1xf32>
    %122 = arith.divf %120, %121 : vector<10x1xf32>
    %123 = vector.broadcast %115 : vector<10x1xf32> to vector<10x32xf32>
    %124 = arith.subf %107, %123 : vector<10x32xf32>
    %cst_50 = arith.constant 9.99999974E-6 : f32
    %125 = vector.broadcast %cst_50 : f32 to vector<10x1xf32>
    %126 = arith.addf %122, %125 : vector<10x1xf32>
    %127 = math.rsqrt %126 : vector<10x1xf32>
    %128 = vector.broadcast %127 : vector<10x1xf32> to vector<10x32xf32>
    %129 = arith.mulf %124, %128 : vector<10x32xf32>
    %130 = vector.broadcast %109 : vector<1x32xf32> to vector<10x32xf32>
    %131 = arith.mulf %129, %130 : vector<10x32xf32>
    %132 = vector.broadcast %111 : vector<1x32xf32> to vector<10x32xf32>
    %133 = arith.addf %131, %132 : vector<10x32xf32>
    %c0_51 = arith.constant 0 : index
    %c0_52 = arith.constant 0 : index
    %c0_53 = arith.constant 0 : index
    %134 = vector.load %arg10[%c0_51, %c0_52, %c0_53] : memref<2x32x64xf32, #tpu.memory_space<vmem>>, vector<1x32x64xf32>
    %135 = vector.shape_cast %134 : vector<1x32x64xf32> to vector<32x64xf32>
    %c0_54 = arith.constant 0 : index
    %c0_55 = arith.constant 0 : index
    %c0_56 = arith.constant 0 : index
    %136 = vector.load %arg11[%c0_54, %c0_55, %c0_56] : memref<2x1x64xf32, #tpu.memory_space<vmem>>, vector<1x1x64xf32>
    %137 = vector.shape_cast %136 : vector<1x1x64xf32> to vector<1x64xf32>
    %c0_57 = arith.constant 0 : index
    %c0_58 = arith.constant 0 : index
    %c0_59 = arith.constant 0 : index
    %138 = vector.load %arg12[%c0_57, %c0_58, %c0_59] : memref<2x64x32xf32, #tpu.memory_space<vmem>>, vector<1x64x32xf32>
    %139 = vector.shape_cast %138 : vector<1x64x32xf32> to vector<64x32xf32>
    %c0_60 = arith.constant 0 : index
    %c0_61 = arith.constant 0 : index
    %c0_62 = arith.constant 0 : index
    %140 = vector.load %arg13[%c0_60, %c0_61, %c0_62] : memref<2x1x32xf32, #tpu.memory_space<vmem>>, vector<1x1x32xf32>
    %141 = vector.shape_cast %140 : vector<1x1x32xf32> to vector<1x32xf32>
    %cst_63 = arith.constant dense<0.000000e+00> : vector<10x64xf32>
    %142 = tpu.matmul %133, %135, %cst_63 {dimension_numbers = #tpu.dot_dimension_numbers<[1], [0], [0], [1], [0, 0, 1, 1], [], []>} : vector<10x32xf32>, vector<32x64xf32>, vector<10x64xf32> -> vector<10x64xf32>
    %143 = vector.broadcast %137 : vector<1x64xf32> to vector<10x64xf32>
    %144 = arith.addf %142, %143 : vector<10x64xf32>
    %cst_64 = arith.constant 0.000000e+00 : f32
    %145 = vector.broadcast %cst_64 : f32 to vector<10x64xf32>
    %146 = arith.maximumf %144, %145 : vector<10x64xf32>
    %cst_65 = arith.constant dense<0.000000e+00> : vector<10x32xf32>
    %147 = tpu.matmul %146, %139, %cst_65 {dimension_numbers = #tpu.dot_dimension_numbers<[1], [0], [0], [1], [0, 0, 1, 1], [], []>} : vector<10x64xf32>, vector<64x32xf32>, vector<10x32xf32> -> vector<10x32xf32>
    %148 = vector.broadcast %141 : vector<1x32xf32> to vector<10x32xf32>
    %149 = arith.addf %147, %148 : vector<10x32xf32>
    %c0_66 = arith.constant 0 : index
    %c0_67 = arith.constant 0 : index
    %c0_68 = arith.constant 0 : index
    %c0_69 = arith.constant 0 : index
    %150 = vector.load %arg9[%c0_66, %c0_67, %c0_68, %c0_69] : memref<2x2x1x32xf32, #tpu.memory_space<vmem>>, vector<1x2x1x32xf32>
    %151 = vector.shape_cast %150 : vector<1x2x1x32xf32> to vector<2x1x32xf32>
    %152 = arith.addf %133, %149 : vector<10x32xf32>
    %153 = vector.extract_strided_slice %151 {offsets = [0, 0, 0], sizes = [1, 1, 32], strides = [1, 1, 1]} : vector<2x1x32xf32> to vector<1x1x32xf32>
    %154 = vector.shape_cast %153 : vector<1x1x32xf32> to vector<1x32xf32>
    %155 = vector.extract_strided_slice %151 {offsets = [1, 0, 0], sizes = [1, 1, 32], strides = [1, 1, 1]} : vector<2x1x32xf32> to vector<1x1x32xf32>
    %156 = vector.shape_cast %155 : vector<1x1x32xf32> to vector<1x32xf32>
    %cst_70 = arith.constant dense<0.000000e+00> : vector<10xf32>
    %157 = vector.multi_reduction <add>, %152, %cst_70 [1] : vector<10x32xf32> to vector<10xf32>
    %158 = vector.shape_cast %157 : vector<10xf32> to vector<10x1xf32>
    %cst_71 = arith.constant 3.200000e+01 : f32
    %159 = vector.broadcast %cst_71 : f32 to vector<10x1xf32>
    %160 = arith.divf %158, %159 : vector<10x1xf32>
    %161 = vector.broadcast %160 : vector<10x1xf32> to vector<10x32xf32>
    %162 = arith.subf %152, %161 : vector<10x32xf32>
    %163 = arith.mulf %162, %162 : vector<10x32xf32>
    %cst_72 = arith.constant dense<0.000000e+00> : vector<10xf32>
    %164 = vector.multi_reduction <add>, %163, %cst_72 [1] : vector<10x32xf32> to vector<10xf32>
    %165 = vector.shape_cast %164 : vector<10xf32> to vector<10x1xf32>
    %cst_73 = arith.constant 3.200000e+01 : f32
    %166 = vector.broadcast %cst_73 : f32 to vector<10x1xf32>
    %167 = arith.divf %165, %166 : vector<10x1xf32>
    %168 = vector.broadcast %160 : vector<10x1xf32> to vector<10x32xf32>
    %169 = arith.subf %152, %168 : vector<10x32xf32>
    %cst_74 = arith.constant 9.99999974E-6 : f32
    %170 = vector.broadcast %cst_74 : f32 to vector<10x1xf32>
    %171 = arith.addf %167, %170 : vector<10x1xf32>
    %172 = math.rsqrt %171 : vector<10x1xf32>
    %173 = vector.broadcast %172 : vector<10x1xf32> to vector<10x32xf32>
    %174 = arith.mulf %169, %173 : vector<10x32xf32>
    %175 = vector.broadcast %154 : vector<1x32xf32> to vector<10x32xf32>
    %176 = arith.mulf %174, %175 : vector<10x32xf32>
    %177 = vector.broadcast %156 : vector<1x32xf32> to vector<10x32xf32>
    %178 = arith.addf %176, %177 : vector<10x32xf32>
    %c1 = arith.constant 1 : index
    %c0_75 = arith.constant 0 : index
    %c0_76 = arith.constant 0 : index
    %179 = vector.load %arg4[%c1, %c0_75, %c0_76] : memref<2x32x96xf32, #tpu.memory_space<vmem>>, vector<1x32x96xf32>
    %180 = vector.shape_cast %179 : vector<1x32x96xf32> to vector<32x96xf32>
    %c1_77 = arith.constant 1 : index
    %c0_78 = arith.constant 0 : index
    %c0_79 = arith.constant 0 : index
    %181 = vector.load %arg5[%c1_77, %c0_78, %c0_79] : memref<2x1x96xf32, #tpu.memory_space<vmem>>, vector<1x1x96xf32>
    %182 = vector.shape_cast %181 : vector<1x1x96xf32> to vector<1x96xf32>
    %c1_80 = arith.constant 1 : index
    %c0_81 = arith.constant 0 : index
    %c0_82 = arith.constant 0 : index
    %183 = vector.load %arg6[%c1_80, %c0_81, %c0_82] : memref<2x32x32xf32, #tpu.memory_space<vmem>>, vector<1x32x32xf32>
    %184 = vector.shape_cast %183 : vector<1x32x32xf32> to vector<32x32xf32>
    %c1_83 = arith.constant 1 : index
    %c0_84 = arith.constant 0 : index
    %c0_85 = arith.constant 0 : index
    %185 = vector.load %arg7[%c1_83, %c0_84, %c0_85] : memref<2x1x32xf32, #tpu.memory_space<vmem>>, vector<1x1x32xf32>
    %186 = vector.shape_cast %185 : vector<1x1x32xf32> to vector<1x32xf32>
    %cst_86 = arith.constant dense<0.000000e+00> : vector<10x96xf32>
    %187 = tpu.matmul %178, %180, %cst_86 {dimension_numbers = #tpu.dot_dimension_numbers<[1], [0], [0], [1], [0, 0, 1, 1], [], []>} : vector<10x32xf32>, vector<32x96xf32>, vector<10x96xf32> -> vector<10x96xf32>
    %188 = vector.broadcast %182 : vector<1x96xf32> to vector<10x96xf32>
    %189 = arith.addf %187, %188 : vector<10x96xf32>
    %190 = vector.extract_strided_slice %189 {offsets = [0, 0], sizes = [10, 32], strides = [1, 1]} : vector<10x96xf32> to vector<10x32xf32>
    %191 = vector.extract_strided_slice %189 {offsets = [0, 32], sizes = [10, 32], strides = [1, 1]} : vector<10x96xf32> to vector<10x32xf32>
    %192 = vector.extract_strided_slice %189 {offsets = [0, 64], sizes = [10, 32], strides = [1, 1]} : vector<10x96xf32> to vector<10x32xf32>
    %cst_87 = arith.constant 0.000000e+00 : f32
    %193 = vector.broadcast %cst_87 : f32 to vector<10x32xf32>
    %194 = vector.broadcast %186 : vector<1x32xf32> to vector<10x32xf32>
    %195 = arith.addf %193, %194 : vector<10x32xf32>
    %196 = vector.extract_strided_slice %190 {offsets = [0, 0], sizes = [10, 8], strides = [1, 1]} : vector<10x32xf32> to vector<10x8xf32>
    %197 = vector.extract_strided_slice %191 {offsets = [0, 0], sizes = [10, 8], strides = [1, 1]} : vector<10x32xf32> to vector<10x8xf32>
    %cst_88 = arith.constant dense<0.000000e+00> : vector<10x10xf32>
    %198 = tpu.matmul %196, %197, %cst_88 {dimension_numbers = #tpu.dot_dimension_numbers<[1], [1], [0], [0], [0, 0, 1, 0], [], []>} : vector<10x8xf32>, vector<10x8xf32>, vector<10x10xf32> -> vector<10x10xf32>
    %cst_89 = arith.constant 0.353553385 : f32
    %199 = vector.broadcast %cst_89 : f32 to vector<10x10xf32>
    %200 = arith.mulf %198, %199 : vector<10x10xf32>
    %201 = vector.broadcast %1 : vector<1x10xf32> to vector<10x10xf32>
    %202 = arith.addf %200, %201 : vector<10x10xf32>
    %cst_90 = arith.constant dense<0xFF800000> : vector<10xf32>
    %203 = vector.multi_reduction <maximumf>, %202, %cst_90 [1] : vector<10x10xf32> to vector<10xf32>
    %204 = vector.shape_cast %203 : vector<10xf32> to vector<10x1xf32>
    %205 = vector.broadcast %204 : vector<10x1xf32> to vector<10x10xf32>
    %206 = arith.subf %202, %205 : vector<10x10xf32>
    %207 = math.exp %206 : vector<10x10xf32>
    %cst_91 = arith.constant dense<0.000000e+00> : vector<10xf32>
    %208 = vector.multi_reduction <add>, %207, %cst_91 [1] : vector<10x10xf32> to vector<10xf32>
    %209 = vector.shape_cast %208 : vector<10xf32> to vector<10x1xf32>
    %210 = vector.broadcast %209 : vector<10x1xf32> to vector<10x10xf32>
    %211 = arith.divf %207, %210 : vector<10x10xf32>
    %212 = vector.extract_strided_slice %192 {offsets = [0, 0], sizes = [10, 8], strides = [1, 1]} : vector<10x32xf32> to vector<10x8xf32>
    %cst_92 = arith.constant dense<0.000000e+00> : vector<10x8xf32>
    %213 = tpu.matmul %211, %212, %cst_92 {dimension_numbers = #tpu.dot_dimension_numbers<[1], [0], [0], [1], [0, 0, 1, 1], [], []>} : vector<10x10xf32>, vector<10x8xf32>, vector<10x8xf32> -> vector<10x8xf32>
    %214 = vector.extract_strided_slice %184 {offsets = [0, 0], sizes = [8, 32], strides = [1, 1]} : vector<32x32xf32> to vector<8x32xf32>
    %cst_93 = arith.constant dense<0.000000e+00> : vector<10x32xf32>
    %215 = tpu.matmul %213, %214, %cst_93 {dimension_numbers = #tpu.dot_dimension_numbers<[1], [0], [0], [1], [0, 0, 1, 1], [], []>} : vector<10x8xf32>, vector<8x32xf32>, vector<10x32xf32> -> vector<10x32xf32>
    %216 = arith.addf %195, %215 : vector<10x32xf32>
    %217 = vector.extract_strided_slice %190 {offsets = [0, 8], sizes = [10, 8], strides = [1, 1]} : vector<10x32xf32> to vector<10x8xf32>
    %218 = vector.extract_strided_slice %191 {offsets = [0, 8], sizes = [10, 8], strides = [1, 1]} : vector<10x32xf32> to vector<10x8xf32>
    %cst_94 = arith.constant dense<0.000000e+00> : vector<10x10xf32>
    %219 = tpu.matmul %217, %218, %cst_94 {dimension_numbers = #tpu.dot_dimension_numbers<[1], [1], [0], [0], [0, 0, 1, 0], [], []>} : vector<10x8xf32>, vector<10x8xf32>, vector<10x10xf32> -> vector<10x10xf32>
    %cst_95 = arith.constant 0.353553385 : f32
    %220 = vector.broadcast %cst_95 : f32 to vector<10x10xf32>
    %221 = arith.mulf %219, %220 : vector<10x10xf32>
    %222 = vector.broadcast %1 : vector<1x10xf32> to vector<10x10xf32>
    %223 = arith.addf %221, %222 : vector<10x10xf32>
    %cst_96 = arith.constant dense<0xFF800000> : vector<10xf32>
    %224 = vector.multi_reduction <maximumf>, %223, %cst_96 [1] : vector<10x10xf32> to vector<10xf32>
    %225 = vector.shape_cast %224 : vector<10xf32> to vector<10x1xf32>
    %226 = vector.broadcast %225 : vector<10x1xf32> to vector<10x10xf32>
    %227 = arith.subf %223, %226 : vector<10x10xf32>
    %228 = math.exp %227 : vector<10x10xf32>
    %cst_97 = arith.constant dense<0.000000e+00> : vector<10xf32>
    %229 = vector.multi_reduction <add>, %228, %cst_97 [1] : vector<10x10xf32> to vector<10xf32>
    %230 = vector.shape_cast %229 : vector<10xf32> to vector<10x1xf32>
    %231 = vector.broadcast %230 : vector<10x1xf32> to vector<10x10xf32>
    %232 = arith.divf %228, %231 : vector<10x10xf32>
    %233 = vector.extract_strided_slice %192 {offsets = [0, 8], sizes = [10, 8], strides = [1, 1]} : vector<10x32xf32> to vector<10x8xf32>
    %cst_98 = arith.constant dense<0.000000e+00> : vector<10x8xf32>
    %234 = tpu.matmul %232, %233, %cst_98 {dimension_numbers = #tpu.dot_dimension_numbers<[1], [0], [0], [1], [0, 0, 1, 1], [], []>} : vector<10x10xf32>, vector<10x8xf32>, vector<10x8xf32> -> vector<10x8xf32>
    %235 = vector.extract_strided_slice %184 {offsets = [8, 0], sizes = [8, 32], strides = [1, 1]} : vector<32x32xf32> to vector<8x32xf32>
    %cst_99 = arith.constant dense<0.000000e+00> : vector<10x32xf32>
    %236 = tpu.matmul %234, %235, %cst_99 {dimension_numbers = #tpu.dot_dimension_numbers<[1], [0], [0], [1], [0, 0, 1, 1], [], []>} : vector<10x8xf32>, vector<8x32xf32>, vector<10x32xf32> -> vector<10x32xf32>
    %237 = arith.addf %216, %236 : vector<10x32xf32>
    %238 = vector.extract_strided_slice %190 {offsets = [0, 16], sizes = [10, 8], strides = [1, 1]} : vector<10x32xf32> to vector<10x8xf32>
    %239 = vector.extract_strided_slice %191 {offsets = [0, 16], sizes = [10, 8], strides = [1, 1]} : vector<10x32xf32> to vector<10x8xf32>
    %cst_100 = arith.constant dense<0.000000e+00> : vector<10x10xf32>
    %240 = tpu.matmul %238, %239, %cst_100 {dimension_numbers = #tpu.dot_dimension_numbers<[1], [1], [0], [0], [0, 0, 1, 0], [], []>} : vector<10x8xf32>, vector<10x8xf32>, vector<10x10xf32> -> vector<10x10xf32>
    %cst_101 = arith.constant 0.353553385 : f32
    %241 = vector.broadcast %cst_101 : f32 to vector<10x10xf32>
    %242 = arith.mulf %240, %241 : vector<10x10xf32>
    %243 = vector.broadcast %1 : vector<1x10xf32> to vector<10x10xf32>
    %244 = arith.addf %242, %243 : vector<10x10xf32>
    %cst_102 = arith.constant dense<0xFF800000> : vector<10xf32>
    %245 = vector.multi_reduction <maximumf>, %244, %cst_102 [1] : vector<10x10xf32> to vector<10xf32>
    %246 = vector.shape_cast %245 : vector<10xf32> to vector<10x1xf32>
    %247 = vector.broadcast %246 : vector<10x1xf32> to vector<10x10xf32>
    %248 = arith.subf %244, %247 : vector<10x10xf32>
    %249 = math.exp %248 : vector<10x10xf32>
    %cst_103 = arith.constant dense<0.000000e+00> : vector<10xf32>
    %250 = vector.multi_reduction <add>, %249, %cst_103 [1] : vector<10x10xf32> to vector<10xf32>
    %251 = vector.shape_cast %250 : vector<10xf32> to vector<10x1xf32>
    %252 = vector.broadcast %251 : vector<10x1xf32> to vector<10x10xf32>
    %253 = arith.divf %249, %252 : vector<10x10xf32>
    %254 = vector.extract_strided_slice %192 {offsets = [0, 16], sizes = [10, 8], strides = [1, 1]} : vector<10x32xf32> to vector<10x8xf32>
    %cst_104 = arith.constant dense<0.000000e+00> : vector<10x8xf32>
    %255 = tpu.matmul %253, %254, %cst_104 {dimension_numbers = #tpu.dot_dimension_numbers<[1], [0], [0], [1], [0, 0, 1, 1], [], []>} : vector<10x10xf32>, vector<10x8xf32>, vector<10x8xf32> -> vector<10x8xf32>
    %256 = vector.extract_strided_slice %184 {offsets = [16, 0], sizes = [8, 32], strides = [1, 1]} : vector<32x32xf32> to vector<8x32xf32>
    %cst_105 = arith.constant dense<0.000000e+00> : vector<10x32xf32>
    %257 = tpu.matmul %255, %256, %cst_105 {dimension_numbers = #tpu.dot_dimension_numbers<[1], [0], [0], [1], [0, 0, 1, 1], [], []>} : vector<10x8xf32>, vector<8x32xf32>, vector<10x32xf32> -> vector<10x32xf32>
    %258 = arith.addf %237, %257 : vector<10x32xf32>
    %259 = vector.extract_strided_slice %190 {offsets = [0, 24], sizes = [10, 8], strides = [1, 1]} : vector<10x32xf32> to vector<10x8xf32>
    %260 = vector.extract_strided_slice %191 {offsets = [0, 24], sizes = [10, 8], strides = [1, 1]} : vector<10x32xf32> to vector<10x8xf32>
    %cst_106 = arith.constant dense<0.000000e+00> : vector<10x10xf32>
    %261 = tpu.matmul %259, %260, %cst_106 {dimension_numbers = #tpu.dot_dimension_numbers<[1], [1], [0], [0], [0, 0, 1, 0], [], []>} : vector<10x8xf32>, vector<10x8xf32>, vector<10x10xf32> -> vector<10x10xf32>
    %cst_107 = arith.constant 0.353553385 : f32
    %262 = vector.broadcast %cst_107 : f32 to vector<10x10xf32>
    %263 = arith.mulf %261, %262 : vector<10x10xf32>
    %264 = vector.broadcast %1 : vector<1x10xf32> to vector<10x10xf32>
    %265 = arith.addf %263, %264 : vector<10x10xf32>
    %cst_108 = arith.constant dense<0xFF800000> : vector<10xf32>
    %266 = vector.multi_reduction <maximumf>, %265, %cst_108 [1] : vector<10x10xf32> to vector<10xf32>
    %267 = vector.shape_cast %266 : vector<10xf32> to vector<10x1xf32>
    %268 = vector.broadcast %267 : vector<10x1xf32> to vector<10x10xf32>
    %269 = arith.subf %265, %268 : vector<10x10xf32>
    %270 = math.exp %269 : vector<10x10xf32>
    %cst_109 = arith.constant dense<0.000000e+00> : vector<10xf32>
    %271 = vector.multi_reduction <add>, %270, %cst_109 [1] : vector<10x10xf32> to vector<10xf32>
    %272 = vector.shape_cast %271 : vector<10xf32> to vector<10x1xf32>
    %273 = vector.broadcast %272 : vector<10x1xf32> to vector<10x10xf32>
    %274 = arith.divf %270, %273 : vector<10x10xf32>
    %275 = vector.extract_strided_slice %192 {offsets = [0, 24], sizes = [10, 8], strides = [1, 1]} : vector<10x32xf32> to vector<10x8xf32>
    %cst_110 = arith.constant dense<0.000000e+00> : vector<10x8xf32>
    %276 = tpu.matmul %274, %275, %cst_110 {dimension_numbers = #tpu.dot_dimension_numbers<[1], [0], [0], [1], [0, 0, 1, 1], [], []>} : vector<10x10xf32>, vector<10x8xf32>, vector<10x8xf32> -> vector<10x8xf32>
    %277 = vector.extract_strided_slice %184 {offsets = [24, 0], sizes = [8, 32], strides = [1, 1]} : vector<32x32xf32> to vector<8x32xf32>
    %cst_111 = arith.constant dense<0.000000e+00> : vector<10x32xf32>
    %278 = tpu.matmul %276, %277, %cst_111 {dimension_numbers = #tpu.dot_dimension_numbers<[1], [0], [0], [1], [0, 0, 1, 1], [], []>} : vector<10x8xf32>, vector<8x32xf32>, vector<10x32xf32> -> vector<10x32xf32>
    %279 = arith.addf %258, %278 : vector<10x32xf32>
    %c1_112 = arith.constant 1 : index
    %c0_113 = arith.constant 0 : index
    %c0_114 = arith.constant 0 : index
    %c0_115 = arith.constant 0 : index
    %280 = vector.load %arg8[%c1_112, %c0_113, %c0_114, %c0_115] : memref<2x2x1x32xf32, #tpu.memory_space<vmem>>, vector<1x2x1x32xf32>
    %281 = vector.shape_cast %280 : vector<1x2x1x32xf32> to vector<2x1x32xf32>
    %282 = arith.addf %178, %279 : vector<10x32xf32>
    %283 = vector.extract_strided_slice %281 {offsets = [0, 0, 0], sizes = [1, 1, 32], strides = [1, 1, 1]} : vector<2x1x32xf32> to vector<1x1x32xf32>
    %284 = vector.shape_cast %283 : vector<1x1x32xf32> to vector<1x32xf32>
    %285 = vector.extract_strided_slice %281 {offsets = [1, 0, 0], sizes = [1, 1, 32], strides = [1, 1, 1]} : vector<2x1x32xf32> to vector<1x1x32xf32>
    %286 = vector.shape_cast %285 : vector<1x1x32xf32> to vector<1x32xf32>
    %cst_116 = arith.constant dense<0.000000e+00> : vector<10xf32>
    %287 = vector.multi_reduction <add>, %282, %cst_116 [1] : vector<10x32xf32> to vector<10xf32>
    %288 = vector.shape_cast %287 : vector<10xf32> to vector<10x1xf32>
    %cst_117 = arith.constant 3.200000e+01 : f32
    %289 = vector.broadcast %cst_117 : f32 to vector<10x1xf32>
    %290 = arith.divf %288, %289 : vector<10x1xf32>
    %291 = vector.broadcast %290 : vector<10x1xf32> to vector<10x32xf32>
    %292 = arith.subf %282, %291 : vector<10x32xf32>
    %293 = arith.mulf %292, %292 : vector<10x32xf32>
    %cst_118 = arith.constant dense<0.000000e+00> : vector<10xf32>
    %294 = vector.multi_reduction <add>, %293, %cst_118 [1] : vector<10x32xf32> to vector<10xf32>
    %295 = vector.shape_cast %294 : vector<10xf32> to vector<10x1xf32>
    %cst_119 = arith.constant 3.200000e+01 : f32
    %296 = vector.broadcast %cst_119 : f32 to vector<10x1xf32>
    %297 = arith.divf %295, %296 : vector<10x1xf32>
    %298 = vector.broadcast %290 : vector<10x1xf32> to vector<10x32xf32>
    %299 = arith.subf %282, %298 : vector<10x32xf32>
    %cst_120 = arith.constant 9.99999974E-6 : f32
    %300 = vector.broadcast %cst_120 : f32 to vector<10x1xf32>
    %301 = arith.addf %297, %300 : vector<10x1xf32>
    %302 = math.rsqrt %301 : vector<10x1xf32>
    %303 = vector.broadcast %302 : vector<10x1xf32> to vector<10x32xf32>
    %304 = arith.mulf %299, %303 : vector<10x32xf32>
    %305 = vector.broadcast %284 : vector<1x32xf32> to vector<10x32xf32>
    %306 = arith.mulf %304, %305 : vector<10x32xf32>
    %307 = vector.broadcast %286 : vector<1x32xf32> to vector<10x32xf32>
    %308 = arith.addf %306, %307 : vector<10x32xf32>
    %c1_121 = arith.constant 1 : index
    %c0_122 = arith.constant 0 : index
    %c0_123 = arith.constant 0 : index
    %309 = vector.load %arg10[%c1_121, %c0_122, %c0_123] : memref<2x32x64xf32, #tpu.memory_space<vmem>>, vector<1x32x64xf32>
    %310 = vector.shape_cast %309 : vector<1x32x64xf32> to vector<32x64xf32>
    %c1_124 = arith.constant 1 : index
    %c0_125 = arith.constant 0 : index
    %c0_126 = arith.constant 0 : index
    %311 = vector.load %arg11[%c1_124, %c0_125, %c0_126] : memref<2x1x64xf32, #tpu.memory_space<vmem>>, vector<1x1x64xf32>
    %312 = vector.shape_cast %311 : vector<1x1x64xf32> to vector<1x64xf32>
    %c1_127 = arith.constant 1 : index
    %c0_128 = arith.constant 0 : index
    %c0_129 = arith.constant 0 : index
    %313 = vector.load %arg12[%c1_127, %c0_128, %c0_129] : memref<2x64x32xf32, #tpu.memory_space<vmem>>, vector<1x64x32xf32>
    %314 = vector.shape_cast %313 : vector<1x64x32xf32> to vector<64x32xf32>
    %c1_130 = arith.constant 1 : index
    %c0_131 = arith.constant 0 : index
    %c0_132 = arith.constant 0 : index
    %315 = vector.load %arg13[%c1_130, %c0_131, %c0_132] : memref<2x1x32xf32, #tpu.memory_space<vmem>>, vector<1x1x32xf32>
    %316 = vector.shape_cast %315 : vector<1x1x32xf32> to vector<1x32xf32>
    %cst_133 = arith.constant dense<0.000000e+00> : vector<10x64xf32>
    %317 = tpu.matmul %308, %310, %cst_133 {dimension_numbers = #tpu.dot_dimension_numbers<[1], [0], [0], [1], [0, 0, 1, 1], [], []>} : vector<10x32xf32>, vector<32x64xf32>, vector<10x64xf32> -> vector<10x64xf32>
    %318 = vector.broadcast %312 : vector<1x64xf32> to vector<10x64xf32>
    %319 = arith.addf %317, %318 : vector<10x64xf32>
    %cst_134 = arith.constant 0.000000e+00 : f32
    %320 = vector.broadcast %cst_134 : f32 to vector<10x64xf32>
    %321 = arith.maximumf %319, %320 : vector<10x64xf32>
    %cst_135 = arith.constant dense<0.000000e+00> : vector<10x32xf32>
    %322 = tpu.matmul %321, %314, %cst_135 {dimension_numbers = #tpu.dot_dimension_numbers<[1], [0], [0], [1], [0, 0, 1, 1], [], []>} : vector<10x64xf32>, vector<64x32xf32>, vector<10x32xf32> -> vector<10x32xf32>
    %323 = vector.broadcast %316 : vector<1x32xf32> to vector<10x32xf32>
    %324 = arith.addf %322, %323 : vector<10x32xf32>
    %c1_136 = arith.constant 1 : index
    %c0_137 = arith.constant 0 : index
    %c0_138 = arith.constant 0 : index
    %c0_139 = arith.constant 0 : index
    %325 = vector.load %arg9[%c1_136, %c0_137, %c0_138, %c0_139] : memref<2x2x1x32xf32, #tpu.memory_space<vmem>>, vector<1x2x1x32xf32>
    %326 = vector.shape_cast %325 : vector<1x2x1x32xf32> to vector<2x1x32xf32>
    %327 = arith.addf %308, %324 : vector<10x32xf32>
    %328 = vector.extract_strided_slice %326 {offsets = [0, 0, 0], sizes = [1, 1, 32], strides = [1, 1, 1]} : vector<2x1x32xf32> to vector<1x1x32xf32>
    %329 = vector.shape_cast %328 : vector<1x1x32xf32> to vector<1x32xf32>
    %330 = vector.extract_strided_slice %326 {offsets = [1, 0, 0], sizes = [1, 1, 32], strides = [1, 1, 1]} : vector<2x1x32xf32> to vector<1x1x32xf32>
    %331 = vector.shape_cast %330 : vector<1x1x32xf32> to vector<1x32xf32>
    %cst_140 = arith.constant dense<0.000000e+00> : vector<10xf32>
    %332 = vector.multi_reduction <add>, %327, %cst_140 [1] : vector<10x32xf32> to vector<10xf32>
    %333 = vector.shape_cast %332 : vector<10xf32> to vector<10x1xf32>
    %cst_141 = arith.constant 3.200000e+01 : f32
    %334 = vector.broadcast %cst_141 : f32 to vector<10x1xf32>
    %335 = arith.divf %333, %334 : vector<10x1xf32>
    %336 = vector.broadcast %335 : vector<10x1xf32> to vector<10x32xf32>
    %337 = arith.subf %327, %336 : vector<10x32xf32>
    %338 = arith.mulf %337, %337 : vector<10x32xf32>
    %cst_142 = arith.constant dense<0.000000e+00> : vector<10xf32>
    %339 = vector.multi_reduction <add>, %338, %cst_142 [1] : vector<10x32xf32> to vector<10xf32>
    %340 = vector.shape_cast %339 : vector<10xf32> to vector<10x1xf32>
    %cst_143 = arith.constant 3.200000e+01 : f32
    %341 = vector.broadcast %cst_143 : f32 to vector<10x1xf32>
    %342 = arith.divf %340, %341 : vector<10x1xf32>
    %343 = vector.broadcast %335 : vector<10x1xf32> to vector<10x32xf32>
    %344 = arith.subf %327, %343 : vector<10x32xf32>
    %cst_144 = arith.constant 9.99999974E-6 : f32
    %345 = vector.broadcast %cst_144 : f32 to vector<10x1xf32>
    %346 = arith.addf %342, %345 : vector<10x1xf32>
    %347 = math.rsqrt %346 : vector<10x1xf32>
    %348 = vector.broadcast %347 : vector<10x1xf32> to vector<10x32xf32>
    %349 = arith.mulf %344, %348 : vector<10x32xf32>
    %350 = vector.broadcast %329 : vector<1x32xf32> to vector<10x32xf32>
    %351 = arith.mulf %349, %350 : vector<10x32xf32>
    %352 = vector.broadcast %331 : vector<1x32xf32> to vector<10x32xf32>
    %353 = arith.addf %351, %352 : vector<10x32xf32>
    %c0_145 = arith.constant 0 : index
    %c0_146 = arith.constant 0 : index
    %c0_147 = arith.constant 0 : index
    %354 = vector.load %arg29[%c0_145, %c0_146, %c0_147] : memref<2x1x32xf32, #tpu.memory_space<vmem>>, vector<2x1x32xf32>
    %355 = vector.extract_strided_slice %354 {offsets = [0, 0, 0], sizes = [1, 1, 32], strides = [1, 1, 1]} : vector<2x1x32xf32> to vector<1x1x32xf32>
    %356 = vector.shape_cast %355 : vector<1x1x32xf32> to vector<1x32xf32>
    %357 = vector.extract_strided_slice %354 {offsets = [1, 0, 0], sizes = [1, 1, 32], strides = [1, 1, 1]} : vector<2x1x32xf32> to vector<1x1x32xf32>
    %358 = vector.shape_cast %357 : vector<1x1x32xf32> to vector<1x32xf32>
    %cst_148 = arith.constant dense<0.000000e+00> : vector<10xf32>
    %359 = vector.multi_reduction <add>, %353, %cst_148 [1] : vector<10x32xf32> to vector<10xf32>
    %360 = vector.shape_cast %359 : vector<10xf32> to vector<10x1xf32>
    %cst_149 = arith.constant 3.200000e+01 : f32
    %361 = vector.broadcast %cst_149 : f32 to vector<10x1xf32>
    %362 = arith.divf %360, %361 : vector<10x1xf32>
    %363 = vector.broadcast %362 : vector<10x1xf32> to vector<10x32xf32>
    %364 = arith.subf %353, %363 : vector<10x32xf32>
    %365 = arith.mulf %364, %364 : vector<10x32xf32>
    %cst_150 = arith.constant dense<0.000000e+00> : vector<10xf32>
    %366 = vector.multi_reduction <add>, %365, %cst_150 [1] : vector<10x32xf32> to vector<10xf32>
    %367 = vector.shape_cast %366 : vector<10xf32> to vector<10x1xf32>
    %cst_151 = arith.constant 3.200000e+01 : f32
    %368 = vector.broadcast %cst_151 : f32 to vector<10x1xf32>
    %369 = arith.divf %367, %368 : vector<10x1xf32>
    %370 = vector.broadcast %362 : vector<10x1xf32> to vector<10x32xf32>
    %371 = arith.subf %353, %370 : vector<10x32xf32>
    %cst_152 = arith.constant 9.99999974E-6 : f32
    %372 = vector.broadcast %cst_152 : f32 to vector<10x1xf32>
    %373 = arith.addf %369, %372 : vector<10x1xf32>
    %374 = math.rsqrt %373 : vector<10x1xf32>
    %375 = vector.broadcast %374 : vector<10x1xf32> to vector<10x32xf32>
    %376 = arith.mulf %371, %375 : vector<10x32xf32>
    %377 = vector.broadcast %356 : vector<1x32xf32> to vector<10x32xf32>
    %378 = arith.mulf %376, %377 : vector<10x32xf32>
    %379 = vector.broadcast %358 : vector<1x32xf32> to vector<10x32xf32>
    %380 = arith.addf %378, %379 : vector<10x32xf32>
    %c0_153 = arith.constant 0 : index
    %c0_154 = arith.constant 0 : index
    %c0_155 = arith.constant 0 : index
    %381 = vector.load %arg3[%c0_153, %c0_154, %c0_155] : memref<1x8x32xf32, #tpu.memory_space<vmem>>, vector<1x8x32xf32>
    %382 = vector.shape_cast %381 : vector<1x8x32xf32> to vector<8x32xf32>
    %383 = tpu.iota {dimensions = array<i32: 0>} : vector<8x8xi32>
    %384 = tpu.iota {dimensions = array<i32: 1>} : vector<8x8xi32>
    %385 = arith.cmpi sgt, %384, %383 : vector<8x8xi32>
    %cst_156 = arith.constant -1.000000e+09 : f32
    %cst_157 = arith.constant 0.000000e+00 : f32
    %386 = vector.broadcast %cst_156 : f32 to vector<8x8xf32>
    %387 = vector.broadcast %cst_157 : f32 to vector<8x8xf32>
    %388 = arith.select %385, %386, %387 : vector<8x8xi1>, vector<8x8xf32>
    %c0_158 = arith.constant 0 : index
    %c0_159 = arith.constant 0 : index
    %c0_160 = arith.constant 0 : index
    %389 = vector.load %arg14[%c0_158, %c0_159, %c0_160] : memref<2x32x96xf32, #tpu.memory_space<vmem>>, vector<1x32x96xf32>
    %390 = vector.shape_cast %389 : vector<1x32x96xf32> to vector<32x96xf32>
    %c0_161 = arith.constant 0 : index
    %c0_162 = arith.constant 0 : index
    %c0_163 = arith.constant 0 : index
    %391 = vector.load %arg15[%c0_161, %c0_162, %c0_163] : memref<2x1x96xf32, #tpu.memory_space<vmem>>, vector<1x1x96xf32>
    %392 = vector.shape_cast %391 : vector<1x1x96xf32> to vector<1x96xf32>
    %c0_164 = arith.constant 0 : index
    %c0_165 = arith.constant 0 : index
    %c0_166 = arith.constant 0 : index
    %393 = vector.load %arg16[%c0_164, %c0_165, %c0_166] : memref<2x32x32xf32, #tpu.memory_space<vmem>>, vector<1x32x32xf32>
    %394 = vector.shape_cast %393 : vector<1x32x32xf32> to vector<32x32xf32>
    %c0_167 = arith.constant 0 : index
    %c0_168 = arith.constant 0 : index
    %c0_169 = arith.constant 0 : index
    %395 = vector.load %arg17[%c0_167, %c0_168, %c0_169] : memref<2x1x32xf32, #tpu.memory_space<vmem>>, vector<1x1x32xf32>
    %396 = vector.shape_cast %395 : vector<1x1x32xf32> to vector<1x32xf32>
    %cst_170 = arith.constant dense<0.000000e+00> : vector<8x96xf32>
    %397 = tpu.matmul %382, %390, %cst_170 {dimension_numbers = #tpu.dot_dimension_numbers<[1], [0], [0], [1], [0, 0, 1, 1], [], []>} : vector<8x32xf32>, vector<32x96xf32>, vector<8x96xf32> -> vector<8x96xf32>
    %398 = vector.broadcast %392 : vector<1x96xf32> to vector<8x96xf32>
    %399 = arith.addf %397, %398 : vector<8x96xf32>
    %400 = vector.extract_strided_slice %399 {offsets = [0, 0], sizes = [8, 32], strides = [1, 1]} : vector<8x96xf32> to vector<8x32xf32>
    %401 = vector.extract_strided_slice %399 {offsets = [0, 32], sizes = [8, 32], strides = [1, 1]} : vector<8x96xf32> to vector<8x32xf32>
    %402 = vector.extract_strided_slice %399 {offsets = [0, 64], sizes = [8, 32], strides = [1, 1]} : vector<8x96xf32> to vector<8x32xf32>
    %cst_171 = arith.constant 0.000000e+00 : f32
    %403 = vector.broadcast %cst_171 : f32 to vector<8x32xf32>
    %404 = vector.broadcast %396 : vector<1x32xf32> to vector<8x32xf32>
    %405 = arith.addf %403, %404 : vector<8x32xf32>
    %406 = vector.extract_strided_slice %400 {offsets = [0, 0], sizes = [8, 8], strides = [1, 1]} : vector<8x32xf32> to vector<8x8xf32>
    %407 = vector.extract_strided_slice %401 {offsets = [0, 0], sizes = [8, 8], strides = [1, 1]} : vector<8x32xf32> to vector<8x8xf32>
    %cst_172 = arith.constant dense<0.000000e+00> : vector<8x8xf32>
    %408 = tpu.matmul %406, %407, %cst_172 {dimension_numbers = #tpu.dot_dimension_numbers<[1], [1], [0], [0], [0, 0, 1, 0], [], []>} : vector<8x8xf32>, vector<8x8xf32>, vector<8x8xf32> -> vector<8x8xf32>
    %cst_173 = arith.constant 0.353553385 : f32
    %409 = vector.broadcast %cst_173 : f32 to vector<8x8xf32>
    %410 = arith.mulf %408, %409 : vector<8x8xf32>
    %411 = arith.addf %410, %388 : vector<8x8xf32>
    %cst_174 = arith.constant dense<0xFF800000> : vector<8xf32>
    %412 = vector.multi_reduction <maximumf>, %411, %cst_174 [1] : vector<8x8xf32> to vector<8xf32>
    %413 = vector.shape_cast %412 : vector<8xf32> to vector<8x1xf32>
    %414 = vector.broadcast %413 : vector<8x1xf32> to vector<8x8xf32>
    %415 = arith.subf %411, %414 : vector<8x8xf32>
    %416 = math.exp %415 : vector<8x8xf32>
    %cst_175 = arith.constant dense<0.000000e+00> : vector<8xf32>
    %417 = vector.multi_reduction <add>, %416, %cst_175 [1] : vector<8x8xf32> to vector<8xf32>
    %418 = vector.shape_cast %417 : vector<8xf32> to vector<8x1xf32>
    %419 = vector.broadcast %418 : vector<8x1xf32> to vector<8x8xf32>
    %420 = arith.divf %416, %419 : vector<8x8xf32>
    %421 = vector.extract_strided_slice %402 {offsets = [0, 0], sizes = [8, 8], strides = [1, 1]} : vector<8x32xf32> to vector<8x8xf32>
    %cst_176 = arith.constant dense<0.000000e+00> : vector<8x8xf32>
    %422 = tpu.matmul %420, %421, %cst_176 {dimension_numbers = #tpu.dot_dimension_numbers<[1], [0], [0], [1], [0, 0, 1, 1], [], []>} : vector<8x8xf32>, vector<8x8xf32>, vector<8x8xf32> -> vector<8x8xf32>
    %423 = vector.extract_strided_slice %394 {offsets = [0, 0], sizes = [8, 32], strides = [1, 1]} : vector<32x32xf32> to vector<8x32xf32>
    %cst_177 = arith.constant dense<0.000000e+00> : vector<8x32xf32>
    %424 = tpu.matmul %422, %423, %cst_177 {dimension_numbers = #tpu.dot_dimension_numbers<[1], [0], [0], [1], [0, 0, 1, 1], [], []>} : vector<8x8xf32>, vector<8x32xf32>, vector<8x32xf32> -> vector<8x32xf32>
    %425 = arith.addf %405, %424 : vector<8x32xf32>
    %426 = vector.extract_strided_slice %400 {offsets = [0, 8], sizes = [8, 8], strides = [1, 1]} : vector<8x32xf32> to vector<8x8xf32>
    %427 = vector.extract_strided_slice %401 {offsets = [0, 8], sizes = [8, 8], strides = [1, 1]} : vector<8x32xf32> to vector<8x8xf32>
    %cst_178 = arith.constant dense<0.000000e+00> : vector<8x8xf32>
    %428 = tpu.matmul %426, %427, %cst_178 {dimension_numbers = #tpu.dot_dimension_numbers<[1], [1], [0], [0], [0, 0, 1, 0], [], []>} : vector<8x8xf32>, vector<8x8xf32>, vector<8x8xf32> -> vector<8x8xf32>
    %cst_179 = arith.constant 0.353553385 : f32
    %429 = vector.broadcast %cst_179 : f32 to vector<8x8xf32>
    %430 = arith.mulf %428, %429 : vector<8x8xf32>
    %431 = arith.addf %430, %388 : vector<8x8xf32>
    %cst_180 = arith.constant dense<0xFF800000> : vector<8xf32>
    %432 = vector.multi_reduction <maximumf>, %431, %cst_180 [1] : vector<8x8xf32> to vector<8xf32>
    %433 = vector.shape_cast %432 : vector<8xf32> to vector<8x1xf32>
    %434 = vector.broadcast %433 : vector<8x1xf32> to vector<8x8xf32>
    %435 = arith.subf %431, %434 : vector<8x8xf32>
    %436 = math.exp %435 : vector<8x8xf32>
    %cst_181 = arith.constant dense<0.000000e+00> : vector<8xf32>
    %437 = vector.multi_reduction <add>, %436, %cst_181 [1] : vector<8x8xf32> to vector<8xf32>
    %438 = vector.shape_cast %437 : vector<8xf32> to vector<8x1xf32>
    %439 = vector.broadcast %438 : vector<8x1xf32> to vector<8x8xf32>
    %440 = arith.divf %436, %439 : vector<8x8xf32>
    %441 = vector.extract_strided_slice %402 {offsets = [0, 8], sizes = [8, 8], strides = [1, 1]} : vector<8x32xf32> to vector<8x8xf32>
    %cst_182 = arith.constant dense<0.000000e+00> : vector<8x8xf32>
    %442 = tpu.matmul %440, %441, %cst_182 {dimension_numbers = #tpu.dot_dimension_numbers<[1], [0], [0], [1], [0, 0, 1, 1], [], []>} : vector<8x8xf32>, vector<8x8xf32>, vector<8x8xf32> -> vector<8x8xf32>
    %443 = vector.extract_strided_slice %394 {offsets = [8, 0], sizes = [8, 32], strides = [1, 1]} : vector<32x32xf32> to vector<8x32xf32>
    %cst_183 = arith.constant dense<0.000000e+00> : vector<8x32xf32>
    %444 = tpu.matmul %442, %443, %cst_183 {dimension_numbers = #tpu.dot_dimension_numbers<[1], [0], [0], [1], [0, 0, 1, 1], [], []>} : vector<8x8xf32>, vector<8x32xf32>, vector<8x32xf32> -> vector<8x32xf32>
    %445 = arith.addf %425, %444 : vector<8x32xf32>
    %446 = vector.extract_strided_slice %400 {offsets = [0, 16], sizes = [8, 8], strides = [1, 1]} : vector<8x32xf32> to vector<8x8xf32>
    %447 = vector.extract_strided_slice %401 {offsets = [0, 16], sizes = [8, 8], strides = [1, 1]} : vector<8x32xf32> to vector<8x8xf32>
    %cst_184 = arith.constant dense<0.000000e+00> : vector<8x8xf32>
    %448 = tpu.matmul %446, %447, %cst_184 {dimension_numbers = #tpu.dot_dimension_numbers<[1], [1], [0], [0], [0, 0, 1, 0], [], []>} : vector<8x8xf32>, vector<8x8xf32>, vector<8x8xf32> -> vector<8x8xf32>
    %cst_185 = arith.constant 0.353553385 : f32
    %449 = vector.broadcast %cst_185 : f32 to vector<8x8xf32>
    %450 = arith.mulf %448, %449 : vector<8x8xf32>
    %451 = arith.addf %450, %388 : vector<8x8xf32>
    %cst_186 = arith.constant dense<0xFF800000> : vector<8xf32>
    %452 = vector.multi_reduction <maximumf>, %451, %cst_186 [1] : vector<8x8xf32> to vector<8xf32>
    %453 = vector.shape_cast %452 : vector<8xf32> to vector<8x1xf32>
    %454 = vector.broadcast %453 : vector<8x1xf32> to vector<8x8xf32>
    %455 = arith.subf %451, %454 : vector<8x8xf32>
    %456 = math.exp %455 : vector<8x8xf32>
    %cst_187 = arith.constant dense<0.000000e+00> : vector<8xf32>
    %457 = vector.multi_reduction <add>, %456, %cst_187 [1] : vector<8x8xf32> to vector<8xf32>
    %458 = vector.shape_cast %457 : vector<8xf32> to vector<8x1xf32>
    %459 = vector.broadcast %458 : vector<8x1xf32> to vector<8x8xf32>
    %460 = arith.divf %456, %459 : vector<8x8xf32>
    %461 = vector.extract_strided_slice %402 {offsets = [0, 16], sizes = [8, 8], strides = [1, 1]} : vector<8x32xf32> to vector<8x8xf32>
    %cst_188 = arith.constant dense<0.000000e+00> : vector<8x8xf32>
    %462 = tpu.matmul %460, %461, %cst_188 {dimension_numbers = #tpu.dot_dimension_numbers<[1], [0], [0], [1], [0, 0, 1, 1], [], []>} : vector<8x8xf32>, vector<8x8xf32>, vector<8x8xf32> -> vector<8x8xf32>
    %463 = vector.extract_strided_slice %394 {offsets = [16, 0], sizes = [8, 32], strides = [1, 1]} : vector<32x32xf32> to vector<8x32xf32>
    %cst_189 = arith.constant dense<0.000000e+00> : vector<8x32xf32>
    %464 = tpu.matmul %462, %463, %cst_189 {dimension_numbers = #tpu.dot_dimension_numbers<[1], [0], [0], [1], [0, 0, 1, 1], [], []>} : vector<8x8xf32>, vector<8x32xf32>, vector<8x32xf32> -> vector<8x32xf32>
    %465 = arith.addf %445, %464 : vector<8x32xf32>
    %466 = vector.extract_strided_slice %400 {offsets = [0, 24], sizes = [8, 8], strides = [1, 1]} : vector<8x32xf32> to vector<8x8xf32>
    %467 = vector.extract_strided_slice %401 {offsets = [0, 24], sizes = [8, 8], strides = [1, 1]} : vector<8x32xf32> to vector<8x8xf32>
    %cst_190 = arith.constant dense<0.000000e+00> : vector<8x8xf32>
    %468 = tpu.matmul %466, %467, %cst_190 {dimension_numbers = #tpu.dot_dimension_numbers<[1], [1], [0], [0], [0, 0, 1, 0], [], []>} : vector<8x8xf32>, vector<8x8xf32>, vector<8x8xf32> -> vector<8x8xf32>
    %cst_191 = arith.constant 0.353553385 : f32
    %469 = vector.broadcast %cst_191 : f32 to vector<8x8xf32>
    %470 = arith.mulf %468, %469 : vector<8x8xf32>
    %471 = arith.addf %470, %388 : vector<8x8xf32>
    %cst_192 = arith.constant dense<0xFF800000> : vector<8xf32>
    %472 = vector.multi_reduction <maximumf>, %471, %cst_192 [1] : vector<8x8xf32> to vector<8xf32>
    %473 = vector.shape_cast %472 : vector<8xf32> to vector<8x1xf32>
    %474 = vector.broadcast %473 : vector<8x1xf32> to vector<8x8xf32>
    %475 = arith.subf %471, %474 : vector<8x8xf32>
    %476 = math.exp %475 : vector<8x8xf32>
    %cst_193 = arith.constant dense<0.000000e+00> : vector<8xf32>
    %477 = vector.multi_reduction <add>, %476, %cst_193 [1] : vector<8x8xf32> to vector<8xf32>
    %478 = vector.shape_cast %477 : vector<8xf32> to vector<8x1xf32>
    %479 = vector.broadcast %478 : vector<8x1xf32> to vector<8x8xf32>
    %480 = arith.divf %476, %479 : vector<8x8xf32>
    %481 = vector.extract_strided_slice %402 {offsets = [0, 24], sizes = [8, 8], strides = [1, 1]} : vector<8x32xf32> to vector<8x8xf32>
    %cst_194 = arith.constant dense<0.000000e+00> : vector<8x8xf32>
    %482 = tpu.matmul %480, %481, %cst_194 {dimension_numbers = #tpu.dot_dimension_numbers<[1], [0], [0], [1], [0, 0, 1, 1], [], []>} : vector<8x8xf32>, vector<8x8xf32>, vector<8x8xf32> -> vector<8x8xf32>
    %483 = vector.extract_strided_slice %394 {offsets = [24, 0], sizes = [8, 32], strides = [1, 1]} : vector<32x32xf32> to vector<8x32xf32>
    %cst_195 = arith.constant dense<0.000000e+00> : vector<8x32xf32>
    %484 = tpu.matmul %482, %483, %cst_195 {dimension_numbers = #tpu.dot_dimension_numbers<[1], [0], [0], [1], [0, 0, 1, 1], [], []>} : vector<8x8xf32>, vector<8x32xf32>, vector<8x32xf32> -> vector<8x32xf32>
    %485 = arith.addf %465, %484 : vector<8x32xf32>
    %c0_196 = arith.constant 0 : index
    %c0_197 = arith.constant 0 : index
    %c0_198 = arith.constant 0 : index
    %c0_199 = arith.constant 0 : index
    %486 = vector.load %arg22[%c0_196, %c0_197, %c0_198, %c0_199] : memref<2x2x1x32xf32, #tpu.memory_space<vmem>>, vector<1x2x1x32xf32>
    %487 = vector.shape_cast %486 : vector<1x2x1x32xf32> to vector<2x1x32xf32>
    %488 = arith.addf %382, %485 : vector<8x32xf32>
    %489 = vector.extract_strided_slice %487 {offsets = [0, 0, 0], sizes = [1, 1, 32], strides = [1, 1, 1]} : vector<2x1x32xf32> to vector<1x1x32xf32>
    %490 = vector.shape_cast %489 : vector<1x1x32xf32> to vector<1x32xf32>
    %491 = vector.extract_strided_slice %487 {offsets = [1, 0, 0], sizes = [1, 1, 32], strides = [1, 1, 1]} : vector<2x1x32xf32> to vector<1x1x32xf32>
    %492 = vector.shape_cast %491 : vector<1x1x32xf32> to vector<1x32xf32>
    %cst_200 = arith.constant dense<0.000000e+00> : vector<8xf32>
    %493 = vector.multi_reduction <add>, %488, %cst_200 [1] : vector<8x32xf32> to vector<8xf32>
    %494 = vector.shape_cast %493 : vector<8xf32> to vector<8x1xf32>
    %cst_201 = arith.constant 3.200000e+01 : f32
    %495 = vector.broadcast %cst_201 : f32 to vector<8x1xf32>
    %496 = arith.divf %494, %495 : vector<8x1xf32>
    %497 = vector.broadcast %496 : vector<8x1xf32> to vector<8x32xf32>
    %498 = arith.subf %488, %497 : vector<8x32xf32>
    %499 = arith.mulf %498, %498 : vector<8x32xf32>
    %cst_202 = arith.constant dense<0.000000e+00> : vector<8xf32>
    %500 = vector.multi_reduction <add>, %499, %cst_202 [1] : vector<8x32xf32> to vector<8xf32>
    %501 = vector.shape_cast %500 : vector<8xf32> to vector<8x1xf32>
    %cst_203 = arith.constant 3.200000e+01 : f32
    %502 = vector.broadcast %cst_203 : f32 to vector<8x1xf32>
    %503 = arith.divf %501, %502 : vector<8x1xf32>
    %504 = vector.broadcast %496 : vector<8x1xf32> to vector<8x32xf32>
    %505 = arith.subf %488, %504 : vector<8x32xf32>
    %cst_204 = arith.constant 9.99999974E-6 : f32
    %506 = vector.broadcast %cst_204 : f32 to vector<8x1xf32>
    %507 = arith.addf %503, %506 : vector<8x1xf32>
    %508 = math.rsqrt %507 : vector<8x1xf32>
    %509 = vector.broadcast %508 : vector<8x1xf32> to vector<8x32xf32>
    %510 = arith.mulf %505, %509 : vector<8x32xf32>
    %511 = vector.broadcast %490 : vector<1x32xf32> to vector<8x32xf32>
    %512 = arith.mulf %510, %511 : vector<8x32xf32>
    %513 = vector.broadcast %492 : vector<1x32xf32> to vector<8x32xf32>
    %514 = arith.addf %512, %513 : vector<8x32xf32>
    %c0_205 = arith.constant 0 : index
    %c0_206 = arith.constant 0 : index
    %c0_207 = arith.constant 0 : index
    %515 = vector.load %arg18[%c0_205, %c0_206, %c0_207] : memref<2x32x96xf32, #tpu.memory_space<vmem>>, vector<1x32x96xf32>
    %516 = vector.shape_cast %515 : vector<1x32x96xf32> to vector<32x96xf32>
    %c0_208 = arith.constant 0 : index
    %c0_209 = arith.constant 0 : index
    %c0_210 = arith.constant 0 : index
    %517 = vector.load %arg19[%c0_208, %c0_209, %c0_210] : memref<2x1x96xf32, #tpu.memory_space<vmem>>, vector<1x1x96xf32>
    %518 = vector.shape_cast %517 : vector<1x1x96xf32> to vector<1x96xf32>
    %c0_211 = arith.constant 0 : index
    %c0_212 = arith.constant 0 : index
    %c0_213 = arith.constant 0 : index
    %519 = vector.load %arg20[%c0_211, %c0_212, %c0_213] : memref<2x32x32xf32, #tpu.memory_space<vmem>>, vector<1x32x32xf32>
    %520 = vector.shape_cast %519 : vector<1x32x32xf32> to vector<32x32xf32>
    %c0_214 = arith.constant 0 : index
    %c0_215 = arith.constant 0 : index
    %c0_216 = arith.constant 0 : index
    %521 = vector.load %arg21[%c0_214, %c0_215, %c0_216] : memref<2x1x32xf32, #tpu.memory_space<vmem>>, vector<1x1x32xf32>
    %522 = vector.shape_cast %521 : vector<1x1x32xf32> to vector<1x32xf32>
    %523 = vector.extract_strided_slice %516 {offsets = [0, 0], sizes = [32, 32], strides = [1, 1]} : vector<32x96xf32> to vector<32x32xf32>
    %cst_217 = arith.constant dense<0.000000e+00> : vector<8x32xf32>
    %524 = tpu.matmul %514, %523, %cst_217 {dimension_numbers = #tpu.dot_dimension_numbers<[1], [0], [0], [1], [0, 0, 1, 1], [], []>} : vector<8x32xf32>, vector<32x32xf32>, vector<8x32xf32> -> vector<8x32xf32>
    %525 = vector.extract_strided_slice %518 {offsets = [0, 0], sizes = [1, 32], strides = [1, 1]} : vector<1x96xf32> to vector<1x32xf32>
    %526 = vector.broadcast %525 : vector<1x32xf32> to vector<8x32xf32>
    %527 = arith.addf %524, %526 : vector<8x32xf32>
    %528 = vector.extract_strided_slice %516 {offsets = [0, 32], sizes = [32, 64], strides = [1, 1]} : vector<32x96xf32> to vector<32x64xf32>
    %cst_218 = arith.constant dense<0.000000e+00> : vector<10x64xf32>
    %529 = tpu.matmul %380, %528, %cst_218 {dimension_numbers = #tpu.dot_dimension_numbers<[1], [0], [0], [1], [0, 0, 1, 1], [], []>} : vector<10x32xf32>, vector<32x64xf32>, vector<10x64xf32> -> vector<10x64xf32>
    %530 = vector.extract_strided_slice %518 {offsets = [0, 32], sizes = [1, 64], strides = [1, 1]} : vector<1x96xf32> to vector<1x64xf32>
    %531 = vector.broadcast %530 : vector<1x64xf32> to vector<10x64xf32>
    %532 = arith.addf %529, %531 : vector<10x64xf32>
    %533 = vector.extract_strided_slice %532 {offsets = [0, 0], sizes = [10, 32], strides = [1, 1]} : vector<10x64xf32> to vector<10x32xf32>
    %534 = vector.extract_strided_slice %532 {offsets = [0, 32], sizes = [10, 32], strides = [1, 1]} : vector<10x64xf32> to vector<10x32xf32>
    %cst_219 = arith.constant 0.000000e+00 : f32
    %535 = vector.broadcast %cst_219 : f32 to vector<8x32xf32>
    %536 = vector.broadcast %522 : vector<1x32xf32> to vector<8x32xf32>
    %537 = arith.addf %535, %536 : vector<8x32xf32>
    %538 = vector.extract_strided_slice %527 {offsets = [0, 0], sizes = [8, 8], strides = [1, 1]} : vector<8x32xf32> to vector<8x8xf32>
    %539 = vector.extract_strided_slice %533 {offsets = [0, 0], sizes = [10, 8], strides = [1, 1]} : vector<10x32xf32> to vector<10x8xf32>
    %cst_220 = arith.constant dense<0.000000e+00> : vector<8x10xf32>
    %540 = tpu.matmul %538, %539, %cst_220 {dimension_numbers = #tpu.dot_dimension_numbers<[1], [1], [0], [0], [0, 0, 1, 0], [], []>} : vector<8x8xf32>, vector<10x8xf32>, vector<8x10xf32> -> vector<8x10xf32>
    %cst_221 = arith.constant 0.353553385 : f32
    %541 = vector.broadcast %cst_221 : f32 to vector<8x10xf32>
    %542 = arith.mulf %540, %541 : vector<8x10xf32>
    %cst_222 = arith.constant dense<0xFF800000> : vector<8xf32>
    %543 = vector.multi_reduction <maximumf>, %542, %cst_222 [1] : vector<8x10xf32> to vector<8xf32>
    %544 = vector.shape_cast %543 : vector<8xf32> to vector<8x1xf32>
    %545 = vector.broadcast %544 : vector<8x1xf32> to vector<8x10xf32>
    %546 = arith.subf %542, %545 : vector<8x10xf32>
    %547 = math.exp %546 : vector<8x10xf32>
    %cst_223 = arith.constant dense<0.000000e+00> : vector<8xf32>
    %548 = vector.multi_reduction <add>, %547, %cst_223 [1] : vector<8x10xf32> to vector<8xf32>
    %549 = vector.shape_cast %548 : vector<8xf32> to vector<8x1xf32>
    %550 = vector.broadcast %549 : vector<8x1xf32> to vector<8x10xf32>
    %551 = arith.divf %547, %550 : vector<8x10xf32>
    %552 = vector.extract_strided_slice %534 {offsets = [0, 0], sizes = [10, 8], strides = [1, 1]} : vector<10x32xf32> to vector<10x8xf32>
    %cst_224 = arith.constant dense<0.000000e+00> : vector<8x8xf32>
    %553 = tpu.matmul %551, %552, %cst_224 {dimension_numbers = #tpu.dot_dimension_numbers<[1], [0], [0], [1], [0, 0, 1, 1], [], []>} : vector<8x10xf32>, vector<10x8xf32>, vector<8x8xf32> -> vector<8x8xf32>
    %554 = vector.extract_strided_slice %520 {offsets = [0, 0], sizes = [8, 32], strides = [1, 1]} : vector<32x32xf32> to vector<8x32xf32>
    %cst_225 = arith.constant dense<0.000000e+00> : vector<8x32xf32>
    %555 = tpu.matmul %553, %554, %cst_225 {dimension_numbers = #tpu.dot_dimension_numbers<[1], [0], [0], [1], [0, 0, 1, 1], [], []>} : vector<8x8xf32>, vector<8x32xf32>, vector<8x32xf32> -> vector<8x32xf32>
    %556 = arith.addf %537, %555 : vector<8x32xf32>
    %557 = vector.extract_strided_slice %527 {offsets = [0, 8], sizes = [8, 8], strides = [1, 1]} : vector<8x32xf32> to vector<8x8xf32>
    %558 = vector.extract_strided_slice %533 {offsets = [0, 8], sizes = [10, 8], strides = [1, 1]} : vector<10x32xf32> to vector<10x8xf32>
    %cst_226 = arith.constant dense<0.000000e+00> : vector<8x10xf32>
    %559 = tpu.matmul %557, %558, %cst_226 {dimension_numbers = #tpu.dot_dimension_numbers<[1], [1], [0], [0], [0, 0, 1, 0], [], []>} : vector<8x8xf32>, vector<10x8xf32>, vector<8x10xf32> -> vector<8x10xf32>
    %cst_227 = arith.constant 0.353553385 : f32
    %560 = vector.broadcast %cst_227 : f32 to vector<8x10xf32>
    %561 = arith.mulf %559, %560 : vector<8x10xf32>
    %cst_228 = arith.constant dense<0xFF800000> : vector<8xf32>
    %562 = vector.multi_reduction <maximumf>, %561, %cst_228 [1] : vector<8x10xf32> to vector<8xf32>
    %563 = vector.shape_cast %562 : vector<8xf32> to vector<8x1xf32>
    %564 = vector.broadcast %563 : vector<8x1xf32> to vector<8x10xf32>
    %565 = arith.subf %561, %564 : vector<8x10xf32>
    %566 = math.exp %565 : vector<8x10xf32>
    %cst_229 = arith.constant dense<0.000000e+00> : vector<8xf32>
    %567 = vector.multi_reduction <add>, %566, %cst_229 [1] : vector<8x10xf32> to vector<8xf32>
    %568 = vector.shape_cast %567 : vector<8xf32> to vector<8x1xf32>
    %569 = vector.broadcast %568 : vector<8x1xf32> to vector<8x10xf32>
    %570 = arith.divf %566, %569 : vector<8x10xf32>
    %571 = vector.extract_strided_slice %534 {offsets = [0, 8], sizes = [10, 8], strides = [1, 1]} : vector<10x32xf32> to vector<10x8xf32>
    %cst_230 = arith.constant dense<0.000000e+00> : vector<8x8xf32>
    %572 = tpu.matmul %570, %571, %cst_230 {dimension_numbers = #tpu.dot_dimension_numbers<[1], [0], [0], [1], [0, 0, 1, 1], [], []>} : vector<8x10xf32>, vector<10x8xf32>, vector<8x8xf32> -> vector<8x8xf32>
    %573 = vector.extract_strided_slice %520 {offsets = [8, 0], sizes = [8, 32], strides = [1, 1]} : vector<32x32xf32> to vector<8x32xf32>
    %cst_231 = arith.constant dense<0.000000e+00> : vector<8x32xf32>
    %574 = tpu.matmul %572, %573, %cst_231 {dimension_numbers = #tpu.dot_dimension_numbers<[1], [0], [0], [1], [0, 0, 1, 1], [], []>} : vector<8x8xf32>, vector<8x32xf32>, vector<8x32xf32> -> vector<8x32xf32>
    %575 = arith.addf %556, %574 : vector<8x32xf32>
    %576 = vector.extract_strided_slice %527 {offsets = [0, 16], sizes = [8, 8], strides = [1, 1]} : vector<8x32xf32> to vector<8x8xf32>
    %577 = vector.extract_strided_slice %533 {offsets = [0, 16], sizes = [10, 8], strides = [1, 1]} : vector<10x32xf32> to vector<10x8xf32>
    %cst_232 = arith.constant dense<0.000000e+00> : vector<8x10xf32>
    %578 = tpu.matmul %576, %577, %cst_232 {dimension_numbers = #tpu.dot_dimension_numbers<[1], [1], [0], [0], [0, 0, 1, 0], [], []>} : vector<8x8xf32>, vector<10x8xf32>, vector<8x10xf32> -> vector<8x10xf32>
    %cst_233 = arith.constant 0.353553385 : f32
    %579 = vector.broadcast %cst_233 : f32 to vector<8x10xf32>
    %580 = arith.mulf %578, %579 : vector<8x10xf32>
    %cst_234 = arith.constant dense<0xFF800000> : vector<8xf32>
    %581 = vector.multi_reduction <maximumf>, %580, %cst_234 [1] : vector<8x10xf32> to vector<8xf32>
    %582 = vector.shape_cast %581 : vector<8xf32> to vector<8x1xf32>
    %583 = vector.broadcast %582 : vector<8x1xf32> to vector<8x10xf32>
    %584 = arith.subf %580, %583 : vector<8x10xf32>
    %585 = math.exp %584 : vector<8x10xf32>
    %cst_235 = arith.constant dense<0.000000e+00> : vector<8xf32>
    %586 = vector.multi_reduction <add>, %585, %cst_235 [1] : vector<8x10xf32> to vector<8xf32>
    %587 = vector.shape_cast %586 : vector<8xf32> to vector<8x1xf32>
    %588 = vector.broadcast %587 : vector<8x1xf32> to vector<8x10xf32>
    %589 = arith.divf %585, %588 : vector<8x10xf32>
    %590 = vector.extract_strided_slice %534 {offsets = [0, 16], sizes = [10, 8], strides = [1, 1]} : vector<10x32xf32> to vector<10x8xf32>
    %cst_236 = arith.constant dense<0.000000e+00> : vector<8x8xf32>
    %591 = tpu.matmul %589, %590, %cst_236 {dimension_numbers = #tpu.dot_dimension_numbers<[1], [0], [0], [1], [0, 0, 1, 1], [], []>} : vector<8x10xf32>, vector<10x8xf32>, vector<8x8xf32> -> vector<8x8xf32>
    %592 = vector.extract_strided_slice %520 {offsets = [16, 0], sizes = [8, 32], strides = [1, 1]} : vector<32x32xf32> to vector<8x32xf32>
    %cst_237 = arith.constant dense<0.000000e+00> : vector<8x32xf32>
    %593 = tpu.matmul %591, %592, %cst_237 {dimension_numbers = #tpu.dot_dimension_numbers<[1], [0], [0], [1], [0, 0, 1, 1], [], []>} : vector<8x8xf32>, vector<8x32xf32>, vector<8x32xf32> -> vector<8x32xf32>
    %594 = arith.addf %575, %593 : vector<8x32xf32>
    %595 = vector.extract_strided_slice %527 {offsets = [0, 24], sizes = [8, 8], strides = [1, 1]} : vector<8x32xf32> to vector<8x8xf32>
    %596 = vector.extract_strided_slice %533 {offsets = [0, 24], sizes = [10, 8], strides = [1, 1]} : vector<10x32xf32> to vector<10x8xf32>
    %cst_238 = arith.constant dense<0.000000e+00> : vector<8x10xf32>
    %597 = tpu.matmul %595, %596, %cst_238 {dimension_numbers = #tpu.dot_dimension_numbers<[1], [1], [0], [0], [0, 0, 1, 0], [], []>} : vector<8x8xf32>, vector<10x8xf32>, vector<8x10xf32> -> vector<8x10xf32>
    %cst_239 = arith.constant 0.353553385 : f32
    %598 = vector.broadcast %cst_239 : f32 to vector<8x10xf32>
    %599 = arith.mulf %597, %598 : vector<8x10xf32>
    %cst_240 = arith.constant dense<0xFF800000> : vector<8xf32>
    %600 = vector.multi_reduction <maximumf>, %599, %cst_240 [1] : vector<8x10xf32> to vector<8xf32>
    %601 = vector.shape_cast %600 : vector<8xf32> to vector<8x1xf32>
    %602 = vector.broadcast %601 : vector<8x1xf32> to vector<8x10xf32>
    %603 = arith.subf %599, %602 : vector<8x10xf32>
    %604 = math.exp %603 : vector<8x10xf32>
    %cst_241 = arith.constant dense<0.000000e+00> : vector<8xf32>
    %605 = vector.multi_reduction <add>, %604, %cst_241 [1] : vector<8x10xf32> to vector<8xf32>
    %606 = vector.shape_cast %605 : vector<8xf32> to vector<8x1xf32>
    %607 = vector.broadcast %606 : vector<8x1xf32> to vector<8x10xf32>
    %608 = arith.divf %604, %607 : vector<8x10xf32>
    %609 = vector.extract_strided_slice %534 {offsets = [0, 24], sizes = [10, 8], strides = [1, 1]} : vector<10x32xf32> to vector<10x8xf32>
    %cst_242 = arith.constant dense<0.000000e+00> : vector<8x8xf32>
    %610 = tpu.matmul %608, %609, %cst_242 {dimension_numbers = #tpu.dot_dimension_numbers<[1], [0], [0], [1], [0, 0, 1, 1], [], []>} : vector<8x10xf32>, vector<10x8xf32>, vector<8x8xf32> -> vector<8x8xf32>
    %611 = vector.extract_strided_slice %520 {offsets = [24, 0], sizes = [8, 32], strides = [1, 1]} : vector<32x32xf32> to vector<8x32xf32>
    %cst_243 = arith.constant dense<0.000000e+00> : vector<8x32xf32>
    %612 = tpu.matmul %610, %611, %cst_243 {dimension_numbers = #tpu.dot_dimension_numbers<[1], [0], [0], [1], [0, 0, 1, 1], [], []>} : vector<8x8xf32>, vector<8x32xf32>, vector<8x32xf32> -> vector<8x32xf32>
    %613 = arith.addf %594, %612 : vector<8x32xf32>
    %c0_244 = arith.constant 0 : index
    %c0_245 = arith.constant 0 : index
    %c0_246 = arith.constant 0 : index
    %c0_247 = arith.constant 0 : index
    %614 = vector.load %arg23[%c0_244, %c0_245, %c0_246, %c0_247] : memref<2x2x1x32xf32, #tpu.memory_space<vmem>>, vector<1x2x1x32xf32>
    %615 = vector.shape_cast %614 : vector<1x2x1x32xf32> to vector<2x1x32xf32>
    %616 = arith.addf %514, %613 : vector<8x32xf32>
    %617 = vector.extract_strided_slice %615 {offsets = [0, 0, 0], sizes = [1, 1, 32], strides = [1, 1, 1]} : vector<2x1x32xf32> to vector<1x1x32xf32>
    %618 = vector.shape_cast %617 : vector<1x1x32xf32> to vector<1x32xf32>
    %619 = vector.extract_strided_slice %615 {offsets = [1, 0, 0], sizes = [1, 1, 32], strides = [1, 1, 1]} : vector<2x1x32xf32> to vector<1x1x32xf32>
    %620 = vector.shape_cast %619 : vector<1x1x32xf32> to vector<1x32xf32>
    %cst_248 = arith.constant dense<0.000000e+00> : vector<8xf32>
    %621 = vector.multi_reduction <add>, %616, %cst_248 [1] : vector<8x32xf32> to vector<8xf32>
    %622 = vector.shape_cast %621 : vector<8xf32> to vector<8x1xf32>
    %cst_249 = arith.constant 3.200000e+01 : f32
    %623 = vector.broadcast %cst_249 : f32 to vector<8x1xf32>
    %624 = arith.divf %622, %623 : vector<8x1xf32>
    %625 = vector.broadcast %624 : vector<8x1xf32> to vector<8x32xf32>
    %626 = arith.subf %616, %625 : vector<8x32xf32>
    %627 = arith.mulf %626, %626 : vector<8x32xf32>
    %cst_250 = arith.constant dense<0.000000e+00> : vector<8xf32>
    %628 = vector.multi_reduction <add>, %627, %cst_250 [1] : vector<8x32xf32> to vector<8xf32>
    %629 = vector.shape_cast %628 : vector<8xf32> to vector<8x1xf32>
    %cst_251 = arith.constant 3.200000e+01 : f32
    %630 = vector.broadcast %cst_251 : f32 to vector<8x1xf32>
    %631 = arith.divf %629, %630 : vector<8x1xf32>
    %632 = vector.broadcast %624 : vector<8x1xf32> to vector<8x32xf32>
    %633 = arith.subf %616, %632 : vector<8x32xf32>
    %cst_252 = arith.constant 9.99999974E-6 : f32
    %634 = vector.broadcast %cst_252 : f32 to vector<8x1xf32>
    %635 = arith.addf %631, %634 : vector<8x1xf32>
    %636 = math.rsqrt %635 : vector<8x1xf32>
    %637 = vector.broadcast %636 : vector<8x1xf32> to vector<8x32xf32>
    %638 = arith.mulf %633, %637 : vector<8x32xf32>
    %639 = vector.broadcast %618 : vector<1x32xf32> to vector<8x32xf32>
    %640 = arith.mulf %638, %639 : vector<8x32xf32>
    %641 = vector.broadcast %620 : vector<1x32xf32> to vector<8x32xf32>
    %642 = arith.addf %640, %641 : vector<8x32xf32>
    %c0_253 = arith.constant 0 : index
    %c0_254 = arith.constant 0 : index
    %c0_255 = arith.constant 0 : index
    %643 = vector.load %arg25[%c0_253, %c0_254, %c0_255] : memref<2x32x64xf32, #tpu.memory_space<vmem>>, vector<1x32x64xf32>
    %644 = vector.shape_cast %643 : vector<1x32x64xf32> to vector<32x64xf32>
    %c0_256 = arith.constant 0 : index
    %c0_257 = arith.constant 0 : index
    %c0_258 = arith.constant 0 : index
    %645 = vector.load %arg26[%c0_256, %c0_257, %c0_258] : memref<2x1x64xf32, #tpu.memory_space<vmem>>, vector<1x1x64xf32>
    %646 = vector.shape_cast %645 : vector<1x1x64xf32> to vector<1x64xf32>
    %c0_259 = arith.constant 0 : index
    %c0_260 = arith.constant 0 : index
    %c0_261 = arith.constant 0 : index
    %647 = vector.load %arg27[%c0_259, %c0_260, %c0_261] : memref<2x64x32xf32, #tpu.memory_space<vmem>>, vector<1x64x32xf32>
    %648 = vector.shape_cast %647 : vector<1x64x32xf32> to vector<64x32xf32>
    %c0_262 = arith.constant 0 : index
    %c0_263 = arith.constant 0 : index
    %c0_264 = arith.constant 0 : index
    %649 = vector.load %arg28[%c0_262, %c0_263, %c0_264] : memref<2x1x32xf32, #tpu.memory_space<vmem>>, vector<1x1x32xf32>
    %650 = vector.shape_cast %649 : vector<1x1x32xf32> to vector<1x32xf32>
    %cst_265 = arith.constant dense<0.000000e+00> : vector<8x64xf32>
    %651 = tpu.matmul %642, %644, %cst_265 {dimension_numbers = #tpu.dot_dimension_numbers<[1], [0], [0], [1], [0, 0, 1, 1], [], []>} : vector<8x32xf32>, vector<32x64xf32>, vector<8x64xf32> -> vector<8x64xf32>
    %652 = vector.broadcast %646 : vector<1x64xf32> to vector<8x64xf32>
    %653 = arith.addf %651, %652 : vector<8x64xf32>
    %cst_266 = arith.constant 0.000000e+00 : f32
    %654 = vector.broadcast %cst_266 : f32 to vector<8x64xf32>
    %655 = arith.maximumf %653, %654 : vector<8x64xf32>
    %cst_267 = arith.constant dense<0.000000e+00> : vector<8x32xf32>
    %656 = tpu.matmul %655, %648, %cst_267 {dimension_numbers = #tpu.dot_dimension_numbers<[1], [0], [0], [1], [0, 0, 1, 1], [], []>} : vector<8x64xf32>, vector<64x32xf32>, vector<8x32xf32> -> vector<8x32xf32>
    %657 = vector.broadcast %650 : vector<1x32xf32> to vector<8x32xf32>
    %658 = arith.addf %656, %657 : vector<8x32xf32>
    %c0_268 = arith.constant 0 : index
    %c0_269 = arith.constant 0 : index
    %c0_270 = arith.constant 0 : index
    %c0_271 = arith.constant 0 : index
    %659 = vector.load %arg24[%c0_268, %c0_269, %c0_270, %c0_271] : memref<2x2x1x32xf32, #tpu.memory_space<vmem>>, vector<1x2x1x32xf32>
    %660 = vector.shape_cast %659 : vector<1x2x1x32xf32> to vector<2x1x32xf32>
    %661 = arith.addf %642, %658 : vector<8x32xf32>
    %662 = vector.extract_strided_slice %660 {offsets = [0, 0, 0], sizes = [1, 1, 32], strides = [1, 1, 1]} : vector<2x1x32xf32> to vector<1x1x32xf32>
    %663 = vector.shape_cast %662 : vector<1x1x32xf32> to vector<1x32xf32>
    %664 = vector.extract_strided_slice %660 {offsets = [1, 0, 0], sizes = [1, 1, 32], strides = [1, 1, 1]} : vector<2x1x32xf32> to vector<1x1x32xf32>
    %665 = vector.shape_cast %664 : vector<1x1x32xf32> to vector<1x32xf32>
    %cst_272 = arith.constant dense<0.000000e+00> : vector<8xf32>
    %666 = vector.multi_reduction <add>, %661, %cst_272 [1] : vector<8x32xf32> to vector<8xf32>
    %667 = vector.shape_cast %666 : vector<8xf32> to vector<8x1xf32>
    %cst_273 = arith.constant 3.200000e+01 : f32
    %668 = vector.broadcast %cst_273 : f32 to vector<8x1xf32>
    %669 = arith.divf %667, %668 : vector<8x1xf32>
    %670 = vector.broadcast %669 : vector<8x1xf32> to vector<8x32xf32>
    %671 = arith.subf %661, %670 : vector<8x32xf32>
    %672 = arith.mulf %671, %671 : vector<8x32xf32>
    %cst_274 = arith.constant dense<0.000000e+00> : vector<8xf32>
    %673 = vector.multi_reduction <add>, %672, %cst_274 [1] : vector<8x32xf32> to vector<8xf32>
    %674 = vector.shape_cast %673 : vector<8xf32> to vector<8x1xf32>
    %cst_275 = arith.constant 3.200000e+01 : f32
    %675 = vector.broadcast %cst_275 : f32 to vector<8x1xf32>
    %676 = arith.divf %674, %675 : vector<8x1xf32>
    %677 = vector.broadcast %669 : vector<8x1xf32> to vector<8x32xf32>
    %678 = arith.subf %661, %677 : vector<8x32xf32>
    %cst_276 = arith.constant 9.99999974E-6 : f32
    %679 = vector.broadcast %cst_276 : f32 to vector<8x1xf32>
    %680 = arith.addf %676, %679 : vector<8x1xf32>
    %681 = math.rsqrt %680 : vector<8x1xf32>
    %682 = vector.broadcast %681 : vector<8x1xf32> to vector<8x32xf32>
    %683 = arith.mulf %678, %682 : vector<8x32xf32>
    %684 = vector.broadcast %663 : vector<1x32xf32> to vector<8x32xf32>
    %685 = arith.mulf %683, %684 : vector<8x32xf32>
    %686 = vector.broadcast %665 : vector<1x32xf32> to vector<8x32xf32>
    %687 = arith.addf %685, %686 : vector<8x32xf32>
    %c1_277 = arith.constant 1 : index
    %c0_278 = arith.constant 0 : index
    %c0_279 = arith.constant 0 : index
    %688 = vector.load %arg14[%c1_277, %c0_278, %c0_279] : memref<2x32x96xf32, #tpu.memory_space<vmem>>, vector<1x32x96xf32>
    %689 = vector.shape_cast %688 : vector<1x32x96xf32> to vector<32x96xf32>
    %c1_280 = arith.constant 1 : index
    %c0_281 = arith.constant 0 : index
    %c0_282 = arith.constant 0 : index
    %690 = vector.load %arg15[%c1_280, %c0_281, %c0_282] : memref<2x1x96xf32, #tpu.memory_space<vmem>>, vector<1x1x96xf32>
    %691 = vector.shape_cast %690 : vector<1x1x96xf32> to vector<1x96xf32>
    %c1_283 = arith.constant 1 : index
    %c0_284 = arith.constant 0 : index
    %c0_285 = arith.constant 0 : index
    %692 = vector.load %arg16[%c1_283, %c0_284, %c0_285] : memref<2x32x32xf32, #tpu.memory_space<vmem>>, vector<1x32x32xf32>
    %693 = vector.shape_cast %692 : vector<1x32x32xf32> to vector<32x32xf32>
    %c1_286 = arith.constant 1 : index
    %c0_287 = arith.constant 0 : index
    %c0_288 = arith.constant 0 : index
    %694 = vector.load %arg17[%c1_286, %c0_287, %c0_288] : memref<2x1x32xf32, #tpu.memory_space<vmem>>, vector<1x1x32xf32>
    %695 = vector.shape_cast %694 : vector<1x1x32xf32> to vector<1x32xf32>
    %cst_289 = arith.constant dense<0.000000e+00> : vector<8x96xf32>
    %696 = tpu.matmul %687, %689, %cst_289 {dimension_numbers = #tpu.dot_dimension_numbers<[1], [0], [0], [1], [0, 0, 1, 1], [], []>} : vector<8x32xf32>, vector<32x96xf32>, vector<8x96xf32> -> vector<8x96xf32>
    %697 = vector.broadcast %691 : vector<1x96xf32> to vector<8x96xf32>
    %698 = arith.addf %696, %697 : vector<8x96xf32>
    %699 = vector.extract_strided_slice %698 {offsets = [0, 0], sizes = [8, 32], strides = [1, 1]} : vector<8x96xf32> to vector<8x32xf32>
    %700 = vector.extract_strided_slice %698 {offsets = [0, 32], sizes = [8, 32], strides = [1, 1]} : vector<8x96xf32> to vector<8x32xf32>
    %701 = vector.extract_strided_slice %698 {offsets = [0, 64], sizes = [8, 32], strides = [1, 1]} : vector<8x96xf32> to vector<8x32xf32>
    %cst_290 = arith.constant 0.000000e+00 : f32
    %702 = vector.broadcast %cst_290 : f32 to vector<8x32xf32>
    %703 = vector.broadcast %695 : vector<1x32xf32> to vector<8x32xf32>
    %704 = arith.addf %702, %703 : vector<8x32xf32>
    %705 = vector.extract_strided_slice %699 {offsets = [0, 0], sizes = [8, 8], strides = [1, 1]} : vector<8x32xf32> to vector<8x8xf32>
    %706 = vector.extract_strided_slice %700 {offsets = [0, 0], sizes = [8, 8], strides = [1, 1]} : vector<8x32xf32> to vector<8x8xf32>
    %cst_291 = arith.constant dense<0.000000e+00> : vector<8x8xf32>
    %707 = tpu.matmul %705, %706, %cst_291 {dimension_numbers = #tpu.dot_dimension_numbers<[1], [1], [0], [0], [0, 0, 1, 0], [], []>} : vector<8x8xf32>, vector<8x8xf32>, vector<8x8xf32> -> vector<8x8xf32>
    %cst_292 = arith.constant 0.353553385 : f32
    %708 = vector.broadcast %cst_292 : f32 to vector<8x8xf32>
    %709 = arith.mulf %707, %708 : vector<8x8xf32>
    %710 = arith.addf %709, %388 : vector<8x8xf32>
    %cst_293 = arith.constant dense<0xFF800000> : vector<8xf32>
    %711 = vector.multi_reduction <maximumf>, %710, %cst_293 [1] : vector<8x8xf32> to vector<8xf32>
    %712 = vector.shape_cast %711 : vector<8xf32> to vector<8x1xf32>
    %713 = vector.broadcast %712 : vector<8x1xf32> to vector<8x8xf32>
    %714 = arith.subf %710, %713 : vector<8x8xf32>
    %715 = math.exp %714 : vector<8x8xf32>
    %cst_294 = arith.constant dense<0.000000e+00> : vector<8xf32>
    %716 = vector.multi_reduction <add>, %715, %cst_294 [1] : vector<8x8xf32> to vector<8xf32>
    %717 = vector.shape_cast %716 : vector<8xf32> to vector<8x1xf32>
    %718 = vector.broadcast %717 : vector<8x1xf32> to vector<8x8xf32>
    %719 = arith.divf %715, %718 : vector<8x8xf32>
    %720 = vector.extract_strided_slice %701 {offsets = [0, 0], sizes = [8, 8], strides = [1, 1]} : vector<8x32xf32> to vector<8x8xf32>
    %cst_295 = arith.constant dense<0.000000e+00> : vector<8x8xf32>
    %721 = tpu.matmul %719, %720, %cst_295 {dimension_numbers = #tpu.dot_dimension_numbers<[1], [0], [0], [1], [0, 0, 1, 1], [], []>} : vector<8x8xf32>, vector<8x8xf32>, vector<8x8xf32> -> vector<8x8xf32>
    %722 = vector.extract_strided_slice %693 {offsets = [0, 0], sizes = [8, 32], strides = [1, 1]} : vector<32x32xf32> to vector<8x32xf32>
    %cst_296 = arith.constant dense<0.000000e+00> : vector<8x32xf32>
    %723 = tpu.matmul %721, %722, %cst_296 {dimension_numbers = #tpu.dot_dimension_numbers<[1], [0], [0], [1], [0, 0, 1, 1], [], []>} : vector<8x8xf32>, vector<8x32xf32>, vector<8x32xf32> -> vector<8x32xf32>
    %724 = arith.addf %704, %723 : vector<8x32xf32>
    %725 = vector.extract_strided_slice %699 {offsets = [0, 8], sizes = [8, 8], strides = [1, 1]} : vector<8x32xf32> to vector<8x8xf32>
    %726 = vector.extract_strided_slice %700 {offsets = [0, 8], sizes = [8, 8], strides = [1, 1]} : vector<8x32xf32> to vector<8x8xf32>
    %cst_297 = arith.constant dense<0.000000e+00> : vector<8x8xf32>
    %727 = tpu.matmul %725, %726, %cst_297 {dimension_numbers = #tpu.dot_dimension_numbers<[1], [1], [0], [0], [0, 0, 1, 0], [], []>} : vector<8x8xf32>, vector<8x8xf32>, vector<8x8xf32> -> vector<8x8xf32>
    %cst_298 = arith.constant 0.353553385 : f32
    %728 = vector.broadcast %cst_298 : f32 to vector<8x8xf32>
    %729 = arith.mulf %727, %728 : vector<8x8xf32>
    %730 = arith.addf %729, %388 : vector<8x8xf32>
    %cst_299 = arith.constant dense<0xFF800000> : vector<8xf32>
    %731 = vector.multi_reduction <maximumf>, %730, %cst_299 [1] : vector<8x8xf32> to vector<8xf32>
    %732 = vector.shape_cast %731 : vector<8xf32> to vector<8x1xf32>
    %733 = vector.broadcast %732 : vector<8x1xf32> to vector<8x8xf32>
    %734 = arith.subf %730, %733 : vector<8x8xf32>
    %735 = math.exp %734 : vector<8x8xf32>
    %cst_300 = arith.constant dense<0.000000e+00> : vector<8xf32>
    %736 = vector.multi_reduction <add>, %735, %cst_300 [1] : vector<8x8xf32> to vector<8xf32>
    %737 = vector.shape_cast %736 : vector<8xf32> to vector<8x1xf32>
    %738 = vector.broadcast %737 : vector<8x1xf32> to vector<8x8xf32>
    %739 = arith.divf %735, %738 : vector<8x8xf32>
    %740 = vector.extract_strided_slice %701 {offsets = [0, 8], sizes = [8, 8], strides = [1, 1]} : vector<8x32xf32> to vector<8x8xf32>
    %cst_301 = arith.constant dense<0.000000e+00> : vector<8x8xf32>
    %741 = tpu.matmul %739, %740, %cst_301 {dimension_numbers = #tpu.dot_dimension_numbers<[1], [0], [0], [1], [0, 0, 1, 1], [], []>} : vector<8x8xf32>, vector<8x8xf32>, vector<8x8xf32> -> vector<8x8xf32>
    %742 = vector.extract_strided_slice %693 {offsets = [8, 0], sizes = [8, 32], strides = [1, 1]} : vector<32x32xf32> to vector<8x32xf32>
    %cst_302 = arith.constant dense<0.000000e+00> : vector<8x32xf32>
    %743 = tpu.matmul %741, %742, %cst_302 {dimension_numbers = #tpu.dot_dimension_numbers<[1], [0], [0], [1], [0, 0, 1, 1], [], []>} : vector<8x8xf32>, vector<8x32xf32>, vector<8x32xf32> -> vector<8x32xf32>
    %744 = arith.addf %724, %743 : vector<8x32xf32>
    %745 = vector.extract_strided_slice %699 {offsets = [0, 16], sizes = [8, 8], strides = [1, 1]} : vector<8x32xf32> to vector<8x8xf32>
    %746 = vector.extract_strided_slice %700 {offsets = [0, 16], sizes = [8, 8], strides = [1, 1]} : vector<8x32xf32> to vector<8x8xf32>
    %cst_303 = arith.constant dense<0.000000e+00> : vector<8x8xf32>
    %747 = tpu.matmul %745, %746, %cst_303 {dimension_numbers = #tpu.dot_dimension_numbers<[1], [1], [0], [0], [0, 0, 1, 0], [], []>} : vector<8x8xf32>, vector<8x8xf32>, vector<8x8xf32> -> vector<8x8xf32>
    %cst_304 = arith.constant 0.353553385 : f32
    %748 = vector.broadcast %cst_304 : f32 to vector<8x8xf32>
    %749 = arith.mulf %747, %748 : vector<8x8xf32>
    %750 = arith.addf %749, %388 : vector<8x8xf32>
    %cst_305 = arith.constant dense<0xFF800000> : vector<8xf32>
    %751 = vector.multi_reduction <maximumf>, %750, %cst_305 [1] : vector<8x8xf32> to vector<8xf32>
    %752 = vector.shape_cast %751 : vector<8xf32> to vector<8x1xf32>
    %753 = vector.broadcast %752 : vector<8x1xf32> to vector<8x8xf32>
    %754 = arith.subf %750, %753 : vector<8x8xf32>
    %755 = math.exp %754 : vector<8x8xf32>
    %cst_306 = arith.constant dense<0.000000e+00> : vector<8xf32>
    %756 = vector.multi_reduction <add>, %755, %cst_306 [1] : vector<8x8xf32> to vector<8xf32>
    %757 = vector.shape_cast %756 : vector<8xf32> to vector<8x1xf32>
    %758 = vector.broadcast %757 : vector<8x1xf32> to vector<8x8xf32>
    %759 = arith.divf %755, %758 : vector<8x8xf32>
    %760 = vector.extract_strided_slice %701 {offsets = [0, 16], sizes = [8, 8], strides = [1, 1]} : vector<8x32xf32> to vector<8x8xf32>
    %cst_307 = arith.constant dense<0.000000e+00> : vector<8x8xf32>
    %761 = tpu.matmul %759, %760, %cst_307 {dimension_numbers = #tpu.dot_dimension_numbers<[1], [0], [0], [1], [0, 0, 1, 1], [], []>} : vector<8x8xf32>, vector<8x8xf32>, vector<8x8xf32> -> vector<8x8xf32>
    %762 = vector.extract_strided_slice %693 {offsets = [16, 0], sizes = [8, 32], strides = [1, 1]} : vector<32x32xf32> to vector<8x32xf32>
    %cst_308 = arith.constant dense<0.000000e+00> : vector<8x32xf32>
    %763 = tpu.matmul %761, %762, %cst_308 {dimension_numbers = #tpu.dot_dimension_numbers<[1], [0], [0], [1], [0, 0, 1, 1], [], []>} : vector<8x8xf32>, vector<8x32xf32>, vector<8x32xf32> -> vector<8x32xf32>
    %764 = arith.addf %744, %763 : vector<8x32xf32>
    %765 = vector.extract_strided_slice %699 {offsets = [0, 24], sizes = [8, 8], strides = [1, 1]} : vector<8x32xf32> to vector<8x8xf32>
    %766 = vector.extract_strided_slice %700 {offsets = [0, 24], sizes = [8, 8], strides = [1, 1]} : vector<8x32xf32> to vector<8x8xf32>
    %cst_309 = arith.constant dense<0.000000e+00> : vector<8x8xf32>
    %767 = tpu.matmul %765, %766, %cst_309 {dimension_numbers = #tpu.dot_dimension_numbers<[1], [1], [0], [0], [0, 0, 1, 0], [], []>} : vector<8x8xf32>, vector<8x8xf32>, vector<8x8xf32> -> vector<8x8xf32>
    %cst_310 = arith.constant 0.353553385 : f32
    %768 = vector.broadcast %cst_310 : f32 to vector<8x8xf32>
    %769 = arith.mulf %767, %768 : vector<8x8xf32>
    %770 = arith.addf %769, %388 : vector<8x8xf32>
    %cst_311 = arith.constant dense<0xFF800000> : vector<8xf32>
    %771 = vector.multi_reduction <maximumf>, %770, %cst_311 [1] : vector<8x8xf32> to vector<8xf32>
    %772 = vector.shape_cast %771 : vector<8xf32> to vector<8x1xf32>
    %773 = vector.broadcast %772 : vector<8x1xf32> to vector<8x8xf32>
    %774 = arith.subf %770, %773 : vector<8x8xf32>
    %775 = math.exp %774 : vector<8x8xf32>
    %cst_312 = arith.constant dense<0.000000e+00> : vector<8xf32>
    %776 = vector.multi_reduction <add>, %775, %cst_312 [1] : vector<8x8xf32> to vector<8xf32>
    %777 = vector.shape_cast %776 : vector<8xf32> to vector<8x1xf32>
    %778 = vector.broadcast %777 : vector<8x1xf32> to vector<8x8xf32>
    %779 = arith.divf %775, %778 : vector<8x8xf32>
    %780 = vector.extract_strided_slice %701 {offsets = [0, 24], sizes = [8, 8], strides = [1, 1]} : vector<8x32xf32> to vector<8x8xf32>
    %cst_313 = arith.constant dense<0.000000e+00> : vector<8x8xf32>
    %781 = tpu.matmul %779, %780, %cst_313 {dimension_numbers = #tpu.dot_dimension_numbers<[1], [0], [0], [1], [0, 0, 1, 1], [], []>} : vector<8x8xf32>, vector<8x8xf32>, vector<8x8xf32> -> vector<8x8xf32>
    %782 = vector.extract_strided_slice %693 {offsets = [24, 0], sizes = [8, 32], strides = [1, 1]} : vector<32x32xf32> to vector<8x32xf32>
    %cst_314 = arith.constant dense<0.000000e+00> : vector<8x32xf32>
    %783 = tpu.matmul %781, %782, %cst_314 {dimension_numbers = #tpu.dot_dimension_numbers<[1], [0], [0], [1], [0, 0, 1, 1], [], []>} : vector<8x8xf32>, vector<8x32xf32>, vector<8x32xf32> -> vector<8x32xf32>
    %784 = arith.addf %764, %783 : vector<8x32xf32>
    %c1_315 = arith.constant 1 : index
    %c0_316 = arith.constant 0 : index
    %c0_317 = arith.constant 0 : index
    %c0_318 = arith.constant 0 : index
    %785 = vector.load %arg22[%c1_315, %c0_316, %c0_317, %c0_318] : memref<2x2x1x32xf32, #tpu.memory_space<vmem>>, vector<1x2x1x32xf32>
    %786 = vector.shape_cast %785 : vector<1x2x1x32xf32> to vector<2x1x32xf32>
    %787 = arith.addf %687, %784 : vector<8x32xf32>
    %788 = vector.extract_strided_slice %786 {offsets = [0, 0, 0], sizes = [1, 1, 32], strides = [1, 1, 1]} : vector<2x1x32xf32> to vector<1x1x32xf32>
    %789 = vector.shape_cast %788 : vector<1x1x32xf32> to vector<1x32xf32>
    %790 = vector.extract_strided_slice %786 {offsets = [1, 0, 0], sizes = [1, 1, 32], strides = [1, 1, 1]} : vector<2x1x32xf32> to vector<1x1x32xf32>
    %791 = vector.shape_cast %790 : vector<1x1x32xf32> to vector<1x32xf32>
    %cst_319 = arith.constant dense<0.000000e+00> : vector<8xf32>
    %792 = vector.multi_reduction <add>, %787, %cst_319 [1] : vector<8x32xf32> to vector<8xf32>
    %793 = vector.shape_cast %792 : vector<8xf32> to vector<8x1xf32>
    %cst_320 = arith.constant 3.200000e+01 : f32
    %794 = vector.broadcast %cst_320 : f32 to vector<8x1xf32>
    %795 = arith.divf %793, %794 : vector<8x1xf32>
    %796 = vector.broadcast %795 : vector<8x1xf32> to vector<8x32xf32>
    %797 = arith.subf %787, %796 : vector<8x32xf32>
    %798 = arith.mulf %797, %797 : vector<8x32xf32>
    %cst_321 = arith.constant dense<0.000000e+00> : vector<8xf32>
    %799 = vector.multi_reduction <add>, %798, %cst_321 [1] : vector<8x32xf32> to vector<8xf32>
    %800 = vector.shape_cast %799 : vector<8xf32> to vector<8x1xf32>
    %cst_322 = arith.constant 3.200000e+01 : f32
    %801 = vector.broadcast %cst_322 : f32 to vector<8x1xf32>
    %802 = arith.divf %800, %801 : vector<8x1xf32>
    %803 = vector.broadcast %795 : vector<8x1xf32> to vector<8x32xf32>
    %804 = arith.subf %787, %803 : vector<8x32xf32>
    %cst_323 = arith.constant 9.99999974E-6 : f32
    %805 = vector.broadcast %cst_323 : f32 to vector<8x1xf32>
    %806 = arith.addf %802, %805 : vector<8x1xf32>
    %807 = math.rsqrt %806 : vector<8x1xf32>
    %808 = vector.broadcast %807 : vector<8x1xf32> to vector<8x32xf32>
    %809 = arith.mulf %804, %808 : vector<8x32xf32>
    %810 = vector.broadcast %789 : vector<1x32xf32> to vector<8x32xf32>
    %811 = arith.mulf %809, %810 : vector<8x32xf32>
    %812 = vector.broadcast %791 : vector<1x32xf32> to vector<8x32xf32>
    %813 = arith.addf %811, %812 : vector<8x32xf32>
    %c1_324 = arith.constant 1 : index
    %c0_325 = arith.constant 0 : index
    %c0_326 = arith.constant 0 : index
    %814 = vector.load %arg18[%c1_324, %c0_325, %c0_326] : memref<2x32x96xf32, #tpu.memory_space<vmem>>, vector<1x32x96xf32>
    %815 = vector.shape_cast %814 : vector<1x32x96xf32> to vector<32x96xf32>
    %c1_327 = arith.constant 1 : index
    %c0_328 = arith.constant 0 : index
    %c0_329 = arith.constant 0 : index
    %816 = vector.load %arg19[%c1_327, %c0_328, %c0_329] : memref<2x1x96xf32, #tpu.memory_space<vmem>>, vector<1x1x96xf32>
    %817 = vector.shape_cast %816 : vector<1x1x96xf32> to vector<1x96xf32>
    %c1_330 = arith.constant 1 : index
    %c0_331 = arith.constant 0 : index
    %c0_332 = arith.constant 0 : index
    %818 = vector.load %arg20[%c1_330, %c0_331, %c0_332] : memref<2x32x32xf32, #tpu.memory_space<vmem>>, vector<1x32x32xf32>
    %819 = vector.shape_cast %818 : vector<1x32x32xf32> to vector<32x32xf32>
    %c1_333 = arith.constant 1 : index
    %c0_334 = arith.constant 0 : index
    %c0_335 = arith.constant 0 : index
    %820 = vector.load %arg21[%c1_333, %c0_334, %c0_335] : memref<2x1x32xf32, #tpu.memory_space<vmem>>, vector<1x1x32xf32>
    %821 = vector.shape_cast %820 : vector<1x1x32xf32> to vector<1x32xf32>
    %822 = vector.extract_strided_slice %815 {offsets = [0, 0], sizes = [32, 32], strides = [1, 1]} : vector<32x96xf32> to vector<32x32xf32>
    %cst_336 = arith.constant dense<0.000000e+00> : vector<8x32xf32>
    %823 = tpu.matmul %813, %822, %cst_336 {dimension_numbers = #tpu.dot_dimension_numbers<[1], [0], [0], [1], [0, 0, 1, 1], [], []>} : vector<8x32xf32>, vector<32x32xf32>, vector<8x32xf32> -> vector<8x32xf32>
    %824 = vector.extract_strided_slice %817 {offsets = [0, 0], sizes = [1, 32], strides = [1, 1]} : vector<1x96xf32> to vector<1x32xf32>
    %825 = vector.broadcast %824 : vector<1x32xf32> to vector<8x32xf32>
    %826 = arith.addf %823, %825 : vector<8x32xf32>
    %827 = vector.extract_strided_slice %815 {offsets = [0, 32], sizes = [32, 64], strides = [1, 1]} : vector<32x96xf32> to vector<32x64xf32>
    %cst_337 = arith.constant dense<0.000000e+00> : vector<10x64xf32>
    %828 = tpu.matmul %380, %827, %cst_337 {dimension_numbers = #tpu.dot_dimension_numbers<[1], [0], [0], [1], [0, 0, 1, 1], [], []>} : vector<10x32xf32>, vector<32x64xf32>, vector<10x64xf32> -> vector<10x64xf32>
    %829 = vector.extract_strided_slice %817 {offsets = [0, 32], sizes = [1, 64], strides = [1, 1]} : vector<1x96xf32> to vector<1x64xf32>
    %830 = vector.broadcast %829 : vector<1x64xf32> to vector<10x64xf32>
    %831 = arith.addf %828, %830 : vector<10x64xf32>
    %832 = vector.extract_strided_slice %831 {offsets = [0, 0], sizes = [10, 32], strides = [1, 1]} : vector<10x64xf32> to vector<10x32xf32>
    %833 = vector.extract_strided_slice %831 {offsets = [0, 32], sizes = [10, 32], strides = [1, 1]} : vector<10x64xf32> to vector<10x32xf32>
    %cst_338 = arith.constant 0.000000e+00 : f32
    %834 = vector.broadcast %cst_338 : f32 to vector<8x32xf32>
    %835 = vector.broadcast %821 : vector<1x32xf32> to vector<8x32xf32>
    %836 = arith.addf %834, %835 : vector<8x32xf32>
    %837 = vector.extract_strided_slice %826 {offsets = [0, 0], sizes = [8, 8], strides = [1, 1]} : vector<8x32xf32> to vector<8x8xf32>
    %838 = vector.extract_strided_slice %832 {offsets = [0, 0], sizes = [10, 8], strides = [1, 1]} : vector<10x32xf32> to vector<10x8xf32>
    %cst_339 = arith.constant dense<0.000000e+00> : vector<8x10xf32>
    %839 = tpu.matmul %837, %838, %cst_339 {dimension_numbers = #tpu.dot_dimension_numbers<[1], [1], [0], [0], [0, 0, 1, 0], [], []>} : vector<8x8xf32>, vector<10x8xf32>, vector<8x10xf32> -> vector<8x10xf32>
    %cst_340 = arith.constant 0.353553385 : f32
    %840 = vector.broadcast %cst_340 : f32 to vector<8x10xf32>
    %841 = arith.mulf %839, %840 : vector<8x10xf32>
    %cst_341 = arith.constant dense<0xFF800000> : vector<8xf32>
    %842 = vector.multi_reduction <maximumf>, %841, %cst_341 [1] : vector<8x10xf32> to vector<8xf32>
    %843 = vector.shape_cast %842 : vector<8xf32> to vector<8x1xf32>
    %844 = vector.broadcast %843 : vector<8x1xf32> to vector<8x10xf32>
    %845 = arith.subf %841, %844 : vector<8x10xf32>
    %846 = math.exp %845 : vector<8x10xf32>
    %cst_342 = arith.constant dense<0.000000e+00> : vector<8xf32>
    %847 = vector.multi_reduction <add>, %846, %cst_342 [1] : vector<8x10xf32> to vector<8xf32>
    %848 = vector.shape_cast %847 : vector<8xf32> to vector<8x1xf32>
    %849 = vector.broadcast %848 : vector<8x1xf32> to vector<8x10xf32>
    %850 = arith.divf %846, %849 : vector<8x10xf32>
    %851 = vector.extract_strided_slice %833 {offsets = [0, 0], sizes = [10, 8], strides = [1, 1]} : vector<10x32xf32> to vector<10x8xf32>
    %cst_343 = arith.constant dense<0.000000e+00> : vector<8x8xf32>
    %852 = tpu.matmul %850, %851, %cst_343 {dimension_numbers = #tpu.dot_dimension_numbers<[1], [0], [0], [1], [0, 0, 1, 1], [], []>} : vector<8x10xf32>, vector<10x8xf32>, vector<8x8xf32> -> vector<8x8xf32>
    %853 = vector.extract_strided_slice %819 {offsets = [0, 0], sizes = [8, 32], strides = [1, 1]} : vector<32x32xf32> to vector<8x32xf32>
    %cst_344 = arith.constant dense<0.000000e+00> : vector<8x32xf32>
    %854 = tpu.matmul %852, %853, %cst_344 {dimension_numbers = #tpu.dot_dimension_numbers<[1], [0], [0], [1], [0, 0, 1, 1], [], []>} : vector<8x8xf32>, vector<8x32xf32>, vector<8x32xf32> -> vector<8x32xf32>
    %855 = arith.addf %836, %854 : vector<8x32xf32>
    %856 = vector.extract_strided_slice %826 {offsets = [0, 8], sizes = [8, 8], strides = [1, 1]} : vector<8x32xf32> to vector<8x8xf32>
    %857 = vector.extract_strided_slice %832 {offsets = [0, 8], sizes = [10, 8], strides = [1, 1]} : vector<10x32xf32> to vector<10x8xf32>
    %cst_345 = arith.constant dense<0.000000e+00> : vector<8x10xf32>
    %858 = tpu.matmul %856, %857, %cst_345 {dimension_numbers = #tpu.dot_dimension_numbers<[1], [1], [0], [0], [0, 0, 1, 0], [], []>} : vector<8x8xf32>, vector<10x8xf32>, vector<8x10xf32> -> vector<8x10xf32>
    %cst_346 = arith.constant 0.353553385 : f32
    %859 = vector.broadcast %cst_346 : f32 to vector<8x10xf32>
    %860 = arith.mulf %858, %859 : vector<8x10xf32>
    %cst_347 = arith.constant dense<0xFF800000> : vector<8xf32>
    %861 = vector.multi_reduction <maximumf>, %860, %cst_347 [1] : vector<8x10xf32> to vector<8xf32>
    %862 = vector.shape_cast %861 : vector<8xf32> to vector<8x1xf32>
    %863 = vector.broadcast %862 : vector<8x1xf32> to vector<8x10xf32>
    %864 = arith.subf %860, %863 : vector<8x10xf32>
    %865 = math.exp %864 : vector<8x10xf32>
    %cst_348 = arith.constant dense<0.000000e+00> : vector<8xf32>
    %866 = vector.multi_reduction <add>, %865, %cst_348 [1] : vector<8x10xf32> to vector<8xf32>
    %867 = vector.shape_cast %866 : vector<8xf32> to vector<8x1xf32>
    %868 = vector.broadcast %867 : vector<8x1xf32> to vector<8x10xf32>
    %869 = arith.divf %865, %868 : vector<8x10xf32>
    %870 = vector.extract_strided_slice %833 {offsets = [0, 8], sizes = [10, 8], strides = [1, 1]} : vector<10x32xf32> to vector<10x8xf32>
    %cst_349 = arith.constant dense<0.000000e+00> : vector<8x8xf32>
    %871 = tpu.matmul %869, %870, %cst_349 {dimension_numbers = #tpu.dot_dimension_numbers<[1], [0], [0], [1], [0, 0, 1, 1], [], []>} : vector<8x10xf32>, vector<10x8xf32>, vector<8x8xf32> -> vector<8x8xf32>
    %872 = vector.extract_strided_slice %819 {offsets = [8, 0], sizes = [8, 32], strides = [1, 1]} : vector<32x32xf32> to vector<8x32xf32>
    %cst_350 = arith.constant dense<0.000000e+00> : vector<8x32xf32>
    %873 = tpu.matmul %871, %872, %cst_350 {dimension_numbers = #tpu.dot_dimension_numbers<[1], [0], [0], [1], [0, 0, 1, 1], [], []>} : vector<8x8xf32>, vector<8x32xf32>, vector<8x32xf32> -> vector<8x32xf32>
    %874 = arith.addf %855, %873 : vector<8x32xf32>
    %875 = vector.extract_strided_slice %826 {offsets = [0, 16], sizes = [8, 8], strides = [1, 1]} : vector<8x32xf32> to vector<8x8xf32>
    %876 = vector.extract_strided_slice %832 {offsets = [0, 16], sizes = [10, 8], strides = [1, 1]} : vector<10x32xf32> to vector<10x8xf32>
    %cst_351 = arith.constant dense<0.000000e+00> : vector<8x10xf32>
    %877 = tpu.matmul %875, %876, %cst_351 {dimension_numbers = #tpu.dot_dimension_numbers<[1], [1], [0], [0], [0, 0, 1, 0], [], []>} : vector<8x8xf32>, vector<10x8xf32>, vector<8x10xf32> -> vector<8x10xf32>
    %cst_352 = arith.constant 0.353553385 : f32
    %878 = vector.broadcast %cst_352 : f32 to vector<8x10xf32>
    %879 = arith.mulf %877, %878 : vector<8x10xf32>
    %cst_353 = arith.constant dense<0xFF800000> : vector<8xf32>
    %880 = vector.multi_reduction <maximumf>, %879, %cst_353 [1] : vector<8x10xf32> to vector<8xf32>
    %881 = vector.shape_cast %880 : vector<8xf32> to vector<8x1xf32>
    %882 = vector.broadcast %881 : vector<8x1xf32> to vector<8x10xf32>
    %883 = arith.subf %879, %882 : vector<8x10xf32>
    %884 = math.exp %883 : vector<8x10xf32>
    %cst_354 = arith.constant dense<0.000000e+00> : vector<8xf32>
    %885 = vector.multi_reduction <add>, %884, %cst_354 [1] : vector<8x10xf32> to vector<8xf32>
    %886 = vector.shape_cast %885 : vector<8xf32> to vector<8x1xf32>
    %887 = vector.broadcast %886 : vector<8x1xf32> to vector<8x10xf32>
    %888 = arith.divf %884, %887 : vector<8x10xf32>
    %889 = vector.extract_strided_slice %833 {offsets = [0, 16], sizes = [10, 8], strides = [1, 1]} : vector<10x32xf32> to vector<10x8xf32>
    %cst_355 = arith.constant dense<0.000000e+00> : vector<8x8xf32>
    %890 = tpu.matmul %888, %889, %cst_355 {dimension_numbers = #tpu.dot_dimension_numbers<[1], [0], [0], [1], [0, 0, 1, 1], [], []>} : vector<8x10xf32>, vector<10x8xf32>, vector<8x8xf32> -> vector<8x8xf32>
    %891 = vector.extract_strided_slice %819 {offsets = [16, 0], sizes = [8, 32], strides = [1, 1]} : vector<32x32xf32> to vector<8x32xf32>
    %cst_356 = arith.constant dense<0.000000e+00> : vector<8x32xf32>
    %892 = tpu.matmul %890, %891, %cst_356 {dimension_numbers = #tpu.dot_dimension_numbers<[1], [0], [0], [1], [0, 0, 1, 1], [], []>} : vector<8x8xf32>, vector<8x32xf32>, vector<8x32xf32> -> vector<8x32xf32>
    %893 = arith.addf %874, %892 : vector<8x32xf32>
    %894 = vector.extract_strided_slice %826 {offsets = [0, 24], sizes = [8, 8], strides = [1, 1]} : vector<8x32xf32> to vector<8x8xf32>
    %895 = vector.extract_strided_slice %832 {offsets = [0, 24], sizes = [10, 8], strides = [1, 1]} : vector<10x32xf32> to vector<10x8xf32>
    %cst_357 = arith.constant dense<0.000000e+00> : vector<8x10xf32>
    %896 = tpu.matmul %894, %895, %cst_357 {dimension_numbers = #tpu.dot_dimension_numbers<[1], [1], [0], [0], [0, 0, 1, 0], [], []>} : vector<8x8xf32>, vector<10x8xf32>, vector<8x10xf32> -> vector<8x10xf32>
    %cst_358 = arith.constant 0.353553385 : f32
    %897 = vector.broadcast %cst_358 : f32 to vector<8x10xf32>
    %898 = arith.mulf %896, %897 : vector<8x10xf32>
    %cst_359 = arith.constant dense<0xFF800000> : vector<8xf32>
    %899 = vector.multi_reduction <maximumf>, %898, %cst_359 [1] : vector<8x10xf32> to vector<8xf32>
    %900 = vector.shape_cast %899 : vector<8xf32> to vector<8x1xf32>
    %901 = vector.broadcast %900 : vector<8x1xf32> to vector<8x10xf32>
    %902 = arith.subf %898, %901 : vector<8x10xf32>
    %903 = math.exp %902 : vector<8x10xf32>
    %cst_360 = arith.constant dense<0.000000e+00> : vector<8xf32>
    %904 = vector.multi_reduction <add>, %903, %cst_360 [1] : vector<8x10xf32> to vector<8xf32>
    %905 = vector.shape_cast %904 : vector<8xf32> to vector<8x1xf32>
    %906 = vector.broadcast %905 : vector<8x1xf32> to vector<8x10xf32>
    %907 = arith.divf %903, %906 : vector<8x10xf32>
    %908 = vector.extract_strided_slice %833 {offsets = [0, 24], sizes = [10, 8], strides = [1, 1]} : vector<10x32xf32> to vector<10x8xf32>
    %cst_361 = arith.constant dense<0.000000e+00> : vector<8x8xf32>
    %909 = tpu.matmul %907, %908, %cst_361 {dimension_numbers = #tpu.dot_dimension_numbers<[1], [0], [0], [1], [0, 0, 1, 1], [], []>} : vector<8x10xf32>, vector<10x8xf32>, vector<8x8xf32> -> vector<8x8xf32>
    %910 = vector.extract_strided_slice %819 {offsets = [24, 0], sizes = [8, 32], strides = [1, 1]} : vector<32x32xf32> to vector<8x32xf32>
    %cst_362 = arith.constant dense<0.000000e+00> : vector<8x32xf32>
    %911 = tpu.matmul %909, %910, %cst_362 {dimension_numbers = #tpu.dot_dimension_numbers<[1], [0], [0], [1], [0, 0, 1, 1], [], []>} : vector<8x8xf32>, vector<8x32xf32>, vector<8x32xf32> -> vector<8x32xf32>
    %912 = arith.addf %893, %911 : vector<8x32xf32>
    %c1_363 = arith.constant 1 : index
    %c0_364 = arith.constant 0 : index
    %c0_365 = arith.constant 0 : index
    %c0_366 = arith.constant 0 : index
    %913 = vector.load %arg23[%c1_363, %c0_364, %c0_365, %c0_366] : memref<2x2x1x32xf32, #tpu.memory_space<vmem>>, vector<1x2x1x32xf32>
    %914 = vector.shape_cast %913 : vector<1x2x1x32xf32> to vector<2x1x32xf32>
    %915 = arith.addf %813, %912 : vector<8x32xf32>
    %916 = vector.extract_strided_slice %914 {offsets = [0, 0, 0], sizes = [1, 1, 32], strides = [1, 1, 1]} : vector<2x1x32xf32> to vector<1x1x32xf32>
    %917 = vector.shape_cast %916 : vector<1x1x32xf32> to vector<1x32xf32>
    %918 = vector.extract_strided_slice %914 {offsets = [1, 0, 0], sizes = [1, 1, 32], strides = [1, 1, 1]} : vector<2x1x32xf32> to vector<1x1x32xf32>
    %919 = vector.shape_cast %918 : vector<1x1x32xf32> to vector<1x32xf32>
    %cst_367 = arith.constant dense<0.000000e+00> : vector<8xf32>
    %920 = vector.multi_reduction <add>, %915, %cst_367 [1] : vector<8x32xf32> to vector<8xf32>
    %921 = vector.shape_cast %920 : vector<8xf32> to vector<8x1xf32>
    %cst_368 = arith.constant 3.200000e+01 : f32
    %922 = vector.broadcast %cst_368 : f32 to vector<8x1xf32>
    %923 = arith.divf %921, %922 : vector<8x1xf32>
    %924 = vector.broadcast %923 : vector<8x1xf32> to vector<8x32xf32>
    %925 = arith.subf %915, %924 : vector<8x32xf32>
    %926 = arith.mulf %925, %925 : vector<8x32xf32>
    %cst_369 = arith.constant dense<0.000000e+00> : vector<8xf32>
    %927 = vector.multi_reduction <add>, %926, %cst_369 [1] : vector<8x32xf32> to vector<8xf32>
    %928 = vector.shape_cast %927 : vector<8xf32> to vector<8x1xf32>
    %cst_370 = arith.constant 3.200000e+01 : f32
    %929 = vector.broadcast %cst_370 : f32 to vector<8x1xf32>
    %930 = arith.divf %928, %929 : vector<8x1xf32>
    %931 = vector.broadcast %923 : vector<8x1xf32> to vector<8x32xf32>
    %932 = arith.subf %915, %931 : vector<8x32xf32>
    %cst_371 = arith.constant 9.99999974E-6 : f32
    %933 = vector.broadcast %cst_371 : f32 to vector<8x1xf32>
    %934 = arith.addf %930, %933 : vector<8x1xf32>
    %935 = math.rsqrt %934 : vector<8x1xf32>
    %936 = vector.broadcast %935 : vector<8x1xf32> to vector<8x32xf32>
    %937 = arith.mulf %932, %936 : vector<8x32xf32>
    %938 = vector.broadcast %917 : vector<1x32xf32> to vector<8x32xf32>
    %939 = arith.mulf %937, %938 : vector<8x32xf32>
    %940 = vector.broadcast %919 : vector<1x32xf32> to vector<8x32xf32>
    %941 = arith.addf %939, %940 : vector<8x32xf32>
    %c1_372 = arith.constant 1 : index
    %c0_373 = arith.constant 0 : index
    %c0_374 = arith.constant 0 : index
    %942 = vector.load %arg25[%c1_372, %c0_373, %c0_374] : memref<2x32x64xf32, #tpu.memory_space<vmem>>, vector<1x32x64xf32>
    %943 = vector.shape_cast %942 : vector<1x32x64xf32> to vector<32x64xf32>
    %c1_375 = arith.constant 1 : index
    %c0_376 = arith.constant 0 : index
    %c0_377 = arith.constant 0 : index
    %944 = vector.load %arg26[%c1_375, %c0_376, %c0_377] : memref<2x1x64xf32, #tpu.memory_space<vmem>>, vector<1x1x64xf32>
    %945 = vector.shape_cast %944 : vector<1x1x64xf32> to vector<1x64xf32>
    %c1_378 = arith.constant 1 : index
    %c0_379 = arith.constant 0 : index
    %c0_380 = arith.constant 0 : index
    %946 = vector.load %arg27[%c1_378, %c0_379, %c0_380] : memref<2x64x32xf32, #tpu.memory_space<vmem>>, vector<1x64x32xf32>
    %947 = vector.shape_cast %946 : vector<1x64x32xf32> to vector<64x32xf32>
    %c1_381 = arith.constant 1 : index
    %c0_382 = arith.constant 0 : index
    %c0_383 = arith.constant 0 : index
    %948 = vector.load %arg28[%c1_381, %c0_382, %c0_383] : memref<2x1x32xf32, #tpu.memory_space<vmem>>, vector<1x1x32xf32>
    %949 = vector.shape_cast %948 : vector<1x1x32xf32> to vector<1x32xf32>
    %cst_384 = arith.constant dense<0.000000e+00> : vector<8x64xf32>
    %950 = tpu.matmul %941, %943, %cst_384 {dimension_numbers = #tpu.dot_dimension_numbers<[1], [0], [0], [1], [0, 0, 1, 1], [], []>} : vector<8x32xf32>, vector<32x64xf32>, vector<8x64xf32> -> vector<8x64xf32>
    %951 = vector.broadcast %945 : vector<1x64xf32> to vector<8x64xf32>
    %952 = arith.addf %950, %951 : vector<8x64xf32>
    %cst_385 = arith.constant 0.000000e+00 : f32
    %953 = vector.broadcast %cst_385 : f32 to vector<8x64xf32>
    %954 = arith.maximumf %952, %953 : vector<8x64xf32>
    %cst_386 = arith.constant dense<0.000000e+00> : vector<8x32xf32>
    %955 = tpu.matmul %954, %947, %cst_386 {dimension_numbers = #tpu.dot_dimension_numbers<[1], [0], [0], [1], [0, 0, 1, 1], [], []>} : vector<8x64xf32>, vector<64x32xf32>, vector<8x32xf32> -> vector<8x32xf32>
    %956 = vector.broadcast %949 : vector<1x32xf32> to vector<8x32xf32>
    %957 = arith.addf %955, %956 : vector<8x32xf32>
    %c1_387 = arith.constant 1 : index
    %c0_388 = arith.constant 0 : index
    %c0_389 = arith.constant 0 : index
    %c0_390 = arith.constant 0 : index
    %958 = vector.load %arg24[%c1_387, %c0_388, %c0_389, %c0_390] : memref<2x2x1x32xf32, #tpu.memory_space<vmem>>, vector<1x2x1x32xf32>
    %959 = vector.shape_cast %958 : vector<1x2x1x32xf32> to vector<2x1x32xf32>
    %960 = arith.addf %941, %957 : vector<8x32xf32>
    %961 = vector.extract_strided_slice %959 {offsets = [0, 0, 0], sizes = [1, 1, 32], strides = [1, 1, 1]} : vector<2x1x32xf32> to vector<1x1x32xf32>
    %962 = vector.shape_cast %961 : vector<1x1x32xf32> to vector<1x32xf32>
    %963 = vector.extract_strided_slice %959 {offsets = [1, 0, 0], sizes = [1, 1, 32], strides = [1, 1, 1]} : vector<2x1x32xf32> to vector<1x1x32xf32>
    %964 = vector.shape_cast %963 : vector<1x1x32xf32> to vector<1x32xf32>
    %cst_391 = arith.constant dense<0.000000e+00> : vector<8xf32>
    %965 = vector.multi_reduction <add>, %960, %cst_391 [1] : vector<8x32xf32> to vector<8xf32>
    %966 = vector.shape_cast %965 : vector<8xf32> to vector<8x1xf32>
    %cst_392 = arith.constant 3.200000e+01 : f32
    %967 = vector.broadcast %cst_392 : f32 to vector<8x1xf32>
    %968 = arith.divf %966, %967 : vector<8x1xf32>
    %969 = vector.broadcast %968 : vector<8x1xf32> to vector<8x32xf32>
    %970 = arith.subf %960, %969 : vector<8x32xf32>
    %971 = arith.mulf %970, %970 : vector<8x32xf32>
    %cst_393 = arith.constant dense<0.000000e+00> : vector<8xf32>
    %972 = vector.multi_reduction <add>, %971, %cst_393 [1] : vector<8x32xf32> to vector<8xf32>
    %973 = vector.shape_cast %972 : vector<8xf32> to vector<8x1xf32>
    %cst_394 = arith.constant 3.200000e+01 : f32
    %974 = vector.broadcast %cst_394 : f32 to vector<8x1xf32>
    %975 = arith.divf %973, %974 : vector<8x1xf32>
    %976 = vector.broadcast %968 : vector<8x1xf32> to vector<8x32xf32>
    %977 = arith.subf %960, %976 : vector<8x32xf32>
    %cst_395 = arith.constant 9.99999974E-6 : f32
    %978 = vector.broadcast %cst_395 : f32 to vector<8x1xf32>
    %979 = arith.addf %975, %978 : vector<8x1xf32>
    %980 = math.rsqrt %979 : vector<8x1xf32>
    %981 = vector.broadcast %980 : vector<8x1xf32> to vector<8x32xf32>
    %982 = arith.mulf %977, %981 : vector<8x32xf32>
    %983 = vector.broadcast %962 : vector<1x32xf32> to vector<8x32xf32>
    %984 = arith.mulf %982, %983 : vector<8x32xf32>
    %985 = vector.broadcast %964 : vector<1x32xf32> to vector<8x32xf32>
    %986 = arith.addf %984, %985 : vector<8x32xf32>
    %c0_396 = arith.constant 0 : index
    %c0_397 = arith.constant 0 : index
    %c0_398 = arith.constant 0 : index
    %987 = vector.load %arg30[%c0_396, %c0_397, %c0_398] : memref<2x1x32xf32, #tpu.memory_space<vmem>>, vector<2x1x32xf32>
    %988 = vector.extract_strided_slice %987 {offsets = [0, 0, 0], sizes = [1, 1, 32], strides = [1, 1, 1]} : vector<2x1x32xf32> to vector<1x1x32xf32>
    %989 = vector.shape_cast %988 : vector<1x1x32xf32> to vector<1x32xf32>
    %990 = vector.extract_strided_slice %987 {offsets = [1, 0, 0], sizes = [1, 1, 32], strides = [1, 1, 1]} : vector<2x1x32xf32> to vector<1x1x32xf32>
    %991 = vector.shape_cast %990 : vector<1x1x32xf32> to vector<1x32xf32>
    %cst_399 = arith.constant dense<0.000000e+00> : vector<8xf32>
    %992 = vector.multi_reduction <add>, %986, %cst_399 [1] : vector<8x32xf32> to vector<8xf32>
    %993 = vector.shape_cast %992 : vector<8xf32> to vector<8x1xf32>
    %cst_400 = arith.constant 3.200000e+01 : f32
    %994 = vector.broadcast %cst_400 : f32 to vector<8x1xf32>
    %995 = arith.divf %993, %994 : vector<8x1xf32>
    %996 = vector.broadcast %995 : vector<8x1xf32> to vector<8x32xf32>
    %997 = arith.subf %986, %996 : vector<8x32xf32>
    %998 = arith.mulf %997, %997 : vector<8x32xf32>
    %cst_401 = arith.constant dense<0.000000e+00> : vector<8xf32>
    %999 = vector.multi_reduction <add>, %998, %cst_401 [1] : vector<8x32xf32> to vector<8xf32>
    %1000 = vector.shape_cast %999 : vector<8xf32> to vector<8x1xf32>
    %cst_402 = arith.constant 3.200000e+01 : f32
    %1001 = vector.broadcast %cst_402 : f32 to vector<8x1xf32>
    %1002 = arith.divf %1000, %1001 : vector<8x1xf32>
    %1003 = vector.broadcast %995 : vector<8x1xf32> to vector<8x32xf32>
    %1004 = arith.subf %986, %1003 : vector<8x32xf32>
    %cst_403 = arith.constant 9.99999974E-6 : f32
    %1005 = vector.broadcast %cst_403 : f32 to vector<8x1xf32>
    %1006 = arith.addf %1002, %1005 : vector<8x1xf32>
    %1007 = math.rsqrt %1006 : vector<8x1xf32>
    %1008 = vector.broadcast %1007 : vector<8x1xf32> to vector<8x32xf32>
    %1009 = arith.mulf %1004, %1008 : vector<8x32xf32>
    %1010 = vector.broadcast %989 : vector<1x32xf32> to vector<8x32xf32>
    %1011 = arith.mulf %1009, %1010 : vector<8x32xf32>
    %1012 = vector.broadcast %991 : vector<1x32xf32> to vector<8x32xf32>
    %1013 = arith.addf %1011, %1012 : vector<8x32xf32>
    %c0_404 = arith.constant 0 : index
    %c0_405 = arith.constant 0 : index
    %1014 = vector.load %arg31[%c0_404, %c0_405] : memref<32x128xf32, #tpu.memory_space<vmem>>, vector<32x128xf32>
    %cst_406 = arith.constant dense<0.000000e+00> : vector<8x128xf32>
    %1015 = tpu.matmul %1013, %1014, %cst_406 {dimension_numbers = #tpu.dot_dimension_numbers<[1], [0], [0], [1], [0, 0, 1, 1], [], []>} : vector<8x32xf32>, vector<32x128xf32>, vector<8x128xf32> -> vector<8x128xf32>
    %c0_407 = arith.constant 0 : index
    %c0_408 = arith.constant 0 : index
    %1016 = vector.load %arg32[%c0_407, %c0_408] : memref<1x128xf32, #tpu.memory_space<vmem>>, vector<1x128xf32>
    %1017 = vector.broadcast %1016 : vector<1x128xf32> to vector<8x128xf32>
    %1018 = arith.addf %1015, %1017 : vector<8x128xf32>
    %c0_409 = arith.constant 0 : index
    %c0_410 = arith.constant 0 : index
    %c0_411 = arith.constant 0 : index
    %1019 = vector.load %arg33[%c0_409, %c0_410, %c0_411] : memref<1x8x128xf32, #tpu.memory_space<vmem>>, vector<1x8x128xf32>
    %1020 = vector.shape_cast %1019 : vector<1x8x128xf32> to vector<8x128xf32>
    %1021 = vector.shape_cast %1018 : vector<8x128xf32> to vector<1x8x128xf32>
    tpu.vector_store %arg33[%c0_409, %c0_410, %c0_411], %1021 {strides = array<i32>} : memref<1x8x128xf32, #tpu.memory_space<vmem>>, vector<1x8x128xf32>,
    return
  }
  func.func @transform_0(%arg0: i32) -> (i32, i32, i32) {
    %c0_i32 = arith.constant 0 : i32
    %c0_i32_0 = arith.constant 0 : i32
    %c0_i32_1 = arith.constant 0 : i32
    return %arg0, %c0_i32, %c0_i32_0 : i32, i32, i32
  }
  func.func @transform_1(%arg0: i32) -> (i32, i32, i32) {
    %c0_i32 = arith.constant 0 : i32
    %c0_i32_0 = arith.constant 0 : i32
    %c0_i32_1 = arith.constant 0 : i32
    return %arg0, %c0_i32, %c0_i32_0 : i32, i32, i32
  }
  func.func @transform_2(%arg0: i32) -> (i32, i32, i32) {
    %c0_i32 = arith.constant 0 : i32
    %c0_i32_0 = arith.constant 0 : i32
    %c0_i32_1 = arith.constant 0 : i32
    return %arg0, %c0_i32, %c0_i32_0 : i32, i32, i32
  }
  func.func @transform_3(%arg0: i32) -> (i32, i32, i32) {
    %c0_i32 = arith.constant 0 : i32
    %c0_i32_0 = arith.constant 0 : i32
    %c0_i32_1 = arith.constant 0 : i32
    %c0_i32_2 = arith.constant 0 : i32
    return %c0_i32, %c0_i32_0, %c0_i32_1 : i32, i32, i32
  }
  func.func @transform_4(%arg0: i32) -> (i32, i32, i32) {
    %c0_i32 = arith.constant 0 : i32
    %c0_i32_0 = arith.constant 0 : i32
    %c0_i32_1 = arith.constant 0 : i32
    %c0_i32_2 = arith.constant 0 : i32
    return %c0_i32, %c0_i32_0, %c0_i32_1 : i32, i32, i32
  }
  func.func @transform_5(%arg0: i32) -> (i32, i32, i32) {
    %c0_i32 = arith.constant 0 : i32
    %c0_i32_0 = arith.constant 0 : i32
    %c0_i32_1 = arith.constant 0 : i32
    %c0_i32_2 = arith.constant 0 : i32
    return %c0_i32, %c0_i32_0, %c0_i32_1 : i32, i32, i32
  }
  func.func @transform_6(%arg0: i32) -> (i32, i32, i32) {
    %c0_i32 = arith.constant 0 : i32
    %c0_i32_0 = arith.constant 0 : i32
    %c0_i32_1 = arith.constant 0 : i32
    %c0_i32_2 = arith.constant 0 : i32
    return %c0_i32, %c0_i32_0, %c0_i32_1 : i32, i32, i32
  }
  func.func @transform_7(%arg0: i32) -> (i32, i32, i32, i32) {
    %c0_i32 = arith.constant 0 : i32
    %c0_i32_0 = arith.constant 0 : i32
    %c0_i32_1 = arith.constant 0 : i32
    %c0_i32_2 = arith.constant 0 : i32
    %c0_i32_3 = arith.constant 0 : i32
    return %c0_i32, %c0_i32_0, %c0_i32_1, %c0_i32_2 : i32, i32, i32, i32
  }
  func.func @transform_8(%arg0: i32) -> (i32, i32, i32, i32) {
    %c0_i32 = arith.constant 0 : i32
    %c0_i32_0 = arith.constant 0 : i32
    %c0_i32_1 = arith.constant 0 : i32
    %c0_i32_2 = arith.constant 0 : i32
    %c0_i32_3 = arith.constant 0 : i32
    return %c0_i32, %c0_i32_0, %c0_i32_1, %c0_i32_2 : i32, i32, i32, i32
  }
  func.func @transform_9(%arg0: i32) -> (i32, i32, i32) {
    %c0_i32 = arith.constant 0 : i32
    %c0_i32_0 = arith.constant 0 : i32
    %c0_i32_1 = arith.constant 0 : i32
    %c0_i32_2 = arith.constant 0 : i32
    return %c0_i32, %c0_i32_0, %c0_i32_1 : i32, i32, i32
  }
  func.func @transform_10(%arg0: i32) -> (i32, i32, i32) {
    %c0_i32 = arith.constant 0 : i32
    %c0_i32_0 = arith.constant 0 : i32
    %c0_i32_1 = arith.constant 0 : i32
    %c0_i32_2 = arith.constant 0 : i32
    return %c0_i32, %c0_i32_0, %c0_i32_1 : i32, i32, i32
  }
  func.func @transform_11(%arg0: i32) -> (i32, i32, i32) {
    %c0_i32 = arith.constant 0 : i32
    %c0_i32_0 = arith.constant 0 : i32
    %c0_i32_1 = arith.constant 0 : i32
    %c0_i32_2 = arith.constant 0 : i32
    return %c0_i32, %c0_i32_0, %c0_i32_1 : i32, i32, i32
  }
  func.func @transform_12(%arg0: i32) -> (i32, i32, i32) {
    %c0_i32 = arith.constant 0 : i32
    %c0_i32_0 = arith.constant 0 : i32
    %c0_i32_1 = arith.constant 0 : i32
    %c0_i32_2 = arith.constant 0 : i32
    return %c0_i32, %c0_i32_0, %c0_i32_1 : i32, i32, i32
  }
  func.func @transform_13(%arg0: i32) -> (i32, i32, i32) {
    %c0_i32 = arith.constant 0 : i32
    %c0_i32_0 = arith.constant 0 : i32
    %c0_i32_1 = arith.constant 0 : i32
    %c0_i32_2 = arith.constant 0 : i32
    return %c0_i32, %c0_i32_0, %c0_i32_1 : i32, i32, i32
  }
  func.func @transform_14(%arg0: i32) -> (i32, i32, i32) {
    %c0_i32 = arith.constant 0 : i32
    %c0_i32_0 = arith.constant 0 : i32
    %c0_i32_1 = arith.constant 0 : i32
    %c0_i32_2 = arith.constant 0 : i32
    return %c0_i32, %c0_i32_0, %c0_i32_1 : i32, i32, i32
  }
  func.func @transform_15(%arg0: i32) -> (i32, i32, i32) {
    %c0_i32 = arith.constant 0 : i32
    %c0_i32_0 = arith.constant 0 : i32
    %c0_i32_1 = arith.constant 0 : i32
    %c0_i32_2 = arith.constant 0 : i32
    return %c0_i32, %c0_i32_0, %c0_i32_1 : i32, i32, i32
  }
  func.func @transform_16(%arg0: i32) -> (i32, i32, i32) {
    %c0_i32 = arith.constant 0 : i32
    %c0_i32_0 = arith.constant 0 : i32
    %c0_i32_1 = arith.constant 0 : i32
    %c0_i32_2 = arith.constant 0 : i32
    return %c0_i32, %c0_i32_0, %c0_i32_1 : i32, i32, i32
  }
  func.func @transform_17(%arg0: i32) -> (i32, i32, i32) {
    %c0_i32 = arith.constant 0 : i32
    %c0_i32_0 = arith.constant 0 : i32
    %c0_i32_1 = arith.constant 0 : i32
    %c0_i32_2 = arith.constant 0 : i32
    return %c0_i32, %c0_i32_0, %c0_i32_1 : i32, i32, i32
  }
  func.func @transform_18(%arg0: i32) -> (i32, i32, i32) {
    %c0_i32 = arith.constant 0 : i32
    %c0_i32_0 = arith.constant 0 : i32
    %c0_i32_1 = arith.constant 0 : i32
    %c0_i32_2 = arith.constant 0 : i32
    return %c0_i32, %c0_i32_0, %c0_i32_1 : i32, i32, i32
  }
  func.func @transform_19(%arg0: i32) -> (i32, i32, i32) {
    %c0_i32 = arith.constant 0 : i32
    %c0_i32_0 = arith.constant 0 : i32
    %c0_i32_1 = arith.constant 0 : i32
    %c0_i32_2 = arith.constant 0 : i32
    return %c0_i32, %c0_i32_0, %c0_i32_1 : i32, i32, i32
  }
  func.func @transform_20(%arg0: i32) -> (i32, i32, i32) {
    %c0_i32 = arith.constant 0 : i32
    %c0_i32_0 = arith.constant 0 : i32
    %c0_i32_1 = arith.constant 0 : i32
    %c0_i32_2 = arith.constant 0 : i32
    return %c0_i32, %c0_i32_0, %c0_i32_1 : i32, i32, i32
  }
  func.func @transform_21(%arg0: i32) -> (i32, i32, i32, i32) {
    %c0_i32 = arith.constant 0 : i32
    %c0_i32_0 = arith.constant 0 : i32
    %c0_i32_1 = arith.constant 0 : i32
    %c0_i32_2 = arith.constant 0 : i32
    %c0_i32_3 = arith.constant 0 : i32
    return %c0_i32, %c0_i32_0, %c0_i32_1, %c0_i32_2 : i32, i32, i32, i32
  }
  func.func @transform_22(%arg0: i32) -> (i32, i32, i32, i32) {
    %c0_i32 = arith.constant 0 : i32
    %c0_i32_0 = arith.constant 0 : i32
    %c0_i32_1 = arith.constant 0 : i32
    %c0_i32_2 = arith.constant 0 : i32
    %c0_i32_3 = arith.constant 0 : i32
    return %c0_i32, %c0_i32_0, %c0_i32_1, %c0_i32_2 : i32, i32, i32, i32
  }
  func.func @transform_23(%arg0: i32) -> (i32, i32, i32, i32) {
    %c0_i32 = arith.constant 0 : i32
    %c0_i32_0 = arith.constant 0 : i32
    %c0_i32_1 = arith.constant 0 : i32
    %c0_i32_2 = arith.constant 0 : i32
    %c0_i32_3 = arith.constant 0 : i32
    return %c0_i32, %c0_i32_0, %c0_i32_1, %c0_i32_2 : i32, i32, i32, i32
  }
  func.func @transform_24(%arg0: i32) -> (i32, i32, i32) {
    %c0_i32 = arith.constant 0 : i32
    %c0_i32_0 = arith.constant 0 : i32
    %c0_i32_1 = arith.constant 0 : i32
    %c0_i32_2 = arith.constant 0 : i32
    return %c0_i32, %c0_i32_0, %c0_i32_1 : i32, i32, i32
  }
  func.func @transform_25(%arg0: i32) -> (i32, i32, i32) {
    %c0_i32 = arith.constant 0 : i32
    %c0_i32_0 = arith.constant 0 : i32
    %c0_i32_1 = arith.constant 0 : i32
    %c0_i32_2 = arith.constant 0 : i32
    return %c0_i32, %c0_i32_0, %c0_i32_1 : i32, i32, i32
  }
  func.func @transform_26(%arg0: i32) -> (i32, i32, i32) {
    %c0_i32 = arith.constant 0 : i32
    %c0_i32_0 = arith.constant 0 : i32
    %c0_i32_1 = arith.constant 0 : i32
    %c0_i32_2 = arith.constant 0 : i32
    return %c0_i32, %c0_i32_0, %c0_i32_1 : i32, i32, i32
  }
  func.func @transform_27(%arg0: i32) -> (i32, i32, i32) {
    %c0_i32 = arith.constant 0 : i32
    %c0_i32_0 = arith.constant 0 : i32
    %c0_i32_1 = arith.constant 0 : i32
    %c0_i32_2 = arith.constant 0 : i32
    return %c0_i32, %c0_i32_0, %c0_i32_1 : i32, i32, i32
  }
  func.func @transform_28(%arg0: i32) -> (i32, i32, i32) {
    %c0_i32 = arith.constant 0 : i32
    %c0_i32_0 = arith.constant 0 : i32
    %c0_i32_1 = arith.constant 0 : i32
    %c0_i32_2 = arith.constant 0 : i32
    return %c0_i32, %c0_i32_0, %c0_i32_1 : i32, i32, i32
  }
  func.func @transform_29(%arg0: i32) -> (i32, i32, i32) {
    %c0_i32 = arith.constant 0 : i32
    %c0_i32_0 = arith.constant 0 : i32
    %c0_i32_1 = arith.constant 0 : i32
    %c0_i32_2 = arith.constant 0 : i32
    return %c0_i32, %c0_i32_0, %c0_i32_1 : i32, i32, i32
  }
  func.func @transform_30(%arg0: i32) -> (i32, i32) {
    %c0_i32 = arith.constant 0 : i32
    %c0_i32_0 = arith.constant 0 : i32
    %c0_i32_1 = arith.constant 0 : i32
    return %c0_i32, %c0_i32_0 : i32, i32
  }
  func.func @transform_31(%arg0: i32) -> (i32, i32) {
    %c0_i32 = arith.constant 0 : i32
    %c0_i32_0 = arith.constant 0 : i32
    %c0_i32_1 = arith.constant 0 : i32
    return %c0_i32, %c0_i32_0 : i32, i32
  }
  func.func @transform_32(%arg0: i32) -> (i32, i32, i32) {
    %c0_i32 = arith.constant 0 : i32
    %c0_i32_0 = arith.constant 0 : i32
    %c0_i32_1 = arith.constant 0 : i32
    return %arg0, %c0_i32, %c0_i32_0 : i32, i32, i32
  }
}

</mosaic_0001>

<bundles_post_ra>
// kernel: transformer_forward.1
= control target key start
LH: loop header
LB: loop body
LE: loop exit
PB: predicated region body
PF: predicated region fallthrough
CT: control target
= control target key end

     0   :  { %s5882_s6 = smov 1   ;;  %s5883_s10 = smov 2   ;;  %s6994_s0 = inlined_call_operand.smem [shape: u32[33], index: -1, kind: input, shape index: {}] }
   0x1   :  { %s5935_s5 = sld [smem:[%s6994_s0]]   ;;  %s5884_s14 = smov 3  }
   0x2   :  { %s5940_s9 = sld [smem:[%s6994_s0 + %s5882_s6]]   ;;  %s5885_s18 = smov 4  }
   0x3   :  { %s5945_s13 = sld [smem:[%s6994_s0 + %s5883_s10]]   ;;  %s5886_s22 = smov 5  }
   0x4   :  { %s5950_s17 = sld [smem:[%s6994_s0 + %s5884_s14]]   ;;  %s5887_s26 = smov 6  }
   0x5   :  { %s5955_s21 = sld [smem:[%s6994_s0 + %s5885_s18]]   ;;  %s5888_s30 = smov 7  }
   0x6   :  { %s5960_s25 = sld [smem:[%s6994_s0 + %s5886_s22]]   ;;  %s5889_s4 = smov 8  }
   0x7   :  { %7043 = sst [smem:[#allocation2_spill]] %s5935_s5  ;;  %s5890_s10 = smov 9  }
   0x8   :  { %7044 = sst [smem:[#allocation3_spill]] %s5940_s9  ;;  %s5891_s15 = smov 10  }
   0x9   :  { %7045 = sst [smem:[#allocation4_spill]] %s5945_s13  ;;  %s5892_s20 = smov 11  }
   0xa   :  { %7046 = sst [smem:[#allocation5_spill]] %s5950_s17  ;;  %s5894_s1 = smov 13  }
   0xb   :  { %7047 = sst [smem:[#allocation6_spill]] %s5955_s21  ;;  %s5895_s7 = smov 14  }
   0xc   :  { %7048 = sst [smem:[#allocation7_spill]] %s5960_s25  ;;  %s5897_s22 = smov 16  }
   0xd   :  { %s5965_s29 = sld [smem:[%s6994_s0 + %s5887_s26]]   ;;  %s5893_s26 = smov 12  }
   0xe   :  { %s5970_s3 = sld [smem:[%s6994_s0 + %s5888_s30]]   ;;  %s5898_s28 = smov 17  }
   0xf   :  { %s5975_s8 = sld [smem:[%s6994_s0 + %s5889_s4]]  }
  0x10   :  { %s5980_s14 = sld [smem:[%s6994_s0 + %s5890_s10]]  }
  0x11   :  { %s5985_s19 = sld [smem:[%s6994_s0 + %s5891_s15]]   ;;  %s5896_s15 = smov 15  }
  0x12   :  { %s5990_s24 = sld [smem:[%s6994_s0 + %s5892_s20]]  }
  0x13   :  { %7049 = sst [smem:[#allocation8_spill]] %s5965_s29 }
  0x14   :  { %7050 = sst [smem:[#allocation9_spill]] %s5970_s3 }
  0x15   :  { %7051 = sst [smem:[#allocation10_spill]] %s5975_s8 }
  0x16   :  { %7052 = sst [smem:[#allocation11_spill]] %s5980_s14 }
  0x17   :  { %7053 = sst [smem:[#allocation12_spill]] %s5985_s19 }
  0x18   :  { %7054 = sst [smem:[#allocation13_spill]] %s5990_s24 }
  0x19   :  { %s5995_s30 = sld [smem:[%s6994_s0 + %s5893_s26]]  }
  0x1a   :  { %s6000_s6 = sld [smem:[%s6994_s0 + %s5894_s1]]  }
  0x1b   :  { %s6005_s12 = sld [smem:[%s6994_s0 + %s5895_s7]]   ;;  %s5899_s7 = smov 18  }
  0x1c   :  { %s6010_s20 = sld [smem:[%s6994_s0 + %s5896_s15]]   ;;  %s5900_s15 = smov 19  }
  0x1d   :  { %s6015_s27 = sld [smem:[%s6994_s0 + %s5897_s22]]   ;;  %s5901_s22 = smov 20  }
  0x1e   :  { %s6020_s4 = sld [smem:[%s6994_s0 + %s5898_s28]]   ;;  %s5902_s28 = smov 21  }
  0x1f   :  { %7055 = sst [smem:[#allocation14_spill]] %s5995_s30 }
  0x21   :  { %7056 = sst [smem:[#allocation15_spill]] %s6005_s12 }
  0x22   :  { %7057 = sst [smem:[#allocation16_spill]] %s6010_s20 }
  0x23   :  { %7058 = sst [smem:[#allocation17_spill]] %s6015_s27 }
  0x24   :  { %7059 = sst [smem:[#allocation18_spill]] %s6020_s4 }
  0x25   :  { %s6025_s12 = sld [smem:[%s6994_s0 + %s5899_s7]]   ;;  %s5903_s7 = smov 22  }
  0x26   :  { %s6030_s20 = sld [smem:[%s6994_s0 + %s5900_s15]]   ;;  %s5904_s15 = smov 23  }
  0x27   :  { %s6035_s27 = sld [smem:[%s6994_s0 + %s5901_s22]]   ;;  %s5905_s22 = smov 24  }
  0x28   :  { %s6040_s4 = sld [smem:[%s6994_s0 + %s5902_s28]]   ;;  %s5906_s28 = smov 25  }
  0x2b   :  { %7060 = sst [smem:[#allocation19_spill]] %s6025_s12 }
  0x2c   :  { %7061 = sst [smem:[#allocation20_spill]] %s6030_s20 }
  0x2d   :  { %7062 = sst [smem:[#allocation21_spill]] %s6035_s27 }
  0x2e   :  { %7063 = sst [smem:[#allocation22_spill]] %s6040_s4 }
  0x2f   :  { %s6045_s12 = sld [smem:[%s6994_s0 + %s5903_s7]]   ;;  %s5907_s7 = smov 26  }
  0x30   :  { %s6050_s20 = sld [smem:[%s6994_s0 + %s5904_s15]]   ;;  %s5908_s15 = smov 27  }
  0x31   :  { %s6055_s27 = sld [smem:[%s6994_s0 + %s5905_s22]]   ;;  %s5909_s22 = smov 28  }
  0x32   :  { %s6060_s4 = sld [smem:[%s6994_s0 + %s5906_s28]]   ;;  %s5910_s28 = smov 29  }
  0x35   :  { %7064 = sst [smem:[#allocation23_spill]] %s6045_s12 }
  0x36   :  { %7065 = sst [smem:[#allocation24_spill]] %s6050_s20 }
  0x37   :  { %7066 = sst [smem:[#allocation25_spill]] %s6055_s27 }
  0x38   :  { %7067 = sst [smem:[#allocation26_spill]] %s6060_s4 }
  0x39   :  { %s6065_s12 = sld [smem:[%s6994_s0 + %s5907_s7]]   ;;  %s5911_s7 = smov 30  }
  0x3a   :  { %s6070_s20 = sld [smem:[%s6994_s0 + %s5908_s15]]   ;;  %s5912_s15 = smov 31  }
  0x3b   :  { %s6075_s27 = sld [smem:[%s6994_s0 + %s5909_s22]]   ;;  %s5913_s22 = smov 32  }
  0x3c   :  { %s6080_s4 = sld [smem:[%s6994_s0 + %s5910_s28]]   ;;  %s6097_s28 = smov 0  }
  0x3f   :  { %7068 = sst [smem:[#allocation27_spill]] %s6065_s12 }
  0x40   :  { %7069 = sst [smem:[#allocation28_spill]] %s6070_s20 }
  0x41   :  { %7070 = sst [smem:[#allocation29_spill]] %s6075_s27 }
  0x42   :  { %s6085_s12 = sld [smem:[%s6994_s0 + %s5911_s7]]  }
  0x43   :  { %s6090_s20 = sld [smem:[%s6994_s0 + %s5912_s15]]  }
  0x44   :  { %s6095_s27 = sld [smem:[%s6994_s0 + %s5913_s22]]  }
  0x45 LB: > { %s7071_s30 = sld [smem:[#allocation14_spill]]  ;;  %s5332_s1 = sadd.s32 4294967295, %s5880_s28   ;;  %s5880_s28 = sphi %s6097_s28, %s75_s28  }
  0x46   : > { %s7072_s29 = sld [smem:[#allocation8_spill]]  ;;  %p5336_p0 = scmp.ge.s32.totalorder %s5880_s28, 1 }
  0x47   : > { %s7073_s25 = sld [smem:[#allocation7_spill]]  ;;  %p912_p1 = scmp.lt.s32.totalorder %s5880_s28, 3 }
  0x48   : > { %s7074_s24 = sld [smem:[#allocation13_spill]] }
  0x49   : > { %s7075_s21 = sld [smem:[#allocation6_spill]]  ;;  %p913_p2 = pnand %p5336_p0, %p912_p1 }
  0x4a   : > { %s7076_s19 = sld [smem:[#allocation12_spill]]  ;;  %p1000_p3 = scmp.lt.s32.totalorder (!%p913_p2), %s5332_s1, 1 }
  0x4b   : > { %s7077_s17 = sld [smem:[#allocation5_spill]]  ;;  %916 = sbr.rel (%p913_p2) target bundleno = 12775 (0x31e7), region = 148 }
  0x4c   : > { %s7078_s14 = sld [smem:[#allocation11_spill]]  ;;  %s7030_s10 = smov (!%p913_p2), 96  }
  0x4d   : > { %s7079_s8 = sld [smem:[#allocation10_spill]]  ;;  %s7019_s11 = smov (!%p913_p2), 64  }
  0x4e   : > { %s7080_s3 = sld [smem:[#allocation9_spill]]  ;;  %s7026_s15 = smov (!%p913_p2), 88  }
  0x4f   : > { %s7081_s5 = sld [smem:[#allocation2_spill]] (!%p913_p2)  ;;  %s7028_s16 = smov (!%p913_p2), 120  }
  0x50   : > { %s7082_s9 = sld [smem:[#allocation3_spill]]  ;;  %s7114_s1 = smov (!%p1000_p3, %s5332_s1), 1  ;;  %vm1032_vm0 = vcmask 261120   ;;  %v5664_v7 = vld [vmem:[%s7075_s21] ss:$0 sm:$0xff]  ;;  %vm1072_vm1 = vcmask 64512  }
  0x51   : > { %v1022_v0 = vld [vmem:[%s7077_s17 + $0x18] sm:$0xff]  ;;  %v1021_v1 = vld [vmem:[%s7077_s17 + $0x10] sm:$0xff]  ;;  %v1020_v2 = vld [vmem:[%s7077_s17 + $0x8] sm:$0xff]  ;;  %s5588_s2 = sshll.u32 %s7114_s1, 4  ;;  %vm1172_vm2 = vcmask 1041408   ;;  %vm1111_vm3 = vcmask 80896  }
  0x52   : > { %1051 = vmatpush.msra.mxu0 %v1022_v0  ;;  %v1019_v3 = vld [vmem:[%s7077_s17] sm:$0xff]  ;;  %vm1115_vm4 = vcmask 74752   ;;  %s7016_s18 = smov 56   ;;  %s7022_s22 = smov 80  }
  0x53   : > { %v1024_v34 = vld [vmem:[%s7073_s25] sm:$0xff]  ;;  %s7020_s23 = smov 72   ;;  %s7024_s26 = smov 104  }
  0x54   : > { %1052 = vmatpush.msra.mxu0 %v1021_v1  ;;  %5589 = vmatpush.msra.mxu3 %v1024_v34  ;;  %s7086_s13 = sld [smem:[#allocation4_spill]] }
  0x55   : > { %s6113_s0 = scalar_lea.vmem %s7081_s5, %s7114_s1  ;;  %s7098_s5 = smov 96  }
  0x56   : > { %1053 = vmatpush.msra.mxu0 %v1020_v2  ;;  %s1007_s7 = scalar_lea.vmem %s7082_s9, %s5588_s2  ;;  %v6150_v14 = vld [vmem:[%s6113_s0] ss:$0 sm:$0xff]  ;;  %s7014_s2 = smov 112  }
  0x57   : > { %v6117_v4 = vld [vmem:[%s1007_s7] sm:$0xff]  ;;  %v6121_v5 = vld [vmem:[%s1007_s7 + $0x8] sm:$0x3]  ;;  %s7010_s7 = smov 48   ;;  %s7100_s9 = smov 104  }
  0x58   : > { %1054 = vmatpush.msra.mxu0 %v1019_v3 }
  0x59   : > { %5341 = vmatmul.msk.f32.vlgmr.msra.gmra.mxu0 %vm1032_vm0, %v6117_v4 }
  0x5a   : > { %1219 = vmatpush.msrb.mxu0 %v1024_v34 }
  0x61   : > { %5342 = vmatmul.msk.f32.gmra.mxu0 %vm1032_vm0, %v6121_v5 }
  0xd6   : > { %v1056_v6 = vpop.f32.mrf.mxu0 }
  0xd7   : > { %v6130_v10 = vadd.f32 %v5664_v7, %v1056_v6 }
  0xde   : > { %v1059_v8 = vpop.f32.mrf.mxu0 }
  0xdf   : > { %v6126_v9 = vadd.f32 %v5664_v7, %v1059_v8 }
  0xe1   : > { %1070 = vrot.lane.b32.xlu0 %v6126_v9, %s7030_s10 }
  0xe9   : > { %1068 = vrot.lane.b32.xlu0 %v6130_v10, %s7030_s10 }
  0xf1   : > { %1163 = vrot.lane.b32.xlu0 %v6126_v9, %s7019_s11 }
  0xf9   : > { %1233 = vrot.lane.b32.xlu0 %v6130_v10, %s7026_s15 }
 0x101   : > { %1229 = vrot.lane.b32.xlu0 %v6130_v10, %s7028_s16 }
 0x109   : > { %1231 = vrot.lane.b32.xlu0 %v6126_v9, %s7028_s16 }
 0x153   : > { %v1071_v11 = vpop.permute.xlu0 %1070 }
 0x154   : > { %5343 = vmatpush.xpose.msk.msra.mxu1 %vm1072_vm1, %v1071_v11 }
 0x15b   : > { %v1069_v12 = vpop.permute.xlu0 %1068 }
 0x15c   : > { %5344 = vmatpush.xpose.msk.msra.mxu1 %vm1072_vm1, %v1069_v12 }
 0x15f   : > { %5345 = vmatmul.msk.f32.vlgmr.msra.gmra.mxu1 %vm1072_vm1, %v6130_v10 }
 0x163   : > { %v1164_v13 = vpop.permute.xlu0 %1163 }
 0x164   : > { %5347 = vmatpush.msk.msra.mxu2 %vm1172_vm2, %v1164_v13 }
 0x167   : > { %5346 = vmatmul.msk.f32.gmra.mxu1 %vm1072_vm1, %v6126_v9 }
 0x16b   : > { %v1234_v53 = vpop.permute.xlu0 %1233 }
 0x173   : > { %v1230_v63 = vpop.permute.xlu0 %1229 }
 0x17b   : > { %v1232_v0 = vpop.permute.xlu0 %1231 }
 0x1dc   : > { %v1098_v15 = vpop.f32.mrf.mxu1 }
 0x1dd   : > { %v1104_v16 = vmul.f32 0.35355338, %v1098_v15 }
 0x1df   : > { %v1109_v17 = vadd.f32 %v6150_v14, %v1104_v16 }
 0x1e1   : > { %v1112_v18 = vsel %vm1111_vm3, %v1109_v17, -inf }
 0x1e2   : > { %1113 = vmax.xlane.f32.xlu1 %v1112_v18 }
 0x1e4   : > { %v1101_v19 = vpop.f32.mrf.mxu1 }
 0x1e5   : > { %v1105_v20 = vmul.f32 0.35355338, %v1101_v19 }
 0x1e7   : > { %v1110_v21 = vadd.f32 %v6150_v14, %v1105_v20 }
 0x1e9   : > { %v1116_v22 = vsel %vm1115_vm4, %v1110_v21, -inf }
 0x1ea   : > { %1117 = vmax.xlane.f32.xlu1 %v1116_v22 }
 0x203   : > { %1161 = vrot.lane.b32.xlu1 %v6130_v10, %s7019_s11 }
 0x255   : > { %v1114_v23 = vpop.xlane.xlu1 %1113 }
 0x256   : > { %v1119_v24 = vsub.f32 %v1109_v17, %v1114_v23 }
 0x258   : > { %v1121_v25 = vmul.f32 1.442695, %v1119_v24 }
 0x25a   : > { %5709 = vpow2.f32 %v1121_v25 }
 0x25d   : > { %v1118_v26 = vpop.xlane.xlu1 %1117 }
 0x25e   : > { %v1120_v27 = vsub.f32 %v1110_v21, %v1118_v26  ;;  %v1025_v26 = vld [vmem:[%s7073_s25 + $0x8] sm:$0xff] }
 0x25f   : > { %1377 = vmatpush.msra.mxu0 %v1025_v26 }
 0x260   : > { %v5710_v28 = vpop.eup %5709  ;;  %v1123_v29 = vmul.f32 1.442695, %v1120_v27 }
 0x261   : > { %v1125_v30 = vsel %vm1111_vm3, %v5710_v28, 0.0 }
 0x262   : > { %5711 = vpow2.f32 %v1123_v29  ;;  %1126 = vadd.xlane.f32.xlu2 %v1125_v30 }
 0x268   : > { %v5712_v31 = vpop.eup %5711 }
 0x269   : > { %v1128_v32 = vsel %vm1115_vm4, %v5712_v31, 0.0 }
 0x26a   : > { %1129 = vadd.xlane.f32.xlu2 %v1128_v32 }
 0x275   : > { %v1162_v33 = vpop.permute.xlu1 %1161 }
 0x276   : > { %1190 = vmatpush.msra.mxu2 %v1162_v33 }
 0x282   : > { %1235 = vrot.lane.b32.xlu2 %v6126_v9, %s7026_s15 }
 0x2d5   : > { %v1127_v35 = vpop.xlane.xlu2 %1126 }
 0x2d6   : > { %5713 = vrcp.f32 %v1127_v35  ;;  %v1142_v40 = vand.u32 2147483648, %v1127_v35  ;;  %v1140_v42 = vand.u32 2147483647, %v1127_v35  ;;  %vm1136_vm6 = vweird.f32 %v1127_v35 }
 0x2d8   : > { %v1143_v45 = vor.u32 1.1754944e-38, %v1142_v40  ;;  %vm1141_vm8 = vcmp.eq.f32.partialorder %v1140_v42, 8.507059e+37 }
 0x2dc   : > { %v5714_v36 = vpop.eup %5713 }
 0x2dd   : > { %v1132_v37 = vmul.f32 %v5714_v36, %v1127_v35  ;;  %v1130_v38 = vpop.xlane.xlu2 %1129  ;;  %vm1137_vm5 = vweird.f32 %v5714_v36 }
 0x2de   : > { %5715 = vrcp.f32 %v1130_v38  ;;  %vm1138_vm7 = vmor %vm1136_vm6, %vm1137_vm5  ;;  %v1157_v52 = vand.u32 2147483648, %v1130_v38  ;;  %v1155_v55 = vand.u32 2147483647, %v1130_v38  ;;  %vm1151_vm10 = vweird.f32 %v1130_v38 }
 0x2df   : > { %v1133_v39 = vsub.f32 1.0, %v1132_v37 }
 0x2e0   : > { %v1158_v57 = vor.u32 1.1754944e-38, %v1157_v52  ;;  %vm1156_vm12 = vcmp.eq.f32.partialorder %v1155_v55, 8.507059e+37 }
 0x2e1   : > { %v1134_v41 = vmul.f32 %v5714_v36, %v1133_v39 }
 0x2e3   : > { %v1135_v43 = vadd.f32 %v5714_v36, %v1134_v41 }
 0x2e4   : > { %v5716_v44 = vpop.eup %5715 }
 0x2e5   : > { %v1147_v46 = vmul.f32 %v5716_v44, %v1130_v38  ;;  %v1236_v47 = vpop.permute.xlu2 %1235  ;;  %v1139_v48 = vsel %vm1138_vm7, %v5714_v36, %v1135_v43  ;;  %vm1152_vm9 = vweird.f32 %v5716_v44 }
 0x2e6   : > { %5352 = vmatpush.xpose.msk.msrb.mxu3 %vm1072_vm1, %v1236_v47  ;;  %v1144_v49 = vsel %vm1141_vm8, %v1143_v45, %v1139_v48  ;;  %vm1153_vm11 = vmor %vm1151_vm10, %vm1152_vm9 }
 0x2e7   : > { %v1148_v50 = vsub.f32 1.0, %v1147_v46  ;;  %v1145_v51 = vmul.f32 %v5710_v28, %v1144_v49 }
 0x2e9   : > { %5348 = vmatmul.msk.f32.vlgmr.msra.gmra.mxu2 %vm1111_vm3, %v1145_v51  ;;  %v1149_v54 = vmul.f32 %v5716_v44, %v1148_v50 }
 0x2ea   : > { %5353 = vmatpush.xpose.msk.msrb.mxu3 %vm1072_vm1, %v1234_v53 }
 0x2eb   : > { %v1150_v56 = vadd.f32 %v5716_v44, %v1149_v54 }
 0x2ed   : > { %v1154_v58 = vsel %vm1153_vm11, %v5716_v44, %v1150_v56 }
 0x2ee   : > { %v1159_v59 = vsel %vm1156_vm12, %v1158_v57, %v1154_v58 }
 0x2ef   : > { %v1160_v60 = vmul.f32 %v5712_v31, %v1159_v59 }
 0x2f1   : > { %5349 = vmatmul.msk.f32.gmra.mxu2 %vm1111_vm3, %v1160_v60 }
 0x36c   : > { %v1192_v61 = vpop.f32.mrf.mxu2 }
 0x36d   : > { %5350 = vmatmul.msk.f32.vlgmr.msrb.gmra.mxu0 %vm1072_vm1, %v1192_v61 }
 0x374   : > { %v1195_v62 = vpop.f32.mrf.mxu2 }
 0x375   : > { %5351 = vmatmul.msk.f32.vlgmr.msra.gmra.mxu3 %vm1072_vm1, %v1195_v62 }
 0x37d   : > { %5354 = vmatmul.msk.f32.vlgmr.msrb.gmra.mxu3 %vm1072_vm1, %v1230_v63 }
 0x385   : > { %5355 = vmatmul.msk.f32.gmra.mxu3 %vm1072_vm1, %v1232_v0 }
 0x3f8   : > { %v6171_v1 = vpop.f32.mrf.mxu3 }
 0x400   : > { %v1262_v2 = vpop.f32.mrf.mxu3 }
 0x401   : > { %v1268_v3 = vmul.f32 0.35355338, %v1262_v2 }
 0x403   : > { %v1270_v6 = vadd.f32 %v6150_v14, %v1268_v3 }
 0x405   : > { %v1272_v7 = vsel %vm1111_vm3, %v1270_v6, -inf }
 0x406   : > { %1273 = vmax.xlane.f32.xlu2 %v1272_v7 }
 0x408   : > { %v1265_v8 = vpop.f32.mrf.mxu3 }
 0x409   : > { %v1269_v11 = vmul.f32 0.35355338, %v1265_v8 }
 0x40b   : > { %v1271_v12 = vadd.f32 %v6150_v14, %v1269_v11  ;;  %v6217_v11 = vpop.f32.mrf.mxu0 }
 0x40d   : > { %v1275_v13 = vsel %vm1115_vm4, %v1271_v12, -inf }
 0x40e   : > { %1276 = vmax.xlane.f32.xlu1 %v1275_v13 }
 0x427   : > { %1322 = vrot.lane.b32.xlu1 %v6126_v9, %s7016_s18 }
 0x42f   : > { %1391 = vrot.lane.b32.xlu1 %v6130_v10, %s7022_s22 }
 0x437   : > { %1549 = vrot.lane.b32.xlu1 %v6130_v10, %s7020_s23 }
 0x43f   : > { %1547 = vrot.lane.b32.xlu1 %v6126_v9, %s7024_s26 }
 0x479   : > { %v1274_v15 = vpop.xlane.xlu2 %1273 }
 0x47a   : > { %v1278_v16 = vsub.f32 %v1270_v6, %v1274_v15 }
 0x47c   : > { %v1280_v17 = vmul.f32 1.442695, %v1278_v16 }
 0x47e   : > { %5717 = vpow2.f32 %v1280_v17 }
 0x481   : > { %v1277_v18 = vpop.xlane.xlu1 %1276 }
 0x482   : > { %v1279_v19 = vsub.f32 %v1271_v12, %v1277_v18 }
 0x484   : > { %v5718_v20 = vpop.eup %5717  ;;  %v1282_v21 = vmul.f32 1.442695, %v1279_v19 }
 0x485   : > { %v1284_v22 = vsel %vm1111_vm3, %v5718_v20, 0.0 }
 0x486   : > { %5719 = vpow2.f32 %v1282_v21  ;;  %1285 = vadd.xlane.f32.xlu0 %v1284_v22 }
 0x48c   : > { %v5720_v23 = vpop.eup %5719 }
 0x48d   : > { %v1287_v24 = vsel %vm1115_vm4, %v5720_v23, 0.0 }
 0x48e   : > { %1288 = vadd.xlane.f32.xlu2 %v1287_v24 }
 0x499   : > { %v1323_v25 = vpop.permute.xlu1 %1322 }
 0x49a   : > { %1393 = vrot.lane.b32.xlu0 %v6126_v9, %s7022_s22  ;;  %5356 = vmatpush.msk.msrb.mxu2 %vm1172_vm2, %v1323_v25 }
 0x4a1   : > { %v1392_v42 = vpop.permute.xlu1 %1391 }
 0x4a2   : > { %1387 = vrot.lane.b32.xlu0 %v6130_v10, %s7014_s2 }
 0x4a6   : > { %1320 = vrot.lane.b32.xlu2 %v6130_v10, %s7016_s18 }
 0x4a9   : > { %v1550_v56 = vpop.permute.xlu1 %1549 }
 0x4aa   : > { %1389 = vrot.lane.b32.xlu0 %v6126_v9, %s7014_s2 }
 0x4ae   : > { %1551 = vrot.lane.b32.xlu2 %v6126_v9, %s7020_s23 }
 0x4b1   : > { %v1548_v8 = vpop.permute.xlu1 %1547 }
 0x4b6   : > { %1545 = vrot.lane.b32.xlu2 %v6130_v10, %s7024_s26 }
 0x4f9   : > { %v1286_v27 = vpop.xlane.xlu0 %1285 }
 0x4fa   : > { %5721 = vrcp.f32 %v1286_v27  ;;  %v1301_v32 = vand.u32 2147483648, %v1286_v27  ;;  %v1299_v34 = vand.u32 2147483647, %v1286_v27  ;;  %vm1295_vm14 = vweird.f32 %v1286_v27 }
 0x4fc   : > { %v1302_v37 = vor.u32 1.1754944e-38, %v1301_v32  ;;  %vm1300_vm5 = vcmp.eq.f32.partialorder %v1299_v34, 8.507059e+37 }
 0x500   : > { %v5722_v28 = vpop.eup %5721 }
 0x501   : > { %v1291_v29 = vmul.f32 %v5722_v28, %v1286_v27  ;;  %v1289_v30 = vpop.xlane.xlu2 %1288  ;;  %vm1296_vm13 = vweird.f32 %v5722_v28 }
 0x502   : > { %5723 = vrcp.f32 %v1289_v30  ;;  %vm1297_vm15 = vmor %vm1295_vm14, %vm1296_vm13  ;;  %v1316_v46 = vand.u32 2147483648, %v1289_v30  ;;  %v1314_v48 = vand.u32 2147483647, %v1289_v30  ;;  %vm1310_vm7 = vweird.f32 %v1289_v30 }
 0x503   : > { %v1292_v31 = vsub.f32 1.0, %v1291_v29 }
 0x504   : > { %v1317_v50 = vor.u32 1.1754944e-38, %v1316_v46  ;;  %vm1315_vm9 = vcmp.eq.f32.partialorder %v1314_v48, 8.507059e+37 }
 0x505   : > { %v1293_v33 = vmul.f32 %v5722_v28, %v1292_v31 }
 0x507   : > { %v1294_v35 = vadd.f32 %v5722_v28, %v1293_v33 }
 0x508   : > { %v5724_v36 = vpop.eup %5723 }
 0x509   : > { %v1306_v38 = vmul.f32 %v5724_v36, %v1289_v30  ;;  %v1321_v39 = vpop.permute.xlu2 %1320  ;;  %v1298_v40 = vsel %vm1297_vm15, %v5722_v28, %v1294_v35  ;;  %vm1311_vm6 = vweird.f32 %v5724_v36 }
 0x50a   : > { %1348 = vmatpush.msrb.mxu2 %v1321_v39  ;;  %v1303_v41 = vsel %vm1300_vm5, %v1302_v37, %v1298_v40  ;;  %vm1312_vm8 = vmor %vm1310_vm7, %vm1311_vm6 }
 0x50b   : > { %v1307_v43 = vsub.f32 1.0, %v1306_v38  ;;  %v1304_v44 = vmul.f32 %v5718_v20, %v1303_v41 }
 0x50c   : > { %v1394_v45 = vpop.permute.xlu0 %1393 }
 0x50d   : > { %5357 = vmatmul.msk.f32.vlgmr.msrb.gmra.mxu2 %vm1111_vm3, %v1304_v44  ;;  %5361 = vmatpush.xpose.msk.msrb.mxu1 %vm1072_vm1, %v1394_v45  ;;  %v1308_v47 = vmul.f32 %v5724_v36, %v1307_v43 }
 0x50f   : > { %v1309_v49 = vadd.f32 %v5724_v36, %v1308_v47 }
 0x511   : > { %v1552_v51 = vpop.permute.xlu2 %1551  ;;  %5362 = vmatpush.xpose.msk.msrb.mxu1 %vm1072_vm1, %v1392_v42  ;;  %v1313_v52 = vsel %vm1312_vm8, %v5724_v36, %v1309_v49 }
 0x512   : > { %5370 = vmatpush.xpose.msk.msrb.mxu0 %vm1072_vm1, %v1552_v51  ;;  %v1318_v53 = vsel %vm1315_vm9, %v1317_v50, %v1313_v52 }
 0x513   : > { %v1319_v54 = vmul.f32 %v5720_v23, %v1318_v53 }
 0x514   : > { %v1388_v55 = vpop.permute.xlu0 %1387 }
 0x515   : > { %5358 = vmatmul.msk.f32.gmra.mxu2 %vm1111_vm3, %v1319_v54  ;;  %5363 = vmatmul.msk.f32.vlgmr.msrb.gmra.mxu1 %vm1072_vm1, %v1388_v55 }
 0x516   : > { %5371 = vmatpush.xpose.msk.msrb.mxu0 %vm1072_vm1, %v1550_v56 }
 0x519   : > { %v1546_v7 = vpop.permute.xlu2 %1545 }
 0x51c   : > { %v1390_v57 = vpop.permute.xlu0 %1389 }
 0x51d   : > { %5364 = vmatmul.msk.f32.gmra.mxu1 %vm1072_vm1, %v1390_v57 }
 0x590   : > { %v1350_v58 = vpop.f32.mrf.mxu2 }
 0x591   : > { %5359 = vmatmul.msk.f32.vlgmr.msra.gmra.mxu0 %vm1072_vm1, %v1350_v58 }
 0x592   : > { %v1420_v59 = vpop.f32.mrf.mxu1 }
 0x593   : > { %v1426_v60 = vmul.f32 0.35355338, %v1420_v59 }
 0x595   : > { %v1428_v61 = vadd.f32 %v6150_v14, %v1426_v60 }
 0x597   : > { %v1430_v62 = vsel %vm1111_vm3, %v1428_v61, -inf }
 0x598   : > { %v1353_v63 = vpop.f32.mrf.mxu2  ;;  %1431 = vmax.xlane.f32.xlu0 %v1430_v62 }
 0x599   : > { %5360 = vmatmul.msk.f32.gmra.mxu0 %vm1072_vm1, %v1353_v63 }
 0x59a   : > { %v1423_v0 = vpop.f32.mrf.mxu1 }
 0x59b   : > { %v1427_v2 = vmul.f32 0.35355338, %v1423_v0 }
 0x59d   : > { %v1429_v3 = vadd.f32 %v6150_v14, %v1427_v2 }
 0x59f   : > { %v1433_v6 = vsel %vm1115_vm4, %v1429_v3, -inf }
 0x5a0   : > { %1434 = vmax.xlane.f32.xlu2 %v1433_v6 }
 0x5a1   : > { %5372 = vmatmul.msk.f32.vlgmr.msrb.gmra.mxu0 %vm1072_vm1, %v1546_v7 }
 0x5a9   : > { %5373 = vmatmul.msk.f32.gmra.mxu0 %vm1072_vm1, %v1548_v8  ;;  %v1026_v8 = vld [vmem:[%s7073_s25 + $0x10] sm:$0xff] }
 0x5aa   : > { %1535 = vmatpush.msra.mxu2 %v1026_v8  ;;  %v1772_v8 = vld [vmem:[%s7078_s14 + $0x18] sm:$0xff] }
 0x5ac   : > { %1804 = vmatpush.msrb.mxu2 %v1772_v8 }
 0x60b   : > { %v1432_v12 = vpop.xlane.xlu0 %1431 }
 0x60c   : > { %v1436_v13 = vsub.f32 %v1428_v61, %v1432_v12 }
 0x60e   : > { %v1438_v15 = vmul.f32 1.442695, %v1436_v13  ;;  %v6219_v16 = vpop.f32.mrf.mxu0 }
 0x610   : > { %5725 = vpow2.f32 %v1438_v15 }
 0x613   : > { %v1435_v19 = vpop.xlane.xlu2 %1434 }
 0x614   : > { %v1437_v21 = vsub.f32 %v1429_v3, %v1435_v19 }
 0x616   : > { %v6221_v17 = vpop.eup %5725  ;;  %v6223_v18 = vpop.f32.mrf.mxu0  ;;  %v1440_v22 = vmul.f32 1.442695, %v1437_v21 }
 0x617   : > { %v1442_v20 = vsel %vm1111_vm3, %v6221_v17, 0.0 }
 0x618   : > { %1443 = vadd.xlane.f32.xlu2 %v1442_v20  ;;  %5727 = vpow2.f32 %v1440_v22 }
 0x61e   : > { %v1578_v23 = vpop.f32.mrf.mxu0  ;;  %v6229_v29 = vpop.eup %5727 }
 0x61f   : > { %v1584_v24 = vmul.f32 0.35355338, %v1578_v23  ;;  %v1445_v31 = vsel %vm1115_vm4, %v6229_v29, 0.0 }
 0x621   : > { %v1586_v25 = vadd.f32 %v6150_v14, %v1584_v24 }
 0x623   : > { %v1588_v26 = vsel %vm1111_vm3, %v1586_v25, -inf }
 0x624   : > { %1589 = vmax.xlane.f32.xlu1 %v1588_v26 }
 0x626   : > { %v1581_v27 = vpop.f32.mrf.mxu0 }
 0x627   : > { %v1585_v28 = vmul.f32 0.35355338, %v1581_v27 }
 0x629   : > { %v1587_v30 = vadd.f32 %v6150_v14, %v1585_v28 }
 0x62b   : > { %v1591_v32 = vsel %vm1115_vm4, %v1587_v30, -inf }
 0x62c   : > { %1446 = vadd.xlane.f32.xlu1 %v1445_v31  ;;  %1592 = vmax.xlane.f32.xlu0 %v1591_v32 }
 0x640   : > { %1478 = vrot.lane.b32.xlu0 %v6130_v10, %s7010_s7 }
 0x645   : > { %1480 = vrot.lane.b32.xlu1 %v6126_v9, %s7010_s7  ;;  %s7012_s7 = smov 40  }
 0x68b   : > { %v1444_v33 = vpop.xlane.xlu2 %1443 }
 0x68c   : > { %5729 = vrcp.f32 %v1444_v33  ;;  %v1459_v52 = vand.u32 2147483648, %v1444_v33  ;;  %vm1453_vm11 = vweird.f32 %v1444_v33  ;;  %v1457_v53 = vand.u32 2147483647, %v1444_v33 }
 0x68e   : > { %v1460_v56 = vor.u32 1.1754944e-38, %v1459_v52  ;;  %vm1458_vm13 = vcmp.eq.f32.partialorder %v1457_v53, 8.507059e+37 }
 0x692   : > { %v5730_v38 = vpop.eup %5729 }
 0x693   : > { %v1449_v42 = vmul.f32 %v5730_v38, %v1444_v33  ;;  %vm1454_vm10 = vweird.f32 %v5730_v38 }
 0x694   : > { %vm1455_vm12 = vmor %vm1453_vm11, %vm1454_vm10 }
 0x695   : > { %v1450_v44 = vsub.f32 1.0, %v1449_v42  ;;  %v5665_v42 = vld [vmem:[%s7072_s29] ss:$0 sm:$0xff] }
 0x697   : > { %v1590_v34 = vpop.xlane.xlu1 %1589  ;;  %v1451_v47 = vmul.f32 %v5730_v38, %v1450_v44  ;;  %v1227_v44 = vadd.f32 %v5665_v42, %v6217_v11 }
 0x698   : > { %v1594_v35 = vsub.f32 %v1586_v25, %v1590_v34 }
 0x699   : > { %v1452_v50 = vadd.f32 %v5730_v38, %v1451_v47 }
 0x69a   : > { %v1596_v36 = vmul.f32 1.442695, %v1594_v35 }
 0x69b   : > { %v1456_v54 = vsel %vm1455_vm12, %v5730_v38, %v1452_v50 }
 0x69c   : > { %5731 = vpow2.f32 %v1596_v36  ;;  %v1461_v57 = vsel %vm1458_vm13, %v1460_v56, %v1456_v54 }
 0x69d   : > { %v1462_v62 = vmul.f32 %v6221_v17, %v1461_v57  ;;  %v5925_v57 = vmov 32.0  }
 0x69f   : > { %v1593_v14 = vpop.xlane.xlu0 %1592  ;;  %v1447_v37 = vpop.xlane.xlu1 %1446 }
 0x6a0   : > { %v1595_v39 = vsub.f32 %v1587_v30, %v1593_v14  ;;  %5733 = vrcp.f32 %v1447_v37  ;;  %v1474_v60 = vand.u32 2147483648, %v1447_v37  ;;  %vm1468_vm15 = vweird.f32 %v1447_v37 }
 0x6a1   : > { %v1472_v63 = vand.u32 2147483647, %v1447_v37 }
 0x6a2   : > { %v6239_v40 = vpop.eup %5731  ;;  %v1598_v41 = vmul.f32 1.442695, %v1595_v39  ;;  %v1475_v2 = vor.u32 1.1754944e-38, %v1474_v60  ;;  %v1027_v39 = vld [vmem:[%s7073_s25 + $0x18] sm:$0xff] }
 0x6a3   : > { %v1600_v43 = vsel %vm1111_vm3, %v6239_v40, 0.0  ;;  %vm1473_vm6 = vcmp.eq.f32.partialorder %v1472_v63, 8.507059e+37 }
 0x6a4   : > { %5735 = vpow2.f32 %v1598_v41  ;;  %1601 = vadd.xlane.f32.xlu0 %v1600_v43 }
 0x6a6   : > { %v5734_v45 = vpop.eup %5733 }
 0x6a7   : > { %v1464_v48 = vmul.f32 %v5734_v45, %v1447_v37  ;;  %vm1469_vm14 = vweird.f32 %v5734_v45 }
 0x6a8   : > { %vm1470_vm5 = vmor %vm1468_vm15, %vm1469_vm14  ;;  %vm1710_vm15 = vcmask 254976  }
 0x6a9   : > { %v1465_v51 = vsub.f32 1.0, %v1464_v48 }
 0x6aa   : > { %v6243_v46 = vpop.eup %5735 }
 0x6ab   : > { %v1603_v49 = vsel %vm1115_vm4, %v6243_v46, 0.0  ;;  %v1466_v55 = vmul.f32 %v5734_v45, %v1465_v51 }
 0x6ac   : > { %1604 = vadd.xlane.f32.xlu2 %v1603_v49  ;;  %v1228_v49 = vadd.f32 %v5665_v42, %v6171_v1 }
 0x6ad   : > { %v1467_v59 = vadd.f32 %v5734_v45, %v1466_v55 }
 0x6ae   : > { %v1386_v52 = vadd.f32 %v6223_v18, %v1228_v49  ;;  %v1776_v49 = vld [vmem:[%s7074_s24 + $0x10] sm:$0xff] }
 0x6af   : > { %v1471_v0 = vsel %vm1470_vm5, %v5734_v45, %v1467_v59  ;;  %v1385_v45 = vadd.f32 %v6219_v16, %v1227_v44 }
 0x6b0   : > { %v1476_v3 = vsel %vm1473_vm6, %v1475_v2, %v1471_v0 }
 0x6b1   : > { %v1477_v6 = vmul.f32 %v6229_v29, %v1476_v3 }
 0x6b2   : > { %v1479_v61 = vpop.permute.xlu0 %1478 }
 0x6b7   : > { %v1481_v58 = vpop.permute.xlu1 %1480 }
 0x6b8   : > { %1636 = vrot.lane.b32.xlu0 %v6130_v10, %s7012_s7  ;;  %5365 = vmatpush.msk.msra.mxu3 %vm1172_vm2, %v1481_v58 }
 0x6ba   : > { %1506 = vmatpush.msra.mxu3 %v1479_v61 }
 0x6bb   : > { %5366 = vmatmul.msk.f32.vlgmr.msra.gmra.mxu3 %vm1111_vm3, %v1462_v62 }
 0x6bc   : > { %1693 = vmatpush.msrb.mxu3 %v1027_v39  ;;  %v5667_v39 = vld [vmem:[%s7080_s3 + $0x1] ss:$0 sm:$0xff] }
 0x6c3   : > { %5367 = vmatmul.msk.f32.gmra.mxu3 %vm1111_vm3, %v1477_v6 }
 0x6c4   : > { %1638 = vrot.lane.b32.xlu2 %v6126_v9, %s7012_s7 }
 0x717   : > { %v1602_v10 = vpop.xlane.xlu0 %1601 }
 0x718   : > { %5737 = vrcp.f32 %v1602_v10  ;;  %v1617_v17 = vand.u32 2147483648, %v1602_v10  ;;  %v1615_v20 = vand.u32 2147483647, %v1602_v10  ;;  %vm1611_vm8 = vweird.f32 %v1602_v10 }
 0x71a   : > { %v1618_v23 = vor.u32 1.1754944e-38, %v1617_v17  ;;  %vm1616_vm10 = vcmp.eq.f32.partialorder %v1615_v20, 8.507059e+37 }
 0x71e   : > { %v5738_v7 = vpop.eup %5737 }
 0x71f   : > { %v1607_v12 = vmul.f32 %v5738_v7, %v1602_v10  ;;  %v1605_v13 = vpop.xlane.xlu2 %1604  ;;  %vm1612_vm7 = vweird.f32 %v5738_v7 }
 0x720   : > { %5739 = vrcp.f32 %v1605_v13  ;;  %vm1613_vm9 = vmor %vm1611_vm8, %vm1612_vm7  ;;  %v1632_v30 = vand.u32 2147483648, %v1605_v13  ;;  %v1630_v32 = vand.u32 2147483647, %v1605_v13  ;;  %vm1626_vm12 = vweird.f32 %v1605_v13 }
 0x721   : > { %v1608_v15 = vsub.f32 1.0, %v1607_v12  ;;  %5741 = vrcp.f32 %v5925_v57  ;;  %v1771_v12 = vld [vmem:[%s7078_s14 + $0x10] sm:$0xff]  ;;  %v5669_v57 = vld [vmem:[%s7071_s30] ss:$0 sm:$0xff] }
 0x722   : > { %v1633_v34 = vor.u32 1.1754944e-38, %v1632_v30  ;;  %vm1631_vm14 = vcmp.eq.f32.partialorder %v1630_v32, 8.507059e+37  ;;  %1805 = vmatpush.msrb.mxu2 %v1771_v12 }
 0x723   : > { %v1609_v19 = vmul.f32 %v5738_v7, %v1608_v15  ;;  %v1769_v15 = vld [vmem:[%s7078_s14] sm:$0xff] }
 0x725   : > { %v1610_v21 = vadd.f32 %v5738_v7, %v1609_v19 }
 0x726   : > { %v5740_v22 = vpop.eup %5739 }
 0x727   : > { %v1614_v24 = vsel %vm1613_vm9, %v5738_v7, %v1610_v21  ;;  %v1622_v9 = vmul.f32 %v5740_v22, %v1605_v13  ;;  %v1639_v25 = vpop.permute.xlu2 %1638  ;;  %vm1627_vm11 = vweird.f32 %v5740_v22  ;;  %v5742_v1 = vpop.eup %5741  ;;  %v1770_v13 = vld [vmem:[%s7078_s14 + $0x8] sm:$0xff]  ;;  %v1781_v21 = vld [vmem:[%s7074_s24 + $0x38] sm:$0xff] }
 0x728   : > { %5374 = vmatpush.msk.msra.mxu1 %vm1172_vm2, %v1639_v25  ;;  %v1619_v26 = vsel %vm1616_vm10, %v1618_v23, %v1614_v24  ;;  %vm1628_vm13 = vmor %vm1626_vm12, %vm1627_vm11  ;;  %v1715_v58 = vmul.f32 32.0, %v5742_v1  ;;  %vm1719_vm5 = vweird.f32 %v5742_v1  ;;  %1806 = vmatpush.msrb.mxu2 %v1770_v13  ;;  %v1779_v23 = vld [vmem:[%s7074_s24 + $0x28] sm:$0xff]  ;;  %v1778_v25 = vld [vmem:[%s7074_s24 + $0x20] sm:$0xff]  ;;  %vm1820_vm12 = vcmask 523264  }
 0x729   : > { %v1623_v27 = vsub.f32 1.0, %v1622_v9  ;;  %v1620_v28 = vmul.f32 %v6239_v40, %v1619_v26  ;;  %1835 = vmatpush.msra.mxu0 %v1781_v21 }
 0x72a   : > { %v1637_v29 = vpop.permute.xlu0 %1636  ;;  %1807 = vmatpush.msrb.mxu2 %v1769_v15  ;;  %v5386_v15 = vld [vmem:[%s7077_s17 + $0x38] sm:$0xff] }
 0x72b   : > { %1664 = vmatpush.msra.mxu1 %v1637_v29  ;;  %v1624_v31 = vmul.f32 %v5740_v22, %v1623_v27 }
 0x72c   : > { %5375 = vmatmul.msk.f32.vlgmr.msra.gmra.mxu1 %vm1111_vm3, %v1620_v28  ;;  %v1777_v28 = vld [vmem:[%s7074_s24 + $0x18] sm:$0xff] }
 0x72d   : > { %v1625_v33 = vadd.f32 %v5740_v22, %v1624_v31  ;;  %1943 = vmatpush.msrb.mxu1 %v5386_v15 }
 0x72f   : > { %v1629_v35 = vsel %vm1628_vm13, %v5740_v22, %v1625_v33  ;;  %v1780_v22 = vld [vmem:[%s7074_s24 + $0x30] sm:$0xff] }
 0x730   : > { %v1634_v36 = vsel %vm1631_vm14, %v1633_v34, %v1629_v35  ;;  %1836 = vmatpush.msra.mxu0 %v1780_v22 }
 0x731   : > { %v1635_v14 = vmul.f32 %v6243_v46, %v1634_v36  ;;  %v5666_v36 = vld [vmem:[%s7080_s3] ss:$0 sm:$0xff] }
 0x732   : > { %1837 = vmatpush.msra.mxu0 %v1779_v23 }
 0x734   : > { %5376 = vmatmul.msk.f32.gmra.mxu1 %vm1111_vm3, %v1635_v14  ;;  %1838 = vmatpush.msra.mxu0 %v1778_v25 }
 0x736   : > { %1839 = vmatpush.msra.mxu0 %v1777_v28 }
 0x738   : > { %1840 = vmatpush.msra.mxu0 %v1776_v49 }
 0x73e   : > { %v1508_v37 = vpop.f32.mrf.mxu3 }
 0x73f   : > { %5368 = vmatmul.msk.f32.vlgmr.msra.gmra.mxu2 %vm1072_vm1, %v1508_v37 }
 0x746   : > { %v1511_v38 = vpop.f32.mrf.mxu3 }
 0x747   : > { %5369 = vmatmul.msk.f32.gmra.mxu2 %vm1072_vm1, %v1511_v38 }
 0x7a9   : > { %v1666_v40 = vpop.f32.mrf.mxu1 }
 0x7aa   : > { %5377 = vmatmul.msk.f32.vlgmr.msrb.gmra.mxu3 %vm1072_vm1, %v1666_v40 }
 0x7b1   : > { %v1669_v41 = vpop.f32.mrf.mxu1 }
 0x7b2   : > { %5378 = vmatmul.msk.f32.gmra.mxu3 %vm1072_vm1, %v1669_v41 }
 0x7c2   : > { %v1537_v43 = vpop.f32.mrf.mxu2 }
 0x7c3   : > { %v1543_v46 = vadd.f32 %v1537_v43, %v1385_v45 }
 0x7ca   : > { %v1540_v51 = vpop.f32.mrf.mxu2 }
 0x7cb   : > { %v1544_v54 = vadd.f32 %v1540_v51, %v1386_v52  ;;  %v1774_v51 = vld [vmem:[%s7074_s24] sm:$0xff] }
 0x7cc   : > { %v5668_v52 = vld [vmem:[%s7076_s19] ss:$0 sm:$0xff] }
 0x82d   : > { %v1695_v47 = vpop.f32.mrf.mxu3 }
 0x82e   : > { %v1701_v48 = vadd.f32 %v1695_v47, %v1543_v46 }
 0x830   : > { %v1705_v50 = vadd.f32 %v1701_v48, %v6117_v4  ;;  %v1716_v4 = vsub.f32 1.0, %v1715_v58 }
 0x832   : > { %v1707_v53 = vsel %vm1032_vm0, %v1705_v50, 0.0  ;;  %v1717_v59 = vmul.f32 %v5742_v1, %v1716_v4 }
 0x833   : > { %1708 = vadd.xlane.f32.xlu1 %v1707_v53 }
 0x834   : > { %v1718_v18 = vadd.f32 %v5742_v1, %v1717_v59 }
 0x835   : > { %v1698_v55 = vpop.f32.mrf.mxu3 }
 0x836   : > { %v1702_v56 = vadd.f32 %v1698_v55, %v1544_v54  ;;  %v6276_v60 = vsel %vm1719_vm5, %v5742_v1, %v1718_v18 }
 0x838   : > { %v1706_v11 = vadd.f32 %v1702_v56, %v6121_v5 }
 0x83a   : > { %v1711_v16 = vsel %vm1710_vm15, %v1706_v11, 0.0 }
 0x83b   : > { %1712 = vadd.xlane.f32.xlu2 %v1711_v16 }
 0x8a6   : > { %v1709_v61 = vpop.xlane.xlu1 %1708 }
 0x8a7   : > { %v1721_v62 = vmul.f32 %v6276_v60, %v1709_v61 }
 0x8a9   : > { %v1723_v5 = vsub.f32 %v1705_v50, %v1721_v62  ;;  %v1775_v50 = vld [vmem:[%s7074_s24 + $0x8] sm:$0xff] }
 0x8aa   : > { %1841 = vmatpush.msra.mxu0 %v1775_v50 }
 0x8ab   : > { %v1725_v63 = vmul.f32 %v1723_v5, %v1723_v5 }
 0x8ac   : > { %1842 = vmatpush.msra.mxu0 %v1774_v51 }
 0x8ad   : > { %v1727_v0 = vsel %vm1032_vm0, %v1725_v63, 0.0 }
 0x8ae   : > { %1728 = vadd.xlane.f32.xlu0 %v1727_v0  ;;  %v1713_v2 = vpop.xlane.xlu2 %1712 }
 0x8af   : > { %v1722_v3 = vmul.f32 %v6276_v60, %v1713_v2 }
 0x8b1   : > { %v1724_v6 = vsub.f32 %v1706_v11, %v1722_v3 }
 0x8b3   : > { %v1726_v10 = vmul.f32 %v1724_v6, %v1724_v6 }
 0x8b5   : > { %v1730_v7 = vsel %vm1710_vm15, %v1726_v10, 0.0 }
 0x8b6   : > { %1731 = vadd.xlane.f32.xlu1 %v1730_v7 }
 0x921   : > { %v1729_v17 = vpop.xlane.xlu0 %1728 }
 0x922   : > { %v1733_v19 = vmul.f32 %v1729_v17, %v6276_v60  ;;  %v5385_v17 = vld [vmem:[%s7077_s17 + $0x30] sm:$0xff] }
 0x923   : > { %1944 = vmatpush.msrb.mxu1 %v5385_v17 }
 0x924   : > { %v1735_v20 = vadd.f32 1e-05, %v1733_v19  ;;  %v5384_v19 = vld [vmem:[%s7077_s17 + $0x28] sm:$0xff] }
 0x925   : > { %1945 = vmatpush.msrb.mxu1 %v5384_v19 }
 0x926   : > { %5743 = vrsqrt.f32 %v1735_v20  ;;  %vm1743_vm7 = vweird.f32 %v1735_v20 }
 0x929   : > { %v1732_v24 = vpop.xlane.xlu1 %1731 }
 0x92a   : > { %v1734_v9 = vmul.f32 %v1732_v24, %v6276_v60 }
 0x92c   : > { %v5744_v26 = vpop.eup %5743  ;;  %v1736_v27 = vadd.f32 1e-05, %v1734_v9 }
 0x92d   : > { %v1738_v29 = vmul.f32 %v5744_v26, %v1735_v20  ;;  %vm1744_vm6 = vweird.f32 %v5744_v26  ;;  %v5383_v20 = vld [vmem:[%s7077_s17 + $0x20] sm:$0xff]  ;;  %s7104_s17 = sld [smem:[#allocation21_spill]] }
 0x92e   : > { %5745 = vrsqrt.f32 %v1736_v27  ;;  %vm1745_vm8 = vmor %vm1743_vm7, %vm1744_vm6  ;;  %vm1753_vm10 = vweird.f32 %v1736_v27  ;;  %1946 = vmatpush.msrb.mxu1 %v5383_v20 }
 0x92f   : > { %v1739_v30 = vmul.f32 %v5744_v26, %v1738_v29 }
 0x931   : > { %v1740_v31 = vmul.f32 0.5, %v1739_v30 }
 0x933   : > { %v1741_v32 = vsub.f32 1.5, %v1740_v31 }
 0x934   : > { %v5746_v33 = vpop.eup %5745 }
 0x935   : > { %v1742_v34 = vmul.f32 %v5744_v26, %v1741_v32  ;;  %v1748_v35 = vmul.f32 %v5746_v33, %v1736_v27  ;;  %vm1754_vm9 = vweird.f32 %v5746_v33 }
 0x936   : > { %vm1755_vm11 = vmor %vm1753_vm10, %vm1754_vm9 }
 0x937   : > { %v1746_v14 = vsel %vm1745_vm8, %v5744_v26, %v1742_v34  ;;  %v1749_v37 = vmul.f32 %v5746_v33, %v1748_v35  ;;  %v5670_v34 = vld [vmem:[%s7079_s8] ss:$0 sm:$0xff] }
 0x938   : > { %v1757_v38 = vmul.f32 %v1746_v14, %v1723_v5 }
 0x939   : > { %v1750_v40 = vmul.f32 0.5, %v1749_v37  ;;  %v5671_v37 = vld [vmem:[%s7079_s8 + $0x1] ss:$0 sm:$0xff] }
 0x93a   : > { %v1762_v41 = vmul.f32 %v5666_v36, %v1757_v38 }
 0x93b   : > { %v1751_v42 = vsub.f32 1.5, %v1750_v40 }
 0x93c   : > { %v1767_v43 = vadd.f32 %v5667_v39, %v1762_v41 }
 0x93d   : > { %v1752_v44 = vmul.f32 %v5746_v33, %v1751_v42 }
 0x93e   : > { %5379 = vmatmul.msk.f32.vlgmr.msrb.gmra.mxu2 %vm1032_vm0, %v1767_v43 }
 0x93f   : > { %v1756_v45 = vsel %vm1755_vm11, %v5746_v33, %v1752_v44 }
 0x940   : > { %v1758_v46 = vmul.f32 %v1756_v45, %v1724_v6 }
 0x942   : > { %v1763_v47 = vmul.f32 %v5666_v36, %v1758_v46 }
 0x944   : > { %v1768_v48 = vadd.f32 %v5667_v39, %v1763_v47  ;;  %v5672_v47 = vld [vmem:[%s7075_s21 + $0x1] ss:$0 sm:$0xff]  ;;  %s7106_s21 = sld [smem:[#allocation27_spill]] }
 0x946   : > { %5380 = vmatmul.msk.f32.gmra.mxu2 %vm1032_vm0, %v1768_v48 }
 0x9c1   : > { %v1809_v53 = vpop.f32.mrf.mxu2 }
 0x9c2   : > { %v1810_v54 = vadd.f32 %v5668_v52, %v1809_v53 }
 0x9c4   : > { %v1815_v55 = vmax.f32 %v1810_v54, 0.0 }
 0x9c6   : > { %5381 = vmatmul.msk.f32.vlgmr.msra.gmra.mxu0 %vm1820_vm12, %v1815_v55 }
 0x9c9   : > { %v1812_v56 = vpop.f32.mrf.mxu2 }
 0x9ca   : > { %v1813_v11 = vadd.f32 %v5668_v52, %v1812_v56 }
 0x9cc   : > { %v1816_v16 = vmax.f32 %v1813_v11, 0.0 }
 0x9ce   : > { %5382 = vmatmul.msk.f32.gmra.mxu0 %vm1820_vm12, %v1816_v16 }
 0xa43   : > { %v1844_v1 = vpop.f32.mrf.mxu0 }
 0xa44   : > { %v1845_v58 = vadd.f32 %v5669_v57, %v1844_v1 }
 0xa46   : > { %v1852_v4 = vadd.f32 %v1845_v58, %v1767_v43  ;;  %v6354_v58 = vld [vmem:[%s6113_s0] ss:$0 sm:$0xff]  ;;  %s7085_s0 = smov 48  }
 0xa48   : > { %v1854_v59 = vsel %vm1032_vm0, %v1852_v4, 0.0 }
 0xa49   : > { %1855 = vadd.xlane.f32.xlu2 %v1854_v59 }
 0xa4b   : > { %v1847_v18 = vpop.f32.mrf.mxu0 }
 0xa4c   : > { %v1848_v61 = vadd.f32 %v5669_v57, %v1847_v18 }
 0xa4e   : > { %v1853_v62 = vadd.f32 %v1848_v61, %v1768_v48 }
 0xa50   : > { %v1857_v5 = vsel %vm1710_vm15, %v1853_v62, 0.0 }
 0xa51   : > { %1858 = vadd.xlane.f32.xlu0 %v1857_v5 }
 0xabc   : > { %v1856_v63 = vpop.xlane.xlu2 %1855 }
 0xabd   : > { %v1860_v0 = vmul.f32 %v1856_v63, %v6276_v60 }
 0xabf   : > { %v1862_v2 = vsub.f32 %v1852_v4, %v1860_v0 }
 0xac1   : > { %v1864_v3 = vmul.f32 %v1862_v2, %v1862_v2 }
 0xac3   : > { %v1866_v6 = vsel %vm1032_vm0, %v1864_v3, 0.0 }
 0xac4   : > { %v1859_v10 = vpop.xlane.xlu0 %1858  ;;  %1867 = vadd.xlane.f32.xlu1 %v1866_v6 }
 0xac5   : > { %v1861_v7 = vmul.f32 %v1859_v10, %v6276_v60 }
 0xac7   : > { %v1863_v8 = vsub.f32 %v1853_v62, %v1861_v7 }
 0xac9   : > { %v1865_v12 = vmul.f32 %v1863_v8, %v1863_v8 }
 0xacb   : > { %v1869_v13 = vsel %vm1710_vm15, %v1865_v12, 0.0 }
 0xacc   : > { %1870 = vadd.xlane.f32.xlu2 %v1869_v13 }
 0xb37   : > { %v1868_v21 = vpop.xlane.xlu1 %1867 }
 0xb38   : > { %v1872_v22 = vmul.f32 %v1868_v21, %v6276_v60 }
 0xb3a   : > { %v1874_v23 = vadd.f32 1e-05, %v1872_v22 }
 0xb3c   : > { %5747 = vrsqrt.f32 %v1874_v23  ;;  %vm1882_vm14 = vweird.f32 %v1874_v23 }
 0xb3f   : > { %v1871_v24 = vpop.xlane.xlu2 %1870 }
 0xb40   : > { %v1873_v9 = vmul.f32 %v1871_v24, %v6276_v60 }
 0xb42   : > { %v5748_v25 = vpop.eup %5747  ;;  %v1875_v26 = vadd.f32 1e-05, %v1873_v9 }
 0xb43   : > { %v1877_v27 = vmul.f32 %v5748_v25, %v1874_v23  ;;  %vm1883_vm13 = vweird.f32 %v5748_v25 }
 0xb44   : > { %5749 = vrsqrt.f32 %v1875_v26  ;;  %vm1884_vm5 = vmor %vm1882_vm14, %vm1883_vm13  ;;  %vm1892_vm7 = vweird.f32 %v1875_v26 }
 0xb45   : > { %v1878_v28 = vmul.f32 %v5748_v25, %v1877_v27 }
 0xb47   : > { %v1879_v29 = vmul.f32 0.5, %v1878_v28 }
 0xb49   : > { %v1880_v30 = vsub.f32 1.5, %v1879_v29 }
 0xb4a   : > { %v5750_v31 = vpop.eup %5749 }
 0xb4b   : > { %v1881_v32 = vmul.f32 %v5748_v25, %v1880_v30  ;;  %v1887_v33 = vmul.f32 %v5750_v31, %v1875_v26  ;;  %vm1893_vm6 = vweird.f32 %v5750_v31 }
 0xb4c   : > { %vm1894_vm8 = vmor %vm1892_vm7, %vm1893_vm6 }
 0xb4d   : > { %v1885_v35 = vsel %vm1884_vm5, %v5748_v25, %v1881_v32  ;;  %v1888_v36 = vmul.f32 %v5750_v31, %v1887_v33 }
 0xb4e   : > { %v1896_v14 = vmul.f32 %v1885_v35, %v1862_v2  ;;  %v5388_v35 = vld [vmem:[%s7073_s25 + $0x20] sm:$0xff] }
 0xb4f   : > { %v1889_v38 = vmul.f32 0.5, %v1888_v36  ;;  %2104 = vmatpush.msrb.mxu0 %v5388_v35 }
 0xb50   : > { %v1901_v39 = vmul.f32 %v5670_v34, %v1896_v14 }
 0xb51   : > { %v1890_v40 = vsub.f32 1.5, %v1889_v38 }
 0xb52   : > { %v6318_v41 = vadd.f32 %v5671_v37, %v1901_v39 }
 0xb53   : > { %v1891_v42 = vmul.f32 %v5750_v31, %v1890_v40 }
 0xb54   : > { %5393 = vmatmul.msk.f32.vlgmr.msrb.gmra.mxu1 %vm1032_vm0, %v6318_v41 }
 0xb55   : > { %v1895_v43 = vsel %vm1894_vm8, %v5750_v31, %v1891_v42 }
 0xb56   : > { %v1897_v44 = vmul.f32 %v1895_v43, %v1863_v8 }
 0xb58   : > { %v1902_v45 = vmul.f32 %v5670_v34, %v1897_v44 }
 0xb5a   : > { %v6322_v46 = vadd.f32 %v5671_v37, %v1902_v45 }
 0xb5c   : > { %5394 = vmatmul.msk.f32.gmra.mxu1 %vm1032_vm0, %v6322_v46 }
 0xbd1   : > { %v1948_v48 = vpop.f32.mrf.mxu1 }
 0xbd2   : > { %v6327_v49 = vadd.f32 %v5672_v47, %v1948_v48 }
 0xbd4   : > { %1960 = vrot.lane.b32.xlu1 %v6327_v49, %s7030_s10 }
 0xbd9   : > { %v1951_v50 = vpop.f32.mrf.mxu1 }
 0xbda   : > { %v6331_v51 = vadd.f32 %v5672_v47, %v1951_v50 }
 0xbdc   : > { %2116 = vrot.lane.b32.xlu1 %v6331_v51, %s7028_s16  ;;  %2120 = vrot.lane.b32.xlu2 %v6331_v51, %s7026_s15 }
 0xbdd   : > { %1962 = vrot.lane.b32.xlu0 %v6331_v51, %s7030_s10 }
 0xbe5   : > { %2118 = vrot.lane.b32.xlu0 %v6327_v49, %s7026_s15 }
 0xbed   : > { %2114 = vrot.lane.b32.xlu0 %v6327_v49, %s7028_s16 }
 0xc36   : > { %v2121_v52 = vpop.permute.xlu2 %2120 }
 0xc37   : > { %5404 = vmatpush.xpose.msk.msra.mxu1 %vm1072_vm1, %v2121_v52 }
 0xc46   : > { %v1961_v54 = vpop.permute.xlu1 %1960 }
 0xc4e   : > { %v2117_v11 = vpop.permute.xlu1 %2116 }
 0xc4f   : > { %v1963_v53 = vpop.permute.xlu0 %1962 }
 0xc50   : > { %5395 = vmatpush.xpose.msk.msra.mxu3 %vm1072_vm1, %v1963_v53 }
 0xc54   : > { %5396 = vmatpush.xpose.msk.msra.mxu3 %vm1072_vm1, %v1961_v54 }
 0xc57   : > { %5397 = vmatmul.msk.f32.vlgmr.msra.gmra.mxu3 %vm1072_vm1, %v6327_v49  ;;  %v2119_v55 = vpop.permute.xlu0 %2118 }
 0xc58   : > { %5405 = vmatpush.xpose.msk.msra.mxu1 %vm1072_vm1, %v2119_v55 }
 0xc5f   : > { %5398 = vmatmul.msk.f32.gmra.mxu3 %vm1072_vm1, %v6331_v51  ;;  %v2115_v56 = vpop.permute.xlu0 %2114 }
 0xc60   : > { %5406 = vmatmul.msk.f32.vlgmr.msra.gmra.mxu1 %vm1072_vm1, %v2115_v56 }
 0xc68   : > { %5407 = vmatmul.msk.f32.gmra.mxu1 %vm1072_vm1, %v2117_v11 }
 0xcda   : > { %v1989_v16 = vpop.f32.mrf.mxu3 }
 0xcdb   : > { %v1995_v57 = vmul.f32 0.35355338, %v1989_v16 }
 0xcdd   : > { %v2147_v1 = vpop.f32.mrf.mxu1  ;;  %v1997_v4 = vadd.f32 %v6354_v58, %v1995_v57 }
 0xcde   : > { %v2153_v59 = vmul.f32 0.35355338, %v2147_v1 }
 0xcdf   : > { %v1999_v18 = vsel %vm1111_vm3, %v1997_v4, -inf }
 0xce0   : > { %2000 = vmax.xlane.f32.xlu2 %v1999_v18  ;;  %v2155_v61 = vadd.f32 %v6354_v58, %v2153_v59 }
 0xce2   : > { %v1992_v62 = vpop.f32.mrf.mxu3  ;;  %v2157_v5 = vsel %vm1111_vm3, %v2155_v61, -inf }
 0xce3   : > { %v1996_v63 = vmul.f32 0.35355338, %v1992_v62  ;;  %2158 = vmax.xlane.f32.xlu0 %v2157_v5 }
 0xce5   : > { %v2150_v0 = vpop.f32.mrf.mxu1  ;;  %v1998_v2 = vadd.f32 %v6354_v58, %v1996_v63 }
 0xce6   : > { %v2154_v3 = vmul.f32 0.35355338, %v2150_v0 }
 0xce7   : > { %v2002_v6 = vsel %vm1115_vm4, %v1998_v2, -inf }
 0xce8   : > { %2003 = vmax.xlane.f32.xlu1 %v2002_v6  ;;  %v2156_v10 = vadd.f32 %v6354_v58, %v2154_v3 }
 0xcea   : > { %v2160_v7 = vsel %vm1115_vm4, %v2156_v10, -inf }
 0xceb   : > { %2161 = vmax.xlane.f32.xlu2 %v2160_v7 }
 0xd03   : > { %2047 = vrot.lane.b32.xlu2 %v6327_v49, %s7019_s11 }
 0xd53   : > { %v2001_v8 = vpop.xlane.xlu2 %2000 }
 0xd54   : > { %v2005_v12 = vsub.f32 %v1997_v4, %v2001_v8 }
 0xd56   : > { %v2007_v13 = vmul.f32 1.442695, %v2005_v12  ;;  %v2159_v15 = vpop.xlane.xlu0 %2158  ;;  %v5389_v12 = vld [vmem:[%s7073_s25 + $0x28] sm:$0xff] }
 0xd57   : > { %v2163_v17 = vsub.f32 %v2155_v61, %v2159_v15 }
 0xd58   : > { %5751 = vpow2.f32 %v2007_v13 }
 0xd59   : > { %v2165_v19 = vmul.f32 1.442695, %v2163_v17 }
 0xd5b   : > { %5753 = vpow2.f32 %v2165_v19  ;;  %v2004_v20 = vpop.xlane.xlu1 %2003 }
 0xd5c   : > { %v2006_v21 = vsub.f32 %v1998_v2, %v2004_v20 }
 0xd5e   : > { %v6366_v22 = vpop.eup %5751  ;;  %v2009_v23 = vmul.f32 1.442695, %v2006_v21  ;;  %v2162_v24 = vpop.xlane.xlu2 %2161 }
 0xd5f   : > { %v2164_v9 = vsub.f32 %v2156_v10, %v2162_v24  ;;  %v2011_v25 = vsel %vm1111_vm3, %v6366_v22, 0.0 }
 0xd60   : > { %5755 = vpow2.f32 %v2009_v23  ;;  %2012 = vadd.xlane.f32.xlu0 %v2011_v25 }
 0xd61   : > { %v6370_v26 = vpop.eup %5753  ;;  %v2167_v27 = vmul.f32 1.442695, %v2164_v9 }
 0xd62   : > { %v2169_v28 = vsel %vm1111_vm3, %v6370_v26, 0.0 }
 0xd63   : > { %5757 = vpow2.f32 %v2167_v27  ;;  %2170 = vadd.xlane.f32.xlu1 %v2169_v28 }
 0xd66   : > { %v6374_v29 = vpop.eup %5755  ;;  %v2048_v33 = vpop.permute.xlu2 %2047 }
 0xd67   : > { %v2014_v30 = vsel %vm1115_vm4, %v6374_v29, 0.0 }
 0xd68   : > { %2015 = vadd.xlane.f32.xlu2 %v2014_v30 }
 0xd69   : > { %v6378_v31 = vpop.eup %5757 }
 0xd6a   : > { %v2172_v32 = vsel %vm1115_vm4, %v6378_v31, 0.0 }
 0xd6b   : > { %2173 = vadd.xlane.f32.xlu0 %v2172_v32 }
 0xd7c   : > { %2049 = vrot.lane.b32.xlu1 %v6331_v51, %s7019_s11 }
 0xd7f   : > { %2207 = vrot.lane.b32.xlu0 %v6331_v51, %s7016_s18 }
 0xd80   : > { %2205 = vrot.lane.b32.xlu2 %v6327_v49, %s7016_s18  ;;  %s7087_s18 = sld [smem:[#allocation15_spill]] }
 0xd84   : > { %2278 = vrot.lane.b32.xlu1 %v6331_v51, %s7022_s22 }
 0xd87   : > { %2436 = vrot.lane.b32.xlu0 %v6331_v51, %s7020_s23 }
 0xd88   : > { %2276 = vrot.lane.b32.xlu2 %v6327_v49, %s7022_s22 }
 0xd8c   : > { %2434 = vrot.lane.b32.xlu1 %v6327_v49, %s7020_s23 }
 0xd8f   : > { %2272 = vrot.lane.b32.xlu0 %v6327_v49, %s7014_s2 }
 0xd90   : > { %2430 = vrot.lane.b32.xlu2 %v6327_v49, %s7024_s26 }
 0xd94   : > { %2274 = vrot.lane.b32.xlu1 %v6331_v51, %s7014_s2 }
 0xd97   : > { %2432 = vrot.lane.b32.xlu0 %v6331_v51, %s7024_s26 }
 0xdd3   : > { %v2013_v34 = vpop.xlane.xlu0 %2012 }
 0xdd4   : > { %5759 = vrcp.f32 %v2013_v34  ;;  %v2028_v56 = vand.u32 2147483648, %v2013_v34  ;;  %vm2022_vm10 = vweird.f32 %v2013_v34  ;;  %v2026_v11 = vand.u32 2147483647, %v2013_v34 }
 0xdd6   : > { %v2171_v36 = vpop.xlane.xlu1 %2170  ;;  %v2029_v18 = vor.u32 1.1754944e-38, %v2028_v56  ;;  %vm2027_vm5 = vcmp.eq.f32.partialorder %v2026_v11, 8.507059e+37 }
 0xdd7   : > { %5761 = vrcp.f32 %v2171_v36  ;;  %v2186_v4 = vand.u32 2147483648, %v2171_v36  ;;  %vm2180_vm14 = vweird.f32 %v2171_v36  ;;  %v2184_v61 = vand.u32 2147483647, %v2171_v36 }
 0xdd9   : > { %v2187_v0 = vor.u32 1.1754944e-38, %v2186_v4  ;;  %vm2185_vm8 = vcmp.eq.f32.partialorder %v2184_v61, 8.507059e+37 }
 0xdda   : > { %v5760_v14 = vpop.eup %5759 }
 0xddb   : > { %v2018_v37 = vmul.f32 %v5760_v14, %v2013_v34  ;;  %v6405_v38 = vpop.xlane.xlu2 %2015  ;;  %vm2023_vm9 = vweird.f32 %v5760_v14 }
 0xddc   : > { %5763 = vrcp.f32 %v6405_v38  ;;  %vm2024_vm11 = vmor %vm2022_vm10, %vm2023_vm9  ;;  %v2043_v6 = vand.u32 2147483648, %v6405_v38  ;;  %vm2037_vm9 = vweird.f32 %v6405_v38  ;;  %v2041_v13 = vand.u32 2147483647, %v6405_v38 }
 0xddd   : > { %v5762_v39 = vpop.eup %5761  ;;  %v2019_v40 = vsub.f32 1.0, %v2018_v37 }
 0xdde   : > { %v2176_v42 = vmul.f32 %v5762_v39, %v2171_v36  ;;  %v6408_v43 = vpop.xlane.xlu0 %2173  ;;  %vm2181_vm13 = vweird.f32 %v5762_v39 }
 0xddf   : > { %5765 = vrcp.f32 %v6408_v43  ;;  %v2020_v47 = vmul.f32 %v5760_v14, %v2019_v40  ;;  %vm2182_vm6 = vmor %vm2180_vm14, %vm2181_vm13  ;;  %v2201_v21 = vand.u32 2147483648, %v6408_v43  ;;  %vm2195_vm13 = vweird.f32 %v6408_v43 }
 0xde0   : > { %v2177_v44 = vsub.f32 1.0, %v2176_v42  ;;  %v2199_v24 = vand.u32 2147483647, %v6408_v43  ;;  %vm2042_vm14 = vcmp.eq.f32.partialorder %v2041_v13, 8.507059e+37 }
 0xde1   : > { %v2021_v53 = vadd.f32 %v5760_v14, %v2020_v47  ;;  %v2202_v28 = vor.u32 1.1754944e-38, %v2201_v21 }
 0xde2   : > { %v5764_v45 = vpop.eup %5763  ;;  %v2178_v52 = vmul.f32 %v5762_v39, %v2177_v44 }
 0xde3   : > { %v2033_v48 = vmul.f32 %v5764_v45, %v6405_v38  ;;  %v2025_v1 = vsel %vm2024_vm11, %v5760_v14, %v2021_v53  ;;  %vm2038_vm7 = vweird.f32 %v5764_v45  ;;  %v2206_v7 = vpop.permute.xlu2 %2205 }
 0xde4   : > { %v2179_v16 = vadd.f32 %v5762_v39, %v2178_v52  ;;  %v2030_v5 = vsel %vm2027_vm5, %v2029_v18, %v2025_v1  ;;  %vm6423_vm10 = vmor %vm2037_vm9, %vm2038_vm7 }
 0xde5   : > { %v6412_v50 = vpop.eup %5765  ;;  %v2034_v54 = vsub.f32 1.0, %v2033_v48  ;;  %v2031_v8 = vmul.f32 %v6366_v22, %v2030_v5  ;;  %v2044_v22 = vor.u32 1.1754944e-38, %v2043_v6 }
 0xde6   : > { %v2191_v55 = vmul.f32 %v6412_v50, %v6408_v43  ;;  %v2183_v62 = vsel %vm2182_vm6, %v5762_v39, %v2179_v16  ;;  %vm2196_vm11 = vweird.f32 %v6412_v50  ;;  %vm2200_vm6 = vcmp.eq.f32.partialorder %v2199_v24, 8.507059e+37  ;;  %v5673_v43 = vld [vmem:[%s7072_s29 + $0x1] ss:$0 sm:$0xff]  ;;  %s7109_s29 = sld [smem:[#allocation28_spill]] }
 0xde7   : > { %v2035_v59 = vmul.f32 %v5764_v45, %v2034_v54  ;;  %v2188_v10 = vsel %vm2185_vm8, %v2187_v0, %v2183_v62  ;;  %vm2197_vm5 = vmor %vm2195_vm13, %vm2196_vm11 }
 0xde8   : > { %v2192_v57 = vsub.f32 1.0, %v2191_v55  ;;  %v2189_v23 = vmul.f32 %v6370_v26, %v2188_v10 }
 0xde9   : > { %v2036_v3 = vadd.f32 %v5764_v45, %v2035_v59 }
 0xdea   : > { %v2193_v63 = vmul.f32 %v6412_v50, %v2192_v57 }
 0xdeb   : > { %v2040_v20 = vsel %vm6423_vm10, %v5764_v45, %v2036_v3 }
 0xdec   : > { %v2194_v19 = vadd.f32 %v6412_v50, %v2193_v63  ;;  %v2045_v9 = vsel %vm2042_vm14, %v2044_v22, %v2040_v20 }
 0xded   : > { %v2046_v26 = vmul.f32 %v6374_v29, %v2045_v9 }
 0xdee   : > { %v2050_v2 = vpop.permute.xlu1 %2049  ;;  %v2198_v25 = vsel %vm2197_vm5, %v6412_v50, %v2194_v19 }
 0xdef   : > { %5399 = vmatpush.msk.msra.mxu2 %vm1172_vm2, %v2050_v2  ;;  %v2203_v30 = vsel %vm2200_vm6, %v2202_v28, %v2198_v25 }
 0xdf0   : > { %v2204_v34 = vmul.f32 %v6378_v31, %v2203_v30 }
 0xdf1   : > { %v2208_v15 = vpop.permute.xlu0 %2207  ;;  %2075 = vmatpush.msra.mxu2 %v2048_v33  ;;  %v2277_v33 = vpop.permute.xlu2 %2276 }
 0xdf2   : > { %5400 = vmatmul.msk.f32.vlgmr.msra.gmra.mxu2 %vm1111_vm3, %v2031_v8  ;;  %5408 = vmatpush.msk.msrb.mxu3 %vm1172_vm2, %v2208_v15 }
 0xdf3   : > { %2262 = vmatpush.msrb.mxu2 %v5389_v12 }
 0xdf4   : > { %2233 = vmatpush.msrb.mxu3 %v2206_v7 }
 0xdf5   : > { %5409 = vmatmul.msk.f32.vlgmr.msrb.gmra.mxu3 %vm1111_vm3, %v2189_v23 }
 0xdf6   : > { %v2279_v27 = vpop.permute.xlu1 %2278 }
 0xdf7   : > { %5413 = vmatpush.xpose.msk.msra.mxu0 %vm1072_vm1, %v2279_v27 }
 0xdf9   : > { %v2437_v32 = vpop.permute.xlu0 %2436  ;;  %v2431_v31 = vpop.permute.xlu2 %2430 }
 0xdfa   : > { %5401 = vmatmul.msk.f32.gmra.mxu2 %vm1111_vm3, %v2046_v26 }
 0xdfb   : > { %5422 = vmatpush.xpose.msk.msra.mxu2 %vm1072_vm1, %v2437_v32  ;;  %5414 = vmatpush.xpose.msk.msra.mxu0 %vm1072_vm1, %v2277_v33 }
 0xdfd   : > { %5410 = vmatmul.msk.f32.gmra.mxu3 %vm1111_vm3, %v2204_v34 }
 0xdfe   : > { %v2435_v35 = vpop.permute.xlu1 %2434 }
 0xdff   : > { %5423 = vmatpush.xpose.msk.msra.mxu2 %vm1072_vm1, %v2435_v35 }
 0xe01   : > { %v2273_v38 = vpop.permute.xlu0 %2272 }
 0xe06   : > { %v2275_v39 = vpop.permute.xlu1 %2274 }
 0xe09   : > { %v2433_v40 = vpop.permute.xlu0 %2432 }
 0xe75   : > { %v2077_v36 = vpop.f32.mrf.mxu2 }
 0xe76   : > { %5402 = vmatmul.msk.f32.vlgmr.msrb.gmra.mxu0 %vm1072_vm1, %v2077_v36 }
 0xe78   : > { %v2235_v29 = vpop.f32.mrf.mxu3 }
 0xe79   : > { %5411 = vmatmul.msk.f32.vlgmr.msrb.gmra.mxu2 %vm1072_vm1, %v2235_v29 }
 0xe7d   : > { %v2080_v14 = vpop.f32.mrf.mxu2 }
 0xe7e   : > { %5403 = vmatmul.msk.f32.gmra.mxu0 %vm1072_vm1, %v2080_v14 }
 0xe80   : > { %v2238_v37 = vpop.f32.mrf.mxu3 }
 0xe81   : > { %5412 = vmatmul.msk.f32.gmra.mxu2 %vm1072_vm1, %v2238_v37 }
 0xe86   : > { %5415 = vmatmul.msk.f32.vlgmr.msra.gmra.mxu0 %vm1072_vm1, %v2273_v38 }
 0xe89   : > { %5424 = vmatmul.msk.f32.vlgmr.msra.gmra.mxu2 %vm1072_vm1, %v2431_v31 }
 0xe8e   : > { %5416 = vmatmul.msk.f32.gmra.mxu0 %vm1072_vm1, %v2275_v39 }
 0xe91   : > { %5425 = vmatmul.msk.f32.gmra.mxu2 %vm1072_vm1, %v2433_v40 }
 0xef3   : > { %v2106_v42 = vpop.f32.mrf.mxu0 }
 0xef4   : > { %v2112_v44 = vadd.f32 %v5673_v43, %v2106_v42 }
 0xefb   : > { %v2109_v45 = vpop.f32.mrf.mxu0 }
 0xefc   : > { %v2264_v47 = vpop.f32.mrf.mxu2  ;;  %v2113_v50 = vadd.f32 %v5673_v43, %v2109_v45 }
 0xefd   : > { %v6456_v48 = vadd.f32 %v2264_v47, %v2112_v44 }
 0xf03   : > { %v2305_v52 = vpop.f32.mrf.mxu0 }
 0xf04   : > { %v2311_v53 = vmul.f32 0.35355338, %v2305_v52  ;;  %v2267_v54 = vpop.f32.mrf.mxu2 }
 0xf05   : > { %v6458_v55 = vadd.f32 %v2267_v54, %v2113_v50 }
 0xf06   : > { %v2313_v56 = vadd.f32 %v6354_v58, %v2311_v53 }
 0xf08   : > { %v2315_v11 = vsel %vm1111_vm3, %v2313_v56, -inf }
 0xf09   : > { %2316 = vmax.xlane.f32.xlu2 %v2315_v11 }
 0xf0b   : > { %v2308_v16 = vpop.f32.mrf.mxu0 }
 0xf0c   : > { %v2312_v57 = vmul.f32 0.35355338, %v2308_v16  ;;  %v2463_v1 = vpop.f32.mrf.mxu2 }
 0xf0d   : > { %v2469_v4 = vmul.f32 0.35355338, %v2463_v1 }
 0xf0e   : > { %v2314_v59 = vadd.f32 %v6354_v58, %v2312_v57 }
 0xf0f   : > { %v2471_v18 = vadd.f32 %v6354_v58, %v2469_v4 }
 0xf10   : > { %v2318_v61 = vsel %vm1115_vm4, %v2314_v59, -inf }
 0xf11   : > { %2319 = vmax.xlane.f32.xlu1 %v2318_v61  ;;  %v2473_v62 = vsel %vm1111_vm3, %v2471_v18, -inf }
 0xf12   : > { %2474 = vmax.xlane.f32.xlu0 %v2473_v62 }
 0xf14   : > { %v2466_v5 = vpop.f32.mrf.mxu2 }
 0xf15   : > { %v2470_v63 = vmul.f32 0.35355338, %v2466_v5 }
 0xf17   : > { %v2472_v0 = vadd.f32 %v6354_v58, %v2470_v63 }
 0xf19   : > { %v2476_v2 = vsel %vm1115_vm4, %v2472_v0, -inf }
 0xf1a   : > { %2477 = vmax.xlane.f32.xlu2 %v2476_v2 }
 0xf26   : > { %2365 = vrot.lane.b32.xlu0 %v6331_v51, %s7085_s0 }
 0xf7c   : > { %v2317_v3 = vpop.xlane.xlu2 %2316 }
 0xf7d   : > { %v2321_v6 = vsub.f32 %v2313_v56, %v2317_v3 }
 0xf7f   : > { %v2323_v10 = vmul.f32 1.442695, %v2321_v6 }
 0xf81   : > { %5767 = vpow2.f32 %v2323_v10 }
 0xf84   : > { %v2320_v7 = vpop.xlane.xlu1 %2319 }
 0xf85   : > { %v2322_v8 = vsub.f32 %v2314_v59, %v2320_v7  ;;  %v2475_v12 = vpop.xlane.xlu0 %2474 }
 0xf86   : > { %v2479_v13 = vsub.f32 %v2471_v18, %v2475_v12 }
 0xf87   : > { %v5768_v15 = vpop.eup %5767  ;;  %v2325_v17 = vmul.f32 1.442695, %v2322_v8 }
 0xf88   : > { %v2481_v19 = vmul.f32 1.442695, %v2479_v13  ;;  %v2327_v20 = vsel %vm1111_vm3, %v5768_v15, 0.0 }
 0xf89   : > { %5769 = vpow2.f32 %v2325_v17  ;;  %2328 = vadd.xlane.f32.xlu1 %v2327_v20 }
 0xf8a   : > { %5771 = vpow2.f32 %v2481_v19 }
 0xf8d   : > { %v2478_v58 = vpop.xlane.xlu2 %2477 }
 0xf8e   : > { %v2480_v21 = vsub.f32 %v2472_v0, %v2478_v58 }
 0xf8f   : > { %v5770_v22 = vpop.eup %5769 }
 0xf90   : > { %v6471_v23 = vpop.eup %5771  ;;  %v2483_v24 = vmul.f32 1.442695, %v2480_v21  ;;  %v2330_v9 = vsel %vm1115_vm4, %v5770_v22, 0.0 }
 0xf91   : > { %2331 = vadd.xlane.f32.xlu0 %v2330_v9  ;;  %v2485_v25 = vsel %vm1111_vm3, %v6471_v23, 0.0 }
 0xf92   : > { %5773 = vpow2.f32 %v2483_v24  ;;  %2486 = vadd.xlane.f32.xlu2 %v2485_v25 }
 0xf98   : > { %v6476_v27 = vpop.eup %5773  ;;  %v2366_v28 = vpop.permute.xlu0 %2365 }
 0xf99   : > { %5417 = vmatpush.msk.msrb.mxu1 %vm1172_vm2, %v2366_v28  ;;  %v2488_v26 = vsel %vm1115_vm4, %v6476_v27, 0.0  ;;  %v2856_v28 = vld [vmem:[%s6000_s6 + $0x18] sm:$0xff] }
 0xf9a   : > { %2489 = vadd.xlane.f32.xlu1 %v2488_v26  ;;  %v2855_v26 = vld [vmem:[%s6000_s6 + $0x10] sm:$0xff] }
 0xfa5   : > { %2521 = vrot.lane.b32.xlu0 %v6327_v49, %s7012_s7 }
 0xfaa   : > { %2363 = vrot.lane.b32.xlu2 %v6327_v49, %s7085_s0 }
 0xfb3   : > { %2523 = vrot.lane.b32.xlu1 %v6331_v51, %s7012_s7  ;;  %s7018_s7 = sshll.u32 %s7114_s1, 3 }
 0xfb4   : > { %s1011_s2 = scalar_lea.vmem %s7086_s13, %s7018_s7  ;;  %s7089_s7 = smov 56  }
 0xfb5   : > { %s7101_s13 = sld [smem:[#allocation20_spill]] }
 0xffc   : > { %v2329_v30 = vpop.xlane.xlu1 %2328 }
 0xffd   : > { %5775 = vrcp.f32 %v2329_v30  ;;  %v2344_v29 = vand.u32 2147483648, %v2329_v30  ;;  %v2342_v37 = vand.u32 2147483647, %v2329_v30  ;;  %vm2338_vm7 = vweird.f32 %v2329_v30 }
 0xfff   : > { %v2345_v49 = vor.u32 1.1754944e-38, %v2344_v29  ;;  %vm2343_vm9 = vcmp.eq.f32.partialorder %v2342_v37, 8.507059e+37 }
0x1003   : > { %v5776_v32 = vpop.eup %5775 }
0x1004   : > { %v2334_v33 = vmul.f32 %v5776_v32, %v2329_v30  ;;  %v2332_v34 = vpop.xlane.xlu0 %2331  ;;  %vm2339_vm4 = vweird.f32 %v5776_v32  ;;  %v2854_v30 = vld [vmem:[%s6000_s6 + $0x8] sm:$0xff] }
0x1005   : > { %5777 = vrcp.f32 %v2332_v34  ;;  %v2487_v35 = vpop.xlane.xlu2 %2486  ;;  %vm2340_vm8 = vmor %vm2338_vm7, %vm2339_vm4  ;;  %v2359_v47 = vand.u32 2147483648, %v2332_v34  ;;  %v2357_v53 = vand.u32 2147483647, %v2332_v34  ;;  %vm2353_vm11 = vweird.f32 %v2332_v34 }
0x1006   : > { %v2335_v36 = vsub.f32 1.0, %v2334_v33  ;;  %5779 = vrcp.f32 %v2487_v35  ;;  %v2502_v63 = vand.u32 2147483648, %v2487_v35  ;;  %vm2496_vm6 = vweird.f32 %v2487_v35  ;;  %v6508_v33 = vld [vmem:[%s1011_s2] sm:$0xff]  ;;  %s7088_s2 = sld [smem:[#allocation16_spill]] }
0x1007   : > { %v2360_v11 = vor.u32 1.1754944e-38, %v2359_v47  ;;  %vm2358_vm14 = vcmp.eq.f32.partialorder %v2357_v53, 8.507059e+37  ;;  %v2500_v0 = vand.u32 2147483647, %v2487_v35 }
0x1008   : > { %v2336_v14 = vmul.f32 %v5776_v32, %v2335_v36  ;;  %v2503_v6 = vor.u32 1.1754944e-38, %v2502_v63 }
0x1009   : > { %vm2501_vm7 = vcmp.eq.f32.partialorder %v2500_v0, 8.507059e+37 }
0x100a   : > { %v2337_v38 = vadd.f32 %v5776_v32, %v2336_v14 }
0x100b   : > { %v5778_v31 = vpop.eup %5777 }
0x100c   : > { %v2341_v39 = vsel %vm2340_vm8, %v5776_v32, %v2337_v38  ;;  %v2349_v51 = vmul.f32 %v5778_v31, %v2332_v34  ;;  %v5780_v44 = vpop.eup %5779  ;;  %vm2354_vm10 = vweird.f32 %v5778_v31  ;;  %v2853_v32 = vld [vmem:[%s6000_s6] sm:$0xff] }
0x100d   : > { %v2346_v40 = vsel %vm2343_vm9, %v2345_v49, %v2341_v39  ;;  %v2490_v42 = vpop.xlane.xlu1 %2489  ;;  %v2364_v43 = vpop.permute.xlu2 %2363  ;;  %v2492_v54 = vmul.f32 %v5780_v44, %v2487_v35  ;;  %vm2355_vm13 = vmor %vm2353_vm11, %vm2354_vm10  ;;  %vm2497_vm5 = vweird.f32 %v5780_v44 }
0x100e   : > { %v2350_v45 = vsub.f32 1.0, %v2349_v51  ;;  %2391 = vmatpush.msrb.mxu1 %v2364_v43  ;;  %v2347_v50 = vmul.f32 %v5768_v15, %v2346_v40  ;;  %5781 = vrcp.f32 %v2490_v42  ;;  %vm2498_vm4 = vmor %vm2496_vm6, %vm2497_vm5  ;;  %v2517_v12 = vand.u32 2147483648, %v2490_v42 }
0x100f   : > { %v2493_v57 = vsub.f32 1.0, %v2492_v54  ;;  %vm2511_vm9 = vweird.f32 %v2490_v42  ;;  %v2515_v17 = vand.u32 2147483647, %v2490_v42 }
0x1010   : > { %v2351_v52 = vmul.f32 %v5778_v31, %v2350_v45  ;;  %5418 = vmatmul.msk.f32.vlgmr.msrb.gmra.mxu1 %vm1111_vm3, %v2347_v50  ;;  %v2518_v20 = vor.u32 1.1754944e-38, %v2517_v12 }
0x1011   : > { %v2494_v18 = vmul.f32 %v5780_v44, %v2493_v57  ;;  %vm2516_vm11 = vcmp.eq.f32.partialorder %v2515_v17, 8.507059e+37  ;;  %v5433_v57 = vld [vmem:[%s7078_s14 + $0x20] sm:$0xff] }
0x1012   : > { %v2352_v56 = vadd.f32 %v5778_v31, %v2351_v52 }
0x1013   : > { %v2495_v62 = vadd.f32 %v5780_v44, %v2494_v18 }
0x1014   : > { %v2356_v16 = vsel %vm2355_vm13, %v5778_v31, %v2352_v56  ;;  %v5782_v4 = vpop.eup %5781  ;;  %v5436_v56 = vld [vmem:[%s7078_s14 + $0x38] sm:$0xff] }
0x1015   : > { %v2361_v1 = vsel %vm2358_vm14, %v2360_v11, %v2356_v16  ;;  %v2507_v61 = vmul.f32 %v5782_v4, %v2490_v42  ;;  %v2499_v2 = vsel %vm2498_vm4, %v5780_v44, %v2495_v62  ;;  %vm2512_vm8 = vweird.f32 %v5782_v4  ;;  %v5674_v42 = vld [vmem:[%s7087_s18] ss:$0 sm:$0xff]  ;;  %v5435_v11 = vld [vmem:[%s7078_s14 + $0x30] sm:$0xff]  ;;  %v5434_v16 = vld [vmem:[%s7078_s14 + $0x28] sm:$0xff]  ;;  %s7102_s14 = smov 80  }
0x1016   : > { %v2362_v59 = vmul.f32 %v5770_v22, %v2361_v1  ;;  %v2504_v10 = vsel %vm2501_vm7, %v2503_v6, %v2499_v2  ;;  %vm2513_vm10 = vmor %vm2511_vm9, %vm2512_vm8  ;;  %v5390_v22 = vld [vmem:[%s7073_s25 + $0x30] sm:$0xff] }
0x1017   : > { %v2508_v5 = vsub.f32 1.0, %v2507_v61  ;;  %v2522_v13 = vpop.permute.xlu0 %2521  ;;  %v2505_v15 = vmul.f32 %v6471_v23, %v2504_v10  ;;  %2420 = vmatpush.msra.mxu3 %v5390_v22  ;;  %v5391_v23 = vld [vmem:[%s7073_s25 + $0x38] sm:$0xff]  ;;  %s7108_s25 = sld [smem:[#allocation26_spill]] }
0x1018   : > { %5419 = vmatmul.msk.f32.gmra.mxu1 %vm1111_vm3, %v2362_v59 }
0x1019   : > { %v2509_v3 = vmul.f32 %v5782_v4, %v2508_v5  ;;  %2578 = vmatpush.msra.mxu1 %v5391_v23  ;;  %2686 = vmatpush.msrb.mxu3 %v5436_v56 }
0x101b   : > { %v2510_v8 = vadd.f32 %v5782_v4, %v2509_v3  ;;  %2687 = vmatpush.msrb.mxu3 %v5435_v11 }
0x101d   : > { %v2514_v19 = vsel %vm2513_vm10, %v5782_v4, %v2510_v8  ;;  %2688 = vmatpush.msrb.mxu3 %v5434_v16 }
0x101e   : > { %v2519_v58 = vsel %vm2516_vm11, %v2518_v20, %v2514_v19  ;;  %v5676_v20 = vld [vmem:[%s7080_s3 + $0x3] ss:$0 sm:$0xff] }
0x101f   : > { %v2520_v21 = vmul.f32 %v6476_v27, %v2519_v58  ;;  %2689 = vmatpush.msrb.mxu3 %v5433_v57 }
0x1025   : > { %v2524_v7 = vpop.permute.xlu1 %2523 }
0x1026   : > { %5426 = vmatpush.msk.msrb.mxu0 %vm1172_vm2, %v2524_v7 }
0x1028   : > { %2549 = vmatpush.msrb.mxu0 %v2522_v13  ;;  %v5675_v13 = vld [vmem:[%s7080_s3 + $0x2] ss:$0 sm:$0xff]  ;;  %s7097_s3 = smov 120  }
0x1029   : > { %5427 = vmatmul.msk.f32.vlgmr.msrb.gmra.mxu0 %vm1111_vm3, %v2505_v15 }
0x102a   : > { %2881 = vmatpush.msra.mxu0 %v2856_v28 }
0x102c   : > { %2882 = vmatpush.msra.mxu0 %v2855_v26 }
0x102e   : > { %2883 = vmatpush.msra.mxu0 %v2854_v30  ;;  %v5445_v30 = vld [vmem:[%s7074_s24 + $0x78] sm:$0xff] }
0x102f   : > { %2716 = vmatpush.msrb.mxu2 %v5445_v30 }
0x1030   : > { %2884 = vmatpush.msra.mxu0 %v2853_v32  ;;  %v5444_v32 = vld [vmem:[%s7074_s24 + $0x70] sm:$0xff] }
0x1031   : > { %5428 = vmatmul.msk.f32.gmra.mxu0 %vm1111_vm3, %v2520_v21  ;;  %2717 = vmatpush.msrb.mxu2 %v5444_v32 }
0x1039   : > { %5453 = vmatmul.msk.f32.vlgmr.msra.gmra.mxu0 %vm1032_vm0, %v6508_v33 }
0x108d   : > { %v2393_v24 = vpop.f32.mrf.mxu1 }
0x108e   : > { %5420 = vmatmul.msk.f32.vlgmr.msra.gmra.mxu3 %vm1072_vm1, %v2393_v24 }
0x1095   : > { %v2396_v9 = vpop.f32.mrf.mxu1 }
0x1096   : > { %5421 = vmatmul.msk.f32.gmra.mxu3 %vm1072_vm1, %v2396_v9 }
0x10a6   : > { %v2551_v25 = vpop.f32.mrf.mxu0 }
0x10a7   : > { %5429 = vmatmul.msk.f32.vlgmr.msra.gmra.mxu1 %vm1072_vm1, %v2551_v25 }
0x10ae   : > { %v2554_v27 = vpop.f32.mrf.mxu0 }
0x10af   : > { %5430 = vmatmul.msk.f32.gmra.mxu1 %vm1072_vm1, %v2554_v27 }
0x10b6   : > { %v2886_v43 = vpop.f32.mrf.mxu0 }
0x1111   : > { %v2422_v34 = vpop.f32.mrf.mxu3 }
0x1112   : > { %v2428_v35 = vadd.f32 %v2422_v34, %v6456_v48  ;;  %v6519_v48 = vadd.f32 %v5674_v42, %v2886_v43  ;;  %v5443_v34 = vld [vmem:[%s7074_s24 + $0x68] sm:$0xff] }
0x1113   : > { %2718 = vmatpush.msrb.mxu2 %v5443_v34 }
0x1119   : > { %v2425_v37 = vpop.f32.mrf.mxu3 }
0x111a   : > { %v2429_v31 = vadd.f32 %v2425_v37, %v6458_v55  ;;  %v5438_v37 = vld [vmem:[%s7074_s24 + $0x40] sm:$0xff] }
0x1124   : > { %v2580_v36 = vpop.f32.mrf.mxu1 }
0x1125   : > { %v2586_v29 = vadd.f32 %v2580_v36, %v2428_v35  ;;  %v5442_v35 = vld [vmem:[%s7074_s24 + $0x60] sm:$0xff]  ;;  %v5441_v36 = vld [vmem:[%s7074_s24 + $0x58] sm:$0xff] }
0x1126   : > { %2719 = vmatpush.msrb.mxu2 %v5442_v35 }
0x1127   : > { %v2591_v14 = vadd.f32 %v2586_v29, %v6318_v41  ;;  %v5440_v29 = vld [vmem:[%s7074_s24 + $0x50] sm:$0xff] }
0x1128   : > { %2720 = vmatpush.msrb.mxu2 %v5441_v36 }
0x1129   : > { %v2593_v38 = vsel %vm1032_vm0, %v2591_v14, 0.0 }
0x112a   : > { %2594 = vadd.xlane.f32.xlu2 %v2593_v38  ;;  %2721 = vmatpush.msrb.mxu2 %v5440_v29  ;;  %v2847_v38 = vlaneseq }
0x112c   : > { %v2583_v49 = vpop.f32.mrf.mxu1 }
0x112d   : > { %v2587_v39 = vadd.f32 %v2583_v49, %v2429_v31  ;;  %v2848_v31 = vshrl.u32 %v2847_v38, 7  ;;  %v2850_v49 = vand.u32 127, %v2847_v38 }
0x112f   : > { %v2592_v51 = vadd.f32 %v2587_v39, %v6322_v46  ;;  %vm2851_vm8 = vcmp.gt.s32.totalorder %v2850_v49, %v2848_v31 }
0x1131   : > { %v2596_v40 = vsel %vm1710_vm15, %v2592_v51, 0.0 }
0x1132   : > { %2597 = vadd.xlane.f32.xlu0 %v2596_v40 }
0x1146   : > { %2998 = vrot.lane.b32.xlu0 %v6519_v48, %s7026_s15  ;;  %s7094_s15 = sld [smem:[#allocation19_spill]] }
0x119d   : > { %v2595_v41 = vpop.xlane.xlu2 %2594 }
0x119e   : > { %v2599_v44 = vmul.f32 %v2595_v41, %v6276_v60 }
0x11a0   : > { %v2601_v55 = vsub.f32 %v2591_v14, %v2599_v44  ;;  %v5439_v14 = vld [vmem:[%s7074_s24 + $0x48] sm:$0xff]  ;;  %v5677_v44 = vld [vmem:[%s7076_s19 + $0x1] ss:$0 sm:$0xff]  ;;  %s7105_s19 = sld [smem:[#allocation25_spill]] }
0x11a1   : > { %2722 = vmatpush.msrb.mxu2 %v5439_v14  ;;  %s7107_s24 = sld [smem:[#allocation23_spill]] }
0x11a2   : > { %v2603_v45 = vmul.f32 %v2601_v55, %v2601_v55 }
0x11a3   : > { %2723 = vmatpush.msrb.mxu2 %v5438_v37 }
0x11a4   : > { %v2605_v46 = vsel %vm1032_vm0, %v2603_v45, 0.0 }
0x11a5   : > { %2606 = vadd.xlane.f32.xlu1 %v2605_v46  ;;  %v2598_v47 = vpop.xlane.xlu0 %2597 }
0x11a6   : > { %v2600_v50 = vmul.f32 %v2598_v47, %v6276_v60 }
0x11a8   : > { %v2602_v52 = vsub.f32 %v2592_v51, %v2600_v50  ;;  %v5926_v51 = vmov 0.0  }
0x11a9   : > { %v6560_v40 = vsel %vm2851_vm8, -1e+09, %v5926_v51 }
0x11aa   : > { %v2604_v53 = vmul.f32 %v2602_v52, %v2602_v52 }
0x11ac   : > { %v2608_v54 = vsel %vm1710_vm15, %v2604_v53, 0.0 }
0x11ad   : > { %2609 = vadd.xlane.f32.xlu2 %v2608_v54 }
0x11b8   : > { %v2999_v18 = vpop.permute.xlu0 %2998 }
0x11b9   : > { %5458 = vmatpush.xpose.msk.msra.mxu3 %vm1072_vm1, %v2999_v18 }
0x11be   : > { %2996 = vrot.lane.b32.xlu1 %v6519_v48, %s7028_s16  ;;  %s7095_s16 = sld [smem:[#allocation29_spill]] }
0x11c5   : > { %2894 = vrot.lane.b32.xlu2 %v6519_v48, %s7030_s10 }
0x1218   : > { %v2607_v1 = vpop.xlane.xlu1 %2606 }
0x1219   : > { %v2611_v4 = vmul.f32 %v2607_v1, %v6276_v60 }
0x121b   : > { %v2613_v59 = vadd.f32 1e-05, %v2611_v4 }
0x121d   : > { %5783 = vrsqrt.f32 %v2613_v59  ;;  %vm2621_vm14 = vweird.f32 %v2613_v59 }
0x1220   : > { %v2610_v61 = vpop.xlane.xlu2 %2609 }
0x1221   : > { %v2612_v62 = vmul.f32 %v2610_v61, %v6276_v60 }
0x1223   : > { %v5784_v5 = vpop.eup %5783  ;;  %v2614_v63 = vadd.f32 1e-05, %v2612_v62 }
0x1224   : > { %v2616_v0 = vmul.f32 %v5784_v5, %v2613_v59  ;;  %vm2622_vm13 = vweird.f32 %v5784_v5 }
0x1225   : > { %5785 = vrsqrt.f32 %v2614_v63  ;;  %vm2623_vm5 = vmor %vm2621_vm14, %vm2622_vm13  ;;  %vm2631_vm4 = vweird.f32 %v2614_v63 }
0x1226   : > { %v2617_v2 = vmul.f32 %v5784_v5, %v2616_v0 }
0x1228   : > { %v2618_v3 = vmul.f32 0.5, %v2617_v2  ;;  %v2895_v6 = vpop.permute.xlu2 %2894  ;;  %v2858_v2 = vld [vmem:[%s7088_s2] sm:$0xff] }
0x1229   : > { %5454 = vmatpush.xpose.msk.msrb.mxu1 %vm1072_vm1, %v2895_v6 }
0x122a   : > { %v2619_v10 = vsub.f32 1.5, %v2618_v3  ;;  %v2859_v3 = vld [vmem:[%s7088_s2 + $0x8] sm:$0xff] }
0x122b   : > { %v5786_v7 = vpop.eup %5785 }
0x122c   : > { %v2620_v8 = vmul.f32 %v5784_v5, %v2619_v10  ;;  %v2626_v12 = vmul.f32 %v5786_v7, %v2614_v63  ;;  %5455 = vmatmul.msk.f32.vlgmr.msrb.gmra.mxu1 %vm1072_vm1, %v6519_v48  ;;  %vm2632_vm6 = vweird.f32 %v5786_v7 }
0x122d   : > { %vm2633_vm7 = vmor %vm2631_vm4, %vm2632_vm6  ;;  %2990 = vmatpush.msra.mxu1 %v2858_v2 }
0x122e   : > { %v2624_v15 = vsel %vm2623_vm5, %v5784_v5, %v2620_v8  ;;  %v2627_v17 = vmul.f32 %v5786_v7, %v2626_v12 }
0x122f   : > { %v2635_v19 = vmul.f32 %v2624_v15, %v2601_v55 }
0x1230   : > { %v2628_v58 = vmul.f32 0.5, %v2627_v17  ;;  %v2997_v26 = vpop.permute.xlu1 %2996 }
0x1231   : > { %v2640_v21 = vmul.f32 %v5675_v13, %v2635_v19 }
0x1232   : > { %v2629_v22 = vsub.f32 1.5, %v2628_v58 }
0x1233   : > { %v6543_v23 = vadd.f32 %v5676_v20, %v2640_v21 }
0x1234   : > { %v2630_v24 = vmul.f32 %v5786_v7, %v2629_v22 }
0x1235   : > { %5447 = vmatmul.msk.f32.vlgmr.msrb.gmra.mxu3 %vm1032_vm0, %v6543_v23 }
0x1236   : > { %v2634_v9 = vsel %vm2633_vm7, %v5786_v7, %v2630_v24 }
0x1237   : > { %v2636_v25 = vmul.f32 %v2634_v9, %v2602_v52 }
0x1239   : > { %v2641_v27 = vmul.f32 %v5675_v13, %v2636_v25 }
0x123b   : > { %v6547_v28 = vadd.f32 %v5676_v20, %v2641_v27 }
0x123d   : > { %5448 = vmatmul.msk.f32.gmra.mxu3 %vm1032_vm0, %v6547_v28 }
0x1245   : > { %5459 = vmatmul.msk.f32.vlgmr.msra.gmra.mxu3 %vm1072_vm1, %v2997_v26 }
0x12a9   : > { %v2917_v39 = vpop.f32.mrf.mxu1 }
0x12aa   : > { %v2920_v42 = vmul.f32 0.35355338, %v2917_v39 }
0x12ac   : > { %v2921_v43 = vadd.f32 %v2920_v42, %v6560_v40 }
0x12ae   : > { %v2922_v41 = vsel %vm1072_vm1, %v2921_v43, -inf }
0x12af   : > { %2923 = vmax.xlane.f32.xlu0 %v2922_v41 }
0x12b8   : > { %v2691_v55 = vpop.f32.mrf.mxu3 }
0x12b9   : > { %v2692_v45 = vadd.f32 %v5677_v44, %v2691_v55 }
0x12bb   : > { %v2697_v46 = vmax.f32 %v2692_v45, 0.0 }
0x12bd   : > { %5449 = vmatmul.msk.f32.vlgmr.msrb.gmra.mxu2 %vm1820_vm12, %v2697_v46 }
0x12c0   : > { %v2694_v47 = vpop.f32.mrf.mxu3 }
0x12c1   : > { %v2695_v50 = vadd.f32 %v5677_v44, %v2694_v47 }
0x12c3   : > { %v2698_v52 = vmax.f32 %v2695_v50, 0.0 }
0x12c5   : > { %5450 = vmatmul.msk.f32.gmra.mxu2 %vm1820_vm12, %v2698_v52 }
0x12c8   : > { %v3021_v53 = vpop.f32.mrf.mxu3 }
0x12c9   : > { %v3024_v54 = vmul.f32 0.35355338, %v3021_v53 }
0x12cb   : > { %v3025_v56 = vadd.f32 %v3024_v54, %v6560_v40 }
0x12cd   : > { %v3026_v11 = vsel %vm1072_vm1, %v3025_v56, -inf }
0x12ce   : > { %3027 = vmax.xlane.f32.xlu1 %v3026_v11 }
0x12e7   : > { %2946 = vrot.lane.b32.xlu1 %v6519_v48, %s7019_s11  ;;  %s7090_s11 = smov 112  }
0x12ef   : > { %3206 = vrot.lane.b32.xlu1 %v6519_v48, %s7020_s23  ;;  %s7091_s23 = sld [smem:[#allocation17_spill]] }
0x12f5   : > { %v5679_v47 = vld [vmem:[%s7091_s23] ss:$0 sm:$0xff] }
0x1322   : > { %v2924_v16 = vpop.xlane.xlu0 %2923 }
0x1323   : > { %v2925_v57 = vsub.f32 %v2921_v43, %v2924_v16 }
0x1325   : > { %v2926_v1 = vmul.f32 1.442695, %v2925_v57 }
0x1327   : > { %5787 = vpow2.f32 %v2926_v1 }
0x132d   : > { %v5788_v4 = vpop.eup %5787 }
0x132e   : > { %v2928_v59 = vsel %vm1072_vm1, %v5788_v4, 0.0 }
0x132f   : > { %2929 = vadd.xlane.f32.xlu2 %v2928_v59 }
0x1340   : > { %v2725_v39 = vpop.f32.mrf.mxu2 }
0x1341   : > { %v3028_v18 = vpop.xlane.xlu1 %3027 }
0x1342   : > { %v3029_v61 = vsub.f32 %v3025_v56, %v3028_v18 }
0x1344   : > { %v3030_v62 = vmul.f32 1.442695, %v3029_v61 }
0x1346   : > { %5789 = vpow2.f32 %v3030_v62 }
0x1347   : > { %3102 = vrot.lane.b32.xlu2 %v6519_v48, %s7022_s22  ;;  %s7092_s22 = smov 40  }
0x1348   : > { %v2728_v51 = vpop.f32.mrf.mxu2 }
0x134c   : > { %v5790_v5 = vpop.eup %5789 }
0x134d   : > { %v3032_v63 = vsel %vm1072_vm1, %v5790_v5, 0.0 }
0x134e   : > { %3033 = vadd.xlane.f32.xlu0 %v3032_v63  ;;  %v5678_v63 = vld [vmem:[%s7071_s30 + $0x1] ss:$0 sm:$0xff]  ;;  %s7110_s30 = sld [smem:[#allocation24_spill]] }
0x134f   : > { %3204 = vrot.lane.b32.xlu2 %v6519_v48, %s7024_s26  ;;  %v2726_v2 = vadd.f32 %v5678_v63, %v2725_v39  ;;  %s7093_s26 = sld [smem:[#allocation18_spill]] }
0x1359   : > { %v2947_v0 = vpop.permute.xlu1 %2946 }
0x135a   : > { %2967 = vmatpush.msrb.mxu0 %v2947_v0 }
0x135c   : > { %3094 = vmatpush.msra.mxu0 %v2859_v3 }
0x1361   : > { %v3207_v24 = vpop.permute.xlu1 %3206 }
0x1362   : > { %3050 = vrot.lane.b32.xlu0 %v6519_v48, %s7089_s7 }
0x136a   : > { %3100 = vrot.lane.b32.xlu0 %v6519_v48, %s7090_s11 }
0x13a2   : > { %v2930_v6 = vpop.xlane.xlu2 %2929 }
0x13a3   : > { %5791 = vrcp.f32 %v2930_v6  ;;  %v2942_v13 = vand.u32 2147483648, %v2930_v6  ;;  %v2940_v17 = vand.u32 2147483647, %v2930_v6  ;;  %vm2936_vm10 = vweird.f32 %v2930_v6 }
0x13a5   : > { %v2943_v20 = vor.u32 1.1754944e-38, %v2942_v13  ;;  %vm2941_vm13 = vcmp.eq.f32.partialorder %v2940_v17, 8.507059e+37 }
0x13a9   : > { %v5792_v10 = vpop.eup %5791 }
0x13aa   : > { %v2932_v7 = vmul.f32 %v5792_v10, %v2930_v6  ;;  %v3103_v8 = vpop.permute.xlu2 %3102  ;;  %vm2937_vm9 = vweird.f32 %v5792_v10  ;;  %v2734_v6 = vadd.f32 %v2726_v2, %v6543_v23 }
0x13ab   : > { %5462 = vmatpush.xpose.msk.msrb.mxu1 %vm1072_vm1, %v3103_v8  ;;  %vm2938_vm11 = vmor %vm2936_vm10, %vm2937_vm9 }
0x13ac   : > { %v2933_v12 = vsub.f32 1.0, %v2932_v7  ;;  %v2736_v7 = vsel %vm1032_vm0, %v2734_v6, 0.0 }
0x13ae   : > { %v2934_v15 = vmul.f32 %v5792_v10, %v2933_v12 }
0x13b0   : > { %v2935_v19 = vadd.f32 %v5792_v10, %v2934_v15 }
0x13b2   : > { %v2939_v58 = vsel %vm2938_vm11, %v5792_v10, %v2935_v19  ;;  %v3205_v43 = vpop.permute.xlu2 %3204  ;;  %v2729_v10 = vadd.f32 %v5678_v63, %v2728_v51 }
0x13b3   : > { %v2944_v21 = vsel %vm2941_vm13, %v2943_v20, %v2939_v58 }
0x13b4   : > { %v2945_v22 = vmul.f32 %v5788_v4, %v2944_v21  ;;  %v2735_v12 = vadd.f32 %v2729_v10, %v6547_v28 }
0x13b6   : > { %5456 = vmatmul.msk.f32.vlgmr.msrb.gmra.mxu0 %vm1072_vm1, %v2945_v22 }
0x13b7   : > { %5466 = vmatpush.xpose.msk.msrb.mxu0 %vm1072_vm1, %v3207_v24 }
0x13c1   : > { %v3034_v9 = vpop.xlane.xlu0 %3033 }
0x13c2   : > { %5793 = vrcp.f32 %v3034_v9  ;;  %v3046_v30 = vand.u32 2147483648, %v3034_v9  ;;  %v3044_v34 = vand.u32 2147483647, %v3034_v9  ;;  %vm3040_vm5 = vweird.f32 %v3034_v9 }
0x13c4   : > { %v3047_v36 = vor.u32 1.1754944e-38, %v3046_v30  ;;  %vm3045_vm4 = vcmp.eq.f32.partialorder %v3044_v34, 8.507059e+37 }
0x13c8   : > { %v5794_v25 = vpop.eup %5793 }
0x13c9   : > { %v3036_v27 = vmul.f32 %v5794_v25, %v3034_v9  ;;  %vm3041_vm14 = vweird.f32 %v5794_v25 }
0x13ca   : > { %vm3042_vm6 = vmor %vm3040_vm5, %vm3041_vm14 }
0x13cb   : > { %v3037_v26 = vsub.f32 1.0, %v3036_v27 }
0x13cd   : > { %v3038_v32 = vmul.f32 %v5794_v25, %v3037_v26 }
0x13cf   : > { %v3039_v35 = vadd.f32 %v5794_v25, %v3038_v32 }
0x13d1   : > { %v3043_v29 = vsel %vm3042_vm6, %v5794_v25, %v3039_v35 }
0x13d2   : > { %v3048_v14 = vsel %vm3045_vm4, %v3047_v36, %v3043_v29 }
0x13d3   : > { %v3049_v37 = vmul.f32 %v5790_v5, %v3048_v14 }
0x13d4   : > { %v3051_v38 = vpop.permute.xlu0 %3050 }
0x13d5   : > { %3071 = vmatpush.msra.mxu2 %v3051_v38 }
0x13d6   : > { %5460 = vmatmul.msk.f32.vlgmr.msra.gmra.mxu2 %vm1072_vm1, %v3049_v37 }
0x13dc   : > { %v3101_v49 = vpop.permute.xlu0 %3100 }
0x1433   : > { %v2969_v31 = vpop.f32.mrf.mxu0 }
0x1434   : > { %5457 = vmatmul.msk.f32.vlgmr.msra.gmra.mxu1 %vm1072_vm1, %v2969_v31 }
0x143c   : > { %5463 = vmatmul.msk.f32.vlgmr.msrb.gmra.mxu1 %vm1072_vm1, %v3101_v49 }
0x1459   : > { %v3073_v42 = vpop.f32.mrf.mxu2 }
0x145a   : > { %5461 = vmatmul.msk.f32.vlgmr.msra.gmra.mxu0 %vm1072_vm1, %v3073_v42 }
0x1462   : > { %5467 = vmatmul.msk.f32.vlgmr.msrb.gmra.mxu0 %vm1072_vm1, %v3205_v43 }
0x14b1   : > { %v2992_v41 = vpop.f32.mrf.mxu1 }
0x14b2   : > { %v2995_v50 = vadd.f32 %v5679_v47, %v2992_v41  ;;  %v2860_v47 = vld [vmem:[%s7088_s2 + $0x10] sm:$0xff] }
0x14b3   : > { %3198 = vmatpush.msrb.mxu2 %v2860_v47 }
0x14b9   : > { %v3125_v44 = vpop.f32.mrf.mxu1 }
0x14ba   : > { %v3128_v55 = vmul.f32 0.35355338, %v3125_v44 }
0x14bc   : > { %v3129_v45 = vadd.f32 %v3128_v55, %v6560_v40 }
0x14be   : > { %v3130_v46 = vsel %vm1072_vm1, %v3129_v45, -inf }
0x14bf   : > { %3131 = vmax.xlane.f32.xlu0 %v3130_v46 }
0x14d7   : > { %v3096_v52 = vpop.f32.mrf.mxu0 }
0x14d8   : > { %v6596_v53 = vadd.f32 %v3096_v52, %v2995_v50  ;;  %v2861_v52 = vld [vmem:[%s7088_s2 + $0x18] sm:$0xff] }
0x14df   : > { %v3229_v54 = vpop.f32.mrf.mxu0 }
0x14e0   : > { %v3232_v56 = vmul.f32 0.35355338, %v3229_v54 }
0x14e2   : > { %v3233_v11 = vadd.f32 %v3232_v56, %v6560_v40 }
0x14e4   : > { %v3234_v16 = vsel %vm1072_vm1, %v3233_v11, -inf }
0x14e5   : > { %3235 = vmax.xlane.f32.xlu1 %v3234_v16 }
0x14fe   : > { %3154 = vrot.lane.b32.xlu1 %v6519_v48, %s7085_s0 }
0x1532   : > { %v3132_v57 = vpop.xlane.xlu0 %3131 }
0x1533   : > { %v3133_v1 = vsub.f32 %v3129_v45, %v3132_v57 }
0x1535   : > { %v3134_v4 = vmul.f32 1.442695, %v3133_v1 }
0x1537   : > { %5795 = vpow2.f32 %v3134_v4 }
0x153d   : > { %v5796_v59 = vpop.eup %5795 }
0x153e   : > { %v3136_v18 = vsel %vm1072_vm1, %v5796_v59, 0.0 }
0x153f   : > { %3137 = vadd.xlane.f32.xlu2 %v3136_v18 }
0x1557   : > { %3258 = vrot.lane.b32.xlu2 %v6519_v48, %s7092_s22  ;;  %v2739_v48 = vsel %vm1710_vm15, %v2735_v12, 0.0 }
0x1558   : > { %v3236_v61 = vpop.xlane.xlu1 %3235 }
0x1559   : > { %v3237_v62 = vsub.f32 %v3233_v11, %v3236_v61 }
0x155b   : > { %v3238_v5 = vmul.f32 1.442695, %v3237_v62 }
0x155d   : > { %5797 = vpow2.f32 %v3238_v5 }
0x1563   : > { %v5798_v0 = vpop.eup %5797 }
0x1564   : > { %v3240_v3 = vsel %vm1072_vm1, %v5798_v0, 0.0 }
0x1565   : > { %3241 = vadd.xlane.f32.xlu0 %v3240_v3  ;;  %v5680_v3 = vld [vmem:[%s7079_s8 + $0x2] ss:$0 sm:$0xff] }
0x156d   : > { %2737 = vadd.xlane.f32.xlu0 %v2736_v7 }
0x1570   : > { %v3155_v8 = vpop.permute.xlu1 %3154 }
0x1571   : > { %3175 = vmatpush.msrb.mxu3 %v3155_v8  ;;  %v5681_v8 = vld [vmem:[%s7079_s8 + $0x3] ss:$0 sm:$0xff]  ;;  %s7099_s8 = smov 88  }
0x1573   : > { %3302 = vmatpush.msra.mxu3 %v2861_v52 }
0x1575   : > { %2740 = vadd.xlane.f32.xlu0 %v2739_v48 }
0x15b2   : > { %v3138_v13 = vpop.xlane.xlu2 %3137 }
0x15b3   : > { %5799 = vrcp.f32 %v3138_v13  ;;  %v3150_v58 = vand.u32 2147483648, %v3138_v13  ;;  %v3148_v21 = vand.u32 2147483647, %v3138_v13  ;;  %vm3144_vm8 = vweird.f32 %v3138_v13 }
0x15b5   : > { %v3151_v24 = vor.u32 1.1754944e-38, %v3150_v58  ;;  %vm3149_vm10 = vcmp.eq.f32.partialorder %v3148_v21, 8.507059e+37 }
0x15b9   : > { %v5800_v15 = vpop.eup %5799 }
0x15ba   : > { %v3140_v17 = vmul.f32 %v5800_v15, %v3138_v13  ;;  %v3259_v19 = vpop.permute.xlu2 %3258  ;;  %vm3145_vm7 = vweird.f32 %v5800_v15 }
0x15bb   : > { %3279 = vmatpush.msra.mxu1 %v3259_v19  ;;  %vm3146_vm9 = vmor %vm3144_vm8, %vm3145_vm7 }
0x15bc   : > { %v3141_v20 = vsub.f32 1.0, %v3140_v17 }
0x15be   : > { %v3142_v23 = vmul.f32 %v5800_v15, %v3141_v20 }
0x15c0   : > { %v3143_v22 = vadd.f32 %v5800_v15, %v3142_v23 }
0x15c2   : > { %v3147_v28 = vsel %vm3146_vm9, %v5800_v15, %v3143_v22 }
0x15c3   : > { %v3152_v9 = vsel %vm3149_vm10, %v3151_v24, %v3147_v28  ;;  %v3341_v24 = vld [vmem:[%s7093_s26] sm:$0xff]  ;;  %v3342_v28 = vld [vmem:[%s7093_s26 + $0x8] sm:$0xff] }
0x15c4   : > { %v3153_v25 = vmul.f32 %v5796_v59, %v3152_v9  ;;  %v3343_v9 = vld [vmem:[%s7093_s26 + $0x10] sm:$0xff] }
0x15c6   : > { %5464 = vmatmul.msk.f32.vlgmr.msrb.gmra.mxu3 %vm1072_vm1, %v3153_v25  ;;  %v5648_v25 = vpack.i.bf16 %v3341_v24, %v3342_v28 }
0x15d8   : > { %v3242_v27 = vpop.xlane.xlu0 %3241 }
0x15d9   : > { %5801 = vrcp.f32 %v3242_v27  ;;  %v3254_v36 = vand.u32 2147483648, %v3242_v27  ;;  %v3252_v37 = vand.u32 2147483647, %v3242_v27  ;;  %vm3248_vm13 = vweird.f32 %v3242_v27 }
0x15db   : > { %v3255_v49 = vor.u32 1.1754944e-38, %v3254_v36  ;;  %vm3253_vm5 = vcmp.eq.f32.partialorder %v3252_v37, 8.507059e+37 }
0x15df   : > { %v5802_v26 = vpop.eup %5801 }
0x15e0   : > { %v3244_v30 = vmul.f32 %v5802_v26, %v3242_v27  ;;  %v2738_v32 = vpop.xlane.xlu0 %2737  ;;  %vm3249_vm11 = vweird.f32 %v5802_v26  ;;  %v3344_v27 = vld [vmem:[%s7093_s26 + $0x18] sm:$0xff] }
0x15e1   : > { %v2742_v34 = vmul.f32 %v2738_v32, %v6276_v60  ;;  %vm3250_vm14 = vmor %vm3248_vm13, %vm3249_vm11  ;;  %3369 = vmatpush.msra.mxu2 %v3344_v27 }
0x15e2   : > { %v3245_v35 = vsub.f32 1.0, %v3244_v30 }
0x15e3   : > { %v2744_v29 = vsub.f32 %v2734_v6, %v2742_v34  ;;  %3370 = vmatpush.msra.mxu2 %v3343_v9 }
0x15e4   : > { %v3246_v14 = vmul.f32 %v5802_v26, %v3245_v35 }
0x15e5   : > { %v2746_v38 = vmul.f32 %v2744_v29, %v2744_v29  ;;  %3371 = vmatpush.msra.mxu2 %v3342_v28 }
0x15e6   : > { %v3247_v31 = vadd.f32 %v5802_v26, %v3246_v14 }
0x15e7   : > { %v2748_v39 = vsel %vm1032_vm0, %v2746_v38, 0.0  ;;  %3372 = vmatpush.msra.mxu2 %v3341_v24 }
0x15e8   : > { %v3251_v51 = vsel %vm3250_vm14, %v5802_v26, %v3247_v31  ;;  %2749 = vadd.xlane.f32.xlu0 %v2748_v39  ;;  %v2741_v42 = vpop.xlane.xlu0 %2740  ;;  %v5643_v26 = vpack.i.bf16 %v3343_v9, %v3344_v27 }
0x15e9   : > { %v3256_v43 = vsel %vm3253_vm5, %v3255_v49, %v3251_v51  ;;  %v2743_v41 = vmul.f32 %v2741_v42, %v6276_v60 }
0x15ea   : > { %v3257_v44 = vmul.f32 %v5798_v0, %v3256_v43 }
0x15eb   : > { %v2745_v55 = vsub.f32 %v2735_v12, %v2743_v41 }
0x15ec   : > { %5468 = vmatmul.msk.f32.vlgmr.msra.gmra.mxu1 %vm1072_vm1, %v3257_v44 }
0x15ed   : > { %v2747_v45 = vmul.f32 %v2745_v55, %v2745_v55 }
0x15ef   : > { %v2751_v46 = vsel %vm1710_vm15, %v2747_v45, 0.0 }
0x15f0   : > { %2752 = vadd.xlane.f32.xlu2 %v2751_v46 }
0x1608   : > { %5644 = vrot.lane.b32.xlu2 %v5643_v26, %s7030_s10 }
0x1649   : > { %v3177_v50 = vpop.f32.mrf.mxu3 }
0x164a   : > { %5465 = vmatmul.msk.f32.vlgmr.msrb.gmra.mxu2 %vm1072_vm1, %v3177_v50 }
0x165b   : > { %v2750_v54 = vpop.xlane.xlu0 %2749 }
0x165c   : > { %v2754_v56 = vmul.f32 %v2750_v54, %v6276_v60 }
0x165e   : > { %v2756_v11 = vadd.f32 1e-05, %v2754_v56 }
0x1660   : > { %5803 = vrsqrt.f32 %v2756_v11  ;;  %vm2764_vm4 = vweird.f32 %v2756_v11 }
0x1663   : > { %v2753_v16 = vpop.xlane.xlu2 %2752 }
0x1664   : > { %v2755_v57 = vmul.f32 %v2753_v16, %v6276_v60 }
0x1666   : > { %v5804_v1 = vpop.eup %5803  ;;  %v2757_v4 = vadd.f32 1e-05, %v2755_v57 }
0x1667   : > { %v2759_v59 = vmul.f32 %v5804_v1, %v2756_v11  ;;  %vm2765_vm6 = vweird.f32 %v5804_v1 }
0x1668   : > { %5805 = vrsqrt.f32 %v2757_v4  ;;  %vm2766_vm7 = vmor %vm2764_vm4, %vm2765_vm6  ;;  %vm2774_vm9 = vweird.f32 %v2757_v4 }
0x1669   : > { %v2760_v18 = vmul.f32 %v5804_v1, %v2759_v59  ;;  %v3281_v61 = vpop.f32.mrf.mxu1 }
0x166a   : > { %5469 = vmatmul.msk.f32.vlgmr.msra.gmra.mxu3 %vm1072_vm1, %v3281_v61 }
0x166b   : > { %v2761_v62 = vmul.f32 0.5, %v2760_v18  ;;  %v5645_v41 = vpop.permute.xlu2 %5644 }
0x166c   : > { %v5646_v44 = vunpack.i.l.bf16 %v5645_v41 }
0x166d   : > { %v2762_v5 = vsub.f32 1.5, %v2761_v62 }
0x166e   : > { %v5806_v63 = vpop.eup %5805  ;;  %3414 = vmatpush.msra.mxu0 %v5646_v44 }
0x166f   : > { %v2763_v0 = vmul.f32 %v5804_v1, %v2762_v5  ;;  %v2769_v2 = vmul.f32 %v5806_v63, %v2757_v4  ;;  %vm2775_vm8 = vweird.f32 %v5806_v63 }
0x1670   : > { %vm2776_vm10 = vmor %vm2774_vm9, %vm2775_vm8 }
0x1671   : > { %v2770_v6 = vmul.f32 %v5806_v63, %v2769_v2  ;;  %v2767_v10 = vsel %vm2766_vm7, %v5804_v1, %v2763_v0 }
0x1672   : > { %v2778_v7 = vmul.f32 %v2767_v10, %v2744_v29  ;;  %v5682_v10 = vld [vmem:[%s7095_s16] ss:$0 sm:$0xff] }
0x1673   : > { %v2771_v12 = vmul.f32 0.5, %v2770_v6 }
0x1674   : > { %v2783_v48 = vmul.f32 %v5680_v3, %v2778_v7 }
0x1675   : > { %v2772_v13 = vsub.f32 1.5, %v2771_v12 }
0x1676   : > { %v2788_v15 = vadd.f32 %v5681_v8, %v2783_v48  ;;  %v5683_v48 = vld [vmem:[%s7095_s16 + $0x1] ss:$0 sm:$0xff]  ;;  %s7103_s16 = smov 72  }
0x1677   : > { %v2773_v17 = vmul.f32 %v5806_v63, %v2772_v13 }
0x1678   : > { %v2792_v19 = vsel %vm1032_vm0, %v2788_v15, 0.0 }
0x1679   : > { %2793 = vadd.xlane.f32.xlu1 %v2792_v19  ;;  %v2777_v20 = vsel %vm2776_vm10, %v5806_v63, %v2773_v17  ;;  %v5684_v63 = vld [vmem:[%s7094_s15] ss:$0 sm:$0xff] }
0x167a   : > { %v2779_v58 = vmul.f32 %v2777_v20, %v2745_v55  ;;  %v5647_v55 = vunpack.i.h.bf16 %v5645_v41 }
0x167c   : > { %v2784_v23 = vmul.f32 %v5680_v3, %v2779_v58  ;;  %3415 = vmatpush.msra.mxu0 %v5647_v55 }
0x167e   : > { %v2789_v21 = vadd.f32 %v5681_v8, %v2784_v23 }
0x1680   : > { %v2795_v22 = vsel %vm1710_vm15, %v2789_v21, 0.0 }
0x1681   : > { %2796 = vadd.xlane.f32.xlu0 %v2795_v22 }
0x1692   : > { %5649 = vrot.lane.b32.xlu1 %v5648_v25, %s7030_s10 }
0x16cd   : > { %v3200_v30 = vpop.f32.mrf.mxu2 }
0x16ce   : > { %v3203_v32 = vadd.f32 %v3200_v30, %v6596_v53 }
0x16ec   : > { %v2794_v34 = vpop.xlane.xlu1 %2793 }
0x16ed   : > { %v3304_v35 = vpop.f32.mrf.mxu3  ;;  %v2798_v36 = vmul.f32 %v2794_v34, %v6276_v60 }
0x16ee   : > { %v3307_v29 = vadd.f32 %v3304_v35, %v3203_v32 }
0x16ef   : > { %v2800_v37 = vsub.f32 %v2788_v15, %v2798_v36 }
0x16f0   : > { %v3310_v14 = vadd.f32 %v3307_v29, %v6508_v33 }
0x16f1   : > { %v2802_v39 = vmul.f32 %v2800_v37, %v2800_v37 }
0x16f2   : > { %v3311_v38 = vsel %vm1032_vm0, %v3310_v14, 0.0 }
0x16f3   : > { %3312 = vadd.xlane.f32.xlu0 %v3311_v38  ;;  %v2804_v42 = vsel %vm1032_vm0, %v2802_v39, 0.0 }
0x16f4   : > { %v2797_v31 = vpop.xlane.xlu0 %2796 }
0x16f5   : > { %v2799_v49 = vmul.f32 %v2797_v31, %v6276_v60 }
0x16f7   : > { %v2801_v51 = vsub.f32 %v2789_v21, %v2799_v49 }
0x16f9   : > { %v2803_v53 = vmul.f32 %v2801_v51, %v2801_v51 }
0x16fb   : > { %2805 = vadd.xlane.f32.xlu0 %v2804_v42  ;;  %v2807_v43 = vsel %vm1710_vm15, %v2803_v53, 0.0 }
0x1703   : > { %2808 = vadd.xlane.f32.xlu0 %v2807_v43 }
0x1704   : > { %v5650_v45 = vpop.permute.xlu1 %5649 }
0x1705   : > { %v5651_v47 = vunpack.i.l.bf16 %v5650_v45  ;;  %v5652_v52 = vunpack.i.h.bf16 %v5650_v45 }
0x1707   : > { %3416 = vmatpush.msra.mxu0 %v5651_v47 }
0x1709   : > { %3417 = vmatpush.msra.mxu0 %v5652_v52 }
0x1766   : > { %v3313_v33 = vpop.xlane.xlu0 %3312 }
0x1767   : > { %v3314_v46 = vmul.f32 %v3313_v33, %v6276_v60 }
0x1769   : > { %v6641_v50 = vsub.f32 %v3310_v14, %v3314_v46 }
0x176b   : > { %v3316_v54 = vmul.f32 %v6641_v50, %v6641_v50 }
0x176d   : > { %v3317_v56 = vsel %vm1032_vm0, %v3316_v54, 0.0 }
0x176e   : > { %3318 = vadd.xlane.f32.xlu0 %v3317_v56  ;;  %v2806_v11 = vpop.xlane.xlu0 %2805 }
0x176f   : > { %v2810_v16 = vmul.f32 %v2806_v11, %v6276_v60 }
0x1771   : > { %v2812_v57 = vadd.f32 1e-05, %v2810_v16 }
0x1773   : > { %5807 = vrsqrt.f32 %v2812_v57  ;;  %vm2820_vm11 = vweird.f32 %v2812_v57 }
0x1776   : > { %v2809_v1 = vpop.xlane.xlu0 %2808 }
0x1777   : > { %v2811_v4 = vmul.f32 %v2809_v1, %v6276_v60 }
0x1779   : > { %v5808_v59 = vpop.eup %5807  ;;  %v2813_v18 = vadd.f32 1e-05, %v2811_v4 }
0x177a   : > { %v2815_v61 = vmul.f32 %v5808_v59, %v2812_v57  ;;  %vm2821_vm15 = vweird.f32 %v5808_v59 }
0x177b   : > { %5809 = vrsqrt.f32 %v2813_v18  ;;  %vm2822_vm13 = vmor %vm2820_vm11, %vm2821_vm15  ;;  %vm2830_vm5 = vweird.f32 %v2813_v18 }
0x177c   : > { %v2816_v62 = vmul.f32 %v5808_v59, %v2815_v61 }
0x177e   : > { %v2817_v5 = vmul.f32 0.5, %v2816_v62 }
0x1780   : > { %v2818_v0 = vsub.f32 1.5, %v2817_v5 }
0x1781   : > { %v5810_v2 = vpop.eup %5809 }
0x1782   : > { %v2819_v3 = vmul.f32 %v5808_v59, %v2818_v0  ;;  %v2825_v6 = vmul.f32 %v5810_v2, %v2813_v18  ;;  %3393 = vrot.lane.b32.xlu0 %v5684_v63, %s7030_s10  ;;  %vm2831_vm14 = vweird.f32 %v5810_v2  ;;  %s7096_s10 = sld [smem:[#allocation22_spill]] }
0x1783   : > { %vm2832_vm6 = vmor %vm2830_vm5, %vm2831_vm14 }
0x1784   : > { %v2823_v7 = vsel %vm2822_vm13, %v5808_v59, %v2819_v3  ;;  %v2826_v8 = vmul.f32 %v5810_v2, %v2825_v6 }
0x1785   : > { %v2834_v12 = vmul.f32 %v2823_v7, %v2800_v37 }
0x1786   : > { %v2827_v13 = vmul.f32 0.5, %v2826_v8 }
0x1787   : > { %v2839_v15 = vmul.f32 %v5682_v10, %v2834_v12 }
0x1788   : > { %v2828_v17 = vsub.f32 1.5, %v2827_v13  ;;  %v5685_v35 = vld [vmem:[%s7096_s10] ss:$0 sm:$0xff]  ;;  %v5686_v14 = vld [vmem:[%s7096_s10 + $0x1] ss:$0 sm:$0xff] }
0x1789   : > { %v6652_v19 = vadd.f32 %v5683_v48, %v2839_v15 }
0x178a   : > { %v2829_v20 = vmul.f32 %v5810_v2, %v2828_v17 }
0x178b   : > { %5471 = vmatmul.msk.f32.vlgmr.msra.gmra.mxu0 %vm1032_vm0, %v6652_v19 }
0x178c   : > { %v2833_v58 = vsel %vm2832_vm6, %v5810_v2, %v2829_v20  ;;  %v3346_v20 = vld [vmem:[%s7101_s13] sm:$0xff] }
0x178d   : > { %v2835_v23 = vmul.f32 %v2833_v58, %v2801_v51  ;;  %3531 = vmatpush.msrb.mxu2 %v3346_v20 }
0x178f   : > { %v2840_v21 = vmul.f32 %v5682_v10, %v2835_v23 }
0x1791   : > { %v6656_v22 = vadd.f32 %v5683_v48, %v2840_v21 }
0x1793   : > { %5472 = vmatmul.msk.f32.gmra.mxu0 %vm1032_vm0, %v6656_v22 }
0x17e1   : > { %v3319_v24 = vpop.xlane.xlu0 %3318 }
0x17e2   : > { %v3320_v28 = vmul.f32 %v3319_v24, %v6276_v60  ;;  %v3347_v24 = vld [vmem:[%s7101_s13 + $0x8] sm:$0xff] }
0x17e4   : > { %v3321_v9 = vadd.f32 1e-05, %v3320_v28 }
0x17e6   : > { %5811 = vrsqrt.f32 %v3321_v9  ;;  %vm3328_vm7 = vweird.f32 %v3321_v9 }
0x17ec   : > { %v5812_v25 = vpop.eup %5811 }
0x17ed   : > { %v3323_v27 = vmul.f32 %v5812_v25, %v3321_v9  ;;  %vm3329_vm4 = vweird.f32 %v5812_v25 }
0x17ee   : > { %vm3330_vm8 = vmor %vm3328_vm7, %vm3329_vm4 }
0x17ef   : > { %v3324_v26 = vmul.f32 %v5812_v25, %v3323_v27 }
0x17f1   : > { %v3325_v30 = vmul.f32 0.5, %v3324_v26 }
0x17f3   : > { %v3326_v32 = vsub.f32 1.5, %v3325_v30 }
0x17f4   : > { %v3394_v31 = vpop.permute.xlu0 %3393 }
0x17f5   : > { %v3327_v34 = vmul.f32 %v5812_v25, %v3326_v32 }
0x17f7   : > { %v3331_v36 = vsel %vm3330_vm8, %v5812_v25, %v3327_v34 }
0x17f8   : > { %v3332_v29 = vmul.f32 %v3331_v36, %v6641_v50 }
0x17fa   : > { %v3336_v37 = vmul.f32 %v5685_v35, %v3332_v29 }
0x17fc   : > { %v6664_v38 = vadd.f32 %v5686_v14, %v3336_v37 }
0x17fe   : > { %5470 = vmatmul.msk.f32.vlgmr.msra.gmra.mxu2 %vm1032_vm0, %v6664_v38 }
0x17ff   : > { %3642 = vmatpush.msra.mxu2 %v3347_v24 }
0x1808   : > { %v3419_v49 = vpop.f32.mrf.mxu0 }
0x1809   : > { %v6668_v39 = vadd.f32 %v3419_v49, %v3394_v31 }
0x180b   : > { %3539 = vrot.lane.b32.xlu2 %v6668_v39, %s7097_s3 }
0x1810   : > { %v3422_v51 = vpop.f32.mrf.mxu0 }
0x1811   : > { %v6672_v42 = vadd.f32 %v3422_v51, %v3394_v31 }
0x1813   : > { %3541 = vrot.lane.b32.xlu0 %v6672_v42, %s7097_s3  ;;  %5473 = vmatpush.xpose.msk.msrb.mxu1 %vm1072_vm1, %v6672_v42 }
0x1817   : > { %5474 = vmatpush.xpose.msk.msrb.mxu1 %vm1072_vm1, %v6668_v39 }
0x1865   : > { %v3540_v44 = vpop.permute.xlu2 %3539 }
0x1881   : > { %v3374_v53 = vpop.f32.mrf.mxu2 }
0x1882   : > { %v3375_v43 = vadd.f32 %v5684_v63, %v3374_v53 }
0x1884   : > { %3537 = vrot.lane.b32.xlu1 %v3375_v43, %s7097_s3  ;;  %5475 = vmatmul.msk.f32.vlgmr.msrb.gmra.mxu1 %vm1072_vm1, %v3375_v43 }
0x1885   : > { %v3542_v41 = vpop.permute.xlu0 %3541 }
0x1886   : > { %5479 = vmatpush.xpose.msk.msra.mxu1 %vm1072_vm1, %v3542_v41 }
0x188a   : > { %5480 = vmatpush.xpose.msk.msra.mxu1 %vm1072_vm1, %v3540_v44 }
0x18f6   : > { %v3538_v55 = vpop.permute.xlu1 %3537 }
0x18f7   : > { %5481 = vmatmul.msk.f32.vlgmr.msra.gmra.mxu1 %vm1072_vm1, %v3538_v55 }
0x1901   : > { %v3455_v33 = vpop.f32.mrf.mxu1 }
0x1902   : > { %v3458_v45 = vmul.f32 0.35355338, %v3455_v33 }
0x1904   : > { %v3459_v46 = vsel %vm1111_vm3, %v3458_v45, -inf }
0x1905   : > { %3460 = vmax.xlane.f32.xlu0 %v3459_v46 }
0x1974   : > { %v3566_v47 = vpop.f32.mrf.mxu1 }
0x1975   : > { %v3569_v50 = vmul.f32 0.35355338, %v3566_v47 }
0x1977   : > { %v3570_v52 = vsel %vm1111_vm3, %v3569_v50, -inf }
0x1978   : > { %3571 = vmax.xlane.f32.xlu2 %v3570_v52  ;;  %v3461_v54 = vpop.xlane.xlu0 %3460 }
0x1979   : > { %v3462_v56 = vsub.f32 %v3458_v45, %v3461_v54 }
0x197b   : > { %v3463_v11 = vmul.f32 1.442695, %v3462_v56 }
0x197d   : > { %5813 = vpow2.f32 %v3463_v11 }
0x1983   : > { %v5814_v16 = vpop.eup %5813 }
0x1984   : > { %v3465_v57 = vsel %vm1111_vm3, %v5814_v16, 0.0 }
0x1985   : > { %3466 = vadd.xlane.f32.xlu1 %v3465_v57 }
0x1990   : > { %3485 = vrot.lane.b32.xlu2 %v6672_v42, %s7098_s5 }
0x1998   : > { %3594 = vrot.lane.b32.xlu2 %v6668_v39, %s7099_s8 }
0x199e   : > { %3483 = vrot.lane.b32.xlu1 %v6668_v39, %s7098_s5 }
0x19a0   : > { %3650 = vrot.lane.b32.xlu2 %v6668_v39, %s7090_s11 }
0x19a6   : > { %3763 = vrot.lane.b32.xlu1 %v6672_v42, %s7100_s9 }
0x19a8   : > { %3759 = vrot.lane.b32.xlu2 %v3375_v43, %s7100_s9 }
0x19ae   : > { %3648 = vrot.lane.b32.xlu1 %v3375_v43, %s7090_s11 }
0x19eb   : > { %v3572_v1 = vpop.xlane.xlu2 %3571 }
0x19ec   : > { %v3573_v4 = vsub.f32 %v3569_v50, %v3572_v1 }
0x19ee   : > { %v3574_v59 = vmul.f32 1.442695, %v3573_v4 }
0x19f0   : > { %5815 = vpow2.f32 %v3574_v59 }
0x19f3   : > { %v3486_v18 = vpop.permute.xlu2 %3485 }
0x19f4   : > { %5476 = vmatpush.msk.msrb.mxu3 %vm1172_vm2, %v3486_v18 }
0x19f6   : > { %v5816_v61 = vpop.eup %5815 }
0x19f7   : > { %v3576_v62 = vsel %vm1111_vm3, %v5816_v61, 0.0 }
0x19f8   : > { %3577 = vadd.xlane.f32.xlu0 %v3576_v62  ;;  %v3467_v5 = vpop.xlane.xlu1 %3466 }
0x19f9   : > { %5817 = vrcp.f32 %v3467_v5  ;;  %v3479_v10 = vand.u32 2147483648, %v3467_v5  ;;  %vm3473_vm10 = vweird.f32 %v3467_v5  ;;  %v3477_v7 = vand.u32 2147483647, %v3467_v5 }
0x19fb   : > { %v3480_v12 = vor.u32 1.1754944e-38, %v3479_v10  ;;  %vm3478_vm11 = vcmp.eq.f32.partialorder %v3477_v7, 8.507059e+37  ;;  %v3595_v35 = vpop.permute.xlu2 %3594 }
0x19ff   : > { %v5818_v63 = vpop.eup %5817 }
0x1a00   : > { %v3469_v0 = vmul.f32 %v5818_v63, %v3467_v5  ;;  %vm3474_vm9 = vweird.f32 %v5818_v63 }
0x1a01   : > { %vm3475_vm15 = vmor %vm3473_vm10, %vm3474_vm9 }
0x1a02   : > { %v3470_v2 = vsub.f32 1.0, %v3469_v0 }
0x1a03   : > { %v3651_v37 = vpop.permute.xlu2 %3650 }
0x1a04   : > { %v3471_v3 = vmul.f32 %v5818_v63, %v3470_v2 }
0x1a06   : > { %v3472_v6 = vadd.f32 %v5818_v63, %v3471_v3 }
0x1a08   : > { %v3476_v8 = vsel %vm3475_vm15, %v5818_v63, %v3472_v6 }
0x1a09   : > { %v3481_v48 = vsel %vm3478_vm11, %v3480_v12, %v3476_v8 }
0x1a0a   : > { %v3482_v15 = vmul.f32 %v5814_v16, %v3481_v48 }
0x1a0b   : > { %v3760_v44 = vpop.permute.xlu2 %3759 }
0x1a0c   : > { %3596 = vrot.lane.b32.xlu0 %v6672_v42, %s7099_s8 }
0x1a10   : > { %v3484_v13 = vpop.permute.xlu1 %3483 }
0x1a11   : > { %3508 = vmatpush.msrb.mxu3 %v3484_v13  ;;  %v3348_v13 = vld [vmem:[%s7101_s13 + $0x10] sm:$0xff] }
0x1a12   : > { %5477 = vmatmul.msk.f32.vlgmr.msrb.gmra.mxu3 %vm1111_vm3, %v3482_v15 }
0x1a14   : > { %3652 = vrot.lane.b32.xlu0 %v6672_v42, %s7090_s11 }
0x1a18   : > { %v3764_v29 = vpop.permute.xlu1 %3763 }
0x1a1c   : > { %3761 = vrot.lane.b32.xlu0 %v6668_v39, %s7100_s9 }
0x1a20   : > { %v3649_v31 = vpop.permute.xlu1 %3648 }
0x1a6b   : > { %v3578_v17 = vpop.xlane.xlu0 %3577 }
0x1a6c   : > { %5819 = vrcp.f32 %v3578_v17  ;;  %v3590_v9 = vand.u32 2147483648, %v3578_v17  ;;  %v3588_v25 = vand.u32 2147483647, %v3578_v17  ;;  %vm3584_vm14 = vweird.f32 %v3578_v17 }
0x1a6e   : > { %v3591_v30 = vor.u32 1.1754944e-38, %v3590_v9  ;;  %vm3589_vm6 = vcmp.eq.f32.partialorder %v3588_v25, 8.507059e+37 }
0x1a72   : > { %v5820_v58 = vpop.eup %5819 }
0x1a73   : > { %v3580_v23 = vmul.f32 %v5820_v58, %v3578_v17  ;;  %vm3585_vm13 = vweird.f32 %v5820_v58 }
0x1a74   : > { %vm3586_vm5 = vmor %vm3584_vm14, %vm3585_vm13 }
0x1a75   : > { %v3581_v21 = vsub.f32 1.0, %v3580_v23 }
0x1a77   : > { %v3582_v28 = vmul.f32 %v5820_v58, %v3581_v21 }
0x1a79   : > { %v3583_v27 = vadd.f32 %v5820_v58, %v3582_v28 }
0x1a7b   : > { %v3587_v26 = vsel %vm3586_vm5, %v5820_v58, %v3583_v27 }
0x1a7c   : > { %v3592_v32 = vsel %vm3589_vm6, %v3591_v30, %v3587_v26 }
0x1a7d   : > { %v3593_v36 = vmul.f32 %v5816_v61, %v3592_v32 }
0x1a7e   : > { %v3597_v34 = vpop.permute.xlu0 %3596 }
0x1a7f   : > { %5482 = vmatpush.msk.msra.mxu3 %vm1172_vm2, %v3597_v34  ;;  %v3349_v34 = vld [vmem:[%s7101_s13 + $0x18] sm:$0xff] }
0x1a81   : > { %3619 = vmatpush.msra.mxu3 %v3595_v35 }
0x1a82   : > { %5483 = vmatmul.msk.f32.vlgmr.msra.gmra.mxu3 %vm1111_vm3, %v3593_v36  ;;  %v5687_v36 = vld [vmem:[%s7104_s17] ss:$0 sm:$0xff] }
0x1a83   : > { %3753 = vmatpush.msrb.mxu3 %v3348_v13 }
0x1a86   : > { %v3653_v14 = vpop.permute.xlu0 %3652 }
0x1a87   : > { %5485 = vmatpush.xpose.msk.msrb.mxu0 %vm1072_vm1, %v3653_v14 }
0x1a8b   : > { %5486 = vmatpush.xpose.msk.msrb.mxu0 %vm1072_vm1, %v3651_v37 }
0x1a8e   : > { %5487 = vmatmul.msk.f32.vlgmr.msrb.gmra.mxu0 %vm1072_vm1, %v3649_v31  ;;  %v3762_v51 = vpop.permute.xlu0 %3761 }
0x1a95   : > { %v3510_v49 = vpop.f32.mrf.mxu3 }
0x1a96   : > { %5478 = vmatmul.msk.f32.vlgmr.msrb.gmra.mxu2 %vm1072_vm1, %v3510_v49 }
0x1a97   : > { %5491 = vmatpush.xpose.msk.msrb.mxu2 %vm1072_vm1, %v3764_v29 }
0x1a9b   : > { %5492 = vmatpush.xpose.msk.msrb.mxu2 %vm1072_vm1, %v3762_v51 }
0x1b05   : > { %v3621_v53 = vpop.f32.mrf.mxu3 }
0x1b06   : > { %5484 = vmatmul.msk.f32.vlgmr.msra.gmra.mxu2 %vm1072_vm1, %v3621_v53 }
0x1b0b   : > { %v3677_v43 = vpop.f32.mrf.mxu0 }
0x1b0c   : > { %v3680_v41 = vmul.f32 0.35355338, %v3677_v43 }
0x1b0e   : > { %5493 = vmatmul.msk.f32.vlgmr.msrb.gmra.mxu2 %vm1072_vm1, %v3760_v44  ;;  %v3681_v55 = vsel %vm1111_vm3, %v3680_v41, -inf }
0x1b0f   : > { %3682 = vmax.xlane.f32.xlu0 %v3681_v55 }
0x1b19   : > { %v6722_v33 = vpop.f32.mrf.mxu2 }
0x1b1a   : > { %v3536_v29 = vadd.f32 %v5687_v36, %v6722_v33 }
0x1b82   : > { %v3683_v45 = vpop.xlane.xlu0 %3682 }
0x1b83   : > { %v3684_v46 = vsub.f32 %v3680_v41, %v3683_v45 }
0x1b85   : > { %v3685_v47 = vmul.f32 1.442695, %v3684_v46  ;;  %v3906_v46 = vld [vmem:[%s7105_s19 + $0x18] sm:$0xff] }
0x1b86   : > { %3935 = vmatpush.msra.mxu3 %v3906_v46  ;;  %v5694_v46 = vld [vmem:[%s7087_s18 + $0x1] ss:$0 sm:$0xff] }
0x1b87   : > { %5821 = vpow2.f32 %v3685_v47  ;;  %v3905_v47 = vld [vmem:[%s7105_s19 + $0x10] sm:$0xff] }
0x1b88   : > { %3936 = vmatpush.msra.mxu3 %v3905_v47 }
0x1b89   : > { %v6724_v50 = vpop.f32.mrf.mxu2 }
0x1b8a   : > { %v3647_v37 = vadd.f32 %v6724_v50, %v3536_v29  ;;  %v3903_v50 = vld [vmem:[%s7105_s19] sm:$0xff] }
0x1b8d   : > { %v5822_v52 = vpop.eup %5821 }
0x1b8e   : > { %v3687_v54 = vsel %vm1111_vm3, %v5822_v52, 0.0 }
0x1b8f   : > { %3688 = vadd.xlane.f32.xlu2 %v3687_v54  ;;  %v3914_v54 = vld [vmem:[%s7106_s21 + $0x30] sm:$0xff] }
0x1b91   : > { %v3788_v56 = vpop.f32.mrf.mxu2 }
0x1b92   : > { %v3791_v11 = vmul.f32 0.35355338, %v3788_v56  ;;  %v3913_v56 = vld [vmem:[%s7106_s21 + $0x28] sm:$0xff] }
0x1b94   : > { %v3792_v16 = vsel %vm1111_vm3, %v3791_v11, -inf }
0x1b95   : > { %3793 = vmax.xlane.f32.xlu1 %v3792_v16 }
0x1ba7   : > { %3705 = vrot.lane.b32.xlu2 %v6668_v39, %s7102_s14 }
0x1bae   : > { %3707 = vrot.lane.b32.xlu1 %v6672_v42, %s7102_s14 }
0x1bb6   : > { %3816 = vrot.lane.b32.xlu1 %v6668_v39, %s7103_s16 }
0x1c02   : > { %v3689_v57 = vpop.xlane.xlu2 %3688 }
0x1c03   : > { %5823 = vrcp.f32 %v3689_v57  ;;  %v3701_v3 = vand.u32 2147483648, %v3689_v57  ;;  %vm3695_vm7 = vweird.f32 %v3689_v57  ;;  %v3699_v39 = vand.u32 2147483647, %v3689_v57 }
0x1c05   : > { %v3702_v10 = vor.u32 1.1754944e-38, %v3701_v3  ;;  %vm3700_vm9 = vcmp.eq.f32.partialorder %v3699_v39, 8.507059e+37  ;;  %v5689_v39 = vld [vmem:[%s7107_s24 + $0x1] ss:$0 sm:$0xff] }
0x1c08   : > { %v3794_v1 = vpop.xlane.xlu1 %3793 }
0x1c09   : > { %v5824_v4 = vpop.eup %5823  ;;  %v3795_v59 = vsub.f32 %v3791_v11, %v3794_v1 }
0x1c0a   : > { %v3691_v61 = vmul.f32 %v5824_v4, %v3689_v57  ;;  %vm3696_vm4 = vweird.f32 %v5824_v4  ;;  %v3706_v12 = vpop.permute.xlu2 %3705  ;;  %v3912_v57 = vld [vmem:[%s7106_s21 + $0x20] sm:$0xff] }
0x1c0b   : > { %v3796_v18 = vmul.f32 1.442695, %v3795_v59  ;;  %vm3697_vm8 = vmor %vm3695_vm7, %vm3696_vm4 }
0x1c0c   : > { %v3692_v62 = vsub.f32 1.0, %v3691_v61 }
0x1c0d   : > { %5825 = vpow2.f32 %v3796_v18 }
0x1c0e   : > { %v3693_v63 = vmul.f32 %v5824_v4, %v3692_v62 }
0x1c10   : > { %v3694_v2 = vadd.f32 %v5824_v4, %v3693_v63 }
0x1c12   : > { %v3698_v6 = vsel %vm3697_vm8, %v5824_v4, %v3694_v2  ;;  %v3911_v4 = vld [vmem:[%s7106_s21 + $0x18] sm:$0xff] }
0x1c13   : > { %v5826_v5 = vpop.eup %5825  ;;  %v3703_v7 = vsel %vm3700_vm9, %v3702_v10, %v3698_v6 }
0x1c14   : > { %v3798_v0 = vsel %vm1111_vm3, %v5826_v5, 0.0  ;;  %v3704_v48 = vmul.f32 %v5822_v52, %v3703_v7  ;;  %v3915_v52 = vld [vmem:[%s7106_s21 + $0x38] sm:$0xff]  ;;  %v3910_v7 = vld [vmem:[%s7106_s21 + $0x10] sm:$0xff] }
0x1c15   : > { %3799 = vadd.xlane.f32.xlu0 %v3798_v0  ;;  %3958 = vmatpush.msra.mxu2 %v3915_v52  ;;  %v5688_v0 = vld [vmem:[%s7107_s24] ss:$0 sm:$0xff] }
0x1c17   : > { %3959 = vmatpush.msra.mxu2 %v3914_v54 }
0x1c19   : > { %3960 = vmatpush.msra.mxu2 %v3913_v56 }
0x1c1b   : > { %3961 = vmatpush.msra.mxu2 %v3912_v57 }
0x1c1d   : > { %3962 = vmatpush.msra.mxu2 %v3911_v4 }
0x1c1f   : > { %3963 = vmatpush.msra.mxu2 %v3910_v7  ;;  %v5504_v7 = vld [vmem:[%s7088_s2 + $0x20] sm:$0xff] }
0x1c20   : > { %v3708_v8 = vpop.permute.xlu1 %3707 }
0x1c21   : > { %5488 = vmatpush.msk.msrb.mxu1 %vm1172_vm2, %v3708_v8  ;;  %v3909_v8 = vld [vmem:[%s7106_s21 + $0x8] sm:$0xff] }
0x1c22   : > { %3964 = vmatpush.msra.mxu2 %v3909_v8  ;;  %v5505_v8 = vld [vmem:[%s7088_s2 + $0x28] sm:$0xff] }
0x1c23   : > { %3730 = vmatpush.msrb.mxu1 %v3706_v12  ;;  %v3908_v12 = vld [vmem:[%s7106_s21] sm:$0xff] }
0x1c24   : > { %5489 = vmatmul.msk.f32.vlgmr.msrb.gmra.mxu1 %vm1111_vm3, %v3704_v48  ;;  %3965 = vmatpush.msra.mxu2 %v3908_v12  ;;  %v5690_v48 = vld [vmem:[%s7108_s25] ss:$0 sm:$0xff] }
0x1c25   : > { %3864 = vmatpush.msra.mxu1 %v3349_v34  ;;  %v5499_v34 = vld [vmem:[%s6000_s6 + $0x20] sm:$0xff] }
0x1c26   : > { %4248 = vmatpush.msrb.mxu2 %v5505_v8 }
0x1c28   : > { %v3817_v26 = vpop.permute.xlu1 %3816 }
0x1c29   : > { %3818 = vrot.lane.b32.xlu0 %v6672_v42, %s7103_s16 }
0x1c88   : > { %v3800_v15 = vpop.xlane.xlu0 %3799 }
0x1c89   : > { %5827 = vrcp.f32 %v3800_v15  ;;  %v3812_v21 = vand.u32 2147483648, %v3800_v15  ;;  %v3810_v24 = vand.u32 2147483647, %v3800_v15  ;;  %vm3806_vm15 = vweird.f32 %v3800_v15 }
0x1c8b   : > { %v3813_v25 = vor.u32 1.1754944e-38, %v3812_v21  ;;  %vm3811_vm13 = vcmp.eq.f32.partialorder %v3810_v24, 8.507059e+37 }
0x1c8f   : > { %v5828_v17 = vpop.eup %5827 }
0x1c90   : > { %v3802_v20 = vmul.f32 %v5828_v17, %v3800_v15  ;;  %vm3807_vm10 = vweird.f32 %v5828_v17 }
0x1c91   : > { %vm3808_vm11 = vmor %vm3806_vm15, %vm3807_vm10 }
0x1c92   : > { %v3803_v58 = vsub.f32 1.0, %v3802_v20  ;;  %v5691_v20 = vld [vmem:[%s7109_s29] ss:$0 sm:$0xff] }
0x1c94   : > { %v3804_v23 = vmul.f32 %v5828_v17, %v3803_v58 }
0x1c96   : > { %v3805_v28 = vadd.f32 %v5828_v17, %v3804_v23 }
0x1c98   : > { %v3809_v9 = vsel %vm3808_vm11, %v5828_v17, %v3805_v28 }
0x1c99   : > { %v3814_v42 = vsel %vm3811_vm13, %v3813_v25, %v3809_v9 }
0x1c9a   : > { %v3815_v30 = vmul.f32 %v5826_v5, %v3814_v42 }
0x1c9b   : > { %v3819_v27 = vpop.permute.xlu0 %3818 }
0x1c9c   : > { %5494 = vmatpush.msk.msra.mxu0 %vm1172_vm2, %v3819_v27 }
0x1c9e   : > { %3841 = vmatpush.msra.mxu0 %v3817_v26  ;;  %v5502_v26 = vld [vmem:[%s6000_s6 + $0x38] sm:$0xff] }
0x1c9f   : > { %5495 = vmatmul.msk.f32.vlgmr.msra.gmra.mxu0 %vm1111_vm3, %v3815_v30  ;;  %v5501_v30 = vld [vmem:[%s6000_s6 + $0x30] sm:$0xff] }
0x1ca0   : > { %4035 = vmatpush.msrb.mxu0 %v5502_v26 }
0x1ca1   : > { %v3732_v32 = vpop.f32.mrf.mxu1 }
0x1ca2   : > { %5490 = vmatmul.msk.f32.vlgmr.msrb.gmra.mxu3 %vm1072_vm1, %v3732_v32  ;;  %4036 = vmatpush.msrb.mxu0 %v5501_v30  ;;  %v5500_v32 = vld [vmem:[%s6000_s6 + $0x28] sm:$0xff] }
0x1ca4   : > { %4037 = vmatpush.msrb.mxu0 %v5500_v32 }
0x1ca6   : > { %4038 = vmatpush.msrb.mxu0 %v5499_v34 }
0x1ca8   : > { %4144 = vmatpush.msra.mxu0 %v5504_v7 }
0x1d1c   : > { %v3843_v35 = vpop.f32.mrf.mxu0 }
0x1d1d   : > { %5496 = vmatmul.msk.f32.vlgmr.msra.gmra.mxu1 %vm1072_vm1, %v3843_v35 }
0x1d25   : > { %v3755_v14 = vpop.f32.mrf.mxu3 }
0x1d26   : > { %v3758_v31 = vadd.f32 %v3755_v14, %v3647_v37 }
0x1d9a   : > { %v3866_v49 = vpop.f32.mrf.mxu1 }
0x1d9b   : > { %v3869_v51 = vadd.f32 %v3866_v49, %v3758_v31 }
0x1d9d   : > { %v3872_v53 = vadd.f32 %v3869_v51, %v6664_v38  ;;  %v3904_v38 = vld [vmem:[%s7105_s19 + $0x8] sm:$0xff] }
0x1d9e   : > { %3937 = vmatpush.msra.mxu3 %v3904_v38 }
0x1d9f   : > { %v3873_v43 = vsel %vm1032_vm0, %v3872_v53, 0.0 }
0x1da0   : > { %3874 = vadd.xlane.f32.xlu2 %v3873_v43  ;;  %3938 = vmatpush.msra.mxu3 %v3903_v50  ;;  %v5692_v43 = vld [vmem:[%s7110_s30] ss:$0 sm:$0xff] }
0x1e13   : > { %v3875_v41 = vpop.xlane.xlu2 %3874 }
0x1e14   : > { %v3876_v44 = vmul.f32 %v3875_v41, %v6276_v60 }
0x1e16   : > { %v3877_v55 = vsub.f32 %v3872_v53, %v3876_v44 }
0x1e18   : > { %v3878_v33 = vmul.f32 %v3877_v55, %v3877_v55 }
0x1e1a   : > { %v3879_v45 = vsel %vm1032_vm0, %v3878_v33, 0.0 }
0x1e1b   : > { %3880 = vadd.xlane.f32.xlu0 %v3879_v45 }
0x1e8e   : > { %v3881_v11 = vpop.xlane.xlu0 %3880 }
0x1e8f   : > { %v3882_v16 = vmul.f32 %v3881_v11, %v6276_v60 }
0x1e91   : > { %v3883_v1 = vadd.f32 1e-05, %v3882_v16 }
0x1e93   : > { %5829 = vrsqrt.f32 %v3883_v1  ;;  %vm3890_vm5 = vweird.f32 %v3883_v1 }
0x1e99   : > { %v5830_v59 = vpop.eup %5829 }
0x1e9a   : > { %v3885_v18 = vmul.f32 %v5830_v59, %v3883_v1  ;;  %vm3891_vm14 = vweird.f32 %v5830_v59 }
0x1e9b   : > { %vm3892_vm6 = vmor %vm3890_vm5, %vm3891_vm14 }
0x1e9c   : > { %v3886_v61 = vmul.f32 %v5830_v59, %v3885_v18 }
0x1e9e   : > { %v3887_v62 = vmul.f32 0.5, %v3886_v61 }
0x1ea0   : > { %v3888_v5 = vsub.f32 1.5, %v3887_v62 }
0x1ea2   : > { %v3889_v63 = vmul.f32 %v5830_v59, %v3888_v5 }
0x1ea4   : > { %v3893_v2 = vsel %vm3892_vm6, %v5830_v59, %v3889_v63 }
0x1ea5   : > { %v3894_v3 = vmul.f32 %v3893_v2, %v3877_v55  ;;  %v5693_v55 = vld [vmem:[%s7110_s30 + $0x1] ss:$0 sm:$0xff] }
0x1ea7   : > { %v3898_v6 = vmul.f32 %v5688_v0, %v3894_v3 }
0x1ea9   : > { %v3902_v10 = vadd.f32 %v5689_v39, %v3898_v6 }
0x1eab   : > { %5497 = vmatmul.msk.f32.vlgmr.msra.gmra.mxu3 %vm1032_vm0, %v3902_v10 }
0x1f2e   : > { %v3940_v13 = vpop.f32.mrf.mxu3 }
0x1f2f   : > { %v3941_v15 = vadd.f32 %v5690_v48, %v3940_v13 }
0x1f31   : > { %v3943_v17 = vmax.f32 %v3941_v15, 0.0 }
0x1f33   : > { %5498 = vmatmul.msk.f32.vlgmr.msra.gmra.mxu2 %vm1820_vm12, %v3943_v17 }
0x1fb6   : > { %v3967_v58 = vpop.f32.mrf.mxu2 }
0x1fb7   : > { %v3968_v23 = vadd.f32 %v5691_v20, %v3967_v58 }
0x1fb9   : > { %v3972_v21 = vadd.f32 %v3968_v23, %v3902_v10 }
0x1fbb   : > { %v3973_v24 = vsel %vm1032_vm0, %v3972_v21, 0.0 }
0x1fbc   : > { %3974 = vadd.xlane.f32.xlu1 %v3973_v24 }
0x202f   : > { %v3975_v28 = vpop.xlane.xlu1 %3974 }
0x2030   : > { %v3976_v9 = vmul.f32 %v3975_v28, %v6276_v60 }
0x2032   : > { %v3977_v25 = vsub.f32 %v3972_v21, %v3976_v9 }
0x2034   : > { %v3978_v42 = vmul.f32 %v3977_v25, %v3977_v25 }
0x2036   : > { %v3979_v27 = vsel %vm1032_vm0, %v3978_v42, 0.0 }
0x2037   : > { %3980 = vadd.xlane.f32.xlu2 %v3979_v27 }
0x20aa   : > { %v3981_v35 = vpop.xlane.xlu2 %3980 }
0x20ab   : > { %v3982_v36 = vmul.f32 %v3981_v35, %v6276_v60 }
0x20ad   : > { %v3983_v29 = vadd.f32 1e-05, %v3982_v36 }
0x20af   : > { %5831 = vrsqrt.f32 %v3983_v29  ;;  %vm3990_vm7 = vweird.f32 %v3983_v29 }
0x20b5   : > { %v5832_v14 = vpop.eup %5831 }
0x20b6   : > { %v3985_v37 = vmul.f32 %v5832_v14, %v3983_v29  ;;  %vm3991_vm4 = vweird.f32 %v5832_v14 }
0x20b7   : > { %vm3992_vm8 = vmor %vm3990_vm7, %vm3991_vm4 }
0x20b8   : > { %v3986_v31 = vmul.f32 %v5832_v14, %v3985_v37 }
0x20ba   : > { %v3987_v49 = vmul.f32 0.5, %v3986_v31 }
0x20bc   : > { %v3988_v51 = vsub.f32 1.5, %v3987_v49 }
0x20be   : > { %v3989_v53 = vmul.f32 %v5832_v14, %v3988_v51 }
0x20c0   : > { %v3993_v41 = vsel %vm3992_vm8, %v5832_v14, %v3989_v53 }
0x20c1   : > { %v3994_v44 = vmul.f32 %v3993_v41, %v3977_v25 }
0x20c3   : > { %v3998_v33 = vmul.f32 %v5692_v43, %v3994_v44 }
0x20c5   : > { %v6781_v45 = vadd.f32 %v5693_v55, %v3998_v33 }
0x20c7   : > { %5509 = vmatmul.msk.f32.vlgmr.msrb.gmra.mxu0 %vm1032_vm0, %v6781_v45 }
0x2144   : > { %v4040_v47 = vpop.f32.mrf.mxu0 }
0x2145   : > { %v6786_v38 = vadd.f32 %v5694_v46, %v4040_v47  ;;  %v5695_v47 = vld [vmem:[%s7091_s23 + $0x1] ss:$0 sm:$0xff] }
0x2147   : > { %4150 = vrot.lane.b32.xlu2 %v6786_v38, %s7097_s3  ;;  %4152 = vrot.lane.b32.xlu1 %v6786_v38, %s7099_s8 }
0x2148   : > { %4048 = vrot.lane.b32.xlu0 %v6786_v38, %s7098_s5 }
0x21a1   : > { %v4151_v54 = vpop.permute.xlu2 %4150 }
0x21b9   : > { %v4153_v50 = vpop.permute.xlu1 %4152 }
0x21ba   : > { %v4049_v52 = vpop.permute.xlu0 %4048 }
0x21bb   : > { %5510 = vmatpush.xpose.msk.msrb.mxu1 %vm1072_vm1, %v4049_v52 }
0x21be   : > { %5511 = vmatmul.msk.f32.vlgmr.msrb.gmra.mxu1 %vm1072_vm1, %v6786_v38 }
0x21bf   : > { %5514 = vmatpush.xpose.msk.msra.mxu1 %vm1072_vm1, %v4153_v50 }
0x21c6   : > { %5515 = vmatmul.msk.f32.vlgmr.msra.gmra.mxu1 %vm1072_vm1, %v4151_v54 }
0x223b   : > { %v4071_v56 = vpop.f32.mrf.mxu1 }
0x223c   : > { %v4074_v11 = vmul.f32 0.35355338, %v4071_v56 }
0x223e   : > { %v4075_v16 = vadd.f32 %v4074_v11, %v6560_v40 }
0x2240   : > { %v4076_v57 = vsel %vm1072_vm1, %v4075_v16, -inf }
0x2241   : > { %4077 = vmax.xlane.f32.xlu0 %v4076_v57 }
0x2243   : > { %v4175_v1 = vpop.f32.mrf.mxu1 }
0x2244   : > { %v4178_v4 = vmul.f32 0.35355338, %v4175_v1 }
0x2246   : > { %v4179_v59 = vadd.f32 %v4178_v4, %v6560_v40 }
0x2248   : > { %v4180_v18 = vsel %vm1072_vm1, %v4179_v59, -inf }
0x2249   : > { %4181 = vmax.xlane.f32.xlu2 %v4180_v18 }
0x2261   : > { %4204 = vrot.lane.b32.xlu2 %v6786_v38, %s7089_s7  ;;  %s7111_s7 = smov 64  }
0x2269   : > { %4254 = vrot.lane.b32.xlu2 %v6786_v38, %s7090_s11 }
0x22b4   : > { %v4078_v61 = vpop.xlane.xlu0 %4077 }
0x22b5   : > { %v4079_v62 = vsub.f32 %v4075_v16, %v4078_v61 }
0x22b7   : > { %v4080_v5 = vmul.f32 1.442695, %v4079_v62 }
0x22b9   : > { %5833 = vpow2.f32 %v4080_v5 }
0x22bc   : > { %v4182_v63 = vpop.xlane.xlu2 %4181 }
0x22bd   : > { %v4183_v0 = vsub.f32 %v4179_v59, %v4182_v63 }
0x22bf   : > { %v5834_v2 = vpop.eup %5833  ;;  %v4184_v3 = vmul.f32 1.442695, %v4183_v0 }
0x22c0   : > { %v4082_v39 = vsel %vm1072_vm1, %v5834_v2, 0.0 }
0x22c1   : > { %5835 = vpow2.f32 %v4184_v3  ;;  %4083 = vadd.xlane.f32.xlu1 %v4082_v39 }
0x22c4   : > { %v4205_v14 = vpop.permute.xlu2 %4204 }
0x22c7   : > { %v5836_v6 = vpop.eup %5835 }
0x22c8   : > { %v4186_v10 = vsel %vm1072_vm1, %v5836_v6, 0.0 }
0x22c9   : > { %4187 = vadd.xlane.f32.xlu0 %v4186_v10 }
0x22cc   : > { %v4255_v41 = vpop.permute.xlu2 %4254 }
0x22da   : > { %4256 = vrot.lane.b32.xlu1 %v6786_v38, %s7102_s14 }
0x22dd   : > { %4100 = vrot.lane.b32.xlu0 %v6786_v38, %s7111_s7 }
0x22e5   : > { %4360 = vrot.lane.b32.xlu0 %v6786_v38, %s7103_s16 }
0x22ed   : > { %4358 = vrot.lane.b32.xlu0 %v6786_v38, %s7100_s9 }
0x2334   : > { %v4084_v12 = vpop.xlane.xlu1 %4083 }
0x2335   : > { %5837 = vrcp.f32 %v4084_v12  ;;  %v4096_v24 = vand.u32 2147483648, %v4084_v12  ;;  %vm4090_vm10 = vweird.f32 %v4084_v12  ;;  %v4094_v9 = vand.u32 2147483647, %v4084_v12 }
0x2337   : > { %v4097_v27 = vor.u32 1.1754944e-38, %v4096_v24  ;;  %vm4095_vm11 = vcmp.eq.f32.partialorder %v4094_v9, 8.507059e+37 }
0x233b   : > { %v5838_v48 = vpop.eup %5837 }
0x233c   : > { %v4086_v13 = vmul.f32 %v5838_v48, %v4084_v12  ;;  %v4188_v15 = vpop.xlane.xlu0 %4187  ;;  %vm4091_vm9 = vweird.f32 %v5838_v48 }
0x233d   : > { %5839 = vrcp.f32 %v4188_v15  ;;  %vm4092_vm15 = vmor %vm4090_vm10, %vm4091_vm9  ;;  %v4200_v34 = vand.u32 2147483648, %v4188_v15  ;;  %vm4194_vm14 = vweird.f32 %v4188_v15  ;;  %v4198_v35 = vand.u32 2147483647, %v4188_v15 }
0x233e   : > { %v4087_v17 = vsub.f32 1.0, %v4086_v13 }
0x233f   : > { %v4201_v31 = vor.u32 1.1754944e-38, %v4200_v34  ;;  %vm4199_vm6 = vcmp.eq.f32.partialorder %v4198_v35, 8.507059e+37 }
0x2340   : > { %v4088_v20 = vmul.f32 %v5838_v48, %v4087_v17 }
0x2342   : > { %v4089_v21 = vadd.f32 %v5838_v48, %v4088_v20 }
0x2343   : > { %v5840_v58 = vpop.eup %5839 }
0x2344   : > { %v4190_v23 = vmul.f32 %v5840_v58, %v4188_v15  ;;  %v4093_v25 = vsel %vm4092_vm15, %v5838_v48, %v4089_v21  ;;  %vm4195_vm13 = vweird.f32 %v5840_v58 }
0x2345   : > { %v4098_v26 = vsel %vm4095_vm11, %v4097_v27, %v4093_v25  ;;  %vm4196_vm5 = vmor %vm4194_vm14, %vm4195_vm13 }
0x2346   : > { %v4191_v28 = vsub.f32 1.0, %v4190_v23  ;;  %v4099_v29 = vmul.f32 %v5834_v2, %v4098_v26 }
0x2348   : > { %v4192_v42 = vmul.f32 %v5840_v58, %v4191_v28 }
0x234a   : > { %v4193_v32 = vadd.f32 %v5840_v58, %v4192_v42 }
0x234c   : > { %v4257_v30 = vpop.permute.xlu1 %4256  ;;  %v4197_v37 = vsel %vm4196_vm5, %v5840_v58, %v4193_v32 }
0x234d   : > { %5518 = vmatpush.xpose.msk.msrb.mxu0 %vm1072_vm1, %v4257_v30  ;;  %v4202_v49 = vsel %vm4199_vm6, %v4201_v31, %v4197_v37 }
0x234e   : > { %v4203_v53 = vmul.f32 %v5836_v6, %v4202_v49 }
0x234f   : > { %v4101_v36 = vpop.permute.xlu0 %4100 }
0x2350   : > { %4121 = vmatpush.msrb.mxu3 %v4101_v36 }
0x2351   : > { %5512 = vmatmul.msk.f32.vlgmr.msrb.gmra.mxu3 %vm1072_vm1, %v4099_v29  ;;  %v5506_v29 = vld [vmem:[%s7088_s2 + $0x30] sm:$0xff] }
0x2352   : > { %4225 = vmatpush.msra.mxu3 %v4205_v14  ;;  %v5507_v14 = vld [vmem:[%s7088_s2 + $0x38] sm:$0xff] }
0x2354   : > { %4352 = vmatpush.msrb.mxu3 %v5506_v29 }
0x2357   : > { %v4361_v51 = vpop.permute.xlu0 %4360 }
0x2358   : > { %5522 = vmatpush.xpose.msk.msra.mxu2 %vm1072_vm1, %v4361_v51 }
0x2359   : > { %5516 = vmatmul.msk.f32.vlgmr.msra.gmra.mxu3 %vm1072_vm1, %v4203_v53 }
0x235f   : > { %v4359_v55 = vpop.permute.xlu0 %4358 }
0x23d4   : > { %v4123_v43 = vpop.f32.mrf.mxu3 }
0x23d5   : > { %5513 = vmatmul.msk.f32.vlgmr.msra.gmra.mxu0 %vm1072_vm1, %v4123_v43 }
0x23dc   : > { %v4227_v44 = vpop.f32.mrf.mxu3 }
0x23dd   : > { %5517 = vmatmul.msk.f32.vlgmr.msrb.gmra.mxu2 %vm1072_vm1, %v4227_v44  ;;  %5519 = vmatmul.msk.f32.vlgmr.msrb.gmra.mxu0 %vm1072_vm1, %v4255_v41 }
0x23e5   : > { %5523 = vmatmul.msk.f32.vlgmr.msra.gmra.mxu2 %vm1072_vm1, %v4359_v55  ;;  %v5531_v55 = vld [vmem:[%s7093_s26 + $0x38] sm:$0xff] }
0x23e6   : > { %4528 = vmatpush.msra.mxu3 %v5531_v55 }
0x2452   : > { %v4146_v33 = vpop.f32.mrf.mxu0 }
0x2453   : > { %v4149_v54 = vadd.f32 %v5695_v47, %v4146_v33  ;;  %v5530_v33 = vld [vmem:[%s7093_s26 + $0x30] sm:$0xff] }
0x2454   : > { %4529 = vmatpush.msra.mxu3 %v5530_v33 }
0x245a   : > { %v4279_v46 = vpop.f32.mrf.mxu0 }
0x245b   : > { %v4282_v50 = vmul.f32 0.35355338, %v4279_v46 }
0x245d   : > { %v4283_v52 = vadd.f32 %v4282_v50, %v6560_v40  ;;  %v5528_v50 = vld [vmem:[%s7093_s26 + $0x20] sm:$0xff] }
0x245f   : > { %v4284_v56 = vsel %vm1072_vm1, %v4283_v52, -inf }
0x2460   : > { %v4250_v11 = vpop.f32.mrf.mxu2  ;;  %4285 = vmax.xlane.f32.xlu1 %v4284_v56 }
0x2461   : > { %v6830_v16 = vadd.f32 %v4250_v11, %v4149_v54 }
0x2468   : > { %v4383_v57 = vpop.f32.mrf.mxu2 }
0x2469   : > { %v4386_v1 = vmul.f32 0.35355338, %v4383_v57 }
0x246b   : > { %v4387_v4 = vadd.f32 %v4386_v1, %v6560_v40 }
0x246d   : > { %v4388_v59 = vsel %vm1072_vm1, %v4387_v4, -inf }
0x246e   : > { %4389 = vmax.xlane.f32.xlu2 %v4388_v59  ;;  %v5698_v59 = vld [vmem:[%s7094_s15 + $0x1] ss:$0 sm:$0xff] }
0x2486   : > { %4308 = vrot.lane.b32.xlu2 %v6786_v38, %s7085_s0 }
0x248e   : > { %4552 = vrot.lane.b32.xlu2 %v5698_v59, %s7098_s5 }
0x24d3   : > { %v4286_v18 = vpop.xlane.xlu1 %4285 }
0x24d4   : > { %v4287_v61 = vsub.f32 %v4283_v52, %v4286_v18  ;;  %v5529_v52 = vld [vmem:[%s7093_s26 + $0x28] sm:$0xff] }
0x24d5   : > { %v5658_v54 = vpack.i.bf16 %v5528_v50, %v5529_v52  ;;  %4530 = vmatpush.msra.mxu3 %v5529_v52 }
0x24d6   : > { %v4288_v62 = vmul.f32 1.442695, %v4287_v61 }
0x24d7   : > { %4531 = vmatpush.msra.mxu3 %v5528_v50 }
0x24d8   : > { %5841 = vpow2.f32 %v4288_v62 }
0x24de   : > { %v5842_v5 = vpop.eup %5841 }
0x24df   : > { %v4290_v63 = vsel %vm1072_vm1, %v5842_v5, 0.0 }
0x24e0   : > { %4291 = vadd.xlane.f32.xlu0 %v4290_v63 }
0x24e1   : > { %v4390_v0 = vpop.xlane.xlu2 %4389 }
0x24e2   : > { %v4391_v2 = vsub.f32 %v4387_v4, %v4390_v0 }
0x24e4   : > { %v4392_v3 = vmul.f32 1.442695, %v4391_v2  ;;  %v5696_v2 = vld [vmem:[%s7096_s10 + $0x2] ss:$0 sm:$0xff] }
0x24e6   : > { %5843 = vpow2.f32 %v4392_v3 }
0x24e9   : > { %v4309_v39 = vpop.permute.xlu2 %4308 }
0x24ea   : > { %4329 = vmatpush.msrb.mxu1 %v4309_v39  ;;  %v5697_v39 = vld [vmem:[%s7096_s10 + $0x3] ss:$0 sm:$0xff] }
0x24ec   : > { %v5844_v40 = vpop.eup %5843  ;;  %4456 = vmatpush.msra.mxu1 %v5507_v14 }
0x24ed   : > { %v4394_v6 = vsel %vm1072_vm1, %v5844_v40, 0.0 }
0x24ee   : > { %4395 = vadd.xlane.f32.xlu1 %v4394_v6 }
0x24f4   : > { %4412 = vrot.lane.b32.xlu0 %v6786_v38, %s7092_s22 }
0x24fc   : > { %5659 = vrot.lane.b32.xlu0 %v5658_v54, %s7098_s5 }
0x2553   : > { %v4292_v10 = vpop.xlane.xlu0 %4291 }
0x2554   : > { %5845 = vrcp.f32 %v4292_v10  ;;  %v4304_v48 = vand.u32 2147483648, %v4292_v10  ;;  %v4302_v15 = vand.u32 2147483647, %v4292_v10  ;;  %vm4298_vm7 = vweird.f32 %v4292_v10 }
0x2556   : > { %v4305_v58 = vor.u32 1.1754944e-38, %v4304_v48  ;;  %vm4303_vm9 = vcmp.eq.f32.partialorder %v4302_v15, 8.507059e+37 }
0x255a   : > { %v5846_v7 = vpop.eup %5845 }
0x255b   : > { %v4294_v8 = vmul.f32 %v5846_v7, %v4292_v10  ;;  %vm4299_vm4 = vweird.f32 %v5846_v7 }
0x255c   : > { %vm4300_vm8 = vmor %vm4298_vm7, %vm4299_vm4 }
0x255d   : > { %v4295_v12 = vsub.f32 1.0, %v4294_v8 }
0x255f   : > { %v4296_v13 = vmul.f32 %v5846_v7, %v4295_v12 }
0x2561   : > { %v4297_v17 = vadd.f32 %v5846_v7, %v4296_v13  ;;  %v4396_v20 = vpop.xlane.xlu1 %4395 }
0x2562   : > { %5847 = vrcp.f32 %v4396_v20  ;;  %v4408_v42 = vand.u32 2147483648, %v4396_v20  ;;  %v4406_v26 = vand.u32 2147483647, %v4396_v20  ;;  %vm4402_vm15 = vweird.f32 %v4396_v20 }
0x2563   : > { %v4301_v23 = vsel %vm4300_vm8, %v5846_v7, %v4297_v17  ;;  %v4553_v17 = vpop.permute.xlu2 %4552 }
0x2564   : > { %v4306_v21 = vsel %vm4303_vm9, %v4305_v58, %v4301_v23  ;;  %v4409_v32 = vor.u32 1.1754944e-38, %v4408_v42  ;;  %vm4407_vm13 = vcmp.eq.f32.partialorder %v4406_v26, 8.507059e+37 }
0x2565   : > { %v4307_v24 = vmul.f32 %v5842_v5, %v4306_v21 }
0x2566   : > { %v4413_v38 = vpop.permute.xlu0 %4412 }
0x2567   : > { %5520 = vmatmul.msk.f32.vlgmr.msrb.gmra.mxu1 %vm1072_vm1, %v4307_v24  ;;  %4433 = vmatpush.msra.mxu0 %v4413_v38 }
0x2568   : > { %v5848_v28 = vpop.eup %5847 }
0x2569   : > { %v4398_v9 = vmul.f32 %v5848_v28, %v4396_v20  ;;  %vm4403_vm10 = vweird.f32 %v5848_v28 }
0x256a   : > { %vm4404_vm11 = vmor %vm4402_vm15, %vm4403_vm10 }
0x256b   : > { %v4399_v25 = vsub.f32 1.0, %v4398_v9 }
0x256d   : > { %v4400_v27 = vmul.f32 %v5848_v28, %v4399_v25 }
0x256e   : > { %v5660_v10 = vpop.permute.xlu0 %5659 }
0x256f   : > { %v4401_v30 = vadd.f32 %v5848_v28, %v4400_v27  ;;  %v5661_v13 = vunpack.i.l.bf16 %v5660_v10  ;;  %v5662_v15 = vunpack.i.h.bf16 %v5660_v10 }
0x2571   : > { %v4405_v34 = vsel %vm4404_vm11, %v5848_v28, %v4401_v30 }
0x2572   : > { %v4410_v35 = vsel %vm4407_vm13, %v4409_v32, %v4405_v34 }
0x2573   : > { %v4411_v36 = vmul.f32 %v5844_v40, %v4410_v35 }
0x2575   : > { %5524 = vmatmul.msk.f32.vlgmr.msra.gmra.mxu0 %vm1072_vm1, %v4411_v36 }
0x25e4   : > { %v4331_v37 = vpop.f32.mrf.mxu1 }
0x25e5   : > { %5521 = vmatmul.msk.f32.vlgmr.msrb.gmra.mxu3 %vm1072_vm1, %v4331_v37 }
0x25f2   : > { %v4435_v31 = vpop.f32.mrf.mxu0 }
0x25f3   : > { %5525 = vmatmul.msk.f32.vlgmr.msra.gmra.mxu1 %vm1072_vm1, %v4435_v31 }
0x2668   : > { %v4354_v49 = vpop.f32.mrf.mxu3 }
0x2669   : > { %v4357_v51 = vadd.f32 %v4354_v49, %v6830_v16  ;;  %v5653_v16 = vpack.i.bf16 %v5530_v33, %v5531_v55 }
0x2670   : > { %v4458_v53 = vpop.f32.mrf.mxu1 }
0x2671   : > { %v4461_v43 = vadd.f32 %v4458_v53, %v4357_v51 }
0x2673   : > { %v4465_v41 = vadd.f32 %v4461_v43, %v6781_v45 }
0x2675   : > { %v4466_v44 = vsel %vm1032_vm0, %v4465_v41, 0.0 }
0x2676   : > { %4467 = vadd.xlane.f32.xlu1 %v4466_v44 }
0x26e9   : > { %v4468_v46 = vpop.xlane.xlu1 %4467 }
0x26ea   : > { %v4469_v47 = vmul.f32 %v4468_v46, %v6276_v60  ;;  %v5533_v46 = vld [vmem:[%s7101_s13 + $0x20] sm:$0xff] }
0x26eb   : > { %4684 = vmatpush.msrb.mxu3 %v5533_v46 }
0x26ec   : > { %v4470_v56 = vsub.f32 %v4465_v41, %v4469_v47 }
0x26ee   : > { %v4471_v45 = vmul.f32 %v4470_v56, %v4470_v56 }
0x26f0   : > { %v4472_v11 = vsel %vm1032_vm0, %v4471_v45, 0.0 }
0x26f1   : > { %4473 = vadd.xlane.f32.xlu1 %v4472_v11 }
0x270a   : > { %5654 = vrot.lane.b32.xlu1 %v5653_v16, %s7098_s5 }
0x2764   : > { %v4474_v57 = vpop.xlane.xlu1 %4473 }
0x2765   : > { %v4475_v1 = vmul.f32 %v4474_v57, %v6276_v60 }
0x2767   : > { %v4476_v4 = vadd.f32 1e-05, %v4475_v1 }
0x2769   : > { %5849 = vrsqrt.f32 %v4476_v4  ;;  %vm4483_vm5 = vweird.f32 %v4476_v4 }
0x276f   : > { %v5850_v18 = vpop.eup %5849 }
0x2770   : > { %v4478_v61 = vmul.f32 %v5850_v18, %v4476_v4  ;;  %vm4484_vm14 = vweird.f32 %v5850_v18 }
0x2771   : > { %vm4485_vm6 = vmor %vm4483_vm5, %vm4484_vm14 }
0x2772   : > { %v4479_v62 = vmul.f32 %v5850_v18, %v4478_v61 }
0x2774   : > { %v4480_v5 = vmul.f32 0.5, %v4479_v62 }
0x2776   : > { %v4481_v63 = vsub.f32 1.5, %v4480_v5 }
0x2778   : > { %v4482_v0 = vmul.f32 %v5850_v18, %v4481_v63 }
0x277a   : > { %v4486_v3 = vsel %vm4485_vm6, %v5850_v18, %v4482_v0 }
0x277b   : > { %v4487_v40 = vmul.f32 %v4486_v3, %v4470_v56 }
0x277c   : > { %v5655_v6 = vpop.permute.xlu1 %5654 }
0x277d   : > { %v4491_v7 = vmul.f32 %v5696_v2, %v4487_v40  ;;  %v5656_v8 = vunpack.i.l.bf16 %v5655_v6  ;;  %v5657_v48 = vunpack.i.h.bf16 %v5655_v6 }
0x277f   : > { %v6862_v12 = vadd.f32 %v5697_v39, %v4491_v7  ;;  %4567 = vmatpush.msrb.mxu2 %v5656_v8 }
0x2781   : > { %5538 = vmatmul.msk.f32.vlgmr.msra.gmra.mxu3 %vm1032_vm0, %v6862_v12  ;;  %4568 = vmatpush.msrb.mxu2 %v5657_v48  ;;  %v5534_v48 = vld [vmem:[%s7101_s13 + $0x28] sm:$0xff] }
0x2782   : > { %4795 = vmatpush.msra.mxu3 %v5534_v48 }
0x2783   : > { %4569 = vmatpush.msrb.mxu2 %v5661_v13 }
0x2785   : > { %4570 = vmatpush.msrb.mxu2 %v5662_v15 }
0x2786   : > { %5539 = vmatmul.msk.f32.vlgmr.msrb.gmra.mxu2 %vm1032_vm0, %v6652_v19 }
0x278e   : > { %5540 = vmatmul.msk.f32.gmra.mxu2 %vm1032_vm0, %v6656_v22 }
0x2804   : > { %v4533_v19 = vpop.f32.mrf.mxu3 }
0x2805   : > { %v4534_v22 = vadd.f32 %v5698_v59, %v4533_v19 }
0x2809   : > { %v4572_v20 = vpop.f32.mrf.mxu2 }
0x280a   : > { %v6870_v58 = vadd.f32 %v4572_v20, %v4553_v17 }
0x280c   : > { %4692 = vrot.lane.b32.xlu2 %v6870_v58, %s7097_s3 }
0x2811   : > { %v4575_v23 = vpop.f32.mrf.mxu2 }
0x2812   : > { %v6874_v21 = vadd.f32 %v4575_v23, %v4553_v17 }
0x2814   : > { %4694 = vrot.lane.b32.xlu0 %v6874_v21, %s7097_s3  ;;  %5541 = vmatpush.xpose.msk.msrb.mxu0 %vm1072_vm1, %v6874_v21 }
0x2818   : > { %5542 = vmatpush.xpose.msk.msrb.mxu0 %vm1072_vm1, %v6870_v58 }
0x281b   : > { %5543 = vmatmul.msk.f32.vlgmr.msrb.gmra.mxu0 %vm1072_vm1, %v4534_v22 }
0x281c   : > { %4690 = vrot.lane.b32.xlu0 %v4534_v22, %s7097_s3 }
0x2866   : > { %v4693_v38 = vpop.permute.xlu2 %4692 }
0x2886   : > { %v4695_v24 = vpop.permute.xlu0 %4694 }
0x2887   : > { %5547 = vmatpush.xpose.msk.msra.mxu0 %vm1072_vm1, %v4695_v24 }
0x288b   : > { %5548 = vmatpush.xpose.msk.msra.mxu0 %vm1072_vm1, %v4693_v38  ;;  %v5699_v38 = vld [vmem:[%s7104_s17 + $0x1] ss:$0 sm:$0xff] }
0x288e   : > { %v4691_v28 = vpop.permute.xlu0 %4690 }
0x288f   : > { %5549 = vmatmul.msk.f32.vlgmr.msra.gmra.mxu0 %vm1072_vm1, %v4691_v28 }
0x2898   : > { %v4608_v9 = vpop.f32.mrf.mxu0 }
0x2899   : > { %v4611_v25 = vmul.f32 0.35355338, %v4608_v9 }
0x289b   : > { %v4612_v42 = vsel %vm1111_vm3, %v4611_v25, -inf }
0x289c   : > { %4613 = vmax.xlane.f32.xlu2 %v4612_v42 }
0x290c   : > { %v4719_v27 = vpop.f32.mrf.mxu0 }
0x290d   : > { %v4722_v26 = vmul.f32 0.35355338, %v4719_v27 }
0x290f   : > { %v4614_v30 = vpop.xlane.xlu2 %4613  ;;  %v4723_v32 = vsel %vm1111_vm3, %v4722_v26, -inf }
0x2910   : > { %v4615_v34 = vsub.f32 %v4611_v25, %v4614_v30  ;;  %4724 = vmax.xlane.f32.xlu1 %v4723_v32 }
0x2912   : > { %v4616_v35 = vmul.f32 1.442695, %v4615_v34 }
0x2914   : > { %5851 = vpow2.f32 %v4616_v35 }
0x291a   : > { %v5852_v36 = vpop.eup %5851 }
0x291b   : > { %v4618_v29 = vsel %vm1111_vm3, %v5852_v36, 0.0 }
0x291c   : > { %4619 = vadd.xlane.f32.xlu0 %v4618_v29 }
0x2929   : > { %4638 = vrot.lane.b32.xlu1 %v6874_v21, %s7098_s5 }
0x2930   : > { %4749 = vrot.lane.b32.xlu0 %v6874_v21, %s7099_s8 }
0x2931   : > { %4916 = vrot.lane.b32.xlu1 %v6874_v21, %s7100_s9 }
0x2938   : > { %4747 = vrot.lane.b32.xlu0 %v6870_v58, %s7099_s8 }
0x2939   : > { %4912 = vrot.lane.b32.xlu1 %v4534_v22, %s7100_s9 }
0x2940   : > { %4914 = vrot.lane.b32.xlu0 %v6870_v58, %s7100_s9 }
0x2948   : > { %4801 = vrot.lane.b32.xlu0 %v4534_v22, %s7090_s11 }
0x2983   : > { %v4725_v14 = vpop.xlane.xlu1 %4724 }
0x2984   : > { %v4726_v37 = vsub.f32 %v4722_v26, %v4725_v14 }
0x2986   : > { %v4727_v31 = vmul.f32 1.442695, %v4726_v37 }
0x2988   : > { %5853 = vpow2.f32 %v4727_v31 }
0x298e   : > { %v5854_v49 = vpop.eup %5853 }
0x298f   : > { %v4729_v51 = vsel %vm1111_vm3, %v5854_v49, 0.0  ;;  %v4620_v43 = vpop.xlane.xlu0 %4619 }
0x2990   : > { %4730 = vadd.xlane.f32.xlu2 %v4729_v51  ;;  %5855 = vrcp.f32 %v4620_v43  ;;  %v4632_v52 = vand.u32 2147483648, %v4620_v43  ;;  %vm4626_vm7 = vweird.f32 %v4620_v43  ;;  %v4630_v54 = vand.u32 2147483647, %v4620_v43 }
0x2992   : > { %v4633_v11 = vor.u32 1.1754944e-38, %v4632_v52  ;;  %vm4631_vm9 = vcmp.eq.f32.partialorder %v4630_v54, 8.507059e+37 }
0x2996   : > { %v5856_v41 = vpop.eup %5855 }
0x2997   : > { %v4622_v44 = vmul.f32 %v5856_v41, %v4620_v43  ;;  %vm4627_vm4 = vweird.f32 %v5856_v41 }
0x2998   : > { %vm4628_vm8 = vmor %vm4626_vm7, %vm4627_vm4 }
0x2999   : > { %v4623_v55 = vsub.f32 1.0, %v4622_v44 }
0x299b   : > { %v4639_v53 = vpop.permute.xlu1 %4638  ;;  %v4624_v33 = vmul.f32 %v5856_v41, %v4623_v55 }
0x299c   : > { %5544 = vmatpush.msk.msrb.mxu1 %vm1172_vm2, %v4639_v53 }
0x299d   : > { %v4625_v50 = vadd.f32 %v5856_v41, %v4624_v33 }
0x299f   : > { %v4629_v45 = vsel %vm4628_vm8, %v5856_v41, %v4625_v50 }
0x29a0   : > { %v4634_v16 = vsel %vm4631_vm9, %v4633_v11, %v4629_v45 }
0x29a1   : > { %v4635_v4 = vmul.f32 %v5852_v36, %v4634_v16  ;;  %v5535_v16 = vld [vmem:[%s7101_s13 + $0x30] sm:$0xff] }
0x29a2   : > { %v4750_v47 = vpop.permute.xlu0 %4749 }
0x29a3   : > { %v4917_v15 = vpop.permute.xlu1 %4916 }
0x29a8   : > { %4636 = vrot.lane.b32.xlu2 %v6870_v58, %s7098_s5  ;;  %s7112_s5 = sshll.u32 %s7114_s1, 3 }
0x29a9   : > { %s1015_s9 = scalar_lea.vmem %s6095_s27, %s7112_s5 }
0x29aa   : > { %v4748_v1 = vpop.permute.xlu0 %4747 }
0x29ab   : > { %v4913_v20 = vpop.permute.xlu1 %4912 }
0x29b0   : > { %4805 = vrot.lane.b32.xlu2 %v6874_v21, %s7090_s11 }
0x29b2   : > { %v4915_v40 = vpop.permute.xlu0 %4914 }
0x29b8   : > { %4803 = vrot.lane.b32.xlu2 %v6870_v58, %s7090_s11 }
0x29ba   : > { %v4802_v8 = vpop.permute.xlu0 %4801 }
0x2a03   : > { %v4731_v56 = vpop.xlane.xlu2 %4730 }
0x2a04   : > { %5857 = vrcp.f32 %v4731_v56  ;;  %v4743_v62 = vand.u32 2147483648, %v4731_v56  ;;  %v4741_v63 = vand.u32 2147483647, %v4731_v56  ;;  %vm4737_vm15 = vweird.f32 %v4731_v56 }
0x2a06   : > { %v4744_v2 = vor.u32 1.1754944e-38, %v4743_v62  ;;  %vm4742_vm13 = vcmp.eq.f32.partialorder %v4741_v63, 8.507059e+37 }
0x2a0a   : > { %v5858_v57 = vpop.eup %5857 }
0x2a0b   : > { %v4733_v59 = vmul.f32 %v5858_v57, %v4731_v56  ;;  %v4637_v18 = vpop.permute.xlu2 %4636  ;;  %vm4738_vm10 = vweird.f32 %v5858_v57 }
0x2a0c   : > { %4661 = vmatpush.msrb.mxu1 %v4637_v18  ;;  %vm4739_vm11 = vmor %vm4737_vm15, %vm4738_vm10 }
0x2a0d   : > { %v4734_v61 = vsub.f32 1.0, %v4733_v59  ;;  %5545 = vmatmul.msk.f32.vlgmr.msrb.gmra.mxu1 %vm1111_vm3, %v4635_v4 }
0x2a0e   : > { %5550 = vmatpush.msk.msra.mxu1 %vm1172_vm2, %v4750_v47 }
0x2a0f   : > { %v4735_v5 = vmul.f32 %v5858_v57, %v4734_v61 }
0x2a10   : > { %4772 = vmatpush.msra.mxu1 %v4748_v1 }
0x2a11   : > { %v4736_v0 = vadd.f32 %v5858_v57, %v4735_v5 }
0x2a12   : > { %4906 = vmatpush.msrb.mxu1 %v5535_v16 }
0x2a13   : > { %v4740_v3 = vsel %vm4739_vm11, %v5858_v57, %v4736_v0  ;;  %v4806_v39 = vpop.permute.xlu2 %4805 }
0x2a14   : > { %v4745_v6 = vsel %vm4742_vm13, %v4744_v2, %v4740_v3  ;;  %5553 = vmatpush.xpose.msk.msra.mxu2 %vm1072_vm1, %v4806_v39  ;;  %v5536_v39 = vld [vmem:[%s7101_s13 + $0x38] sm:$0xff] }
0x2a15   : > { %v4746_v10 = vmul.f32 %v5854_v49, %v4745_v6 }
0x2a17   : > { %5551 = vmatmul.msk.f32.vlgmr.msra.gmra.mxu1 %vm1111_vm3, %v4746_v10 }
0x2a1b   : > { %v4804_v7 = vpop.permute.xlu2 %4803 }
0x2a1c   : > { %5554 = vmatpush.xpose.msk.msra.mxu2 %vm1072_vm1, %v4804_v7 }
0x2a1f   : > { %5555 = vmatmul.msk.f32.vlgmr.msra.gmra.mxu2 %vm1072_vm1, %v4802_v8 }
0x2a8a   : > { %v4663_v13 = vpop.f32.mrf.mxu1 }
0x2a8b   : > { %5546 = vmatmul.msk.f32.vlgmr.msrb.gmra.mxu3 %vm1072_vm1, %v4663_v13 }
0x2a8c   : > { %5559 = vmatpush.xpose.msk.msrb.mxu3 %vm1072_vm1, %v4917_v15 }
0x2a90   : > { %5560 = vmatpush.xpose.msk.msrb.mxu3 %vm1072_vm1, %v4915_v40 }
0x2a94   : > { %v4774_v17 = vpop.f32.mrf.mxu1 }
0x2a95   : > { %5552 = vmatmul.msk.f32.vlgmr.msra.gmra.mxu3 %vm1072_vm1, %v4774_v17 }
0x2a9d   : > { %5561 = vmatmul.msk.f32.vlgmr.msrb.gmra.mxu3 %vm1072_vm1, %v4913_v20 }
0x2aa2   : > { %v4830_v23 = vpop.f32.mrf.mxu2 }
0x2aa3   : > { %v4833_v19 = vmul.f32 0.35355338, %v4830_v23 }
0x2aa5   : > { %v4834_v22 = vsel %vm1111_vm3, %v4833_v19, -inf }
0x2aa6   : > { %4835 = vmax.xlane.f32.xlu2 %v4834_v22  ;;  %v5570_v22 = vld [vmem:[%s7105_s19 + $0x38] sm:$0xff] }
0x2aa7   : > { %5093 = vmatpush.msra.mxu1 %v5570_v22  ;;  %v5196_v22 = vld [vmem:[%s6085_s12 + $0x10] sm:$0xff] }
0x2abe   : > { %4971 = vrot.lane.b32.xlu2 %v6874_v21, %s7103_s16 }
0x2ac6   : > { %4858 = vrot.lane.b32.xlu2 %v6870_v58, %s7102_s14 }
0x2b0e   : > { %v4686_v24 = vpop.f32.mrf.mxu3 }
0x2b0f   : > { %v4689_v28 = vadd.f32 %v5699_v38, %v4686_v24  ;;  %v5569_v24 = vld [vmem:[%s7105_s19 + $0x30] sm:$0xff]  ;;  %v5567_v38 = vld [vmem:[%s7105_s19 + $0x20] sm:$0xff] }
0x2b10   : > { %5094 = vmatpush.msra.mxu1 %v5569_v24  ;;  %v5195_v24 = vld [vmem:[%s6085_s12 + $0x8] sm:$0xff] }
0x2b18   : > { %v4797_v9 = vpop.f32.mrf.mxu3 }
0x2b19   : > { %v6929_v25 = vadd.f32 %v4797_v9, %v4689_v28  ;;  %v4836_v42 = vpop.xlane.xlu2 %4835  ;;  %v5579_v28 = vld [vmem:[%s7106_s21 + $0x78] sm:$0xff]  ;;  %v5578_v9 = vld [vmem:[%s7106_s21 + $0x70] sm:$0xff] }
0x2b1a   : > { %v4837_v27 = vsub.f32 %v4833_v19, %v4836_v42  ;;  %5116 = vmatpush.msra.mxu3 %v5579_v28 }
0x2b1c   : > { %v4838_v26 = vmul.f32 1.442695, %v4837_v27  ;;  %5117 = vmatpush.msra.mxu3 %v5578_v9 }
0x2b1e   : > { %5859 = vpow2.f32 %v4838_v26  ;;  %v5576_v26 = vld [vmem:[%s7106_s21 + $0x60] sm:$0xff] }
0x2b20   : > { %v4941_v30 = vpop.f32.mrf.mxu3 }
0x2b21   : > { %v4944_v32 = vmul.f32 0.35355338, %v4941_v30  ;;  %v4972_v34 = vpop.permute.xlu2 %4971 }
0x2b22   : > { %5562 = vmatpush.msk.msrb.mxu2 %vm1172_vm2, %v4972_v34 }
0x2b23   : > { %v4945_v35 = vsel %vm1111_vm3, %v4944_v32, -inf }
0x2b24   : > { %4946 = vmax.xlane.f32.xlu1 %v4945_v35  ;;  %v5860_v36 = vpop.eup %5859 }
0x2b25   : > { %v4840_v29 = vsel %vm1111_vm3, %v5860_v36, 0.0 }
0x2b29   : > { %v4859_v56 = vpop.permute.xlu2 %4858 }
0x2b2c   : > { %4841 = vadd.xlane.f32.xlu1 %v4840_v29 }
0x2b45   : > { %4860 = vrot.lane.b32.xlu1 %v6874_v21, %s7102_s14 }
0x2b97   : > { %v4947_v14 = vpop.xlane.xlu1 %4946 }
0x2b98   : > { %v4948_v37 = vsub.f32 %v4944_v32, %v4947_v14  ;;  %v5575_v32 = vld [vmem:[%s7106_s21 + $0x58] sm:$0xff] }
0x2b9a   : > { %v4949_v31 = vmul.f32 1.442695, %v4948_v37 }
0x2b9c   : > { %5861 = vpow2.f32 %v4949_v31  ;;  %v5700_v31 = vld [vmem:[%s7107_s24 + $0x2] ss:$0 sm:$0xff] }
0x2b9f   : > { %v4842_v49 = vpop.xlane.xlu1 %4841 }
0x2ba0   : > { %5863 = vrcp.f32 %v4842_v49  ;;  %v4854_v46 = vand.u32 2147483648, %v4842_v49  ;;  %vm4848_vm5 = vweird.f32 %v4842_v49  ;;  %v4852_v21 = vand.u32 2147483647, %v4842_v49 }
0x2ba2   : > { %v5862_v51 = vpop.eup %5861  ;;  %v4855_v50 = vor.u32 1.1754944e-38, %v4854_v46  ;;  %vm4853_vm4 = vcmp.eq.f32.partialorder %v4852_v21, 8.507059e+37  ;;  %v5702_v46 = vld [vmem:[%s7108_s25 + $0x1] ss:$0 sm:$0xff] }
0x2ba3   : > { %v4951_v53 = vsel %vm1111_vm3, %v5862_v51, 0.0 }
0x2ba4   : > { %4952 = vadd.xlane.f32.xlu0 %v4951_v53 }
0x2ba6   : > { %v5864_v43 = vpop.eup %5863 }
0x2ba7   : > { %v4844_v41 = vmul.f32 %v5864_v43, %v4842_v49  ;;  %vm4849_vm14 = vweird.f32 %v5864_v43 }
0x2ba8   : > { %vm4850_vm6 = vmor %vm4848_vm5, %vm4849_vm14 }
0x2ba9   : > { %v4845_v44 = vsub.f32 1.0, %v4844_v41 }
0x2bab   : > { %v4846_v55 = vmul.f32 %v5864_v43, %v4845_v44  ;;  %v5574_v44 = vld [vmem:[%s7106_s21 + $0x50] sm:$0xff] }
0x2bad   : > { %v4847_v33 = vadd.f32 %v5864_v43, %v4846_v55  ;;  %v5573_v55 = vld [vmem:[%s7106_s21 + $0x48] sm:$0xff] }
0x2baf   : > { %v4851_v47 = vsel %vm4850_vm6, %v5864_v43, %v4847_v33  ;;  %v5572_v33 = vld [vmem:[%s7106_s21 + $0x40] sm:$0xff] }
0x2bb0   : > { %v4856_v52 = vsel %vm4853_vm4, %v4855_v50, %v4851_v47 }
0x2bb1   : > { %v4857_v45 = vmul.f32 %v5860_v36, %v4856_v52  ;;  %v5703_v52 = vld [vmem:[%s7109_s29 + $0x1] ss:$0 sm:$0xff] }
0x2bb7   : > { %v4861_v54 = vpop.permute.xlu1 %4860 }
0x2bb8   : > { %4969 = vrot.lane.b32.xlu0 %v6870_v58, %s7103_s16  ;;  %5556 = vmatpush.msk.msrb.mxu0 %vm1172_vm2, %v4861_v54 }
0x2bba   : > { %4883 = vmatpush.msrb.mxu0 %v4859_v56 }
0x2bbb   : > { %5557 = vmatmul.msk.f32.vlgmr.msrb.gmra.mxu0 %vm1111_vm3, %v4857_v45 }
0x2bbc   : > { %5017 = vmatpush.msra.mxu0 %v5536_v39  ;;  %v5704_v39 = vld [vmem:[%s7110_s30 + $0x2] ss:$0 sm:$0xff] }
0x2c17   : > { %v4953_v11 = vpop.xlane.xlu0 %4952 }
0x2c18   : > { %5865 = vrcp.f32 %v4953_v11  ;;  %v4965_v59 = vand.u32 2147483648, %v4953_v11  ;;  %v4963_v61 = vand.u32 2147483647, %v4953_v11  ;;  %vm4959_vm8 = vweird.f32 %v4953_v11 }
0x2c1a   : > { %v4966_v62 = vor.u32 1.1754944e-38, %v4965_v59  ;;  %vm4964_vm9 = vcmp.eq.f32.partialorder %v4963_v61, 8.507059e+37 }
0x2c1e   : > { %v5866_v57 = vpop.eup %5865 }
0x2c1f   : > { %v4955_v1 = vmul.f32 %v5866_v57, %v4953_v11  ;;  %vm4960_vm7 = vweird.f32 %v5866_v57 }
0x2c20   : > { %vm4961_vm2 = vmor %vm4959_vm8, %vm4960_vm7 }
0x2c21   : > { %v4956_v4 = vsub.f32 1.0, %v4955_v1 }
0x2c23   : > { %v4957_v18 = vmul.f32 %v5866_v57, %v4956_v4 }
0x2c25   : > { %v4958_v58 = vadd.f32 %v5866_v57, %v4957_v18 }
0x2c27   : > { %v4962_v5 = vsel %vm4961_vm2, %v5866_v57, %v4958_v58 }
0x2c28   : > { %v4967_v63 = vsel %vm4964_vm9, %v4966_v62, %v4962_v5 }
0x2c29   : > { %v4968_v0 = vmul.f32 %v5862_v51, %v4967_v63  ;;  %v5701_v51 = vld [vmem:[%s7107_s24 + $0x3] ss:$0 sm:$0xff] }
0x2c2a   : > { %v4970_v2 = vpop.permute.xlu0 %4969 }
0x2c2b   : > { %4994 = vmatpush.msrb.mxu2 %v4970_v2 }
0x2c2c   : > { %5563 = vmatmul.msk.f32.vlgmr.msrb.gmra.mxu2 %vm1111_vm3, %v4968_v0 }
0x2c38   : > { %v4885_v3 = vpop.f32.mrf.mxu0 }
0x2c39   : > { %5558 = vmatmul.msk.f32.vlgmr.msrb.gmra.mxu1 %vm1072_vm1, %v4885_v3 }
0x2caf   : > { %v4996_v40 = vpop.f32.mrf.mxu2 }
0x2cb0   : > { %5564 = vmatmul.msk.f32.vlgmr.msra.gmra.mxu0 %vm1072_vm1, %v4996_v40 }
0x2cb6   : > { %v4908_v6 = vpop.f32.mrf.mxu1 }
0x2cb7   : > { %v4911_v10 = vadd.f32 %v4908_v6, %v6929_v25  ;;  %v5577_v25 = vld [vmem:[%s7106_s21 + $0x68] sm:$0xff] }
0x2cb8   : > { %5118 = vmatpush.msra.mxu3 %v5577_v25 }
0x2cba   : > { %5119 = vmatpush.msra.mxu3 %v5576_v26 }
0x2cbc   : > { %5120 = vmatpush.msra.mxu3 %v5575_v32 }
0x2cbe   : > { %5121 = vmatpush.msra.mxu3 %v5574_v44 }
0x2cc0   : > { %5122 = vmatpush.msra.mxu3 %v5573_v55 }
0x2cc2   : > { %5123 = vmatpush.msra.mxu3 %v5572_v33 }
0x2d2d   : > { %v5019_v7 = vpop.f32.mrf.mxu0 }
0x2d2e   : > { %v5022_v8 = vadd.f32 %v5019_v7, %v4911_v10  ;;  %v5705_v10 = vld [vmem:[%s7110_s30 + $0x3] ss:$0 sm:$0xff] }
0x2d30   : > { %v5026_v48 = vadd.f32 %v5022_v8, %v6862_v12  ;;  %v5568_v12 = vld [vmem:[%s7105_s19 + $0x28] sm:$0xff] }
0x2d31   : > { %5095 = vmatpush.msra.mxu1 %v5568_v12  ;;  %v5194_v12 = vld [vmem:[%s6085_s12] sm:$0xff] }
0x2d32   : > { %v5027_v13 = vsel %vm1032_vm0, %v5026_v48, 0.0 }
0x2d33   : > { %5028 = vadd.xlane.f32.xlu0 %v5027_v13  ;;  %5096 = vmatpush.msra.mxu1 %v5567_v38 }
0x2da6   : > { %v5029_v15 = vpop.xlane.xlu0 %5028 }
0x2da7   : > { %v5030_v17 = vmul.f32 %v5029_v15, %v6276_v60 }
0x2da9   : > { %v5031_v20 = vsub.f32 %v5026_v48, %v5030_v17 }
0x2dab   : > { %v5032_v23 = vmul.f32 %v5031_v20, %v5031_v20 }
0x2dad   : > { %v5033_v19 = vsel %vm1032_vm0, %v5032_v23, 0.0 }
0x2dae   : > { %5034 = vadd.xlane.f32.xlu2 %v5033_v19  ;;  %v5197_v19 = vld [vmem:[%s6085_s12 + $0x18] sm:$0xff] }
0x2daf   : > { %5217 = vmatpush.msra.mxu2 %v5197_v19 }
0x2db1   : > { %5218 = vmatpush.msra.mxu2 %v5196_v22 }
0x2db3   : > { %5219 = vmatpush.msra.mxu2 %v5195_v24 }
0x2db5   : > { %5220 = vmatpush.msra.mxu2 %v5194_v12 }
0x2e21   : > { %v5035_v42 = vpop.xlane.xlu2 %5034 }
0x2e22   : > { %v5036_v27 = vmul.f32 %v5035_v42, %v6276_v60 }
0x2e24   : > { %v5037_v30 = vadd.f32 1e-05, %v5036_v27 }
0x2e26   : > { %5867 = vrsqrt.f32 %v5037_v30  ;;  %vm5044_vm3 = vweird.f32 %v5037_v30 }
0x2e2c   : > { %v5868_v34 = vpop.eup %5867 }
0x2e2d   : > { %v5039_v35 = vmul.f32 %v5868_v34, %v5037_v30  ;;  %vm5045_vm1 = vweird.f32 %v5868_v34 }
0x2e2e   : > { %vm5046_vm10 = vmor %vm5044_vm3, %vm5045_vm1 }
0x2e2f   : > { %v5040_v36 = vmul.f32 %v5868_v34, %v5039_v35 }
0x2e31   : > { %v5041_v29 = vmul.f32 0.5, %v5040_v36  ;;  %v5707_v36 = vld [vmem:[%s6080_s4 + $0x1] ss:$0 sm:$0xff] }
0x2e33   : > { %v5042_v14 = vsub.f32 1.5, %v5041_v29 }
0x2e35   : > { %v5043_v37 = vmul.f32 %v5868_v34, %v5042_v14 }
0x2e37   : > { %v5047_v49 = vsel %vm5046_vm10, %v5868_v34, %v5043_v37  ;;  %v5706_v34 = vld [vmem:[%s6080_s4] ss:$0 sm:$0xff] }
0x2e38   : > { %v5048_v53 = vmul.f32 %v5047_v49, %v5031_v20  ;;  %v5708_v37 = vld [vmem:[%s6090_s20] ss:$0 sm:$0xff] }
0x2e3a   : > { %v5052_v43 = vmul.f32 %v5700_v31, %v5048_v53 }
0x2e3c   : > { %v5056_v41 = vadd.f32 %v5701_v51, %v5052_v43 }
0x2e3e   : > { %5581 = vmatmul.msk.f32.vlgmr.msra.gmra.mxu1 %vm1032_vm0, %v5056_v41 }
0x2ebb   : > { %v5098_v21 = vpop.f32.mrf.mxu1 }
0x2ebc   : > { %v5099_v47 = vadd.f32 %v5702_v46, %v5098_v21 }
0x2ebe   : > { %v5101_v50 = vmax.f32 %v5099_v47, 0.0 }
0x2ec0   : > { %5582 = vmatmul.msk.f32.vlgmr.msra.gmra.mxu3 %vm1820_vm12, %v5101_v50 }
0x2f43   : > { %v5125_v54 = vpop.f32.mrf.mxu3 }
0x2f44   : > { %v5126_v56 = vadd.f32 %v5703_v52, %v5125_v54 }
0x2f46   : > { %v5131_v45 = vadd.f32 %v5126_v56, %v5056_v41 }
0x2f48   : > { %v5132_v11 = vsel %vm1032_vm0, %v5131_v45, 0.0 }
0x2f49   : > { %5133 = vadd.xlane.f32.xlu1 %v5132_v11 }
0x2fbc   : > { %v5134_v16 = vpop.xlane.xlu1 %5133 }
0x2fbd   : > { %v5135_v57 = vmul.f32 %v5134_v16, %v6276_v60 }
0x2fbf   : > { %v5136_v1 = vsub.f32 %v5131_v45, %v5135_v57 }
0x2fc1   : > { %v5137_v4 = vmul.f32 %v5136_v1, %v5136_v1 }
0x2fc3   : > { %v5138_v59 = vsel %vm1032_vm0, %v5137_v4, 0.0 }
0x2fc4   : > { %5139 = vadd.xlane.f32.xlu0 %v5138_v59 }
0x3037   : > { %v5140_v18 = vpop.xlane.xlu0 %5139 }
0x3038   : > { %v5141_v61 = vmul.f32 %v5140_v18, %v6276_v60 }
0x303a   : > { %v5142_v58 = vadd.f32 1e-05, %v5141_v61 }
0x303c   : > { %5869 = vrsqrt.f32 %v5142_v58  ;;  %vm5149_vm15 = vweird.f32 %v5142_v58 }
0x3042   : > { %v5870_v62 = vpop.eup %5869 }
0x3043   : > { %v5144_v5 = vmul.f32 %v5870_v62, %v5142_v58  ;;  %vm5150_vm12 = vweird.f32 %v5870_v62 }
0x3044   : > { %vm5151_vm11 = vmor %vm5149_vm15, %vm5150_vm12 }
0x3045   : > { %v5145_v63 = vmul.f32 %v5870_v62, %v5144_v5 }
0x3047   : > { %v5146_v0 = vmul.f32 0.5, %v5145_v63 }
0x3049   : > { %v5147_v2 = vsub.f32 1.5, %v5146_v0 }
0x304b   : > { %v5148_v3 = vmul.f32 %v5870_v62, %v5147_v2 }
0x304d   : > { %v5152_v40 = vsel %vm5151_vm11, %v5870_v62, %v5148_v3 }
0x304e   : > { %v5153_v6 = vmul.f32 %v5152_v40, %v5136_v1 }
0x3050   : > { %v5157_v7 = vmul.f32 %v5704_v39, %v5153_v6 }
0x3052   : > { %v5161_v8 = vadd.f32 %v5705_v10, %v5157_v7 }
0x3054   : > { %v5164_v48 = vsel %vm1032_vm0, %v5161_v8, 0.0 }
0x3055   : > { %5165 = vadd.xlane.f32.xlu2 %v5164_v48 }
0x30c8   : > { %v5166_v13 = vpop.xlane.xlu2 %5165 }
0x30c9   : > { %v5167_v15 = vmul.f32 %v5166_v13, %v6276_v60 }
0x30cb   : > { %v5168_v17 = vsub.f32 %v5161_v8, %v5167_v15 }
0x30cd   : > { %v5169_v20 = vmul.f32 %v5168_v17, %v5168_v17 }
0x30cf   : > { %v5170_v23 = vsel %vm1032_vm0, %v5169_v20, 0.0 }
0x30d0   : > { %5171 = vadd.xlane.f32.xlu1 %v5170_v23 }
0x3143   : > { %v5172_v38 = vpop.xlane.xlu1 %5171 }
0x3144   : > { %v5173_v28 = vmul.f32 %v5172_v38, %v6276_v60 }
0x3146   : > { %v5174_v9 = vadd.f32 1e-05, %v5173_v28 }
0x3148   : > { %5871 = vrsqrt.f32 %v5174_v9  ;;  %vm5181_vm14 = vweird.f32 %v5174_v9 }
0x314e   : > { %v5872_v25 = vpop.eup %5871 }
0x314f   : > { %v5176_v42 = vmul.f32 %v5872_v25, %v5174_v9  ;;  %vm5182_vm13 = vweird.f32 %v5872_v25 }
0x3150   : > { %vm5183_vm5 = vmor %vm5181_vm14, %vm5182_vm13 }
0x3151   : > { %v5177_v27 = vmul.f32 %v5872_v25, %v5176_v42 }
0x3153   : > { %v5178_v26 = vmul.f32 0.5, %v5177_v27 }
0x3155   : > { %v5179_v30 = vsub.f32 1.5, %v5178_v26 }
0x3157   : > { %v5180_v32 = vmul.f32 %v5872_v25, %v5179_v30 }
0x3159   : > { %v5184_v35 = vsel %vm5183_vm5, %v5872_v25, %v5180_v32 }
0x315a   : > { %v5185_v29 = vmul.f32 %v5184_v35, %v5168_v17 }
0x315c   : > { %v5189_v14 = vmul.f32 %v5706_v34, %v5185_v29 }
0x315e   : > { %v5193_v60 = vadd.f32 %v5707_v36, %v5189_v14 }
0x3160   : > { %5585 = vmatmul.msk.f32.vlgmr.msra.gmra.mxu2 %vm1032_vm0, %v5193_v60 }
0x31e3   : > { %v5222_v31 = vpop.f32.mrf.mxu2 }
0x31e4   : > { %v5223_v49 = vadd.f32 %v5708_v37, %v5222_v31 }
0x31e6   : > { %5225 = vst [vmem:[%s1015_s9] sm:$0xff] %v5223_v49 }
0x31e7 PF: > { %s75_s28 = sadd.s32 1, %s5880_s28  }
0x31e8   : > { %p72_p4 = scmp.ge.s32.totalorder %s75_s28, 4  }
0x31ea   :  { %74 = sbr.rel (!%p72_p4) target bundleno = 69 (0x45), region = 241 }

</bundles_post_ra>
